<compile_context>
chip_gen: v5e
topology: v5e:2x2
jax: 0.10.0
libtpu: 0.0.40
codegen_flags: <defaults>
</compile_context>

<pallas_src>
import numpy as np
import jax
import jax.numpy as jnp
from jax import lax
from jax.experimental import pallas as pl
from jax.experimental.pallas import tpu as pltpu

JUMP = 0.0   # JumpReLU threshold (module default jump=0.0)
LANE = 128   # lane padding for channel / feature dims


def _jump_relu(x, jump=JUMP):
    # JumpReLU: pass x through where x > jump, else 0.
    return jnp.where(x > jump, x, jnp.zeros_like(x))


# ------------------------------ fused Pallas kernel -------------------------

def lenet_fused_kernel(p1_ref, w1_ref, b1_ref, w2_hbm, b2_ref,
                       fw1_hbm, fb1_ref, fw2_ref, fb2_ref, fw3_ref, fb3_ref,
                       o_ref,
                       h1_ref, p2_ref, f_ref, w2_ref, fw1_ref, dma_sem):
    """Whole LeNetLike forward in one kernel invocation.

    p1_ref : [4, B*12*16, 25]  conv1 im2col patches, one block per pool phase
                               (pooled 12x12 grid, W zero-padded to 16)
    w1_ref : [25, 128]         conv1 weight (out-ch padded to 128)
    b1_ref : [1, 128]          conv1 bias (padded)
    w2_hbm : [25*128, 128]     conv2 weight (HBM; rows = tap*128 + c_in)
    b2_ref : [1, 128]          conv2 bias (padded)
    fw1_hbm: [16*128, 128]     fc1 weight (HBM; rows in (y, x, c) block order)
    fw2/fw3: [128, 128]        fc2 / fc3 weights (padded)
    o_ref  : [B, 128]          padded logits (cols 10..127 are exactly zero)
    h1_ref : [B, 12, 16, 128]  VMEM scratch: conv1 pooled+activated output
    p2_ref : [B*64, 25*128]    VMEM scratch: conv2 im2col patch matrix
    f_ref  : [B, 16*128]       VMEM scratch: pooled+activated fc1 input
    w2_ref : [25*128, 128]     VMEM scratch: conv2 weight (DMA'd from HBM)
    fw1_ref: [16*128, 128]     VMEM scratch: fc1 weight (DMA'd from HBM)
    dma_sem: DMA semaphores (2,)
    """
    B = o_ref.shape[0]
    R1 = p1_ref.shape[1]              # B * 12 * 16
    K1 = p1_ref.shape[-1]             # 25
    C = LANE                          # padded channel / feature width

    # ---- kick off the big weight DMAs; they complete under conv1 + staging.
    w2_cp = pltpu.make_async_copy(w2_hbm, w2_ref, dma_sem.at[0])
    fw1_cp = pltpu.make_async_copy(fw1_hbm, fw1_ref, dma_sem.at[1])
    w2_cp.start()
    fw1_cp.start()

    # ---- conv1: one matmul over the 4 stacked pool phases, then phase-max,
    #      hoisted bias add, JumpReLU.
    p1 = p1_ref[...].reshape(4 * R1, K1)
    y1 = jnp.dot(p1, w1_ref[...], preferred_element_type=jnp.float32)   # [4*R1, C]
    h1 = jnp.maximum(jnp.maximum(y1[0 * R1:1 * R1], y1[1 * R1:2 * R1]),
                     jnp.maximum(y1[2 * R1:3 * R1], y1[3 * R1:4 * R1]))
    h1 = _jump_relu(h1 + b1_ref[...])                                   # [R1, C]
    h1_ref[...] = h1.reshape(B, 12, 16, C)            # NHWC, W padded 12 -> 16
    # (padded W columns 12..15 hold JumpReLU(b1); never read below: kw+w <= 11)

    # ---- conv2 im2col with the kw shift hoisted: 5 sublane-misaligned reads
    #      (one per kw) instead of 25, then 25 tile-aligned lane-block stores.
    for kw in range(5):
        hk = h1_ref[:, :, kw:kw + 8, :]                # [B, 12, 8, C]
        for kh in range(5):
            t = kh * 5 + kw
            p2_ref[:, t * C:(t + 1) * C] = hk[:, kh:kh + 8, :, :].reshape(B * 64, C)

    # ---- conv2: single K = 25*128 matmul (was 25 K=128 matmuls).
    w2_cp.wait()
    y2 = jnp.dot(p2_ref[...], w2_ref[...], preferred_element_type=jnp.float32)
    y2 = (y2 + b2_ref[...]).reshape(B, 8, 8, C)        # [B, 8, 8, C], value only

    # ---- 2x2 max-pool + JumpReLU, scattered into the lane-dense fc1 input
    #      layout (block s = y*4 + x, lanes = channel) matching fw1's rows.
    # TODO(synk): F.dropout(training=self.training) treated as identity (inference).
    for i in range(4):
        for j in range(4):
            p00 = y2[:, 2 * i, 2 * j, :]
            p01 = y2[:, 2 * i, 2 * j + 1, :]
            p10 = y2[:, 2 * i + 1, 2 * j, :]
            p11 = y2[:, 2 * i + 1, 2 * j + 1, :]
            h2s = _jump_relu(jnp.maximum(jnp.maximum(p00, p01),
                                         jnp.maximum(p10, p11)))        # [B, C]
            s = i * 4 + j
            f_ref[:, s * C:(s + 1) * C] = h2s

    # ---- fc1 as one K=2048 matmul, then fc2, fc3.
    fw1_cp.wait()
    h = _jump_relu(jnp.dot(f_ref[...], fw1_ref[...],
                           preferred_element_type=jnp.float32) + fb1_ref[...])
    h = _jump_relu(jnp.dot(h, fw2_ref[...], preferred_element_type=jnp.float32)
                   + fb2_ref[...])
    o_ref[...] = (jnp.dot(h, fw3_ref[...], preferred_element_type=jnp.float32)
                  + fb3_ref[...])


def lenet_fused(p1, w1p, b1p, w2mat, b2p, fw1p, fb1p, fw2p, fb2p, fw3p, fb3p):
    B = p1.shape[1] // (12 * 16)
    vmem = lambda: pl.BlockSpec(memory_space=pltpu.MemorySpace.VMEM)
    hbm = lambda: pl.BlockSpec(memory_space=pl.ANY)
    return pl.pallas_call(
        lenet_fused_kernel,
        out_shape=jax.ShapeDtypeStruct((B, LANE), jnp.float32),
        in_specs=[vmem(),          # p1
                  vmem(), vmem(),  # w1p, b1p
                  hbm(),  vmem(),  # w2mat (HBM, async-copied), b2p
                  hbm(),  vmem(),  # fw1p (HBM, async-copied), fb1p
                  vmem(), vmem(),  # fw2p, fb2p
                  vmem(), vmem()],  # fw3p, fb3p
        out_specs=vmem(),
        scratch_shapes=[
            pltpu.VMEM((B, 12, 16, LANE), jnp.float32),     # h1
            pltpu.VMEM((B * 64, 25 * LANE), jnp.float32),   # p2 (conv2 im2col)
            pltpu.VMEM((B, 16 * LANE), jnp.float32),        # fc1 input
            pltpu.VMEM((25 * LANE, LANE), jnp.float32),     # conv2 weight (VMEM copy)
            pltpu.VMEM((16 * LANE, LANE), jnp.float32),     # fc1 weight (VMEM copy)
            pltpu.SemaphoreType.DMA((2,)),
        ],
    )(p1, w1p, b1p, w2mat, b2p, fw1p, fb1p, fw2p, fb2p, fw3p, fb3p)


# --------------------------------- Glue --------------------------------------

def _conv1_pool_phase_patches(x):
    """x: [B, 28, 28] -> [4, B*12*16, 25] conv1 im2col patches.

    One leading block per 2x2 pool phase; rows ordered (batch, out_h, out_w)
    over the pooled 12x12 grid with out_w zero-padded to 16 so the kernel-side
    reshape into the (B, 12, 16, C) h1 scratch stays (8,128)-tile aligned.
    Columns ordered kh*5+kw (single input channel).
    """
    B = x.shape[0]
    cols = jnp.stack([x[:, ki:ki + 24, kj:kj + 24]
                      for ki in range(5) for kj in range(5)], axis=-1)   # [B,24,24,25]
    phases = []
    for di in (0, 1):
        for dj in (0, 1):
            sub = cols[:, di::2, dj::2, :]                               # [B,12,12,25]
            sub = jnp.pad(sub, ((0, 0), (0, 0), (0, 4), (0, 0)))         # [B,12,16,25]
            phases.append(sub.reshape(B * 12 * 16, 25))
    return jnp.stack(phases, axis=0)                                     # [4, B*192, 25]


def lenetlike_forward(x_nchw, params):
    x = x_nchw[:, 0]                                    # [B, 28, 28] (in_ch = 1)
    p1 = _conv1_pool_phase_patches(x)                   # [4, B*192, 25]
    logits_pad = lenet_fused(
        p1, params["w1p"], params["b1p"], params["w2mat"], params["b2p"],
        params["fw1p"], params["fb1p"], params["fw2p"], params["fb2p"],
        params["fw3p"], params["fb3p"])
    return logits_pad[:, :10]                           # drop zero lane padding


# --------------------------- deterministic params ----------------------------

def init_params(key):
    ks = jax.random.split(key, 10)

    def u(k, shape, fan_in):
        bound = 1.0 / float(np.sqrt(fan_in))
        return jax.random.uniform(k, shape, jnp.float32, -bound, bound)

    w1 = u(ks[0], (10, 1, 5, 5), 25)
    b1 = u(ks[1], (10,), 25)
    w2 = u(ks[2], (20, 10, 5, 5), 250)
    b2 = u(ks[3], (20,), 250)
    fw1 = u(ks[4], (320, 120), 320)
    fb1 = u(ks[5], (120,), 320)
    fw2 = u(ks[6], (120, 90), 120)
    fb2 = u(ks[7], (90,), 120)
    fw3 = u(ks[8], (90, 10), 90)
    fb3 = u(ks[9], (10,), 90)

    params = {"w1": w1, "b1": b1, "w2": w2, "b2": b2,
              "fw1": fw1, "fb1": fb1, "fw2": fw2, "fb2": fb2,
              "fw3": fw3, "fb3": fb3}

    # ---- padded / reordered kernel-side weights (built once at init) --------
    # conv1: (out, in*kh*kw) -> (25, 128), out-ch padded to a full lane tile.
    w1p = jnp.zeros((25, LANE), jnp.float32).at[:, :10].set(w1.reshape(10, 25).T)
    b1p = jnp.zeros((1, LANE), jnp.float32).at[0, :10].set(b1)

    # conv2 as a single [25*128, 128] matrix: row = (kh*5+kw)*128 + c_in.
    w2t = jnp.transpose(w2, (2, 3, 1, 0)).reshape(25, 10, 20)     # (tap, ci, co)
    w2mat = (jnp.zeros((25, LANE, LANE), jnp.float32)
             .at[:, :10, :20].set(w2t)
             .reshape(25 * LANE, LANE))
    b2p = jnp.zeros((1, LANE), jnp.float32).at[0, :20].set(b2)

    # fc1: rows reordered from PyTorch NCHW flatten (c, y, x) to the kernel's
    # NHWC-padded order ((y*4 + x)*128 + c), and zero-padded to lane multiples.
    fw1_nhwc = jnp.transpose(fw1.reshape(20, 4, 4, 120), (1, 2, 0, 3))   # (y,x,c,j)
    fw1p = jnp.zeros((4, 4, LANE, LANE), jnp.float32).at[:, :, :20, :120].set(fw1_nhwc)
    fw1p = fw1p.reshape(16 * LANE, LANE)
    fb1p = jnp.zeros((1, LANE), jnp.float32).at[0, :120].set(fb1)

    fw2p = jnp.zeros((LANE, LANE), jnp.float32).at[:120, :90].set(fw2)
    fb2p = jnp.zeros((1, LANE), jnp.float32).at[0, :90].set(fb2)
    fw3p = jnp.zeros((LANE, LANE), jnp.float32).at[:90, :10].set(fw3)
    fb3p = jnp.zeros((1, LANE), jnp.float32).at[0, :10].set(fb3)

    params.update(w1p=w1p, b1p=b1p, w2mat=w2mat, b2p=b2p,
                  fw1p=fw1p, fb1p=fb1p, fw2p=fw2p, fb2p=fb2p,
                  fw3p=fw3p, fb3p=fb3p)
    return params


# ------------------------------ pure-JAX reference ---------------------------

def reference_forward(x, params):
    def conv(xx, w, b):
        y = lax.conv_general_dilated(
            xx, w, (1, 1), "VALID", dimension_numbers=("NCHW", "OIHW", "NCHW"))
        return y + b.reshape(1, -1, 1, 1)

    def maxpool2(xx):
        return lax.reduce_window(xx, -jnp.inf, lax.max,
                                 (1, 1, 2, 2), (1, 1, 2, 2), "VALID")

    h = _jump_relu(maxpool2(conv(x, params["w1"], params["b1"])))
    h = _jump_relu(maxpool2(conv(h, params["w2"], params["b2"])))
    h = h.reshape(x.shape[0], 320)
    h = _jump_relu(h @ params["fw1"] + params["fb1"])
    h = _jump_relu(h @ params["fw2"] + params["fb2"])
    return h @ params["fw3"] + params["fb3"]


# ----------------------------------- main -------------------------------------

if __name__ == "__main__":
    key = jax.random.PRNGKey(0)
    kx, kp = jax.random.split(key)
    # MNIST-like input implied by the module (fc1 expects 20*4*4 = 320 features)
    x = jax.random.normal(kx, (2, 1, 28, 28), dtype=jnp.float32)
    params = init_params(kp)

    fwd = jax.jit(lenetlike_forward)
    out = jax.block_until_ready(fwd(x, params))

    ref = jax.block_until_ready(reference_forward(x, params))
    np.testing.assert_allclose(np.asarray(out), np.asarray(ref), rtol=1e-4, atol=1e-4)

    print("KERNEL_OK")
</pallas_src>

<mosaic_0001>
module attributes {stable_mosaic.version = 11 : i64} {
  func.func @lenet_fused_kernel(%arg0: memref<4x384x25xf32, #tpu.memory_space<vmem>>, %arg1: memref<25x128xf32, #tpu.memory_space<vmem>>, %arg2: memref<1x128xf32, #tpu.memory_space<vmem>>, %arg3: memref<3200x128xf32, #tpu.memory_space<any>>, %arg4: memref<1x128xf32, #tpu.memory_space<vmem>>, %arg5: memref<2048x128xf32, #tpu.memory_space<any>>, %arg6: memref<1x128xf32, #tpu.memory_space<vmem>>, %arg7: memref<128x128xf32, #tpu.memory_space<vmem>>, %arg8: memref<1x128xf32, #tpu.memory_space<vmem>>, %arg9: memref<128x128xf32, #tpu.memory_space<vmem>>, %arg10: memref<1x128xf32, #tpu.memory_space<vmem>>, %arg11: memref<2x128xf32, #tpu.memory_space<vmem>>, %arg12: memref<2x12x16x128xf32, #tpu.memory_space<vmem>>, %arg13: memref<128x3200xf32, #tpu.memory_space<vmem>>, %arg14: memref<2x2048xf32, #tpu.memory_space<vmem>>, %arg15: memref<3200x128xf32, #tpu.memory_space<vmem>>, %arg16: memref<2048x128xf32, #tpu.memory_space<vmem>>, %arg17: memref<2x!tpu.dma_semaphore, #tpu.memory_space<semaphore_mem>>) attributes {dimension_semantics = [], scalar_prefetch = 0 : i64, scratch_operands = 6 : i64, tpu.core_type = #tpu.core_type<tc>} {
    %c0_i32 = arith.constant 0 : i32
    %0 = tpu.memref_slice %arg17[%c0_i32] : memref<2x!tpu.dma_semaphore, #tpu.memory_space<semaphore_mem>> -> memref<1x!tpu.dma_semaphore, #tpu.memory_space<semaphore_mem>>
    %1 = tpu.memref_squeeze %0 : memref<1x!tpu.dma_semaphore, #tpu.memory_space<semaphore_mem>> -> memref<!tpu.dma_semaphore, #tpu.memory_space<semaphore_mem>>
    tpu.enqueue_dma source(%arg3 : memref<3200x128xf32, #tpu.memory_space<any>>) target(%arg15 : memref<3200x128xf32, #tpu.memory_space<vmem>>) target_semaphore(%1 : memref<!tpu.dma_semaphore, #tpu.memory_space<semaphore_mem>>)
    %c1_i32 = arith.constant 1 : i32
    %2 = tpu.memref_slice %arg17[%c1_i32] : memref<2x!tpu.dma_semaphore, #tpu.memory_space<semaphore_mem>> -> memref<1x!tpu.dma_semaphore, #tpu.memory_space<semaphore_mem>>
    %3 = tpu.memref_squeeze %2 : memref<1x!tpu.dma_semaphore, #tpu.memory_space<semaphore_mem>> -> memref<!tpu.dma_semaphore, #tpu.memory_space<semaphore_mem>>
    tpu.enqueue_dma source(%arg5 : memref<2048x128xf32, #tpu.memory_space<any>>) target(%arg16 : memref<2048x128xf32, #tpu.memory_space<vmem>>) target_semaphore(%3 : memref<!tpu.dma_semaphore, #tpu.memory_space<semaphore_mem>>)
    %c0 = arith.constant 0 : index
    %c0_0 = arith.constant 0 : index
    %c0_1 = arith.constant 0 : index
    %4 = vector.load %arg0[%c0, %c0_0, %c0_1] : memref<4x384x25xf32, #tpu.memory_space<vmem>>, vector<4x384x25xf32>
    %5 = vector.shape_cast %4 : vector<4x384x25xf32> to vector<1536x25xf32>
    %c0_2 = arith.constant 0 : index
    %c0_3 = arith.constant 0 : index
    %6 = vector.load %arg1[%c0_2, %c0_3] : memref<25x128xf32, #tpu.memory_space<vmem>>, vector<25x128xf32>
    %cst = arith.constant dense<0.000000e+00> : vector<1536x128xf32>
    %7 = tpu.matmul %5, %6, %cst {dimension_numbers = #tpu.dot_dimension_numbers<[1], [0], [0], [1], [0, 0, 1, 1], [], []>} : vector<1536x25xf32>, vector<25x128xf32>, vector<1536x128xf32> -> vector<1536x128xf32>
    %8 = vector.extract_strided_slice %7 {offsets = [0, 0], sizes = [384, 128], strides = [1, 1]} : vector<1536x128xf32> to vector<384x128xf32>
    %9 = vector.extract_strided_slice %7 {offsets = [384, 0], sizes = [384, 128], strides = [1, 1]} : vector<1536x128xf32> to vector<384x128xf32>
    %10 = arith.maximumf %8, %9 : vector<384x128xf32>
    %11 = vector.extract_strided_slice %7 {offsets = [768, 0], sizes = [384, 128], strides = [1, 1]} : vector<1536x128xf32> to vector<384x128xf32>
    %12 = vector.extract_strided_slice %7 {offsets = [1152, 0], sizes = [384, 128], strides = [1, 1]} : vector<1536x128xf32> to vector<384x128xf32>
    %13 = arith.maximumf %11, %12 : vector<384x128xf32>
    %14 = arith.maximumf %10, %13 : vector<384x128xf32>
    %c0_4 = arith.constant 0 : index
    %c0_5 = arith.constant 0 : index
    %15 = vector.load %arg2[%c0_4, %c0_5] : memref<1x128xf32, #tpu.memory_space<vmem>>, vector<1x128xf32>
    %16 = vector.broadcast %15 : vector<1x128xf32> to vector<384x128xf32>
    %17 = arith.addf %14, %16 : vector<384x128xf32>
    %cst_6 = arith.constant 0.000000e+00 : f32
    %18 = vector.broadcast %cst_6 : f32 to vector<384x128xf32>
    %19 = arith.cmpf ogt, %17, %18 : vector<384x128xf32>
    %cst_7 = arith.constant 0.000000e+00 : f32
    %20 = vector.broadcast %cst_7 : f32 to vector<384x128xf32>
    %21 = arith.select %19, %17, %20 : vector<384x128xi1>, vector<384x128xf32>
    %22 = vector.shape_cast %21 : vector<384x128xf32> to vector<2x12x16x128xf32>
    %c0_8 = arith.constant 0 : index
    %c0_9 = arith.constant 0 : index
    %c0_10 = arith.constant 0 : index
    %c0_11 = arith.constant 0 : index
    %23 = vector.load %arg12[%c0_8, %c0_9, %c0_10, %c0_11] : memref<2x12x16x128xf32, #tpu.memory_space<vmem>>, vector<2x12x16x128xf32>
    tpu.vector_store %arg12[%c0_8, %c0_9, %c0_10, %c0_11], %22 {strides = array<i32>} : memref<2x12x16x128xf32, #tpu.memory_space<vmem>>, vector<2x12x16x128xf32>,
    %c0_12 = arith.constant 0 : index
    %c0_13 = arith.constant 0 : index
    %c0_14 = arith.constant 0 : index
    %c0_15 = arith.constant 0 : index
    %24 = vector.load %arg12[%c0_12, %c0_13, %c0_14, %c0_15] : memref<2x12x16x128xf32, #tpu.memory_space<vmem>>, vector<2x12x8x128xf32>
    %25 = vector.extract_strided_slice %24 {offsets = [0, 0, 0, 0], sizes = [2, 8, 8, 128], strides = [1, 1, 1, 1]} : vector<2x12x8x128xf32> to vector<2x8x8x128xf32>
    %26 = vector.shape_cast %25 : vector<2x8x8x128xf32> to vector<128x128xf32>
    %c0_16 = arith.constant 0 : index
    %c0_17 = arith.constant 0 : index
    %27 = vector.load %arg13[%c0_16, %c0_17] : memref<128x3200xf32, #tpu.memory_space<vmem>>, vector<128x128xf32>
    tpu.vector_store %arg13[%c0_16, %c0_17], %26 {strides = array<i32>} : memref<128x3200xf32, #tpu.memory_space<vmem>>, vector<128x128xf32>,
    %28 = vector.extract_strided_slice %24 {offsets = [0, 1, 0, 0], sizes = [2, 8, 8, 128], strides = [1, 1, 1, 1]} : vector<2x12x8x128xf32> to vector<2x8x8x128xf32>
    %29 = vector.shape_cast %28 : vector<2x8x8x128xf32> to vector<128x128xf32>
    %c0_18 = arith.constant 0 : index
    %c640 = arith.constant 640 : index
    %30 = vector.load %arg13[%c0_18, %c640] : memref<128x3200xf32, #tpu.memory_space<vmem>>, vector<128x128xf32>
    tpu.vector_store %arg13[%c0_18, %c640], %29 {strides = array<i32>} : memref<128x3200xf32, #tpu.memory_space<vmem>>, vector<128x128xf32>,
    %31 = vector.extract_strided_slice %24 {offsets = [0, 2, 0, 0], sizes = [2, 8, 8, 128], strides = [1, 1, 1, 1]} : vector<2x12x8x128xf32> to vector<2x8x8x128xf32>
    %32 = vector.shape_cast %31 : vector<2x8x8x128xf32> to vector<128x128xf32>
    %c0_19 = arith.constant 0 : index
    %c1280 = arith.constant 1280 : index
    %33 = vector.load %arg13[%c0_19, %c1280] : memref<128x3200xf32, #tpu.memory_space<vmem>>, vector<128x128xf32>
    tpu.vector_store %arg13[%c0_19, %c1280], %32 {strides = array<i32>} : memref<128x3200xf32, #tpu.memory_space<vmem>>, vector<128x128xf32>,
    %34 = vector.extract_strided_slice %24 {offsets = [0, 3, 0, 0], sizes = [2, 8, 8, 128], strides = [1, 1, 1, 1]} : vector<2x12x8x128xf32> to vector<2x8x8x128xf32>
    %35 = vector.shape_cast %34 : vector<2x8x8x128xf32> to vector<128x128xf32>
    %c0_20 = arith.constant 0 : index
    %c1920 = arith.constant 1920 : index
    %36 = vector.load %arg13[%c0_20, %c1920] : memref<128x3200xf32, #tpu.memory_space<vmem>>, vector<128x128xf32>
    tpu.vector_store %arg13[%c0_20, %c1920], %35 {strides = array<i32>} : memref<128x3200xf32, #tpu.memory_space<vmem>>, vector<128x128xf32>,
    %37 = vector.extract_strided_slice %24 {offsets = [0, 4, 0, 0], sizes = [2, 8, 8, 128], strides = [1, 1, 1, 1]} : vector<2x12x8x128xf32> to vector<2x8x8x128xf32>
    %38 = vector.shape_cast %37 : vector<2x8x8x128xf32> to vector<128x128xf32>
    %c0_21 = arith.constant 0 : index
    %c2560 = arith.constant 2560 : index
    %39 = vector.load %arg13[%c0_21, %c2560] : memref<128x3200xf32, #tpu.memory_space<vmem>>, vector<128x128xf32>
    tpu.vector_store %arg13[%c0_21, %c2560], %38 {strides = array<i32>} : memref<128x3200xf32, #tpu.memory_space<vmem>>, vector<128x128xf32>,
    %c0_22 = arith.constant 0 : index
    %c0_23 = arith.constant 0 : index
    %c1 = arith.constant 1 : index
    %c0_24 = arith.constant 0 : index
    %40 = vector.load %arg12[%c0_22, %c0_23, %c1, %c0_24] : memref<2x12x16x128xf32, #tpu.memory_space<vmem>>, vector<2x12x8x128xf32>
    %41 = vector.extract_strided_slice %40 {offsets = [0, 0, 0, 0], sizes = [2, 8, 8, 128], strides = [1, 1, 1, 1]} : vector<2x12x8x128xf32> to vector<2x8x8x128xf32>
    %42 = vector.shape_cast %41 : vector<2x8x8x128xf32> to vector<128x128xf32>
    %c0_25 = arith.constant 0 : index
    %c128 = arith.constant 128 : index
    %43 = vector.load %arg13[%c0_25, %c128] : memref<128x3200xf32, #tpu.memory_space<vmem>>, vector<128x128xf32>
    tpu.vector_store %arg13[%c0_25, %c128], %42 {strides = array<i32>} : memref<128x3200xf32, #tpu.memory_space<vmem>>, vector<128x128xf32>,
    %44 = vector.extract_strided_slice %40 {offsets = [0, 1, 0, 0], sizes = [2, 8, 8, 128], strides = [1, 1, 1, 1]} : vector<2x12x8x128xf32> to vector<2x8x8x128xf32>
    %45 = vector.shape_cast %44 : vector<2x8x8x128xf32> to vector<128x128xf32>
    %c0_26 = arith.constant 0 : index
    %c768 = arith.constant 768 : index
    %46 = vector.load %arg13[%c0_26, %c768] : memref<128x3200xf32, #tpu.memory_space<vmem>>, vector<128x128xf32>
    tpu.vector_store %arg13[%c0_26, %c768], %45 {strides = array<i32>} : memref<128x3200xf32, #tpu.memory_space<vmem>>, vector<128x128xf32>,
    %47 = vector.extract_strided_slice %40 {offsets = [0, 2, 0, 0], sizes = [2, 8, 8, 128], strides = [1, 1, 1, 1]} : vector<2x12x8x128xf32> to vector<2x8x8x128xf32>
    %48 = vector.shape_cast %47 : vector<2x8x8x128xf32> to vector<128x128xf32>
    %c0_27 = arith.constant 0 : index
    %c1408 = arith.constant 1408 : index
    %49 = vector.load %arg13[%c0_27, %c1408] : memref<128x3200xf32, #tpu.memory_space<vmem>>, vector<128x128xf32>
    tpu.vector_store %arg13[%c0_27, %c1408], %48 {strides = array<i32>} : memref<128x3200xf32, #tpu.memory_space<vmem>>, vector<128x128xf32>,
    %50 = vector.extract_strided_slice %40 {offsets = [0, 3, 0, 0], sizes = [2, 8, 8, 128], strides = [1, 1, 1, 1]} : vector<2x12x8x128xf32> to vector<2x8x8x128xf32>
    %51 = vector.shape_cast %50 : vector<2x8x8x128xf32> to vector<128x128xf32>
    %c0_28 = arith.constant 0 : index
    %c2048 = arith.constant 2048 : index
    %52 = vector.load %arg13[%c0_28, %c2048] : memref<128x3200xf32, #tpu.memory_space<vmem>>, vector<128x128xf32>
    tpu.vector_store %arg13[%c0_28, %c2048], %51 {strides = array<i32>} : memref<128x3200xf32, #tpu.memory_space<vmem>>, vector<128x128xf32>,
    %53 = vector.extract_strided_slice %40 {offsets = [0, 4, 0, 0], sizes = [2, 8, 8, 128], strides = [1, 1, 1, 1]} : vector<2x12x8x128xf32> to vector<2x8x8x128xf32>
    %54 = vector.shape_cast %53 : vector<2x8x8x128xf32> to vector<128x128xf32>
    %c0_29 = arith.constant 0 : index
    %c2688 = arith.constant 2688 : index
    %55 = vector.load %arg13[%c0_29, %c2688] : memref<128x3200xf32, #tpu.memory_space<vmem>>, vector<128x128xf32>
    tpu.vector_store %arg13[%c0_29, %c2688], %54 {strides = array<i32>} : memref<128x3200xf32, #tpu.memory_space<vmem>>, vector<128x128xf32>,
    %c0_30 = arith.constant 0 : index
    %c0_31 = arith.constant 0 : index
    %c2 = arith.constant 2 : index
    %c0_32 = arith.constant 0 : index
    %56 = vector.load %arg12[%c0_30, %c0_31, %c2, %c0_32] : memref<2x12x16x128xf32, #tpu.memory_space<vmem>>, vector<2x12x8x128xf32>
    %57 = vector.extract_strided_slice %56 {offsets = [0, 0, 0, 0], sizes = [2, 8, 8, 128], strides = [1, 1, 1, 1]} : vector<2x12x8x128xf32> to vector<2x8x8x128xf32>
    %58 = vector.shape_cast %57 : vector<2x8x8x128xf32> to vector<128x128xf32>
    %c0_33 = arith.constant 0 : index
    %c256 = arith.constant 256 : index
    %59 = vector.load %arg13[%c0_33, %c256] : memref<128x3200xf32, #tpu.memory_space<vmem>>, vector<128x128xf32>
    tpu.vector_store %arg13[%c0_33, %c256], %58 {strides = array<i32>} : memref<128x3200xf32, #tpu.memory_space<vmem>>, vector<128x128xf32>,
    %60 = vector.extract_strided_slice %56 {offsets = [0, 1, 0, 0], sizes = [2, 8, 8, 128], strides = [1, 1, 1, 1]} : vector<2x12x8x128xf32> to vector<2x8x8x128xf32>
    %61 = vector.shape_cast %60 : vector<2x8x8x128xf32> to vector<128x128xf32>
    %c0_34 = arith.constant 0 : index
    %c896 = arith.constant 896 : index
    %62 = vector.load %arg13[%c0_34, %c896] : memref<128x3200xf32, #tpu.memory_space<vmem>>, vector<128x128xf32>
    tpu.vector_store %arg13[%c0_34, %c896], %61 {strides = array<i32>} : memref<128x3200xf32, #tpu.memory_space<vmem>>, vector<128x128xf32>,
    %63 = vector.extract_strided_slice %56 {offsets = [0, 2, 0, 0], sizes = [2, 8, 8, 128], strides = [1, 1, 1, 1]} : vector<2x12x8x128xf32> to vector<2x8x8x128xf32>
    %64 = vector.shape_cast %63 : vector<2x8x8x128xf32> to vector<128x128xf32>
    %c0_35 = arith.constant 0 : index
    %c1536 = arith.constant 1536 : index
    %65 = vector.load %arg13[%c0_35, %c1536] : memref<128x3200xf32, #tpu.memory_space<vmem>>, vector<128x128xf32>
    tpu.vector_store %arg13[%c0_35, %c1536], %64 {strides = array<i32>} : memref<128x3200xf32, #tpu.memory_space<vmem>>, vector<128x128xf32>,
    %66 = vector.extract_strided_slice %56 {offsets = [0, 3, 0, 0], sizes = [2, 8, 8, 128], strides = [1, 1, 1, 1]} : vector<2x12x8x128xf32> to vector<2x8x8x128xf32>
    %67 = vector.shape_cast %66 : vector<2x8x8x128xf32> to vector<128x128xf32>
    %c0_36 = arith.constant 0 : index
    %c2176 = arith.constant 2176 : index
    %68 = vector.load %arg13[%c0_36, %c2176] : memref<128x3200xf32, #tpu.memory_space<vmem>>, vector<128x128xf32>
    tpu.vector_store %arg13[%c0_36, %c2176], %67 {strides = array<i32>} : memref<128x3200xf32, #tpu.memory_space<vmem>>, vector<128x128xf32>,
    %69 = vector.extract_strided_slice %56 {offsets = [0, 4, 0, 0], sizes = [2, 8, 8, 128], strides = [1, 1, 1, 1]} : vector<2x12x8x128xf32> to vector<2x8x8x128xf32>
    %70 = vector.shape_cast %69 : vector<2x8x8x128xf32> to vector<128x128xf32>
    %c0_37 = arith.constant 0 : index
    %c2816 = arith.constant 2816 : index
    %71 = vector.load %arg13[%c0_37, %c2816] : memref<128x3200xf32, #tpu.memory_space<vmem>>, vector<128x128xf32>
    tpu.vector_store %arg13[%c0_37, %c2816], %70 {strides = array<i32>} : memref<128x3200xf32, #tpu.memory_space<vmem>>, vector<128x128xf32>,
    %c0_38 = arith.constant 0 : index
    %c0_39 = arith.constant 0 : index
    %c3 = arith.constant 3 : index
    %c0_40 = arith.constant 0 : index
    %72 = vector.load %arg12[%c0_38, %c0_39, %c3, %c0_40] : memref<2x12x16x128xf32, #tpu.memory_space<vmem>>, vector<2x12x8x128xf32>
    %73 = vector.extract_strided_slice %72 {offsets = [0, 0, 0, 0], sizes = [2, 8, 8, 128], strides = [1, 1, 1, 1]} : vector<2x12x8x128xf32> to vector<2x8x8x128xf32>
    %74 = vector.shape_cast %73 : vector<2x8x8x128xf32> to vector<128x128xf32>
    %c0_41 = arith.constant 0 : index
    %c384 = arith.constant 384 : index
    %75 = vector.load %arg13[%c0_41, %c384] : memref<128x3200xf32, #tpu.memory_space<vmem>>, vector<128x128xf32>
    tpu.vector_store %arg13[%c0_41, %c384], %74 {strides = array<i32>} : memref<128x3200xf32, #tpu.memory_space<vmem>>, vector<128x128xf32>,
    %76 = vector.extract_strided_slice %72 {offsets = [0, 1, 0, 0], sizes = [2, 8, 8, 128], strides = [1, 1, 1, 1]} : vector<2x12x8x128xf32> to vector<2x8x8x128xf32>
    %77 = vector.shape_cast %76 : vector<2x8x8x128xf32> to vector<128x128xf32>
    %c0_42 = arith.constant 0 : index
    %c1024 = arith.constant 1024 : index
    %78 = vector.load %arg13[%c0_42, %c1024] : memref<128x3200xf32, #tpu.memory_space<vmem>>, vector<128x128xf32>
    tpu.vector_store %arg13[%c0_42, %c1024], %77 {strides = array<i32>} : memref<128x3200xf32, #tpu.memory_space<vmem>>, vector<128x128xf32>,
    %79 = vector.extract_strided_slice %72 {offsets = [0, 2, 0, 0], sizes = [2, 8, 8, 128], strides = [1, 1, 1, 1]} : vector<2x12x8x128xf32> to vector<2x8x8x128xf32>
    %80 = vector.shape_cast %79 : vector<2x8x8x128xf32> to vector<128x128xf32>
    %c0_43 = arith.constant 0 : index
    %c1664 = arith.constant 1664 : index
    %81 = vector.load %arg13[%c0_43, %c1664] : memref<128x3200xf32, #tpu.memory_space<vmem>>, vector<128x128xf32>
    tpu.vector_store %arg13[%c0_43, %c1664], %80 {strides = array<i32>} : memref<128x3200xf32, #tpu.memory_space<vmem>>, vector<128x128xf32>,
    %82 = vector.extract_strided_slice %72 {offsets = [0, 3, 0, 0], sizes = [2, 8, 8, 128], strides = [1, 1, 1, 1]} : vector<2x12x8x128xf32> to vector<2x8x8x128xf32>
    %83 = vector.shape_cast %82 : vector<2x8x8x128xf32> to vector<128x128xf32>
    %c0_44 = arith.constant 0 : index
    %c2304 = arith.constant 2304 : index
    %84 = vector.load %arg13[%c0_44, %c2304] : memref<128x3200xf32, #tpu.memory_space<vmem>>, vector<128x128xf32>
    tpu.vector_store %arg13[%c0_44, %c2304], %83 {strides = array<i32>} : memref<128x3200xf32, #tpu.memory_space<vmem>>, vector<128x128xf32>,
    %85 = vector.extract_strided_slice %72 {offsets = [0, 4, 0, 0], sizes = [2, 8, 8, 128], strides = [1, 1, 1, 1]} : vector<2x12x8x128xf32> to vector<2x8x8x128xf32>
    %86 = vector.shape_cast %85 : vector<2x8x8x128xf32> to vector<128x128xf32>
    %c0_45 = arith.constant 0 : index
    %c2944 = arith.constant 2944 : index
    %87 = vector.load %arg13[%c0_45, %c2944] : memref<128x3200xf32, #tpu.memory_space<vmem>>, vector<128x128xf32>
    tpu.vector_store %arg13[%c0_45, %c2944], %86 {strides = array<i32>} : memref<128x3200xf32, #tpu.memory_space<vmem>>, vector<128x128xf32>,
    %c0_46 = arith.constant 0 : index
    %c0_47 = arith.constant 0 : index
    %c4 = arith.constant 4 : index
    %c0_48 = arith.constant 0 : index
    %88 = vector.load %arg12[%c0_46, %c0_47, %c4, %c0_48] : memref<2x12x16x128xf32, #tpu.memory_space<vmem>>, vector<2x12x8x128xf32>
    %89 = vector.extract_strided_slice %88 {offsets = [0, 0, 0, 0], sizes = [2, 8, 8, 128], strides = [1, 1, 1, 1]} : vector<2x12x8x128xf32> to vector<2x8x8x128xf32>
    %90 = vector.shape_cast %89 : vector<2x8x8x128xf32> to vector<128x128xf32>
    %c0_49 = arith.constant 0 : index
    %c512 = arith.constant 512 : index
    %91 = vector.load %arg13[%c0_49, %c512] : memref<128x3200xf32, #tpu.memory_space<vmem>>, vector<128x128xf32>
    tpu.vector_store %arg13[%c0_49, %c512], %90 {strides = array<i32>} : memref<128x3200xf32, #tpu.memory_space<vmem>>, vector<128x128xf32>,
    %92 = vector.extract_strided_slice %88 {offsets = [0, 1, 0, 0], sizes = [2, 8, 8, 128], strides = [1, 1, 1, 1]} : vector<2x12x8x128xf32> to vector<2x8x8x128xf32>
    %93 = vector.shape_cast %92 : vector<2x8x8x128xf32> to vector<128x128xf32>
    %c0_50 = arith.constant 0 : index
    %c1152 = arith.constant 1152 : index
    %94 = vector.load %arg13[%c0_50, %c1152] : memref<128x3200xf32, #tpu.memory_space<vmem>>, vector<128x128xf32>
    tpu.vector_store %arg13[%c0_50, %c1152], %93 {strides = array<i32>} : memref<128x3200xf32, #tpu.memory_space<vmem>>, vector<128x128xf32>,
    %95 = vector.extract_strided_slice %88 {offsets = [0, 2, 0, 0], sizes = [2, 8, 8, 128], strides = [1, 1, 1, 1]} : vector<2x12x8x128xf32> to vector<2x8x8x128xf32>
    %96 = vector.shape_cast %95 : vector<2x8x8x128xf32> to vector<128x128xf32>
    %c0_51 = arith.constant 0 : index
    %c1792 = arith.constant 1792 : index
    %97 = vector.load %arg13[%c0_51, %c1792] : memref<128x3200xf32, #tpu.memory_space<vmem>>, vector<128x128xf32>
    tpu.vector_store %arg13[%c0_51, %c1792], %96 {strides = array<i32>} : memref<128x3200xf32, #tpu.memory_space<vmem>>, vector<128x128xf32>,
    %98 = vector.extract_strided_slice %88 {offsets = [0, 3, 0, 0], sizes = [2, 8, 8, 128], strides = [1, 1, 1, 1]} : vector<2x12x8x128xf32> to vector<2x8x8x128xf32>
    %99 = vector.shape_cast %98 : vector<2x8x8x128xf32> to vector<128x128xf32>
    %c0_52 = arith.constant 0 : index
    %c2432 = arith.constant 2432 : index
    %100 = vector.load %arg13[%c0_52, %c2432] : memref<128x3200xf32, #tpu.memory_space<vmem>>, vector<128x128xf32>
    tpu.vector_store %arg13[%c0_52, %c2432], %99 {strides = array<i32>} : memref<128x3200xf32, #tpu.memory_space<vmem>>, vector<128x128xf32>,
    %101 = vector.extract_strided_slice %88 {offsets = [0, 4, 0, 0], sizes = [2, 8, 8, 128], strides = [1, 1, 1, 1]} : vector<2x12x8x128xf32> to vector<2x8x8x128xf32>
    %102 = vector.shape_cast %101 : vector<2x8x8x128xf32> to vector<128x128xf32>
    %c0_53 = arith.constant 0 : index
    %c3072 = arith.constant 3072 : index
    %103 = vector.load %arg13[%c0_53, %c3072] : memref<128x3200xf32, #tpu.memory_space<vmem>>, vector<128x128xf32>
    tpu.vector_store %arg13[%c0_53, %c3072], %102 {strides = array<i32>} : memref<128x3200xf32, #tpu.memory_space<vmem>>, vector<128x128xf32>,
    %c0_i32_54 = arith.constant 0 : i32
    %104 = tpu.memref_slice %arg17[%c0_i32_54] : memref<2x!tpu.dma_semaphore, #tpu.memory_space<semaphore_mem>> -> memref<1x!tpu.dma_semaphore, #tpu.memory_space<semaphore_mem>>
    %105 = tpu.memref_squeeze %104 : memref<1x!tpu.dma_semaphore, #tpu.memory_space<semaphore_mem>> -> memref<!tpu.dma_semaphore, #tpu.memory_space<semaphore_mem>>
    tpu.wait_dma2 semaphore(%105 : memref<!tpu.dma_semaphore, #tpu.memory_space<semaphore_mem>>) src(%arg3 : memref<3200x128xf32, #tpu.memory_space<any>>) dst(%arg15 : memref<3200x128xf32, #tpu.memory_space<vmem>>)
    %c0_55 = arith.constant 0 : index
    %c0_56 = arith.constant 0 : index
    %106 = vector.load %arg13[%c0_55, %c0_56] : memref<128x3200xf32, #tpu.memory_space<vmem>>, vector<128x3200xf32>
    %c0_57 = arith.constant 0 : index
    %c0_58 = arith.constant 0 : index
    %107 = vector.load %arg15[%c0_57, %c0_58] : memref<3200x128xf32, #tpu.memory_space<vmem>>, vector<3200x128xf32>
    %cst_59 = arith.constant dense<0.000000e+00> : vector<128x128xf32>
    %108 = tpu.matmul %106, %107, %cst_59 {dimension_numbers = #tpu.dot_dimension_numbers<[1], [0], [0], [1], [0, 0, 1, 1], [], []>} : vector<128x3200xf32>, vector<3200x128xf32>, vector<128x128xf32> -> vector<128x128xf32>
    %c0_60 = arith.constant 0 : index
    %c0_61 = arith.constant 0 : index
    %109 = vector.load %arg4[%c0_60, %c0_61] : memref<1x128xf32, #tpu.memory_space<vmem>>, vector<1x128xf32>
    %110 = vector.broadcast %109 : vector<1x128xf32> to vector<128x128xf32>
    %111 = arith.addf %108, %110 : vector<128x128xf32>
    %112 = vector.shape_cast %111 : vector<128x128xf32> to vector<2x8x8x128xf32>
    %113 = vector.extract_strided_slice %112 {offsets = [0, 0, 0, 0], sizes = [2, 1, 1, 128], strides = [1, 1, 1, 1]} : vector<2x8x8x128xf32> to vector<2x1x1x128xf32>
    %114 = vector.shape_cast %113 : vector<2x1x1x128xf32> to vector<2x128xf32>
    %115 = vector.extract_strided_slice %112 {offsets = [0, 0, 1, 0], sizes = [2, 1, 1, 128], strides = [1, 1, 1, 1]} : vector<2x8x8x128xf32> to vector<2x1x1x128xf32>
    %116 = vector.shape_cast %115 : vector<2x1x1x128xf32> to vector<2x128xf32>
    %117 = vector.extract_strided_slice %112 {offsets = [0, 1, 0, 0], sizes = [2, 1, 1, 128], strides = [1, 1, 1, 1]} : vector<2x8x8x128xf32> to vector<2x1x1x128xf32>
    %118 = vector.shape_cast %117 : vector<2x1x1x128xf32> to vector<2x128xf32>
    %119 = vector.extract_strided_slice %112 {offsets = [0, 1, 1, 0], sizes = [2, 1, 1, 128], strides = [1, 1, 1, 1]} : vector<2x8x8x128xf32> to vector<2x1x1x128xf32>
    %120 = vector.shape_cast %119 : vector<2x1x1x128xf32> to vector<2x128xf32>
    %121 = arith.maximumf %114, %116 : vector<2x128xf32>
    %122 = arith.maximumf %118, %120 : vector<2x128xf32>
    %123 = arith.maximumf %121, %122 : vector<2x128xf32>
    %cst_62 = arith.constant 0.000000e+00 : f32
    %124 = vector.broadcast %cst_62 : f32 to vector<2x128xf32>
    %125 = arith.cmpf ogt, %123, %124 : vector<2x128xf32>
    %cst_63 = arith.constant 0.000000e+00 : f32
    %126 = vector.broadcast %cst_63 : f32 to vector<2x128xf32>
    %127 = arith.select %125, %123, %126 : vector<2x128xi1>, vector<2x128xf32>
    %c0_64 = arith.constant 0 : index
    %c0_65 = arith.constant 0 : index
    %128 = vector.load %arg14[%c0_64, %c0_65] : memref<2x2048xf32, #tpu.memory_space<vmem>>, vector<2x128xf32>
    tpu.vector_store %arg14[%c0_64, %c0_65], %127 {strides = array<i32>} : memref<2x2048xf32, #tpu.memory_space<vmem>>, vector<2x128xf32>,
    %129 = vector.extract_strided_slice %112 {offsets = [0, 0, 2, 0], sizes = [2, 1, 1, 128], strides = [1, 1, 1, 1]} : vector<2x8x8x128xf32> to vector<2x1x1x128xf32>
    %130 = vector.shape_cast %129 : vector<2x1x1x128xf32> to vector<2x128xf32>
    %131 = vector.extract_strided_slice %112 {offsets = [0, 0, 3, 0], sizes = [2, 1, 1, 128], strides = [1, 1, 1, 1]} : vector<2x8x8x128xf32> to vector<2x1x1x128xf32>
    %132 = vector.shape_cast %131 : vector<2x1x1x128xf32> to vector<2x128xf32>
    %133 = vector.extract_strided_slice %112 {offsets = [0, 1, 2, 0], sizes = [2, 1, 1, 128], strides = [1, 1, 1, 1]} : vector<2x8x8x128xf32> to vector<2x1x1x128xf32>
    %134 = vector.shape_cast %133 : vector<2x1x1x128xf32> to vector<2x128xf32>
    %135 = vector.extract_strided_slice %112 {offsets = [0, 1, 3, 0], sizes = [2, 1, 1, 128], strides = [1, 1, 1, 1]} : vector<2x8x8x128xf32> to vector<2x1x1x128xf32>
    %136 = vector.shape_cast %135 : vector<2x1x1x128xf32> to vector<2x128xf32>
    %137 = arith.maximumf %130, %132 : vector<2x128xf32>
    %138 = arith.maximumf %134, %136 : vector<2x128xf32>
    %139 = arith.maximumf %137, %138 : vector<2x128xf32>
    %cst_66 = arith.constant 0.000000e+00 : f32
    %140 = vector.broadcast %cst_66 : f32 to vector<2x128xf32>
    %141 = arith.cmpf ogt, %139, %140 : vector<2x128xf32>
    %cst_67 = arith.constant 0.000000e+00 : f32
    %142 = vector.broadcast %cst_67 : f32 to vector<2x128xf32>
    %143 = arith.select %141, %139, %142 : vector<2x128xi1>, vector<2x128xf32>
    %c0_68 = arith.constant 0 : index
    %c128_69 = arith.constant 128 : index
    %144 = vector.load %arg14[%c0_68, %c128_69] : memref<2x2048xf32, #tpu.memory_space<vmem>>, vector<2x128xf32>
    tpu.vector_store %arg14[%c0_68, %c128_69], %143 {strides = array<i32>} : memref<2x2048xf32, #tpu.memory_space<vmem>>, vector<2x128xf32>,
    %145 = vector.extract_strided_slice %112 {offsets = [0, 0, 4, 0], sizes = [2, 1, 1, 128], strides = [1, 1, 1, 1]} : vector<2x8x8x128xf32> to vector<2x1x1x128xf32>
    %146 = vector.shape_cast %145 : vector<2x1x1x128xf32> to vector<2x128xf32>
    %147 = vector.extract_strided_slice %112 {offsets = [0, 0, 5, 0], sizes = [2, 1, 1, 128], strides = [1, 1, 1, 1]} : vector<2x8x8x128xf32> to vector<2x1x1x128xf32>
    %148 = vector.shape_cast %147 : vector<2x1x1x128xf32> to vector<2x128xf32>
    %149 = vector.extract_strided_slice %112 {offsets = [0, 1, 4, 0], sizes = [2, 1, 1, 128], strides = [1, 1, 1, 1]} : vector<2x8x8x128xf32> to vector<2x1x1x128xf32>
    %150 = vector.shape_cast %149 : vector<2x1x1x128xf32> to vector<2x128xf32>
    %151 = vector.extract_strided_slice %112 {offsets = [0, 1, 5, 0], sizes = [2, 1, 1, 128], strides = [1, 1, 1, 1]} : vector<2x8x8x128xf32> to vector<2x1x1x128xf32>
    %152 = vector.shape_cast %151 : vector<2x1x1x128xf32> to vector<2x128xf32>
    %153 = arith.maximumf %146, %148 : vector<2x128xf32>
    %154 = arith.maximumf %150, %152 : vector<2x128xf32>
    %155 = arith.maximumf %153, %154 : vector<2x128xf32>
    %cst_70 = arith.constant 0.000000e+00 : f32
    %156 = vector.broadcast %cst_70 : f32 to vector<2x128xf32>
    %157 = arith.cmpf ogt, %155, %156 : vector<2x128xf32>
    %cst_71 = arith.constant 0.000000e+00 : f32
    %158 = vector.broadcast %cst_71 : f32 to vector<2x128xf32>
    %159 = arith.select %157, %155, %158 : vector<2x128xi1>, vector<2x128xf32>
    %c0_72 = arith.constant 0 : index
    %c256_73 = arith.constant 256 : index
    %160 = vector.load %arg14[%c0_72, %c256_73] : memref<2x2048xf32, #tpu.memory_space<vmem>>, vector<2x128xf32>
    tpu.vector_store %arg14[%c0_72, %c256_73], %159 {strides = array<i32>} : memref<2x2048xf32, #tpu.memory_space<vmem>>, vector<2x128xf32>,
    %161 = vector.extract_strided_slice %112 {offsets = [0, 0, 6, 0], sizes = [2, 1, 1, 128], strides = [1, 1, 1, 1]} : vector<2x8x8x128xf32> to vector<2x1x1x128xf32>
    %162 = vector.shape_cast %161 : vector<2x1x1x128xf32> to vector<2x128xf32>
    %163 = vector.extract_strided_slice %112 {offsets = [0, 0, 7, 0], sizes = [2, 1, 1, 128], strides = [1, 1, 1, 1]} : vector<2x8x8x128xf32> to vector<2x1x1x128xf32>
    %164 = vector.shape_cast %163 : vector<2x1x1x128xf32> to vector<2x128xf32>
    %165 = vector.extract_strided_slice %112 {offsets = [0, 1, 6, 0], sizes = [2, 1, 1, 128], strides = [1, 1, 1, 1]} : vector<2x8x8x128xf32> to vector<2x1x1x128xf32>
    %166 = vector.shape_cast %165 : vector<2x1x1x128xf32> to vector<2x128xf32>
    %167 = vector.extract_strided_slice %112 {offsets = [0, 1, 7, 0], sizes = [2, 1, 1, 128], strides = [1, 1, 1, 1]} : vector<2x8x8x128xf32> to vector<2x1x1x128xf32>
    %168 = vector.shape_cast %167 : vector<2x1x1x128xf32> to vector<2x128xf32>
    %169 = arith.maximumf %162, %164 : vector<2x128xf32>
    %170 = arith.maximumf %166, %168 : vector<2x128xf32>
    %171 = arith.maximumf %169, %170 : vector<2x128xf32>
    %cst_74 = arith.constant 0.000000e+00 : f32
    %172 = vector.broadcast %cst_74 : f32 to vector<2x128xf32>
    %173 = arith.cmpf ogt, %171, %172 : vector<2x128xf32>
    %cst_75 = arith.constant 0.000000e+00 : f32
    %174 = vector.broadcast %cst_75 : f32 to vector<2x128xf32>
    %175 = arith.select %173, %171, %174 : vector<2x128xi1>, vector<2x128xf32>
    %c0_76 = arith.constant 0 : index
    %c384_77 = arith.constant 384 : index
    %176 = vector.load %arg14[%c0_76, %c384_77] : memref<2x2048xf32, #tpu.memory_space<vmem>>, vector<2x128xf32>
    tpu.vector_store %arg14[%c0_76, %c384_77], %175 {strides = array<i32>} : memref<2x2048xf32, #tpu.memory_space<vmem>>, vector<2x128xf32>,
    %177 = vector.extract_strided_slice %112 {offsets = [0, 2, 0, 0], sizes = [2, 1, 1, 128], strides = [1, 1, 1, 1]} : vector<2x8x8x128xf32> to vector<2x1x1x128xf32>
    %178 = vector.shape_cast %177 : vector<2x1x1x128xf32> to vector<2x128xf32>
    %179 = vector.extract_strided_slice %112 {offsets = [0, 2, 1, 0], sizes = [2, 1, 1, 128], strides = [1, 1, 1, 1]} : vector<2x8x8x128xf32> to vector<2x1x1x128xf32>
    %180 = vector.shape_cast %179 : vector<2x1x1x128xf32> to vector<2x128xf32>
    %181 = vector.extract_strided_slice %112 {offsets = [0, 3, 0, 0], sizes = [2, 1, 1, 128], strides = [1, 1, 1, 1]} : vector<2x8x8x128xf32> to vector<2x1x1x128xf32>
    %182 = vector.shape_cast %181 : vector<2x1x1x128xf32> to vector<2x128xf32>
    %183 = vector.extract_strided_slice %112 {offsets = [0, 3, 1, 0], sizes = [2, 1, 1, 128], strides = [1, 1, 1, 1]} : vector<2x8x8x128xf32> to vector<2x1x1x128xf32>
    %184 = vector.shape_cast %183 : vector<2x1x1x128xf32> to vector<2x128xf32>
    %185 = arith.maximumf %178, %180 : vector<2x128xf32>
    %186 = arith.maximumf %182, %184 : vector<2x128xf32>
    %187 = arith.maximumf %185, %186 : vector<2x128xf32>
    %cst_78 = arith.constant 0.000000e+00 : f32
    %188 = vector.broadcast %cst_78 : f32 to vector<2x128xf32>
    %189 = arith.cmpf ogt, %187, %188 : vector<2x128xf32>
    %cst_79 = arith.constant 0.000000e+00 : f32
    %190 = vector.broadcast %cst_79 : f32 to vector<2x128xf32>
    %191 = arith.select %189, %187, %190 : vector<2x128xi1>, vector<2x128xf32>
    %c0_80 = arith.constant 0 : index
    %c512_81 = arith.constant 512 : index
    %192 = vector.load %arg14[%c0_80, %c512_81] : memref<2x2048xf32, #tpu.memory_space<vmem>>, vector<2x128xf32>
    tpu.vector_store %arg14[%c0_80, %c512_81], %191 {strides = array<i32>} : memref<2x2048xf32, #tpu.memory_space<vmem>>, vector<2x128xf32>,
    %193 = vector.extract_strided_slice %112 {offsets = [0, 2, 2, 0], sizes = [2, 1, 1, 128], strides = [1, 1, 1, 1]} : vector<2x8x8x128xf32> to vector<2x1x1x128xf32>
    %194 = vector.shape_cast %193 : vector<2x1x1x128xf32> to vector<2x128xf32>
    %195 = vector.extract_strided_slice %112 {offsets = [0, 2, 3, 0], sizes = [2, 1, 1, 128], strides = [1, 1, 1, 1]} : vector<2x8x8x128xf32> to vector<2x1x1x128xf32>
    %196 = vector.shape_cast %195 : vector<2x1x1x128xf32> to vector<2x128xf32>
    %197 = vector.extract_strided_slice %112 {offsets = [0, 3, 2, 0], sizes = [2, 1, 1, 128], strides = [1, 1, 1, 1]} : vector<2x8x8x128xf32> to vector<2x1x1x128xf32>
    %198 = vector.shape_cast %197 : vector<2x1x1x128xf32> to vector<2x128xf32>
    %199 = vector.extract_strided_slice %112 {offsets = [0, 3, 3, 0], sizes = [2, 1, 1, 128], strides = [1, 1, 1, 1]} : vector<2x8x8x128xf32> to vector<2x1x1x128xf32>
    %200 = vector.shape_cast %199 : vector<2x1x1x128xf32> to vector<2x128xf32>
    %201 = arith.maximumf %194, %196 : vector<2x128xf32>
    %202 = arith.maximumf %198, %200 : vector<2x128xf32>
    %203 = arith.maximumf %201, %202 : vector<2x128xf32>
    %cst_82 = arith.constant 0.000000e+00 : f32
    %204 = vector.broadcast %cst_82 : f32 to vector<2x128xf32>
    %205 = arith.cmpf ogt, %203, %204 : vector<2x128xf32>
    %cst_83 = arith.constant 0.000000e+00 : f32
    %206 = vector.broadcast %cst_83 : f32 to vector<2x128xf32>
    %207 = arith.select %205, %203, %206 : vector<2x128xi1>, vector<2x128xf32>
    %c0_84 = arith.constant 0 : index
    %c640_85 = arith.constant 640 : index
    %208 = vector.load %arg14[%c0_84, %c640_85] : memref<2x2048xf32, #tpu.memory_space<vmem>>, vector<2x128xf32>
    tpu.vector_store %arg14[%c0_84, %c640_85], %207 {strides = array<i32>} : memref<2x2048xf32, #tpu.memory_space<vmem>>, vector<2x128xf32>,
    %209 = vector.extract_strided_slice %112 {offsets = [0, 2, 4, 0], sizes = [2, 1, 1, 128], strides = [1, 1, 1, 1]} : vector<2x8x8x128xf32> to vector<2x1x1x128xf32>
    %210 = vector.shape_cast %209 : vector<2x1x1x128xf32> to vector<2x128xf32>
    %211 = vector.extract_strided_slice %112 {offsets = [0, 2, 5, 0], sizes = [2, 1, 1, 128], strides = [1, 1, 1, 1]} : vector<2x8x8x128xf32> to vector<2x1x1x128xf32>
    %212 = vector.shape_cast %211 : vector<2x1x1x128xf32> to vector<2x128xf32>
    %213 = vector.extract_strided_slice %112 {offsets = [0, 3, 4, 0], sizes = [2, 1, 1, 128], strides = [1, 1, 1, 1]} : vector<2x8x8x128xf32> to vector<2x1x1x128xf32>
    %214 = vector.shape_cast %213 : vector<2x1x1x128xf32> to vector<2x128xf32>
    %215 = vector.extract_strided_slice %112 {offsets = [0, 3, 5, 0], sizes = [2, 1, 1, 128], strides = [1, 1, 1, 1]} : vector<2x8x8x128xf32> to vector<2x1x1x128xf32>
    %216 = vector.shape_cast %215 : vector<2x1x1x128xf32> to vector<2x128xf32>
    %217 = arith.maximumf %210, %212 : vector<2x128xf32>
    %218 = arith.maximumf %214, %216 : vector<2x128xf32>
    %219 = arith.maximumf %217, %218 : vector<2x128xf32>
    %cst_86 = arith.constant 0.000000e+00 : f32
    %220 = vector.broadcast %cst_86 : f32 to vector<2x128xf32>
    %221 = arith.cmpf ogt, %219, %220 : vector<2x128xf32>
    %cst_87 = arith.constant 0.000000e+00 : f32
    %222 = vector.broadcast %cst_87 : f32 to vector<2x128xf32>
    %223 = arith.select %221, %219, %222 : vector<2x128xi1>, vector<2x128xf32>
    %c0_88 = arith.constant 0 : index
    %c768_89 = arith.constant 768 : index
    %224 = vector.load %arg14[%c0_88, %c768_89] : memref<2x2048xf32, #tpu.memory_space<vmem>>, vector<2x128xf32>
    tpu.vector_store %arg14[%c0_88, %c768_89], %223 {strides = array<i32>} : memref<2x2048xf32, #tpu.memory_space<vmem>>, vector<2x128xf32>,
    %225 = vector.extract_strided_slice %112 {offsets = [0, 2, 6, 0], sizes = [2, 1, 1, 128], strides = [1, 1, 1, 1]} : vector<2x8x8x128xf32> to vector<2x1x1x128xf32>
    %226 = vector.shape_cast %225 : vector<2x1x1x128xf32> to vector<2x128xf32>
    %227 = vector.extract_strided_slice %112 {offsets = [0, 2, 7, 0], sizes = [2, 1, 1, 128], strides = [1, 1, 1, 1]} : vector<2x8x8x128xf32> to vector<2x1x1x128xf32>
    %228 = vector.shape_cast %227 : vector<2x1x1x128xf32> to vector<2x128xf32>
    %229 = vector.extract_strided_slice %112 {offsets = [0, 3, 6, 0], sizes = [2, 1, 1, 128], strides = [1, 1, 1, 1]} : vector<2x8x8x128xf32> to vector<2x1x1x128xf32>
    %230 = vector.shape_cast %229 : vector<2x1x1x128xf32> to vector<2x128xf32>
    %231 = vector.extract_strided_slice %112 {offsets = [0, 3, 7, 0], sizes = [2, 1, 1, 128], strides = [1, 1, 1, 1]} : vector<2x8x8x128xf32> to vector<2x1x1x128xf32>
    %232 = vector.shape_cast %231 : vector<2x1x1x128xf32> to vector<2x128xf32>
    %233 = arith.maximumf %226, %228 : vector<2x128xf32>
    %234 = arith.maximumf %230, %232 : vector<2x128xf32>
    %235 = arith.maximumf %233, %234 : vector<2x128xf32>
    %cst_90 = arith.constant 0.000000e+00 : f32
    %236 = vector.broadcast %cst_90 : f32 to vector<2x128xf32>
    %237 = arith.cmpf ogt, %235, %236 : vector<2x128xf32>
    %cst_91 = arith.constant 0.000000e+00 : f32
    %238 = vector.broadcast %cst_91 : f32 to vector<2x128xf32>
    %239 = arith.select %237, %235, %238 : vector<2x128xi1>, vector<2x128xf32>
    %c0_92 = arith.constant 0 : index
    %c896_93 = arith.constant 896 : index
    %240 = vector.load %arg14[%c0_92, %c896_93] : memref<2x2048xf32, #tpu.memory_space<vmem>>, vector<2x128xf32>
    tpu.vector_store %arg14[%c0_92, %c896_93], %239 {strides = array<i32>} : memref<2x2048xf32, #tpu.memory_space<vmem>>, vector<2x128xf32>,
    %241 = vector.extract_strided_slice %112 {offsets = [0, 4, 0, 0], sizes = [2, 1, 1, 128], strides = [1, 1, 1, 1]} : vector<2x8x8x128xf32> to vector<2x1x1x128xf32>
    %242 = vector.shape_cast %241 : vector<2x1x1x128xf32> to vector<2x128xf32>
    %243 = vector.extract_strided_slice %112 {offsets = [0, 4, 1, 0], sizes = [2, 1, 1, 128], strides = [1, 1, 1, 1]} : vector<2x8x8x128xf32> to vector<2x1x1x128xf32>
    %244 = vector.shape_cast %243 : vector<2x1x1x128xf32> to vector<2x128xf32>
    %245 = vector.extract_strided_slice %112 {offsets = [0, 5, 0, 0], sizes = [2, 1, 1, 128], strides = [1, 1, 1, 1]} : vector<2x8x8x128xf32> to vector<2x1x1x128xf32>
    %246 = vector.shape_cast %245 : vector<2x1x1x128xf32> to vector<2x128xf32>
    %247 = vector.extract_strided_slice %112 {offsets = [0, 5, 1, 0], sizes = [2, 1, 1, 128], strides = [1, 1, 1, 1]} : vector<2x8x8x128xf32> to vector<2x1x1x128xf32>
    %248 = vector.shape_cast %247 : vector<2x1x1x128xf32> to vector<2x128xf32>
    %249 = arith.maximumf %242, %244 : vector<2x128xf32>
    %250 = arith.maximumf %246, %248 : vector<2x128xf32>
    %251 = arith.maximumf %249, %250 : vector<2x128xf32>
    %cst_94 = arith.constant 0.000000e+00 : f32
    %252 = vector.broadcast %cst_94 : f32 to vector<2x128xf32>
    %253 = arith.cmpf ogt, %251, %252 : vector<2x128xf32>
    %cst_95 = arith.constant 0.000000e+00 : f32
    %254 = vector.broadcast %cst_95 : f32 to vector<2x128xf32>
    %255 = arith.select %253, %251, %254 : vector<2x128xi1>, vector<2x128xf32>
    %c0_96 = arith.constant 0 : index
    %c1024_97 = arith.constant 1024 : index
    %256 = vector.load %arg14[%c0_96, %c1024_97] : memref<2x2048xf32, #tpu.memory_space<vmem>>, vector<2x128xf32>
    tpu.vector_store %arg14[%c0_96, %c1024_97], %255 {strides = array<i32>} : memref<2x2048xf32, #tpu.memory_space<vmem>>, vector<2x128xf32>,
    %257 = vector.extract_strided_slice %112 {offsets = [0, 4, 2, 0], sizes = [2, 1, 1, 128], strides = [1, 1, 1, 1]} : vector<2x8x8x128xf32> to vector<2x1x1x128xf32>
    %258 = vector.shape_cast %257 : vector<2x1x1x128xf32> to vector<2x128xf32>
    %259 = vector.extract_strided_slice %112 {offsets = [0, 4, 3, 0], sizes = [2, 1, 1, 128], strides = [1, 1, 1, 1]} : vector<2x8x8x128xf32> to vector<2x1x1x128xf32>
    %260 = vector.shape_cast %259 : vector<2x1x1x128xf32> to vector<2x128xf32>
    %261 = vector.extract_strided_slice %112 {offsets = [0, 5, 2, 0], sizes = [2, 1, 1, 128], strides = [1, 1, 1, 1]} : vector<2x8x8x128xf32> to vector<2x1x1x128xf32>
    %262 = vector.shape_cast %261 : vector<2x1x1x128xf32> to vector<2x128xf32>
    %263 = vector.extract_strided_slice %112 {offsets = [0, 5, 3, 0], sizes = [2, 1, 1, 128], strides = [1, 1, 1, 1]} : vector<2x8x8x128xf32> to vector<2x1x1x128xf32>
    %264 = vector.shape_cast %263 : vector<2x1x1x128xf32> to vector<2x128xf32>
    %265 = arith.maximumf %258, %260 : vector<2x128xf32>
    %266 = arith.maximumf %262, %264 : vector<2x128xf32>
    %267 = arith.maximumf %265, %266 : vector<2x128xf32>
    %cst_98 = arith.constant 0.000000e+00 : f32
    %268 = vector.broadcast %cst_98 : f32 to vector<2x128xf32>
    %269 = arith.cmpf ogt, %267, %268 : vector<2x128xf32>
    %cst_99 = arith.constant 0.000000e+00 : f32
    %270 = vector.broadcast %cst_99 : f32 to vector<2x128xf32>
    %271 = arith.select %269, %267, %270 : vector<2x128xi1>, vector<2x128xf32>
    %c0_100 = arith.constant 0 : index
    %c1152_101 = arith.constant 1152 : index
    %272 = vector.load %arg14[%c0_100, %c1152_101] : memref<2x2048xf32, #tpu.memory_space<vmem>>, vector<2x128xf32>
    tpu.vector_store %arg14[%c0_100, %c1152_101], %271 {strides = array<i32>} : memref<2x2048xf32, #tpu.memory_space<vmem>>, vector<2x128xf32>,
    %273 = vector.extract_strided_slice %112 {offsets = [0, 4, 4, 0], sizes = [2, 1, 1, 128], strides = [1, 1, 1, 1]} : vector<2x8x8x128xf32> to vector<2x1x1x128xf32>
    %274 = vector.shape_cast %273 : vector<2x1x1x128xf32> to vector<2x128xf32>
    %275 = vector.extract_strided_slice %112 {offsets = [0, 4, 5, 0], sizes = [2, 1, 1, 128], strides = [1, 1, 1, 1]} : vector<2x8x8x128xf32> to vector<2x1x1x128xf32>
    %276 = vector.shape_cast %275 : vector<2x1x1x128xf32> to vector<2x128xf32>
    %277 = vector.extract_strided_slice %112 {offsets = [0, 5, 4, 0], sizes = [2, 1, 1, 128], strides = [1, 1, 1, 1]} : vector<2x8x8x128xf32> to vector<2x1x1x128xf32>
    %278 = vector.shape_cast %277 : vector<2x1x1x128xf32> to vector<2x128xf32>
    %279 = vector.extract_strided_slice %112 {offsets = [0, 5, 5, 0], sizes = [2, 1, 1, 128], strides = [1, 1, 1, 1]} : vector<2x8x8x128xf32> to vector<2x1x1x128xf32>
    %280 = vector.shape_cast %279 : vector<2x1x1x128xf32> to vector<2x128xf32>
    %281 = arith.maximumf %274, %276 : vector<2x128xf32>
    %282 = arith.maximumf %278, %280 : vector<2x128xf32>
    %283 = arith.maximumf %281, %282 : vector<2x128xf32>
    %cst_102 = arith.constant 0.000000e+00 : f32
    %284 = vector.broadcast %cst_102 : f32 to vector<2x128xf32>
    %285 = arith.cmpf ogt, %283, %284 : vector<2x128xf32>
    %cst_103 = arith.constant 0.000000e+00 : f32
    %286 = vector.broadcast %cst_103 : f32 to vector<2x128xf32>
    %287 = arith.select %285, %283, %286 : vector<2x128xi1>, vector<2x128xf32>
    %c0_104 = arith.constant 0 : index
    %c1280_105 = arith.constant 1280 : index
    %288 = vector.load %arg14[%c0_104, %c1280_105] : memref<2x2048xf32, #tpu.memory_space<vmem>>, vector<2x128xf32>
    tpu.vector_store %arg14[%c0_104, %c1280_105], %287 {strides = array<i32>} : memref<2x2048xf32, #tpu.memory_space<vmem>>, vector<2x128xf32>,
    %289 = vector.extract_strided_slice %112 {offsets = [0, 4, 6, 0], sizes = [2, 1, 1, 128], strides = [1, 1, 1, 1]} : vector<2x8x8x128xf32> to vector<2x1x1x128xf32>
    %290 = vector.shape_cast %289 : vector<2x1x1x128xf32> to vector<2x128xf32>
    %291 = vector.extract_strided_slice %112 {offsets = [0, 4, 7, 0], sizes = [2, 1, 1, 128], strides = [1, 1, 1, 1]} : vector<2x8x8x128xf32> to vector<2x1x1x128xf32>
    %292 = vector.shape_cast %291 : vector<2x1x1x128xf32> to vector<2x128xf32>
    %293 = vector.extract_strided_slice %112 {offsets = [0, 5, 6, 0], sizes = [2, 1, 1, 128], strides = [1, 1, 1, 1]} : vector<2x8x8x128xf32> to vector<2x1x1x128xf32>
    %294 = vector.shape_cast %293 : vector<2x1x1x128xf32> to vector<2x128xf32>
    %295 = vector.extract_strided_slice %112 {offsets = [0, 5, 7, 0], sizes = [2, 1, 1, 128], strides = [1, 1, 1, 1]} : vector<2x8x8x128xf32> to vector<2x1x1x128xf32>
    %296 = vector.shape_cast %295 : vector<2x1x1x128xf32> to vector<2x128xf32>
    %297 = arith.maximumf %290, %292 : vector<2x128xf32>
    %298 = arith.maximumf %294, %296 : vector<2x128xf32>
    %299 = arith.maximumf %297, %298 : vector<2x128xf32>
    %cst_106 = arith.constant 0.000000e+00 : f32
    %300 = vector.broadcast %cst_106 : f32 to vector<2x128xf32>
    %301 = arith.cmpf ogt, %299, %300 : vector<2x128xf32>
    %cst_107 = arith.constant 0.000000e+00 : f32
    %302 = vector.broadcast %cst_107 : f32 to vector<2x128xf32>
    %303 = arith.select %301, %299, %302 : vector<2x128xi1>, vector<2x128xf32>
    %c0_108 = arith.constant 0 : index
    %c1408_109 = arith.constant 1408 : index
    %304 = vector.load %arg14[%c0_108, %c1408_109] : memref<2x2048xf32, #tpu.memory_space<vmem>>, vector<2x128xf32>
    tpu.vector_store %arg14[%c0_108, %c1408_109], %303 {strides = array<i32>} : memref<2x2048xf32, #tpu.memory_space<vmem>>, vector<2x128xf32>,
    %305 = vector.extract_strided_slice %112 {offsets = [0, 6, 0, 0], sizes = [2, 1, 1, 128], strides = [1, 1, 1, 1]} : vector<2x8x8x128xf32> to vector<2x1x1x128xf32>
    %306 = vector.shape_cast %305 : vector<2x1x1x128xf32> to vector<2x128xf32>
    %307 = vector.extract_strided_slice %112 {offsets = [0, 6, 1, 0], sizes = [2, 1, 1, 128], strides = [1, 1, 1, 1]} : vector<2x8x8x128xf32> to vector<2x1x1x128xf32>
    %308 = vector.shape_cast %307 : vector<2x1x1x128xf32> to vector<2x128xf32>
    %309 = vector.extract_strided_slice %112 {offsets = [0, 7, 0, 0], sizes = [2, 1, 1, 128], strides = [1, 1, 1, 1]} : vector<2x8x8x128xf32> to vector<2x1x1x128xf32>
    %310 = vector.shape_cast %309 : vector<2x1x1x128xf32> to vector<2x128xf32>
    %311 = vector.extract_strided_slice %112 {offsets = [0, 7, 1, 0], sizes = [2, 1, 1, 128], strides = [1, 1, 1, 1]} : vector<2x8x8x128xf32> to vector<2x1x1x128xf32>
    %312 = vector.shape_cast %311 : vector<2x1x1x128xf32> to vector<2x128xf32>
    %313 = arith.maximumf %306, %308 : vector<2x128xf32>
    %314 = arith.maximumf %310, %312 : vector<2x128xf32>
    %315 = arith.maximumf %313, %314 : vector<2x128xf32>
    %cst_110 = arith.constant 0.000000e+00 : f32
    %316 = vector.broadcast %cst_110 : f32 to vector<2x128xf32>
    %317 = arith.cmpf ogt, %315, %316 : vector<2x128xf32>
    %cst_111 = arith.constant 0.000000e+00 : f32
    %318 = vector.broadcast %cst_111 : f32 to vector<2x128xf32>
    %319 = arith.select %317, %315, %318 : vector<2x128xi1>, vector<2x128xf32>
    %c0_112 = arith.constant 0 : index
    %c1536_113 = arith.constant 1536 : index
    %320 = vector.load %arg14[%c0_112, %c1536_113] : memref<2x2048xf32, #tpu.memory_space<vmem>>, vector<2x128xf32>
    tpu.vector_store %arg14[%c0_112, %c1536_113], %319 {strides = array<i32>} : memref<2x2048xf32, #tpu.memory_space<vmem>>, vector<2x128xf32>,
    %321 = vector.extract_strided_slice %112 {offsets = [0, 6, 2, 0], sizes = [2, 1, 1, 128], strides = [1, 1, 1, 1]} : vector<2x8x8x128xf32> to vector<2x1x1x128xf32>
    %322 = vector.shape_cast %321 : vector<2x1x1x128xf32> to vector<2x128xf32>
    %323 = vector.extract_strided_slice %112 {offsets = [0, 6, 3, 0], sizes = [2, 1, 1, 128], strides = [1, 1, 1, 1]} : vector<2x8x8x128xf32> to vector<2x1x1x128xf32>
    %324 = vector.shape_cast %323 : vector<2x1x1x128xf32> to vector<2x128xf32>
    %325 = vector.extract_strided_slice %112 {offsets = [0, 7, 2, 0], sizes = [2, 1, 1, 128], strides = [1, 1, 1, 1]} : vector<2x8x8x128xf32> to vector<2x1x1x128xf32>
    %326 = vector.shape_cast %325 : vector<2x1x1x128xf32> to vector<2x128xf32>
    %327 = vector.extract_strided_slice %112 {offsets = [0, 7, 3, 0], sizes = [2, 1, 1, 128], strides = [1, 1, 1, 1]} : vector<2x8x8x128xf32> to vector<2x1x1x128xf32>
    %328 = vector.shape_cast %327 : vector<2x1x1x128xf32> to vector<2x128xf32>
    %329 = arith.maximumf %322, %324 : vector<2x128xf32>
    %330 = arith.maximumf %326, %328 : vector<2x128xf32>
    %331 = arith.maximumf %329, %330 : vector<2x128xf32>
    %cst_114 = arith.constant 0.000000e+00 : f32
    %332 = vector.broadcast %cst_114 : f32 to vector<2x128xf32>
    %333 = arith.cmpf ogt, %331, %332 : vector<2x128xf32>
    %cst_115 = arith.constant 0.000000e+00 : f32
    %334 = vector.broadcast %cst_115 : f32 to vector<2x128xf32>
    %335 = arith.select %333, %331, %334 : vector<2x128xi1>, vector<2x128xf32>
    %c0_116 = arith.constant 0 : index
    %c1664_117 = arith.constant 1664 : index
    %336 = vector.load %arg14[%c0_116, %c1664_117] : memref<2x2048xf32, #tpu.memory_space<vmem>>, vector<2x128xf32>
    tpu.vector_store %arg14[%c0_116, %c1664_117], %335 {strides = array<i32>} : memref<2x2048xf32, #tpu.memory_space<vmem>>, vector<2x128xf32>,
    %337 = vector.extract_strided_slice %112 {offsets = [0, 6, 4, 0], sizes = [2, 1, 1, 128], strides = [1, 1, 1, 1]} : vector<2x8x8x128xf32> to vector<2x1x1x128xf32>
    %338 = vector.shape_cast %337 : vector<2x1x1x128xf32> to vector<2x128xf32>
    %339 = vector.extract_strided_slice %112 {offsets = [0, 6, 5, 0], sizes = [2, 1, 1, 128], strides = [1, 1, 1, 1]} : vector<2x8x8x128xf32> to vector<2x1x1x128xf32>
    %340 = vector.shape_cast %339 : vector<2x1x1x128xf32> to vector<2x128xf32>
    %341 = vector.extract_strided_slice %112 {offsets = [0, 7, 4, 0], sizes = [2, 1, 1, 128], strides = [1, 1, 1, 1]} : vector<2x8x8x128xf32> to vector<2x1x1x128xf32>
    %342 = vector.shape_cast %341 : vector<2x1x1x128xf32> to vector<2x128xf32>
    %343 = vector.extract_strided_slice %112 {offsets = [0, 7, 5, 0], sizes = [2, 1, 1, 128], strides = [1, 1, 1, 1]} : vector<2x8x8x128xf32> to vector<2x1x1x128xf32>
    %344 = vector.shape_cast %343 : vector<2x1x1x128xf32> to vector<2x128xf32>
    %345 = arith.maximumf %338, %340 : vector<2x128xf32>
    %346 = arith.maximumf %342, %344 : vector<2x128xf32>
    %347 = arith.maximumf %345, %346 : vector<2x128xf32>
    %cst_118 = arith.constant 0.000000e+00 : f32
    %348 = vector.broadcast %cst_118 : f32 to vector<2x128xf32>
    %349 = arith.cmpf ogt, %347, %348 : vector<2x128xf32>
    %cst_119 = arith.constant 0.000000e+00 : f32
    %350 = vector.broadcast %cst_119 : f32 to vector<2x128xf32>
    %351 = arith.select %349, %347, %350 : vector<2x128xi1>, vector<2x128xf32>
    %c0_120 = arith.constant 0 : index
    %c1792_121 = arith.constant 1792 : index
    %352 = vector.load %arg14[%c0_120, %c1792_121] : memref<2x2048xf32, #tpu.memory_space<vmem>>, vector<2x128xf32>
    tpu.vector_store %arg14[%c0_120, %c1792_121], %351 {strides = array<i32>} : memref<2x2048xf32, #tpu.memory_space<vmem>>, vector<2x128xf32>,
    %353 = vector.extract_strided_slice %112 {offsets = [0, 6, 6, 0], sizes = [2, 1, 1, 128], strides = [1, 1, 1, 1]} : vector<2x8x8x128xf32> to vector<2x1x1x128xf32>
    %354 = vector.shape_cast %353 : vector<2x1x1x128xf32> to vector<2x128xf32>
    %355 = vector.extract_strided_slice %112 {offsets = [0, 6, 7, 0], sizes = [2, 1, 1, 128], strides = [1, 1, 1, 1]} : vector<2x8x8x128xf32> to vector<2x1x1x128xf32>
    %356 = vector.shape_cast %355 : vector<2x1x1x128xf32> to vector<2x128xf32>
    %357 = vector.extract_strided_slice %112 {offsets = [0, 7, 6, 0], sizes = [2, 1, 1, 128], strides = [1, 1, 1, 1]} : vector<2x8x8x128xf32> to vector<2x1x1x128xf32>
    %358 = vector.shape_cast %357 : vector<2x1x1x128xf32> to vector<2x128xf32>
    %359 = vector.extract_strided_slice %112 {offsets = [0, 7, 7, 0], sizes = [2, 1, 1, 128], strides = [1, 1, 1, 1]} : vector<2x8x8x128xf32> to vector<2x1x1x128xf32>
    %360 = vector.shape_cast %359 : vector<2x1x1x128xf32> to vector<2x128xf32>
    %361 = arith.maximumf %354, %356 : vector<2x128xf32>
    %362 = arith.maximumf %358, %360 : vector<2x128xf32>
    %363 = arith.maximumf %361, %362 : vector<2x128xf32>
    %cst_122 = arith.constant 0.000000e+00 : f32
    %364 = vector.broadcast %cst_122 : f32 to vector<2x128xf32>
    %365 = arith.cmpf ogt, %363, %364 : vector<2x128xf32>
    %cst_123 = arith.constant 0.000000e+00 : f32
    %366 = vector.broadcast %cst_123 : f32 to vector<2x128xf32>
    %367 = arith.select %365, %363, %366 : vector<2x128xi1>, vector<2x128xf32>
    %c0_124 = arith.constant 0 : index
    %c1920_125 = arith.constant 1920 : index
    %368 = vector.load %arg14[%c0_124, %c1920_125] : memref<2x2048xf32, #tpu.memory_space<vmem>>, vector<2x128xf32>
    tpu.vector_store %arg14[%c0_124, %c1920_125], %367 {strides = array<i32>} : memref<2x2048xf32, #tpu.memory_space<vmem>>, vector<2x128xf32>,
    %c1_i32_126 = arith.constant 1 : i32
    %369 = tpu.memref_slice %arg17[%c1_i32_126] : memref<2x!tpu.dma_semaphore, #tpu.memory_space<semaphore_mem>> -> memref<1x!tpu.dma_semaphore, #tpu.memory_space<semaphore_mem>>
    %370 = tpu.memref_squeeze %369 : memref<1x!tpu.dma_semaphore, #tpu.memory_space<semaphore_mem>> -> memref<!tpu.dma_semaphore, #tpu.memory_space<semaphore_mem>>
    tpu.wait_dma2 semaphore(%370 : memref<!tpu.dma_semaphore, #tpu.memory_space<semaphore_mem>>) src(%arg5 : memref<2048x128xf32, #tpu.memory_space<any>>) dst(%arg16 : memref<2048x128xf32, #tpu.memory_space<vmem>>)
    %c0_127 = arith.constant 0 : index
    %c0_128 = arith.constant 0 : index
    %371 = vector.load %arg14[%c0_127, %c0_128] : memref<2x2048xf32, #tpu.memory_space<vmem>>, vector<2x2048xf32>
    %c0_129 = arith.constant 0 : index
    %c0_130 = arith.constant 0 : index
    %372 = vector.load %arg16[%c0_129, %c0_130] : memref<2048x128xf32, #tpu.memory_space<vmem>>, vector<2048x128xf32>
    %cst_131 = arith.constant dense<0.000000e+00> : vector<2x128xf32>
    %373 = tpu.matmul %371, %372, %cst_131 {dimension_numbers = #tpu.dot_dimension_numbers<[1], [0], [0], [1], [0, 0, 1, 1], [], []>} : vector<2x2048xf32>, vector<2048x128xf32>, vector<2x128xf32> -> vector<2x128xf32>
    %c0_132 = arith.constant 0 : index
    %c0_133 = arith.constant 0 : index
    %374 = vector.load %arg6[%c0_132, %c0_133] : memref<1x128xf32, #tpu.memory_space<vmem>>, vector<1x128xf32>
    %375 = vector.broadcast %374 : vector<1x128xf32> to vector<2x128xf32>
    %376 = arith.addf %373, %375 : vector<2x128xf32>
    %cst_134 = arith.constant 0.000000e+00 : f32
    %377 = vector.broadcast %cst_134 : f32 to vector<2x128xf32>
    %378 = arith.cmpf ogt, %376, %377 : vector<2x128xf32>
    %cst_135 = arith.constant 0.000000e+00 : f32
    %379 = vector.broadcast %cst_135 : f32 to vector<2x128xf32>
    %380 = arith.select %378, %376, %379 : vector<2x128xi1>, vector<2x128xf32>
    %c0_136 = arith.constant 0 : index
    %c0_137 = arith.constant 0 : index
    %381 = vector.load %arg7[%c0_136, %c0_137] : memref<128x128xf32, #tpu.memory_space<vmem>>, vector<128x128xf32>
    %cst_138 = arith.constant dense<0.000000e+00> : vector<2x128xf32>
    %382 = tpu.matmul %380, %381, %cst_138 {dimension_numbers = #tpu.dot_dimension_numbers<[1], [0], [0], [1], [0, 0, 1, 1], [], []>} : vector<2x128xf32>, vector<128x128xf32>, vector<2x128xf32> -> vector<2x128xf32>
    %c0_139 = arith.constant 0 : index
    %c0_140 = arith.constant 0 : index
    %383 = vector.load %arg8[%c0_139, %c0_140] : memref<1x128xf32, #tpu.memory_space<vmem>>, vector<1x128xf32>
    %384 = vector.broadcast %383 : vector<1x128xf32> to vector<2x128xf32>
    %385 = arith.addf %382, %384 : vector<2x128xf32>
    %cst_141 = arith.constant 0.000000e+00 : f32
    %386 = vector.broadcast %cst_141 : f32 to vector<2x128xf32>
    %387 = arith.cmpf ogt, %385, %386 : vector<2x128xf32>
    %cst_142 = arith.constant 0.000000e+00 : f32
    %388 = vector.broadcast %cst_142 : f32 to vector<2x128xf32>
    %389 = arith.select %387, %385, %388 : vector<2x128xi1>, vector<2x128xf32>
    %c0_143 = arith.constant 0 : index
    %c0_144 = arith.constant 0 : index
    %390 = vector.load %arg9[%c0_143, %c0_144] : memref<128x128xf32, #tpu.memory_space<vmem>>, vector<128x128xf32>
    %cst_145 = arith.constant dense<0.000000e+00> : vector<2x128xf32>
    %391 = tpu.matmul %389, %390, %cst_145 {dimension_numbers = #tpu.dot_dimension_numbers<[1], [0], [0], [1], [0, 0, 1, 1], [], []>} : vector<2x128xf32>, vector<128x128xf32>, vector<2x128xf32> -> vector<2x128xf32>
    %c0_146 = arith.constant 0 : index
    %c0_147 = arith.constant 0 : index
    %392 = vector.load %arg10[%c0_146, %c0_147] : memref<1x128xf32, #tpu.memory_space<vmem>>, vector<1x128xf32>
    %393 = vector.broadcast %392 : vector<1x128xf32> to vector<2x128xf32>
    %394 = arith.addf %391, %393 : vector<2x128xf32>
    %c0_148 = arith.constant 0 : index
    %c0_149 = arith.constant 0 : index
    %395 = vector.load %arg11[%c0_148, %c0_149] : memref<2x128xf32, #tpu.memory_space<vmem>>, vector<2x128xf32>
    tpu.vector_store %arg11[%c0_148, %c0_149], %394 {strides = array<i32>} : memref<2x128xf32, #tpu.memory_space<vmem>>, vector<2x128xf32>,
    return
  }
}

</mosaic_0001>

<bundles_post_ra>
// kernel: lenetlike_forward.1
= control target key start
LH: loop header
LB: loop body
LE: loop exit
PB: predicated region body
PF: predicated region fallthrough
CT: control target
= control target key end

     0   :  { %16 = vsyncpa [#allocation9], 0  ;;  %s14125_s0 = inlined_call_operand.vmem [shape: f32[4,384,25], index: 0, kind: input, shape index: {}]   ;;  %s14126_s1 = inlined_call_operand.vmem [shape: f32[25,128], index: 1, kind: input, shape index: {}]   ;;  %s14127_s2 = inlined_call_operand.vmem [shape: f32[1,128], index: 2, kind: input, shape index: {}]   ;;  %s14128_s3 = inlined_call_operand.vmem [shape: f32[3200,128], index: 3, kind: input, shape index: {}]   ;;  %s14129_s4 = inlined_call_operand.vmem [shape: f32[1,128], index: 4, kind: input, shape index: {}]   ;;  %s14130_s5 = inlined_call_operand.vmem [shape: f32[2048,128], index: 5, kind: input, shape index: {}]   ;;  %s14131_s6 = inlined_call_operand.vmem [shape: f32[1,128], index: 6, kind: input, shape index: {}]   ;;  %s14132_s7 = inlined_call_operand.vmem [shape: f32[128,128], index: 7, kind: input, shape index: {}]   ;;  %s14133_s8 = inlined_call_operand.vmem [shape: f32[1,128], index: 8, kind: input, shape index: {}]   ;;  %s14134_s9 = inlined_call_operand.vmem [shape: f32[128,128], index: 9, kind: input, shape index: {}]   ;;  %s14135_s10 = inlined_call_operand.vmem [shape: f32[1,128], index: 10, kind: input, shape index: {}]   ;;  %s14136_s11 = inlined_call_operand.hbm [shape: f32[2,128], index: 11, kind: output, shape index: {}]  }
   0x1   :  { %v7496_v0 = vld [vmem:[%s14128_s3] sm:$0xff]  ;;  %v7501_v1 = vld [vmem:[%s14128_s3 + $0x8] sm:$0xff]  ;;  %v7506_v2 = vld [vmem:[%s14128_s3 + $0x10] sm:$0xff] }
   0x2   :  { %14298 = vst [vmem:[#allocation15_spill] sm:$0xff] %v7496_v0  ;;  %v7511_v3 = vld [vmem:[%s14128_s3 + $0x18] sm:$0xff]  ;;  %v7516_v4 = vld [vmem:[%s14128_s3 + $0x20] sm:$0xff]  ;;  %v7521_v5 = vld [vmem:[%s14128_s3 + $0x28] sm:$0xff] }
   0x3   :  { %14299 = vst [vmem:[#allocation16_spill] sm:$0xff] %v7501_v1  ;;  %v7526_v6 = vld [vmem:[%s14128_s3 + $0x30] sm:$0xff]  ;;  %v7531_v7 = vld [vmem:[%s14128_s3 + $0x38] sm:$0xff]  ;;  %v7536_v8 = vld [vmem:[%s14128_s3 + $0x40] sm:$0xff] }
   0x4   :  { %14300 = vst [vmem:[#allocation17_spill] sm:$0xff] %v7506_v2  ;;  %v7541_v9 = vld [vmem:[%s14128_s3 + $0x48] sm:$0xff]  ;;  %v7546_v10 = vld [vmem:[%s14128_s3 + $0x50] sm:$0xff]  ;;  %v7551_v11 = vld [vmem:[%s14128_s3 + $0x58] sm:$0xff] }
   0x5   :  { %14301 = vst [vmem:[#allocation18_spill] sm:$0xff] %v7511_v3  ;;  %v7556_v12 = vld [vmem:[%s14128_s3 + $0x60] sm:$0xff]  ;;  %v7561_v13 = vld [vmem:[%s14128_s3 + $0x68] sm:$0xff]  ;;  %v7566_v14 = vld [vmem:[%s14128_s3 + $0x70] sm:$0xff] }
   0x6   :  { %14302 = vst [vmem:[#allocation19_spill] sm:$0xff] %v7516_v4  ;;  %v7571_v15 = vld [vmem:[%s14128_s3 + $0x78] sm:$0xff]  ;;  %v7576_v16 = vld [vmem:[%s14128_s3 + $0x80] sm:$0xff]  ;;  %v7581_v17 = vld [vmem:[%s14128_s3 + $0x88] sm:$0xff] }
   0x7   :  { %14303 = vst [vmem:[#allocation20_spill] sm:$0xff] %v7521_v5  ;;  %v7586_v18 = vld [vmem:[%s14128_s3 + $0x90] sm:$0xff]  ;;  %v7591_v19 = vld [vmem:[%s14128_s3 + $0x98] sm:$0xff]  ;;  %v7596_v20 = vld [vmem:[%s14128_s3 + $0xa0] sm:$0xff] }
   0x8   :  { %14304 = vst [vmem:[#allocation21_spill] sm:$0xff] %v7526_v6  ;;  %v7601_v21 = vld [vmem:[%s14128_s3 + $0xa8] sm:$0xff]  ;;  %v7606_v22 = vld [vmem:[%s14128_s3 + $0xb0] sm:$0xff]  ;;  %v7611_v23 = vld [vmem:[%s14128_s3 + $0xb8] sm:$0xff] }
   0x9   :  { %14305 = vst [vmem:[#allocation22_spill] sm:$0xff] %v7531_v7  ;;  %v7616_v24 = vld [vmem:[%s14128_s3 + $0xc0] sm:$0xff]  ;;  %v7621_v25 = vld [vmem:[%s14128_s3 + $0xc8] sm:$0xff]  ;;  %v7626_v26 = vld [vmem:[%s14128_s3 + $0xd0] sm:$0xff] }
   0xa   :  { %14306 = vst [vmem:[#allocation23_spill] sm:$0xff] %v7536_v8  ;;  %v7631_v27 = vld [vmem:[%s14128_s3 + $0xd8] sm:$0xff]  ;;  %v7636_v28 = vld [vmem:[%s14128_s3 + $0xe0] sm:$0xff]  ;;  %v7641_v29 = vld [vmem:[%s14128_s3 + $0xe8] sm:$0xff] }
   0xb   :  { %14307 = vst [vmem:[#allocation24_spill] sm:$0xff] %v7541_v9  ;;  %v7646_v30 = vld [vmem:[%s14128_s3 + $0xf0] sm:$0xff]  ;;  %v7651_v31 = vld [vmem:[%s14128_s3 + $0xf8] sm:$0xff]  ;;  %v7656_v32 = vld [vmem:[%s14128_s3 + $0x100] sm:$0xff] }
   0xc   :  { %14308 = vst [vmem:[#allocation25_spill] sm:$0xff] %v7546_v10  ;;  %v7661_v33 = vld [vmem:[%s14128_s3 + $0x108] sm:$0xff]  ;;  %v7666_v34 = vld [vmem:[%s14128_s3 + $0x110] sm:$0xff]  ;;  %v7671_v35 = vld [vmem:[%s14128_s3 + $0x118] sm:$0xff] }
   0xd   :  { %14309 = vst [vmem:[#allocation26_spill] sm:$0xff] %v7551_v11  ;;  %v7676_v36 = vld [vmem:[%s14128_s3 + $0x120] sm:$0xff]  ;;  %v7681_v37 = vld [vmem:[%s14128_s3 + $0x128] sm:$0xff]  ;;  %v7686_v38 = vld [vmem:[%s14128_s3 + $0x130] sm:$0xff] }
   0xe   :  { %14310 = vst [vmem:[#allocation27_spill] sm:$0xff] %v7556_v12  ;;  %v7691_v39 = vld [vmem:[%s14128_s3 + $0x138] sm:$0xff]  ;;  %v7696_v40 = vld [vmem:[%s14128_s3 + $0x140] sm:$0xff]  ;;  %v7701_v41 = vld [vmem:[%s14128_s3 + $0x148] sm:$0xff] }
   0xf   :  { %14311 = vst [vmem:[#allocation28_spill] sm:$0xff] %v7561_v13  ;;  %v7706_v42 = vld [vmem:[%s14128_s3 + $0x150] sm:$0xff]  ;;  %v7711_v43 = vld [vmem:[%s14128_s3 + $0x158] sm:$0xff]  ;;  %v7716_v44 = vld [vmem:[%s14128_s3 + $0x160] sm:$0xff] }
  0x10   :  { %14312 = vst [vmem:[#allocation29_spill] sm:$0xff] %v7566_v14  ;;  %v7721_v45 = vld [vmem:[%s14128_s3 + $0x168] sm:$0xff]  ;;  %v7726_v46 = vld [vmem:[%s14128_s3 + $0x170] sm:$0xff]  ;;  %v7731_v47 = vld [vmem:[%s14128_s3 + $0x178] sm:$0xff] }
  0x11   :  { %14313 = vst [vmem:[#allocation30_spill] sm:$0xff] %v7571_v15  ;;  %v7736_v48 = vld [vmem:[%s14128_s3 + $0x180] sm:$0xff]  ;;  %v7741_v49 = vld [vmem:[%s14128_s3 + $0x188] sm:$0xff]  ;;  %v7746_v50 = vld [vmem:[%s14128_s3 + $0x190] sm:$0xff] }
  0x12   :  { %14314 = vst [vmem:[#allocation31_spill] sm:$0xff] %v7576_v16  ;;  %v7751_v51 = vld [vmem:[%s14128_s3 + $0x198] sm:$0xff]  ;;  %v7756_v52 = vld [vmem:[%s14128_s3 + $0x1a0] sm:$0xff]  ;;  %v7761_v53 = vld [vmem:[%s14128_s3 + $0x1a8] sm:$0xff] }
  0x13   :  { %14315 = vst [vmem:[#allocation32_spill] sm:$0xff] %v7581_v17  ;;  %v7766_v54 = vld [vmem:[%s14128_s3 + $0x1b0] sm:$0xff]  ;;  %v7771_v55 = vld [vmem:[%s14128_s3 + $0x1b8] sm:$0xff]  ;;  %v7776_v56 = vld [vmem:[%s14128_s3 + $0x1c0] sm:$0xff] }
  0x14   :  { %14316 = vst [vmem:[#allocation33_spill] sm:$0xff] %v7586_v18  ;;  %v7781_v57 = vld [vmem:[%s14128_s3 + $0x1c8] sm:$0xff]  ;;  %v7786_v58 = vld [vmem:[%s14128_s3 + $0x1d0] sm:$0xff]  ;;  %v7791_v59 = vld [vmem:[%s14128_s3 + $0x1d8] sm:$0xff] }
  0x15   :  { %14317 = vst [vmem:[#allocation34_spill] sm:$0xff] %v7591_v19  ;;  %v7796_v60 = vld [vmem:[%s14128_s3 + $0x1e0] sm:$0xff]  ;;  %v7801_v61 = vld [vmem:[%s14128_s3 + $0x1e8] sm:$0xff]  ;;  %v7806_v62 = vld [vmem:[%s14128_s3 + $0x1f0] sm:$0xff] }
  0x16   :  { %14318 = vst [vmem:[#allocation35_spill] sm:$0xff] %v7596_v20  ;;  %v7811_v63 = vld [vmem:[%s14128_s3 + $0x1f8] sm:$0xff] }
  0x17   :  { %14319 = vst [vmem:[#allocation36_spill] sm:$0xff] %v7601_v21 }
  0x18   :  { %14320 = vst [vmem:[#allocation37_spill] sm:$0xff] %v7606_v22 }
  0x19   :  { %14321 = vst [vmem:[#allocation38_spill] sm:$0xff] %v7611_v23 }
  0x1a   :  { %14322 = vst [vmem:[#allocation39_spill] sm:$0xff] %v7616_v24 }
  0x1b   :  { %14323 = vst [vmem:[#allocation40_spill] sm:$0xff] %v7621_v25 }
  0x1c   :  { %14324 = vst [vmem:[#allocation41_spill] sm:$0xff] %v7626_v26 }
  0x1d   :  { %14325 = vst [vmem:[#allocation42_spill] sm:$0xff] %v7631_v27 }
  0x1e   :  { %14326 = vst [vmem:[#allocation43_spill] sm:$0xff] %v7636_v28 }
  0x1f   :  { %14327 = vst [vmem:[#allocation44_spill] sm:$0xff] %v7641_v29 }
  0x20   :  { %14328 = vst [vmem:[#allocation45_spill] sm:$0xff] %v7646_v30 }
  0x21   :  { %14329 = vst [vmem:[#allocation46_spill] sm:$0xff] %v7651_v31 }
  0x22   :  { %14330 = vst [vmem:[#allocation47_spill] sm:$0xff] %v7656_v32 }
  0x23   :  { %14331 = vst [vmem:[#allocation48_spill] sm:$0xff] %v7661_v33 }
  0x24   :  { %14332 = vst [vmem:[#allocation49_spill] sm:$0xff] %v7666_v34 }
  0x25   :  { %14333 = vst [vmem:[#allocation50_spill] sm:$0xff] %v7671_v35 }
  0x26   :  { %14334 = vst [vmem:[#allocation51_spill] sm:$0xff] %v7676_v36 }
  0x27   :  { %14335 = vst [vmem:[#allocation52_spill] sm:$0xff] %v7681_v37 }
  0x28   :  { %14336 = vst [vmem:[#allocation53_spill] sm:$0xff] %v7686_v38 }
  0x29   :  { %14337 = vst [vmem:[#allocation54_spill] sm:$0xff] %v7691_v39 }
  0x2a   :  { %14338 = vst [vmem:[#allocation55_spill] sm:$0xff] %v7696_v40 }
  0x2b   :  { %14339 = vst [vmem:[#allocation56_spill] sm:$0xff] %v7701_v41 }
  0x2c   :  { %14340 = vst [vmem:[#allocation57_spill] sm:$0xff] %v7706_v42 }
  0x2d   :  { %14341 = vst [vmem:[#allocation58_spill] sm:$0xff] %v7711_v43 }
  0x2e   :  { %14342 = vst [vmem:[#allocation59_spill] sm:$0xff] %v7716_v44 }
  0x2f   :  { %14343 = vst [vmem:[#allocation60_spill] sm:$0xff] %v7721_v45 }
  0x30   :  { %14344 = vst [vmem:[#allocation61_spill] sm:$0xff] %v7726_v46 }
  0x31   :  { %14345 = vst [vmem:[#allocation62_spill] sm:$0xff] %v7731_v47 }
  0x32   :  { %14346 = vst [vmem:[#allocation63_spill] sm:$0xff] %v7736_v48  ;;  %v7816_v48 = vld [vmem:[%s14128_s3 + $0x200] sm:$0xff] }
  0x33   :  { %14347 = vst [vmem:[#allocation64_spill] sm:$0xff] %v7741_v49  ;;  %v7821_v49 = vld [vmem:[%s14128_s3 + $0x208] sm:$0xff] }
  0x34   :  { %14348 = vst [vmem:[#allocation65_spill] sm:$0xff] %v7746_v50  ;;  %v7826_v50 = vld [vmem:[%s14128_s3 + $0x210] sm:$0xff] }
  0x35   :  { %14349 = vst [vmem:[#allocation66_spill] sm:$0xff] %v7751_v51  ;;  %v7831_v51 = vld [vmem:[%s14128_s3 + $0x218] sm:$0xff] }
  0x36   :  { %14350 = vst [vmem:[#allocation67_spill] sm:$0xff] %v7756_v52  ;;  %v7836_v52 = vld [vmem:[%s14128_s3 + $0x220] sm:$0xff] }
  0x37   :  { %14351 = vst [vmem:[#allocation68_spill] sm:$0xff] %v7761_v53  ;;  %v7876_v53 = vld [vmem:[%s14128_s3 + $0x260] sm:$0xff] }
  0x38   :  { %14352 = vst [vmem:[#allocation69_spill] sm:$0xff] %v7766_v54  ;;  %v7886_v54 = vld [vmem:[%s14128_s3 + $0x270] sm:$0xff] }
  0x39   :  { %14353 = vst [vmem:[#allocation70_spill] sm:$0xff] %v7771_v55  ;;  %v7896_v55 = vld [vmem:[%s14128_s3 + $0x280] sm:$0xff] }
  0x3a   :  { %14354 = vst [vmem:[#allocation71_spill] sm:$0xff] %v7776_v56  ;;  %v7906_v56 = vld [vmem:[%s14128_s3 + $0x290] sm:$0xff] }
  0x3b   :  { %14355 = vst [vmem:[#allocation72_spill] sm:$0xff] %v7781_v57  ;;  %v7916_v57 = vld [vmem:[%s14128_s3 + $0x2a0] sm:$0xff] }
  0x3c   :  { %14356 = vst [vmem:[#allocation73_spill] sm:$0xff] %v7786_v58  ;;  %v7991_v58 = vld [vmem:[%s14128_s3 + $0x318] sm:$0xff] }
  0x3d   :  { %14357 = vst [vmem:[#allocation74_spill] sm:$0xff] %v7791_v59 }
  0x3e   :  { %14358 = vst [vmem:[#allocation75_spill] sm:$0xff] %v7796_v60 }
  0x3f   :  { %14359 = vst [vmem:[#allocation76_spill] sm:$0xff] %v7801_v61 }
  0x40   :  { %14360 = vst [vmem:[#allocation77_spill] sm:$0xff] %v7806_v62 }
  0x41   :  { %14361 = vst [vmem:[#allocation78_spill] sm:$0xff] %v7811_v63 }
  0x42   :  { %14362 = vst [vmem:[#allocation79_spill] sm:$0xff] %v7816_v48  ;;  %v7841_v48 = vld [vmem:[%s14128_s3 + $0x228] sm:$0xff] }
  0x43   :  { %14363 = vst [vmem:[#allocation80_spill] sm:$0xff] %v7821_v49  ;;  %v7846_v49 = vld [vmem:[%s14128_s3 + $0x230] sm:$0xff] }
  0x44   :  { %14364 = vst [vmem:[#allocation81_spill] sm:$0xff] %v7826_v50  ;;  %v7851_v50 = vld [vmem:[%s14128_s3 + $0x238] sm:$0xff] }
  0x45   :  { %14365 = vst [vmem:[#allocation82_spill] sm:$0xff] %v7831_v51  ;;  %v7856_v51 = vld [vmem:[%s14128_s3 + $0x240] sm:$0xff] }
  0x46   :  { %14366 = vst [vmem:[#allocation83_spill] sm:$0xff] %v7836_v52  ;;  %v7861_v52 = vld [vmem:[%s14128_s3 + $0x248] sm:$0xff] }
  0x47   :  { %14367 = vst [vmem:[#allocation84_spill] sm:$0xff] %v7841_v48  ;;  %v7866_v48 = vld [vmem:[%s14128_s3 + $0x250] sm:$0xff] }
  0x48   :  { %14368 = vst [vmem:[#allocation85_spill] sm:$0xff] %v7846_v49  ;;  %v7871_v49 = vld [vmem:[%s14128_s3 + $0x258] sm:$0xff] }
  0x49   :  { %14369 = vst [vmem:[#allocation86_spill] sm:$0xff] %v7851_v50  ;;  %v7881_v50 = vld [vmem:[%s14128_s3 + $0x268] sm:$0xff] }
  0x4a   :  { %14370 = vst [vmem:[#allocation87_spill] sm:$0xff] %v7856_v51  ;;  %v7891_v51 = vld [vmem:[%s14128_s3 + $0x278] sm:$0xff] }
  0x4b   :  { %14371 = vst [vmem:[#allocation88_spill] sm:$0xff] %v7861_v52  ;;  %v7901_v52 = vld [vmem:[%s14128_s3 + $0x288] sm:$0xff] }
  0x4c   :  { %14372 = vst [vmem:[#allocation89_spill] sm:$0xff] %v7866_v48  ;;  %v7911_v48 = vld [vmem:[%s14128_s3 + $0x298] sm:$0xff] }
  0x4d   :  { %14373 = vst [vmem:[#allocation90_spill] sm:$0xff] %v7871_v49  ;;  %v7986_v49 = vld [vmem:[%s14128_s3 + $0x310] sm:$0xff] }
  0x4e   :  { %14374 = vst [vmem:[#allocation91_spill] sm:$0xff] %v7876_v53  ;;  %v7996_v53 = vld [vmem:[%s14128_s3 + $0x320] sm:$0xff] }
  0x4f   :  { %14375 = vst [vmem:[#allocation92_spill] sm:$0xff] %v7881_v50 }
  0x50   :  { %14376 = vst [vmem:[#allocation93_spill] sm:$0xff] %v7886_v54 }
  0x51   :  { %14377 = vst [vmem:[#allocation94_spill] sm:$0xff] %v7891_v51 }
  0x52   :  { %14378 = vst [vmem:[#allocation95_spill] sm:$0xff] %v7896_v55  ;;  %v7921_v55 = vld [vmem:[%s14128_s3 + $0x2a8] sm:$0xff] }
  0x53   :  { %14379 = vst [vmem:[#allocation96_spill] sm:$0xff] %v7901_v52  ;;  %v7926_v52 = vld [vmem:[%s14128_s3 + $0x2b0] sm:$0xff] }
  0x54   :  { %14380 = vst [vmem:[#allocation97_spill] sm:$0xff] %v7906_v56  ;;  %v7931_v56 = vld [vmem:[%s14128_s3 + $0x2b8] sm:$0xff] }
  0x55   :  { %14381 = vst [vmem:[#allocation98_spill] sm:$0xff] %v7911_v48  ;;  %v7936_v48 = vld [vmem:[%s14128_s3 + $0x2c0] sm:$0xff] }
  0x56   :  { %14382 = vst [vmem:[#allocation99_spill] sm:$0xff] %v7916_v57  ;;  %v7941_v57 = vld [vmem:[%s14128_s3 + $0x2c8] sm:$0xff] }
  0x57   :  { %14383 = vst [vmem:[#allocation100_spill] sm:$0xff] %v7921_v55  ;;  %v7946_v55 = vld [vmem:[%s14128_s3 + $0x2d0] sm:$0xff] }
  0x58   :  { %14384 = vst [vmem:[#allocation101_spill] sm:$0xff] %v7926_v52  ;;  %v7951_v52 = vld [vmem:[%s14128_s3 + $0x2d8] sm:$0xff] }
  0x59   :  { %14385 = vst [vmem:[#allocation102_spill] sm:$0xff] %v7931_v56  ;;  %v7956_v56 = vld [vmem:[%s14128_s3 + $0x2e0] sm:$0xff] }
  0x5a   :  { %14386 = vst [vmem:[#allocation103_spill] sm:$0xff] %v7936_v48  ;;  %v7961_v48 = vld [vmem:[%s14128_s3 + $0x2e8] sm:$0xff] }
  0x5b   :  { %14387 = vst [vmem:[#allocation104_spill] sm:$0xff] %v7941_v57  ;;  %v7966_v57 = vld [vmem:[%s14128_s3 + $0x2f0] sm:$0xff] }
  0x5c   :  { %14388 = vst [vmem:[#allocation105_spill] sm:$0xff] %v7946_v55  ;;  %v7971_v55 = vld [vmem:[%s14128_s3 + $0x2f8] sm:$0xff] }
  0x5d   :  { %14389 = vst [vmem:[#allocation106_spill] sm:$0xff] %v7951_v52  ;;  %v7976_v52 = vld [vmem:[%s14128_s3 + $0x300] sm:$0xff] }
  0x5e   :  { %14390 = vst [vmem:[#allocation107_spill] sm:$0xff] %v7956_v56  ;;  %v7981_v56 = vld [vmem:[%s14128_s3 + $0x308] sm:$0xff] }
  0x5f   :  { %14391 = vst [vmem:[#allocation108_spill] sm:$0xff] %v7961_v48 }
  0x60   :  { %14392 = vst [vmem:[#allocation109_spill] sm:$0xff] %v7966_v57 }
  0x61   :  { %14393 = vst [vmem:[#allocation110_spill] sm:$0xff] %v7971_v55 }
  0x62   :  { %14394 = vst [vmem:[#allocation111_spill] sm:$0xff] %v7976_v52  ;;  %v8001_v52 = vld [vmem:[%s14128_s3 + $0x328] sm:$0xff] }
  0x63   :  { %14395 = vst [vmem:[#allocation112_spill] sm:$0xff] %v7981_v56  ;;  %v8006_v56 = vld [vmem:[%s14128_s3 + $0x330] sm:$0xff] }
  0x64   :  { %14396 = vst [vmem:[#allocation113_spill] sm:$0xff] %v7986_v49  ;;  %v8011_v49 = vld [vmem:[%s14128_s3 + $0x338] sm:$0xff] }
  0x65   :  { %14397 = vst [vmem:[#allocation114_spill] sm:$0xff] %v7991_v58  ;;  %v8016_v58 = vld [vmem:[%s14128_s3 + $0x340] sm:$0xff] }
  0x66   :  { %14398 = vst [vmem:[#allocation115_spill] sm:$0xff] %v7996_v53  ;;  %v8021_v53 = vld [vmem:[%s14128_s3 + $0x348] sm:$0xff] }
  0x67   :  { %14399 = vst [vmem:[#allocation116_spill] sm:$0xff] %v8001_v52  ;;  %v8026_v52 = vld [vmem:[%s14128_s3 + $0x350] sm:$0xff] }
  0x68   :  { %14400 = vst [vmem:[#allocation117_spill] sm:$0xff] %v8006_v56  ;;  %v8031_v56 = vld [vmem:[%s14128_s3 + $0x358] sm:$0xff] }
  0x69   :  { %14401 = vst [vmem:[#allocation118_spill] sm:$0xff] %v8011_v49  ;;  %v8036_v49 = vld [vmem:[%s14128_s3 + $0x360] sm:$0xff] }
  0x6a   :  { %14402 = vst [vmem:[#allocation119_spill] sm:$0xff] %v8016_v58  ;;  %v8041_v58 = vld [vmem:[%s14128_s3 + $0x368] sm:$0xff] }
  0x6b   :  { %14403 = vst [vmem:[#allocation120_spill] sm:$0xff] %v8021_v53  ;;  %v8046_v53 = vld [vmem:[%s14128_s3 + $0x370] sm:$0xff] }
  0x6c   :  { %14404 = vst [vmem:[#allocation121_spill] sm:$0xff] %v8026_v52  ;;  %v8051_v52 = vld [vmem:[%s14128_s3 + $0x378] sm:$0xff] }
  0x6d   :  { %14405 = vst [vmem:[#allocation122_spill] sm:$0xff] %v8031_v56  ;;  %v8056_v56 = vld [vmem:[%s14128_s3 + $0x380] sm:$0xff] }
  0x6e   :  { %14406 = vst [vmem:[#allocation123_spill] sm:$0xff] %v8036_v49  ;;  %v8061_v49 = vld [vmem:[%s14128_s3 + $0x388] sm:$0xff] }
  0x6f   :  { %14407 = vst [vmem:[#allocation124_spill] sm:$0xff] %v8041_v58  ;;  %v8066_v58 = vld [vmem:[%s14128_s3 + $0x390] sm:$0xff] }
  0x70   :  { %14408 = vst [vmem:[#allocation125_spill] sm:$0xff] %v8046_v53  ;;  %v8071_v53 = vld [vmem:[%s14128_s3 + $0x398] sm:$0xff] }
  0x71   :  { %14409 = vst [vmem:[#allocation126_spill] sm:$0xff] %v8051_v52  ;;  %v8076_v52 = vld [vmem:[%s14128_s3 + $0x3a0] sm:$0xff] }
  0x72   :  { %14410 = vst [vmem:[#allocation127_spill] sm:$0xff] %v8056_v56  ;;  %v8081_v56 = vld [vmem:[%s14128_s3 + $0x3a8] sm:$0xff] }
  0x73   :  { %14411 = vst [vmem:[#allocation128_spill] sm:$0xff] %v8061_v49  ;;  %v8086_v49 = vld [vmem:[%s14128_s3 + $0x3b0] sm:$0xff] }
  0x74   :  { %14412 = vst [vmem:[#allocation129_spill] sm:$0xff] %v8066_v58  ;;  %v8091_v58 = vld [vmem:[%s14128_s3 + $0x3b8] sm:$0xff] }
  0x75   :  { %14413 = vst [vmem:[#allocation130_spill] sm:$0xff] %v8071_v53  ;;  %v8096_v53 = vld [vmem:[%s14128_s3 + $0x3c0] sm:$0xff] }
  0x76   :  { %14414 = vst [vmem:[#allocation131_spill] sm:$0xff] %v8076_v52  ;;  %v8101_v52 = vld [vmem:[%s14128_s3 + $0x3c8] sm:$0xff] }
  0x77   :  { %14415 = vst [vmem:[#allocation132_spill] sm:$0xff] %v8081_v56  ;;  %v8106_v56 = vld [vmem:[%s14128_s3 + $0x3d0] sm:$0xff] }
  0x78   :  { %14416 = vst [vmem:[#allocation133_spill] sm:$0xff] %v8086_v49  ;;  %v8111_v49 = vld [vmem:[%s14128_s3 + $0x3d8] sm:$0xff] }
  0x79   :  { %14417 = vst [vmem:[#allocation134_spill] sm:$0xff] %v8091_v58  ;;  %v8116_v58 = vld [vmem:[%s14128_s3 + $0x3e0] sm:$0xff] }
  0x7a   :  { %14418 = vst [vmem:[#allocation135_spill] sm:$0xff] %v8096_v53  ;;  %v8121_v53 = vld [vmem:[%s14128_s3 + $0x3e8] sm:$0xff] }
  0x7b   :  { %14419 = vst [vmem:[#allocation136_spill] sm:$0xff] %v8101_v52  ;;  %v8126_v52 = vld [vmem:[%s14128_s3 + $0x3f0] sm:$0xff] }
  0x7c   :  { %14420 = vst [vmem:[#allocation137_spill] sm:$0xff] %v8106_v56  ;;  %v8131_v56 = vld [vmem:[%s14128_s3 + $0x3f8] sm:$0xff] }
  0x7d   :  { %14421 = vst [vmem:[#allocation138_spill] sm:$0xff] %v8111_v49  ;;  %v8136_v49 = vld [vmem:[%s14128_s3 + $0x400] sm:$0xff] }
  0x7e   :  { %14422 = vst [vmem:[#allocation139_spill] sm:$0xff] %v8116_v58  ;;  %v8141_v58 = vld [vmem:[%s14128_s3 + $0x408] sm:$0xff] }
  0x7f   :  { %14423 = vst [vmem:[#allocation140_spill] sm:$0xff] %v8121_v53  ;;  %v8146_v53 = vld [vmem:[%s14128_s3 + $0x410] sm:$0xff] }
  0x80   :  { %14424 = vst [vmem:[#allocation141_spill] sm:$0xff] %v8126_v52  ;;  %v8151_v52 = vld [vmem:[%s14128_s3 + $0x418] sm:$0xff] }
  0x81   :  { %14425 = vst [vmem:[#allocation142_spill] sm:$0xff] %v8131_v56  ;;  %v8156_v56 = vld [vmem:[%s14128_s3 + $0x420] sm:$0xff] }
  0x82   :  { %14426 = vst [vmem:[#allocation143_spill] sm:$0xff] %v8136_v49  ;;  %v8161_v49 = vld [vmem:[%s14128_s3 + $0x428] sm:$0xff] }
  0x83   :  { %14427 = vst [vmem:[#allocation144_spill] sm:$0xff] %v8141_v58  ;;  %v8166_v58 = vld [vmem:[%s14128_s3 + $0x430] sm:$0xff] }
  0x84   :  { %14428 = vst [vmem:[#allocation145_spill] sm:$0xff] %v8146_v53  ;;  %v8171_v53 = vld [vmem:[%s14128_s3 + $0x438] sm:$0xff] }
  0x85   :  { %14429 = vst [vmem:[#allocation146_spill] sm:$0xff] %v8151_v52  ;;  %v8176_v52 = vld [vmem:[%s14128_s3 + $0x440] sm:$0xff] }
  0x86   :  { %14430 = vst [vmem:[#allocation147_spill] sm:$0xff] %v8156_v56  ;;  %v8181_v56 = vld [vmem:[%s14128_s3 + $0x448] sm:$0xff] }
  0x87   :  { %14431 = vst [vmem:[#allocation148_spill] sm:$0xff] %v8161_v49  ;;  %v8186_v49 = vld [vmem:[%s14128_s3 + $0x450] sm:$0xff] }
  0x88   :  { %14432 = vst [vmem:[#allocation149_spill] sm:$0xff] %v8166_v58  ;;  %v8191_v58 = vld [vmem:[%s14128_s3 + $0x458] sm:$0xff] }
  0x89   :  { %14433 = vst [vmem:[#allocation150_spill] sm:$0xff] %v8171_v53  ;;  %v8196_v53 = vld [vmem:[%s14128_s3 + $0x460] sm:$0xff] }
  0x8a   :  { %14434 = vst [vmem:[#allocation151_spill] sm:$0xff] %v8176_v52  ;;  %v8201_v52 = vld [vmem:[%s14128_s3 + $0x468] sm:$0xff] }
  0x8b   :  { %14435 = vst [vmem:[#allocation152_spill] sm:$0xff] %v8181_v56  ;;  %v8206_v56 = vld [vmem:[%s14128_s3 + $0x470] sm:$0xff] }
  0x8c   :  { %14436 = vst [vmem:[#allocation153_spill] sm:$0xff] %v8186_v49  ;;  %v8211_v49 = vld [vmem:[%s14128_s3 + $0x478] sm:$0xff] }
  0x8d   :  { %14437 = vst [vmem:[#allocation154_spill] sm:$0xff] %v8191_v58  ;;  %v8216_v58 = vld [vmem:[%s14128_s3 + $0x480] sm:$0xff] }
  0x8e   :  { %14438 = vst [vmem:[#allocation155_spill] sm:$0xff] %v8196_v53  ;;  %v8221_v53 = vld [vmem:[%s14128_s3 + $0x488] sm:$0xff] }
  0x8f   :  { %14439 = vst [vmem:[#allocation156_spill] sm:$0xff] %v8201_v52  ;;  %v8226_v52 = vld [vmem:[%s14128_s3 + $0x490] sm:$0xff] }
  0x90   :  { %14440 = vst [vmem:[#allocation157_spill] sm:$0xff] %v8206_v56  ;;  %v8231_v56 = vld [vmem:[%s14128_s3 + $0x498] sm:$0xff] }
  0x91   :  { %14441 = vst [vmem:[#allocation158_spill] sm:$0xff] %v8211_v49  ;;  %v8236_v49 = vld [vmem:[%s14128_s3 + $0x4a0] sm:$0xff] }
  0x92   :  { %14442 = vst [vmem:[#allocation159_spill] sm:$0xff] %v8216_v58  ;;  %v8241_v58 = vld [vmem:[%s14128_s3 + $0x4a8] sm:$0xff] }
  0x93   :  { %14443 = vst [vmem:[#allocation160_spill] sm:$0xff] %v8221_v53  ;;  %v8246_v53 = vld [vmem:[%s14128_s3 + $0x4b0] sm:$0xff] }
  0x94   :  { %14444 = vst [vmem:[#allocation161_spill] sm:$0xff] %v8226_v52  ;;  %v8251_v52 = vld [vmem:[%s14128_s3 + $0x4b8] sm:$0xff] }
  0x95   :  { %14445 = vst [vmem:[#allocation162_spill] sm:$0xff] %v8231_v56  ;;  %v8256_v56 = vld [vmem:[%s14128_s3 + $0x4c0] sm:$0xff] }
  0x96   :  { %14446 = vst [vmem:[#allocation163_spill] sm:$0xff] %v8236_v49  ;;  %v8261_v49 = vld [vmem:[%s14128_s3 + $0x4c8] sm:$0xff] }
  0x97   :  { %14447 = vst [vmem:[#allocation164_spill] sm:$0xff] %v8241_v58  ;;  %v8266_v58 = vld [vmem:[%s14128_s3 + $0x4d0] sm:$0xff] }
  0x98   :  { %14448 = vst [vmem:[#allocation165_spill] sm:$0xff] %v8246_v53  ;;  %v8271_v53 = vld [vmem:[%s14128_s3 + $0x4d8] sm:$0xff] }
  0x99   :  { %14449 = vst [vmem:[#allocation166_spill] sm:$0xff] %v8251_v52  ;;  %v8276_v52 = vld [vmem:[%s14128_s3 + $0x4e0] sm:$0xff] }
  0x9a   :  { %14450 = vst [vmem:[#allocation167_spill] sm:$0xff] %v8256_v56  ;;  %v8281_v56 = vld [vmem:[%s14128_s3 + $0x4e8] sm:$0xff] }
  0x9b   :  { %14451 = vst [vmem:[#allocation168_spill] sm:$0xff] %v8261_v49  ;;  %v8286_v49 = vld [vmem:[%s14128_s3 + $0x4f0] sm:$0xff] }
  0x9c   :  { %14452 = vst [vmem:[#allocation169_spill] sm:$0xff] %v8266_v58  ;;  %v8291_v58 = vld [vmem:[%s14128_s3 + $0x4f8] sm:$0xff] }
  0x9d   :  { %14453 = vst [vmem:[#allocation170_spill] sm:$0xff] %v8271_v53  ;;  %v8296_v53 = vld [vmem:[%s14128_s3 + $0x500] sm:$0xff] }
  0x9e   :  { %14454 = vst [vmem:[#allocation171_spill] sm:$0xff] %v8276_v52  ;;  %v8301_v52 = vld [vmem:[%s14128_s3 + $0x508] sm:$0xff] }
  0x9f   :  { %14455 = vst [vmem:[#allocation172_spill] sm:$0xff] %v8281_v56  ;;  %v8306_v56 = vld [vmem:[%s14128_s3 + $0x510] sm:$0xff] }
  0xa0   :  { %14456 = vst [vmem:[#allocation173_spill] sm:$0xff] %v8286_v49  ;;  %v8311_v49 = vld [vmem:[%s14128_s3 + $0x518] sm:$0xff] }
  0xa1   :  { %14457 = vst [vmem:[#allocation174_spill] sm:$0xff] %v8291_v58  ;;  %v8316_v58 = vld [vmem:[%s14128_s3 + $0x520] sm:$0xff] }
  0xa2   :  { %14458 = vst [vmem:[#allocation175_spill] sm:$0xff] %v8296_v53  ;;  %v8321_v53 = vld [vmem:[%s14128_s3 + $0x528] sm:$0xff] }
  0xa3   :  { %14459 = vst [vmem:[#allocation176_spill] sm:$0xff] %v8301_v52  ;;  %v8326_v52 = vld [vmem:[%s14128_s3 + $0x530] sm:$0xff] }
  0xa4   :  { %14460 = vst [vmem:[#allocation177_spill] sm:$0xff] %v8306_v56  ;;  %v8331_v56 = vld [vmem:[%s14128_s3 + $0x538] sm:$0xff] }
  0xa5   :  { %14461 = vst [vmem:[#allocation178_spill] sm:$0xff] %v8311_v49  ;;  %v8336_v49 = vld [vmem:[%s14128_s3 + $0x540] sm:$0xff] }
  0xa6   :  { %14462 = vst [vmem:[#allocation179_spill] sm:$0xff] %v8316_v58  ;;  %v8341_v58 = vld [vmem:[%s14128_s3 + $0x548] sm:$0xff] }
  0xa7   :  { %14463 = vst [vmem:[#allocation180_spill] sm:$0xff] %v8321_v53  ;;  %v8346_v53 = vld [vmem:[%s14128_s3 + $0x550] sm:$0xff] }
  0xa8   :  { %14464 = vst [vmem:[#allocation181_spill] sm:$0xff] %v8326_v52  ;;  %v8351_v52 = vld [vmem:[%s14128_s3 + $0x558] sm:$0xff] }
  0xa9   :  { %14465 = vst [vmem:[#allocation182_spill] sm:$0xff] %v8331_v56  ;;  %v8356_v56 = vld [vmem:[%s14128_s3 + $0x560] sm:$0xff] }
  0xaa   :  { %14466 = vst [vmem:[#allocation183_spill] sm:$0xff] %v8336_v49  ;;  %v8361_v49 = vld [vmem:[%s14128_s3 + $0x568] sm:$0xff] }
  0xab   :  { %14467 = vst [vmem:[#allocation184_spill] sm:$0xff] %v8341_v58  ;;  %v8366_v58 = vld [vmem:[%s14128_s3 + $0x570] sm:$0xff] }
  0xac   :  { %14468 = vst [vmem:[#allocation185_spill] sm:$0xff] %v8346_v53  ;;  %v8371_v53 = vld [vmem:[%s14128_s3 + $0x578] sm:$0xff] }
  0xad   :  { %14469 = vst [vmem:[#allocation186_spill] sm:$0xff] %v8351_v52  ;;  %v8376_v52 = vld [vmem:[%s14128_s3 + $0x580] sm:$0xff] }
  0xae   :  { %14470 = vst [vmem:[#allocation187_spill] sm:$0xff] %v8356_v56  ;;  %v8381_v56 = vld [vmem:[%s14128_s3 + $0x588] sm:$0xff] }
  0xaf   :  { %14471 = vst [vmem:[#allocation188_spill] sm:$0xff] %v8361_v49  ;;  %v8386_v49 = vld [vmem:[%s14128_s3 + $0x590] sm:$0xff] }
  0xb0   :  { %14472 = vst [vmem:[#allocation189_spill] sm:$0xff] %v8366_v58  ;;  %v8391_v58 = vld [vmem:[%s14128_s3 + $0x598] sm:$0xff] }
  0xb1   :  { %14473 = vst [vmem:[#allocation190_spill] sm:$0xff] %v8371_v53  ;;  %v8396_v53 = vld [vmem:[%s14128_s3 + $0x5a0] sm:$0xff] }
  0xb2   :  { %14474 = vst [vmem:[#allocation191_spill] sm:$0xff] %v8376_v52  ;;  %v8401_v52 = vld [vmem:[%s14128_s3 + $0x5a8] sm:$0xff] }
  0xb3   :  { %14475 = vst [vmem:[#allocation192_spill] sm:$0xff] %v8381_v56  ;;  %v8406_v56 = vld [vmem:[%s14128_s3 + $0x5b0] sm:$0xff] }
  0xb4   :  { %14476 = vst [vmem:[#allocation193_spill] sm:$0xff] %v8386_v49  ;;  %v8411_v49 = vld [vmem:[%s14128_s3 + $0x5b8] sm:$0xff] }
  0xb5   :  { %14477 = vst [vmem:[#allocation194_spill] sm:$0xff] %v8391_v58  ;;  %v8416_v58 = vld [vmem:[%s14128_s3 + $0x5c0] sm:$0xff] }
  0xb6   :  { %14478 = vst [vmem:[#allocation195_spill] sm:$0xff] %v8396_v53  ;;  %v8421_v53 = vld [vmem:[%s14128_s3 + $0x5c8] sm:$0xff] }
  0xb7   :  { %14479 = vst [vmem:[#allocation196_spill] sm:$0xff] %v8401_v52  ;;  %v8426_v52 = vld [vmem:[%s14128_s3 + $0x5d0] sm:$0xff] }
  0xb8   :  { %14480 = vst [vmem:[#allocation197_spill] sm:$0xff] %v8406_v56  ;;  %v8431_v56 = vld [vmem:[%s14128_s3 + $0x5d8] sm:$0xff] }
  0xb9   :  { %14481 = vst [vmem:[#allocation198_spill] sm:$0xff] %v8411_v49  ;;  %v8436_v49 = vld [vmem:[%s14128_s3 + $0x5e0] sm:$0xff] }
  0xba   :  { %14482 = vst [vmem:[#allocation199_spill] sm:$0xff] %v8416_v58  ;;  %v8441_v58 = vld [vmem:[%s14128_s3 + $0x5e8] sm:$0xff] }
  0xbb   :  { %14483 = vst [vmem:[#allocation200_spill] sm:$0xff] %v8421_v53  ;;  %v8446_v53 = vld [vmem:[%s14128_s3 + $0x5f0] sm:$0xff] }
  0xbc   :  { %14484 = vst [vmem:[#allocation201_spill] sm:$0xff] %v8426_v52  ;;  %v8451_v52 = vld [vmem:[%s14128_s3 + $0x5f8] sm:$0xff] }
  0xbd   :  { %14485 = vst [vmem:[#allocation202_spill] sm:$0xff] %v8431_v56  ;;  %v8456_v56 = vld [vmem:[%s14128_s3 + $0x600] sm:$0xff] }
  0xbe   :  { %14486 = vst [vmem:[#allocation203_spill] sm:$0xff] %v8436_v49  ;;  %v8461_v49 = vld [vmem:[%s14128_s3 + $0x608] sm:$0xff] }
  0xbf   :  { %14487 = vst [vmem:[#allocation204_spill] sm:$0xff] %v8441_v58  ;;  %v8466_v58 = vld [vmem:[%s14128_s3 + $0x610] sm:$0xff] }
  0xc0   :  { %14488 = vst [vmem:[#allocation205_spill] sm:$0xff] %v8446_v53  ;;  %v8471_v53 = vld [vmem:[%s14128_s3 + $0x618] sm:$0xff] }
  0xc1   :  { %14489 = vst [vmem:[#allocation206_spill] sm:$0xff] %v8451_v52  ;;  %v8476_v52 = vld [vmem:[%s14128_s3 + $0x620] sm:$0xff] }
  0xc2   :  { %14490 = vst [vmem:[#allocation207_spill] sm:$0xff] %v8456_v56  ;;  %v8481_v56 = vld [vmem:[%s14128_s3 + $0x628] sm:$0xff] }
  0xc3   :  { %14491 = vst [vmem:[#allocation208_spill] sm:$0xff] %v8461_v49  ;;  %v8486_v49 = vld [vmem:[%s14128_s3 + $0x630] sm:$0xff] }
  0xc4   :  { %14492 = vst [vmem:[#allocation209_spill] sm:$0xff] %v8466_v58  ;;  %v8491_v58 = vld [vmem:[%s14128_s3 + $0x638] sm:$0xff] }
  0xc5   :  { %14493 = vst [vmem:[#allocation210_spill] sm:$0xff] %v8471_v53  ;;  %v8496_v53 = vld [vmem:[%s14128_s3 + $0x640] sm:$0xff] }
  0xc6   :  { %14494 = vst [vmem:[#allocation211_spill] sm:$0xff] %v8476_v52  ;;  %v8501_v52 = vld [vmem:[%s14128_s3 + $0x648] sm:$0xff] }
  0xc7   :  { %14495 = vst [vmem:[#allocation212_spill] sm:$0xff] %v8481_v56  ;;  %v8506_v56 = vld [vmem:[%s14128_s3 + $0x650] sm:$0xff] }
  0xc8   :  { %14496 = vst [vmem:[#allocation213_spill] sm:$0xff] %v8486_v49  ;;  %v8511_v49 = vld [vmem:[%s14128_s3 + $0x658] sm:$0xff] }
  0xc9   :  { %14497 = vst [vmem:[#allocation214_spill] sm:$0xff] %v8491_v58  ;;  %v8516_v58 = vld [vmem:[%s14128_s3 + $0x660] sm:$0xff] }
  0xca   :  { %14498 = vst [vmem:[#allocation215_spill] sm:$0xff] %v8496_v53  ;;  %v8521_v53 = vld [vmem:[%s14128_s3 + $0x668] sm:$0xff] }
  0xcb   :  { %14499 = vst [vmem:[#allocation216_spill] sm:$0xff] %v8501_v52  ;;  %v8526_v52 = vld [vmem:[%s14128_s3 + $0x670] sm:$0xff] }
  0xcc   :  { %14500 = vst [vmem:[#allocation217_spill] sm:$0xff] %v8506_v56  ;;  %v8531_v56 = vld [vmem:[%s14128_s3 + $0x678] sm:$0xff] }
  0xcd   :  { %14501 = vst [vmem:[#allocation218_spill] sm:$0xff] %v8511_v49  ;;  %v8536_v49 = vld [vmem:[%s14128_s3 + $0x680] sm:$0xff] }
  0xce   :  { %14502 = vst [vmem:[#allocation219_spill] sm:$0xff] %v8516_v58  ;;  %v8541_v58 = vld [vmem:[%s14128_s3 + $0x688] sm:$0xff] }
  0xcf   :  { %14503 = vst [vmem:[#allocation220_spill] sm:$0xff] %v8521_v53  ;;  %v8546_v53 = vld [vmem:[%s14128_s3 + $0x690] sm:$0xff] }
  0xd0   :  { %14504 = vst [vmem:[#allocation221_spill] sm:$0xff] %v8526_v52  ;;  %v8551_v52 = vld [vmem:[%s14128_s3 + $0x698] sm:$0xff] }
  0xd1   :  { %14505 = vst [vmem:[#allocation222_spill] sm:$0xff] %v8531_v56  ;;  %v8556_v56 = vld [vmem:[%s14128_s3 + $0x6a0] sm:$0xff] }
  0xd2   :  { %14506 = vst [vmem:[#allocation223_spill] sm:$0xff] %v8536_v49  ;;  %v8561_v49 = vld [vmem:[%s14128_s3 + $0x6a8] sm:$0xff] }
  0xd3   :  { %14507 = vst [vmem:[#allocation224_spill] sm:$0xff] %v8541_v58  ;;  %v8566_v58 = vld [vmem:[%s14128_s3 + $0x6b0] sm:$0xff] }
  0xd4   :  { %14508 = vst [vmem:[#allocation225_spill] sm:$0xff] %v8546_v53  ;;  %v8571_v53 = vld [vmem:[%s14128_s3 + $0x6b8] sm:$0xff] }
  0xd5   :  { %14509 = vst [vmem:[#allocation226_spill] sm:$0xff] %v8551_v52  ;;  %v8576_v52 = vld [vmem:[%s14128_s3 + $0x6c0] sm:$0xff] }
  0xd6   :  { %14510 = vst [vmem:[#allocation227_spill] sm:$0xff] %v8556_v56  ;;  %v8581_v56 = vld [vmem:[%s14128_s3 + $0x6c8] sm:$0xff] }
  0xd7   :  { %14511 = vst [vmem:[#allocation228_spill] sm:$0xff] %v8561_v49  ;;  %v8586_v49 = vld [vmem:[%s14128_s3 + $0x6d0] sm:$0xff] }
  0xd8   :  { %14512 = vst [vmem:[#allocation229_spill] sm:$0xff] %v8566_v58  ;;  %v8591_v58 = vld [vmem:[%s14128_s3 + $0x6d8] sm:$0xff] }
  0xd9   :  { %14513 = vst [vmem:[#allocation230_spill] sm:$0xff] %v8571_v53  ;;  %v8596_v53 = vld [vmem:[%s14128_s3 + $0x6e0] sm:$0xff] }
  0xda   :  { %14514 = vst [vmem:[#allocation231_spill] sm:$0xff] %v8576_v52  ;;  %v8601_v52 = vld [vmem:[%s14128_s3 + $0x6e8] sm:$0xff] }
  0xdb   :  { %14515 = vst [vmem:[#allocation232_spill] sm:$0xff] %v8581_v56  ;;  %v8606_v56 = vld [vmem:[%s14128_s3 + $0x6f0] sm:$0xff] }
  0xdc   :  { %14516 = vst [vmem:[#allocation233_spill] sm:$0xff] %v8586_v49  ;;  %v8611_v49 = vld [vmem:[%s14128_s3 + $0x6f8] sm:$0xff] }
  0xdd   :  { %14517 = vst [vmem:[#allocation234_spill] sm:$0xff] %v8591_v58  ;;  %v8616_v58 = vld [vmem:[%s14128_s3 + $0x700] sm:$0xff] }
  0xde   :  { %14518 = vst [vmem:[#allocation235_spill] sm:$0xff] %v8596_v53  ;;  %v8621_v53 = vld [vmem:[%s14128_s3 + $0x708] sm:$0xff] }
  0xdf   :  { %14519 = vst [vmem:[#allocation236_spill] sm:$0xff] %v8601_v52  ;;  %v8626_v52 = vld [vmem:[%s14128_s3 + $0x710] sm:$0xff] }
  0xe0   :  { %14520 = vst [vmem:[#allocation237_spill] sm:$0xff] %v8606_v56  ;;  %v8631_v56 = vld [vmem:[%s14128_s3 + $0x718] sm:$0xff] }
  0xe1   :  { %14521 = vst [vmem:[#allocation238_spill] sm:$0xff] %v8611_v49  ;;  %v8636_v49 = vld [vmem:[%s14128_s3 + $0x720] sm:$0xff] }
  0xe2   :  { %14522 = vst [vmem:[#allocation239_spill] sm:$0xff] %v8616_v58  ;;  %v8641_v58 = vld [vmem:[%s14128_s3 + $0x728] sm:$0xff] }
  0xe3   :  { %14523 = vst [vmem:[#allocation240_spill] sm:$0xff] %v8621_v53  ;;  %v8646_v53 = vld [vmem:[%s14128_s3 + $0x730] sm:$0xff] }
  0xe4   :  { %14524 = vst [vmem:[#allocation241_spill] sm:$0xff] %v8626_v52  ;;  %v8651_v52 = vld [vmem:[%s14128_s3 + $0x738] sm:$0xff] }
  0xe5   :  { %14525 = vst [vmem:[#allocation242_spill] sm:$0xff] %v8631_v56  ;;  %v8656_v56 = vld [vmem:[%s14128_s3 + $0x740] sm:$0xff] }
  0xe6   :  { %14526 = vst [vmem:[#allocation243_spill] sm:$0xff] %v8636_v49  ;;  %v8661_v49 = vld [vmem:[%s14128_s3 + $0x748] sm:$0xff] }
  0xe7   :  { %14527 = vst [vmem:[#allocation244_spill] sm:$0xff] %v8641_v58  ;;  %v8666_v58 = vld [vmem:[%s14128_s3 + $0x750] sm:$0xff] }
  0xe8   :  { %14528 = vst [vmem:[#allocation245_spill] sm:$0xff] %v8646_v53  ;;  %v8671_v53 = vld [vmem:[%s14128_s3 + $0x758] sm:$0xff] }
  0xe9   :  { %14529 = vst [vmem:[#allocation246_spill] sm:$0xff] %v8651_v52  ;;  %v8676_v52 = vld [vmem:[%s14128_s3 + $0x760] sm:$0xff] }
  0xea   :  { %14530 = vst [vmem:[#allocation247_spill] sm:$0xff] %v8656_v56  ;;  %v8681_v56 = vld [vmem:[%s14128_s3 + $0x768] sm:$0xff] }
  0xeb   :  { %14531 = vst [vmem:[#allocation248_spill] sm:$0xff] %v8661_v49  ;;  %v8686_v49 = vld [vmem:[%s14128_s3 + $0x770] sm:$0xff] }
  0xec   :  { %14532 = vst [vmem:[#allocation249_spill] sm:$0xff] %v8666_v58  ;;  %v8691_v58 = vld [vmem:[%s14128_s3 + $0x778] sm:$0xff] }
  0xed   :  { %14533 = vst [vmem:[#allocation250_spill] sm:$0xff] %v8671_v53  ;;  %v8696_v53 = vld [vmem:[%s14128_s3 + $0x780] sm:$0xff] }
  0xee   :  { %14534 = vst [vmem:[#allocation251_spill] sm:$0xff] %v8676_v52  ;;  %v8701_v52 = vld [vmem:[%s14128_s3 + $0x788] sm:$0xff] }
  0xef   :  { %14535 = vst [vmem:[#allocation252_spill] sm:$0xff] %v8681_v56  ;;  %v8706_v56 = vld [vmem:[%s14128_s3 + $0x790] sm:$0xff] }
  0xf0   :  { %14536 = vst [vmem:[#allocation253_spill] sm:$0xff] %v8686_v49  ;;  %v8711_v49 = vld [vmem:[%s14128_s3 + $0x798] sm:$0xff] }
  0xf1   :  { %14537 = vst [vmem:[#allocation254_spill] sm:$0xff] %v8691_v58  ;;  %v8716_v58 = vld [vmem:[%s14128_s3 + $0x7a0] sm:$0xff] }
  0xf2   :  { %14538 = vst [vmem:[#allocation255_spill] sm:$0xff] %v8696_v53  ;;  %v8721_v53 = vld [vmem:[%s14128_s3 + $0x7a8] sm:$0xff] }
  0xf3   :  { %14539 = vst [vmem:[#allocation256_spill] sm:$0xff] %v8701_v52  ;;  %v8726_v52 = vld [vmem:[%s14128_s3 + $0x7b0] sm:$0xff] }
  0xf4   :  { %14540 = vst [vmem:[#allocation257_spill] sm:$0xff] %v8706_v56  ;;  %v8731_v56 = vld [vmem:[%s14128_s3 + $0x7b8] sm:$0xff] }
  0xf5   :  { %14541 = vst [vmem:[#allocation258_spill] sm:$0xff] %v8711_v49  ;;  %v8736_v49 = vld [vmem:[%s14128_s3 + $0x7c0] sm:$0xff] }
  0xf6   :  { %14542 = vst [vmem:[#allocation259_spill] sm:$0xff] %v8716_v58  ;;  %v8741_v58 = vld [vmem:[%s14128_s3 + $0x7c8] sm:$0xff] }
  0xf7   :  { %14543 = vst [vmem:[#allocation260_spill] sm:$0xff] %v8721_v53  ;;  %v8746_v53 = vld [vmem:[%s14128_s3 + $0x7d0] sm:$0xff] }
  0xf8   :  { %14544 = vst [vmem:[#allocation261_spill] sm:$0xff] %v8726_v52  ;;  %v8751_v52 = vld [vmem:[%s14128_s3 + $0x7d8] sm:$0xff] }
  0xf9   :  { %14545 = vst [vmem:[#allocation262_spill] sm:$0xff] %v8731_v56  ;;  %v8756_v56 = vld [vmem:[%s14128_s3 + $0x7e0] sm:$0xff] }
  0xfa   :  { %14546 = vst [vmem:[#allocation263_spill] sm:$0xff] %v8736_v49  ;;  %v8761_v49 = vld [vmem:[%s14128_s3 + $0x7e8] sm:$0xff] }
  0xfb   :  { %14547 = vst [vmem:[#allocation264_spill] sm:$0xff] %v8741_v58  ;;  %v8766_v58 = vld [vmem:[%s14128_s3 + $0x7f0] sm:$0xff] }
  0xfc   :  { %14548 = vst [vmem:[#allocation265_spill] sm:$0xff] %v8746_v53  ;;  %v8771_v53 = vld [vmem:[%s14128_s3 + $0x7f8] sm:$0xff] }
  0xfd   :  { %14549 = vst [vmem:[#allocation266_spill] sm:$0xff] %v8751_v52  ;;  %v8776_v52 = vld [vmem:[%s14128_s3 + $0x800] sm:$0xff] }
  0xfe   :  { %14550 = vst [vmem:[#allocation267_spill] sm:$0xff] %v8756_v56  ;;  %v8781_v56 = vld [vmem:[%s14128_s3 + $0x808] sm:$0xff] }
  0xff   :  { %14551 = vst [vmem:[#allocation268_spill] sm:$0xff] %v8761_v49  ;;  %v8786_v49 = vld [vmem:[%s14128_s3 + $0x810] sm:$0xff] }
 0x100   :  { %14552 = vst [vmem:[#allocation269_spill] sm:$0xff] %v8766_v58  ;;  %v8791_v58 = vld [vmem:[%s14128_s3 + $0x818] sm:$0xff] }
 0x101   :  { %14553 = vst [vmem:[#allocation270_spill] sm:$0xff] %v8771_v53  ;;  %v8796_v53 = vld [vmem:[%s14128_s3 + $0x820] sm:$0xff] }
 0x102   :  { %14554 = vst [vmem:[#allocation271_spill] sm:$0xff] %v8776_v52  ;;  %v8801_v52 = vld [vmem:[%s14128_s3 + $0x828] sm:$0xff] }
 0x103   :  { %14555 = vst [vmem:[#allocation272_spill] sm:$0xff] %v8781_v56  ;;  %v8806_v56 = vld [vmem:[%s14128_s3 + $0x830] sm:$0xff] }
 0x104   :  { %14556 = vst [vmem:[#allocation273_spill] sm:$0xff] %v8786_v49  ;;  %v8811_v49 = vld [vmem:[%s14128_s3 + $0x838] sm:$0xff] }
 0x105   :  { %14557 = vst [vmem:[#allocation274_spill] sm:$0xff] %v8791_v58  ;;  %v8816_v58 = vld [vmem:[%s14128_s3 + $0x840] sm:$0xff] }
 0x106   :  { %14558 = vst [vmem:[#allocation275_spill] sm:$0xff] %v8796_v53  ;;  %v8821_v53 = vld [vmem:[%s14128_s3 + $0x848] sm:$0xff] }
 0x107   :  { %14559 = vst [vmem:[#allocation276_spill] sm:$0xff] %v8801_v52  ;;  %v8826_v52 = vld [vmem:[%s14128_s3 + $0x850] sm:$0xff] }
 0x108   :  { %14560 = vst [vmem:[#allocation277_spill] sm:$0xff] %v8806_v56  ;;  %v8831_v56 = vld [vmem:[%s14128_s3 + $0x858] sm:$0xff] }
 0x109   :  { %14561 = vst [vmem:[#allocation278_spill] sm:$0xff] %v8811_v49  ;;  %v8836_v49 = vld [vmem:[%s14128_s3 + $0x860] sm:$0xff] }
 0x10a   :  { %14562 = vst [vmem:[#allocation279_spill] sm:$0xff] %v8816_v58  ;;  %v8841_v58 = vld [vmem:[%s14128_s3 + $0x868] sm:$0xff] }
 0x10b   :  { %14563 = vst [vmem:[#allocation280_spill] sm:$0xff] %v8821_v53  ;;  %v8846_v53 = vld [vmem:[%s14128_s3 + $0x870] sm:$0xff] }
 0x10c   :  { %14564 = vst [vmem:[#allocation281_spill] sm:$0xff] %v8826_v52  ;;  %v8851_v52 = vld [vmem:[%s14128_s3 + $0x878] sm:$0xff] }
 0x10d   :  { %14565 = vst [vmem:[#allocation282_spill] sm:$0xff] %v8831_v56  ;;  %v8856_v56 = vld [vmem:[%s14128_s3 + $0x880] sm:$0xff] }
 0x10e   :  { %14566 = vst [vmem:[#allocation283_spill] sm:$0xff] %v8836_v49  ;;  %v8861_v49 = vld [vmem:[%s14128_s3 + $0x888] sm:$0xff] }
 0x10f   :  { %14567 = vst [vmem:[#allocation284_spill] sm:$0xff] %v8841_v58  ;;  %v8866_v58 = vld [vmem:[%s14128_s3 + $0x890] sm:$0xff] }
 0x110   :  { %14568 = vst [vmem:[#allocation285_spill] sm:$0xff] %v8846_v53  ;;  %v8871_v53 = vld [vmem:[%s14128_s3 + $0x898] sm:$0xff] }
 0x111   :  { %14569 = vst [vmem:[#allocation286_spill] sm:$0xff] %v8851_v52  ;;  %v8876_v52 = vld [vmem:[%s14128_s3 + $0x8a0] sm:$0xff] }
 0x112   :  { %14570 = vst [vmem:[#allocation287_spill] sm:$0xff] %v8856_v56  ;;  %v8881_v56 = vld [vmem:[%s14128_s3 + $0x8a8] sm:$0xff] }
 0x113   :  { %14571 = vst [vmem:[#allocation288_spill] sm:$0xff] %v8861_v49  ;;  %v8886_v49 = vld [vmem:[%s14128_s3 + $0x8b0] sm:$0xff] }
 0x114   :  { %14572 = vst [vmem:[#allocation289_spill] sm:$0xff] %v8866_v58  ;;  %v8891_v58 = vld [vmem:[%s14128_s3 + $0x8b8] sm:$0xff] }
 0x115   :  { %14573 = vst [vmem:[#allocation290_spill] sm:$0xff] %v8871_v53  ;;  %v8896_v53 = vld [vmem:[%s14128_s3 + $0x8c0] sm:$0xff] }
 0x116   :  { %14574 = vst [vmem:[#allocation291_spill] sm:$0xff] %v8876_v52  ;;  %v8901_v52 = vld [vmem:[%s14128_s3 + $0x8c8] sm:$0xff] }
 0x117   :  { %14575 = vst [vmem:[#allocation292_spill] sm:$0xff] %v8881_v56  ;;  %v8906_v56 = vld [vmem:[%s14128_s3 + $0x8d0] sm:$0xff] }
 0x118   :  { %14576 = vst [vmem:[#allocation293_spill] sm:$0xff] %v8886_v49  ;;  %v8911_v49 = vld [vmem:[%s14128_s3 + $0x8d8] sm:$0xff] }
 0x119   :  { %14577 = vst [vmem:[#allocation294_spill] sm:$0xff] %v8891_v58  ;;  %v8916_v58 = vld [vmem:[%s14128_s3 + $0x8e0] sm:$0xff] }
 0x11a   :  { %14578 = vst [vmem:[#allocation295_spill] sm:$0xff] %v8896_v53  ;;  %v8921_v53 = vld [vmem:[%s14128_s3 + $0x8e8] sm:$0xff] }
 0x11b   :  { %14579 = vst [vmem:[#allocation296_spill] sm:$0xff] %v8901_v52  ;;  %v8926_v52 = vld [vmem:[%s14128_s3 + $0x8f0] sm:$0xff] }
 0x11c   :  { %14580 = vst [vmem:[#allocation297_spill] sm:$0xff] %v8906_v56  ;;  %v8931_v56 = vld [vmem:[%s14128_s3 + $0x8f8] sm:$0xff] }
 0x11d   :  { %14581 = vst [vmem:[#allocation298_spill] sm:$0xff] %v8911_v49  ;;  %v8936_v49 = vld [vmem:[%s14128_s3 + $0x900] sm:$0xff] }
 0x11e   :  { %14582 = vst [vmem:[#allocation299_spill] sm:$0xff] %v8916_v58  ;;  %v8941_v58 = vld [vmem:[%s14128_s3 + $0x908] sm:$0xff] }
 0x11f   :  { %14583 = vst [vmem:[#allocation300_spill] sm:$0xff] %v8921_v53  ;;  %v8946_v53 = vld [vmem:[%s14128_s3 + $0x910] sm:$0xff] }
 0x120   :  { %14584 = vst [vmem:[#allocation301_spill] sm:$0xff] %v8926_v52  ;;  %v8951_v52 = vld [vmem:[%s14128_s3 + $0x918] sm:$0xff] }
 0x121   :  { %14585 = vst [vmem:[#allocation302_spill] sm:$0xff] %v8931_v56  ;;  %v8956_v56 = vld [vmem:[%s14128_s3 + $0x920] sm:$0xff] }
 0x122   :  { %14586 = vst [vmem:[#allocation303_spill] sm:$0xff] %v8936_v49  ;;  %v8961_v49 = vld [vmem:[%s14128_s3 + $0x928] sm:$0xff] }
 0x123   :  { %14587 = vst [vmem:[#allocation304_spill] sm:$0xff] %v8941_v58  ;;  %v8966_v58 = vld [vmem:[%s14128_s3 + $0x930] sm:$0xff] }
 0x124   :  { %14588 = vst [vmem:[#allocation305_spill] sm:$0xff] %v8946_v53  ;;  %v8971_v53 = vld [vmem:[%s14128_s3 + $0x938] sm:$0xff] }
 0x125   :  { %14589 = vst [vmem:[#allocation306_spill] sm:$0xff] %v8951_v52  ;;  %v8976_v52 = vld [vmem:[%s14128_s3 + $0x940] sm:$0xff] }
 0x126   :  { %14590 = vst [vmem:[#allocation307_spill] sm:$0xff] %v8956_v56  ;;  %v8981_v56 = vld [vmem:[%s14128_s3 + $0x948] sm:$0xff] }
 0x127   :  { %14591 = vst [vmem:[#allocation308_spill] sm:$0xff] %v8961_v49  ;;  %v8986_v49 = vld [vmem:[%s14128_s3 + $0x950] sm:$0xff] }
 0x128   :  { %14592 = vst [vmem:[#allocation309_spill] sm:$0xff] %v8966_v58  ;;  %v8991_v58 = vld [vmem:[%s14128_s3 + $0x958] sm:$0xff] }
 0x129   :  { %14593 = vst [vmem:[#allocation310_spill] sm:$0xff] %v8971_v53  ;;  %v8996_v53 = vld [vmem:[%s14128_s3 + $0x960] sm:$0xff] }
 0x12a   :  { %14594 = vst [vmem:[#allocation311_spill] sm:$0xff] %v8976_v52  ;;  %v9001_v52 = vld [vmem:[%s14128_s3 + $0x968] sm:$0xff] }
 0x12b   :  { %14595 = vst [vmem:[#allocation312_spill] sm:$0xff] %v8981_v56  ;;  %v9006_v56 = vld [vmem:[%s14128_s3 + $0x970] sm:$0xff] }
 0x12c   :  { %14596 = vst [vmem:[#allocation313_spill] sm:$0xff] %v8986_v49  ;;  %v9011_v49 = vld [vmem:[%s14128_s3 + $0x978] sm:$0xff] }
 0x12d   :  { %14597 = vst [vmem:[#allocation314_spill] sm:$0xff] %v8991_v58  ;;  %v9016_v58 = vld [vmem:[%s14128_s3 + $0x980] sm:$0xff] }
 0x12e   :  { %14598 = vst [vmem:[#allocation315_spill] sm:$0xff] %v8996_v53  ;;  %v9021_v53 = vld [vmem:[%s14128_s3 + $0x988] sm:$0xff] }
 0x12f   :  { %14599 = vst [vmem:[#allocation316_spill] sm:$0xff] %v9001_v52  ;;  %v9026_v52 = vld [vmem:[%s14128_s3 + $0x990] sm:$0xff] }
 0x130   :  { %14600 = vst [vmem:[#allocation317_spill] sm:$0xff] %v9006_v56  ;;  %v9031_v56 = vld [vmem:[%s14128_s3 + $0x998] sm:$0xff] }
 0x131   :  { %14601 = vst [vmem:[#allocation318_spill] sm:$0xff] %v9011_v49  ;;  %v9036_v49 = vld [vmem:[%s14128_s3 + $0x9a0] sm:$0xff] }
 0x132   :  { %14602 = vst [vmem:[#allocation319_spill] sm:$0xff] %v9016_v58  ;;  %v9041_v58 = vld [vmem:[%s14128_s3 + $0x9a8] sm:$0xff] }
 0x133   :  { %14603 = vst [vmem:[#allocation320_spill] sm:$0xff] %v9021_v53  ;;  %v9046_v53 = vld [vmem:[%s14128_s3 + $0x9b0] sm:$0xff] }
 0x134   :  { %14604 = vst [vmem:[#allocation321_spill] sm:$0xff] %v9026_v52  ;;  %v9051_v52 = vld [vmem:[%s14128_s3 + $0x9b8] sm:$0xff] }
 0x135   :  { %14605 = vst [vmem:[#allocation322_spill] sm:$0xff] %v9031_v56  ;;  %v9056_v56 = vld [vmem:[%s14128_s3 + $0x9c0] sm:$0xff] }
 0x136   :  { %14606 = vst [vmem:[#allocation323_spill] sm:$0xff] %v9036_v49  ;;  %v9061_v49 = vld [vmem:[%s14128_s3 + $0x9c8] sm:$0xff] }
 0x137   :  { %14607 = vst [vmem:[#allocation324_spill] sm:$0xff] %v9041_v58  ;;  %v9066_v58 = vld [vmem:[%s14128_s3 + $0x9d0] sm:$0xff] }
 0x138   :  { %14608 = vst [vmem:[#allocation325_spill] sm:$0xff] %v9046_v53  ;;  %v9071_v53 = vld [vmem:[%s14128_s3 + $0x9d8] sm:$0xff] }
 0x139   :  { %14609 = vst [vmem:[#allocation326_spill] sm:$0xff] %v9051_v52  ;;  %v9076_v52 = vld [vmem:[%s14128_s3 + $0x9e0] sm:$0xff] }
 0x13a   :  { %14610 = vst [vmem:[#allocation327_spill] sm:$0xff] %v9056_v56  ;;  %v9081_v56 = vld [vmem:[%s14128_s3 + $0x9e8] sm:$0xff] }
 0x13b   :  { %14611 = vst [vmem:[#allocation328_spill] sm:$0xff] %v9061_v49  ;;  %v9086_v49 = vld [vmem:[%s14128_s3 + $0x9f0] sm:$0xff] }
 0x13c   :  { %14612 = vst [vmem:[#allocation329_spill] sm:$0xff] %v9066_v58  ;;  %v9091_v58 = vld [vmem:[%s14128_s3 + $0x9f8] sm:$0xff] }
 0x13d   :  { %14613 = vst [vmem:[#allocation330_spill] sm:$0xff] %v9071_v53  ;;  %v9096_v53 = vld [vmem:[%s14128_s3 + $0xa00] sm:$0xff] }
 0x13e   :  { %14614 = vst [vmem:[#allocation331_spill] sm:$0xff] %v9076_v52  ;;  %v9101_v52 = vld [vmem:[%s14128_s3 + $0xa08] sm:$0xff] }
 0x13f   :  { %14615 = vst [vmem:[#allocation332_spill] sm:$0xff] %v9081_v56  ;;  %v9106_v56 = vld [vmem:[%s14128_s3 + $0xa10] sm:$0xff] }
 0x140   :  { %14616 = vst [vmem:[#allocation333_spill] sm:$0xff] %v9086_v49  ;;  %v9111_v49 = vld [vmem:[%s14128_s3 + $0xa18] sm:$0xff] }
 0x141   :  { %14617 = vst [vmem:[#allocation334_spill] sm:$0xff] %v9091_v58  ;;  %v9116_v58 = vld [vmem:[%s14128_s3 + $0xa20] sm:$0xff] }
 0x142   :  { %14618 = vst [vmem:[#allocation335_spill] sm:$0xff] %v9096_v53  ;;  %v9121_v53 = vld [vmem:[%s14128_s3 + $0xa28] sm:$0xff] }
 0x143   :  { %14619 = vst [vmem:[#allocation336_spill] sm:$0xff] %v9101_v52  ;;  %v9126_v52 = vld [vmem:[%s14128_s3 + $0xa30] sm:$0xff] }
 0x144   :  { %14620 = vst [vmem:[#allocation337_spill] sm:$0xff] %v9106_v56  ;;  %v9131_v56 = vld [vmem:[%s14128_s3 + $0xa38] sm:$0xff] }
 0x145   :  { %14621 = vst [vmem:[#allocation338_spill] sm:$0xff] %v9111_v49  ;;  %v9136_v49 = vld [vmem:[%s14128_s3 + $0xa40] sm:$0xff] }
 0x146   :  { %14622 = vst [vmem:[#allocation339_spill] sm:$0xff] %v9116_v58  ;;  %v9141_v58 = vld [vmem:[%s14128_s3 + $0xa48] sm:$0xff] }
 0x147   :  { %14623 = vst [vmem:[#allocation340_spill] sm:$0xff] %v9121_v53  ;;  %v9146_v53 = vld [vmem:[%s14128_s3 + $0xa50] sm:$0xff] }
 0x148   :  { %14624 = vst [vmem:[#allocation341_spill] sm:$0xff] %v9126_v52  ;;  %v9151_v52 = vld [vmem:[%s14128_s3 + $0xa58] sm:$0xff] }
 0x149   :  { %14625 = vst [vmem:[#allocation342_spill] sm:$0xff] %v9131_v56  ;;  %v9156_v56 = vld [vmem:[%s14128_s3 + $0xa60] sm:$0xff] }
 0x14a   :  { %14626 = vst [vmem:[#allocation343_spill] sm:$0xff] %v9136_v49  ;;  %v9161_v49 = vld [vmem:[%s14128_s3 + $0xa68] sm:$0xff] }
 0x14b   :  { %14627 = vst [vmem:[#allocation344_spill] sm:$0xff] %v9141_v58  ;;  %v9166_v58 = vld [vmem:[%s14128_s3 + $0xa70] sm:$0xff] }
 0x14c   :  { %14628 = vst [vmem:[#allocation345_spill] sm:$0xff] %v9146_v53  ;;  %v9171_v53 = vld [vmem:[%s14128_s3 + $0xa78] sm:$0xff] }
 0x14d   :  { %14629 = vst [vmem:[#allocation346_spill] sm:$0xff] %v9151_v52  ;;  %v9176_v52 = vld [vmem:[%s14128_s3 + $0xa80] sm:$0xff] }
 0x14e   :  { %14630 = vst [vmem:[#allocation347_spill] sm:$0xff] %v9156_v56  ;;  %v9181_v56 = vld [vmem:[%s14128_s3 + $0xa88] sm:$0xff] }
 0x14f   :  { %14631 = vst [vmem:[#allocation348_spill] sm:$0xff] %v9161_v49  ;;  %v9186_v49 = vld [vmem:[%s14128_s3 + $0xa90] sm:$0xff] }
 0x150   :  { %14632 = vst [vmem:[#allocation349_spill] sm:$0xff] %v9166_v58  ;;  %v9191_v58 = vld [vmem:[%s14128_s3 + $0xa98] sm:$0xff] }
 0x151   :  { %14633 = vst [vmem:[#allocation350_spill] sm:$0xff] %v9171_v53  ;;  %v9196_v53 = vld [vmem:[%s14128_s3 + $0xaa0] sm:$0xff] }
 0x152   :  { %14634 = vst [vmem:[#allocation351_spill] sm:$0xff] %v9176_v52  ;;  %v9201_v52 = vld [vmem:[%s14128_s3 + $0xaa8] sm:$0xff] }
 0x153   :  { %14635 = vst [vmem:[#allocation352_spill] sm:$0xff] %v9181_v56  ;;  %v9206_v56 = vld [vmem:[%s14128_s3 + $0xab0] sm:$0xff] }
 0x154   :  { %14636 = vst [vmem:[#allocation353_spill] sm:$0xff] %v9186_v49  ;;  %v9211_v49 = vld [vmem:[%s14128_s3 + $0xab8] sm:$0xff] }
 0x155   :  { %14637 = vst [vmem:[#allocation354_spill] sm:$0xff] %v9191_v58  ;;  %v9216_v58 = vld [vmem:[%s14128_s3 + $0xac0] sm:$0xff] }
 0x156   :  { %14638 = vst [vmem:[#allocation355_spill] sm:$0xff] %v9196_v53  ;;  %v9221_v53 = vld [vmem:[%s14128_s3 + $0xac8] sm:$0xff] }
 0x157   :  { %14639 = vst [vmem:[#allocation356_spill] sm:$0xff] %v9201_v52  ;;  %v9226_v52 = vld [vmem:[%s14128_s3 + $0xad0] sm:$0xff] }
 0x158   :  { %14640 = vst [vmem:[#allocation357_spill] sm:$0xff] %v9206_v56  ;;  %v9231_v56 = vld [vmem:[%s14128_s3 + $0xad8] sm:$0xff] }
 0x159   :  { %14641 = vst [vmem:[#allocation358_spill] sm:$0xff] %v9211_v49  ;;  %v9236_v49 = vld [vmem:[%s14128_s3 + $0xae0] sm:$0xff] }
 0x15a   :  { %14642 = vst [vmem:[#allocation359_spill] sm:$0xff] %v9216_v58  ;;  %v9241_v58 = vld [vmem:[%s14128_s3 + $0xae8] sm:$0xff] }
 0x15b   :  { %14643 = vst [vmem:[#allocation360_spill] sm:$0xff] %v9221_v53  ;;  %v9246_v53 = vld [vmem:[%s14128_s3 + $0xaf0] sm:$0xff] }
 0x15c   :  { %14644 = vst [vmem:[#allocation361_spill] sm:$0xff] %v9226_v52  ;;  %v9251_v52 = vld [vmem:[%s14128_s3 + $0xaf8] sm:$0xff] }
 0x15d   :  { %14645 = vst [vmem:[#allocation362_spill] sm:$0xff] %v9231_v56  ;;  %v9256_v56 = vld [vmem:[%s14128_s3 + $0xb00] sm:$0xff] }
 0x15e   :  { %14646 = vst [vmem:[#allocation363_spill] sm:$0xff] %v9236_v49  ;;  %v9261_v49 = vld [vmem:[%s14128_s3 + $0xb08] sm:$0xff] }
 0x15f   :  { %14647 = vst [vmem:[#allocation364_spill] sm:$0xff] %v9241_v58  ;;  %v9266_v58 = vld [vmem:[%s14128_s3 + $0xb10] sm:$0xff] }
 0x160   :  { %14648 = vst [vmem:[#allocation365_spill] sm:$0xff] %v9246_v53  ;;  %v9271_v53 = vld [vmem:[%s14128_s3 + $0xb18] sm:$0xff] }
 0x161   :  { %14649 = vst [vmem:[#allocation366_spill] sm:$0xff] %v9251_v52  ;;  %v9276_v52 = vld [vmem:[%s14128_s3 + $0xb20] sm:$0xff] }
 0x162   :  { %14650 = vst [vmem:[#allocation367_spill] sm:$0xff] %v9256_v56  ;;  %v9281_v56 = vld [vmem:[%s14128_s3 + $0xb28] sm:$0xff] }
 0x163   :  { %14651 = vst [vmem:[#allocation368_spill] sm:$0xff] %v9261_v49  ;;  %v9286_v49 = vld [vmem:[%s14128_s3 + $0xb30] sm:$0xff] }
 0x164   :  { %14652 = vst [vmem:[#allocation369_spill] sm:$0xff] %v9266_v58  ;;  %v9291_v58 = vld [vmem:[%s14128_s3 + $0xb38] sm:$0xff] }
 0x165   :  { %14653 = vst [vmem:[#allocation370_spill] sm:$0xff] %v9271_v53  ;;  %v9296_v53 = vld [vmem:[%s14128_s3 + $0xb40] sm:$0xff] }
 0x166   :  { %14654 = vst [vmem:[#allocation371_spill] sm:$0xff] %v9276_v52  ;;  %v9301_v52 = vld [vmem:[%s14128_s3 + $0xb48] sm:$0xff] }
 0x167   :  { %14655 = vst [vmem:[#allocation372_spill] sm:$0xff] %v9281_v56  ;;  %v9306_v56 = vld [vmem:[%s14128_s3 + $0xb50] sm:$0xff] }
 0x168   :  { %14656 = vst [vmem:[#allocation373_spill] sm:$0xff] %v9286_v49  ;;  %v9311_v49 = vld [vmem:[%s14128_s3 + $0xb58] sm:$0xff] }
 0x169   :  { %14657 = vst [vmem:[#allocation374_spill] sm:$0xff] %v9291_v58  ;;  %v9316_v58 = vld [vmem:[%s14128_s3 + $0xb60] sm:$0xff] }
 0x16a   :  { %14658 = vst [vmem:[#allocation375_spill] sm:$0xff] %v9296_v53  ;;  %v9321_v53 = vld [vmem:[%s14128_s3 + $0xb68] sm:$0xff] }
 0x16b   :  { %14659 = vst [vmem:[#allocation376_spill] sm:$0xff] %v9301_v52  ;;  %v9326_v52 = vld [vmem:[%s14128_s3 + $0xb70] sm:$0xff] }
 0x16c   :  { %14660 = vst [vmem:[#allocation377_spill] sm:$0xff] %v9306_v56  ;;  %v9331_v56 = vld [vmem:[%s14128_s3 + $0xb78] sm:$0xff] }
 0x16d   :  { %14661 = vst [vmem:[#allocation378_spill] sm:$0xff] %v9311_v49  ;;  %v9336_v49 = vld [vmem:[%s14128_s3 + $0xb80] sm:$0xff] }
 0x16e   :  { %14662 = vst [vmem:[#allocation379_spill] sm:$0xff] %v9316_v58  ;;  %v9341_v58 = vld [vmem:[%s14128_s3 + $0xb88] sm:$0xff] }
 0x16f   :  { %14663 = vst [vmem:[#allocation380_spill] sm:$0xff] %v9321_v53  ;;  %v9346_v53 = vld [vmem:[%s14128_s3 + $0xb90] sm:$0xff] }
 0x170   :  { %14664 = vst [vmem:[#allocation381_spill] sm:$0xff] %v9326_v52  ;;  %v9351_v52 = vld [vmem:[%s14128_s3 + $0xb98] sm:$0xff] }
 0x171   :  { %14665 = vst [vmem:[#allocation382_spill] sm:$0xff] %v9331_v56  ;;  %v9356_v56 = vld [vmem:[%s14128_s3 + $0xba0] sm:$0xff] }
 0x172   :  { %14666 = vst [vmem:[#allocation383_spill] sm:$0xff] %v9336_v49  ;;  %v9361_v49 = vld [vmem:[%s14128_s3 + $0xba8] sm:$0xff] }
 0x173   :  { %14667 = vst [vmem:[#allocation384_spill] sm:$0xff] %v9341_v58  ;;  %v9366_v58 = vld [vmem:[%s14128_s3 + $0xbb0] sm:$0xff] }
 0x174   :  { %14668 = vst [vmem:[#allocation385_spill] sm:$0xff] %v9346_v53  ;;  %v9371_v53 = vld [vmem:[%s14128_s3 + $0xbb8] sm:$0xff] }
 0x175   :  { %14669 = vst [vmem:[#allocation386_spill] sm:$0xff] %v9351_v52  ;;  %v9376_v52 = vld [vmem:[%s14128_s3 + $0xbc0] sm:$0xff] }
 0x176   :  { %14670 = vst [vmem:[#allocation387_spill] sm:$0xff] %v9356_v56  ;;  %v9381_v56 = vld [vmem:[%s14128_s3 + $0xbc8] sm:$0xff] }
 0x177   :  { %14671 = vst [vmem:[#allocation388_spill] sm:$0xff] %v9361_v49  ;;  %v9386_v49 = vld [vmem:[%s14128_s3 + $0xbd0] sm:$0xff] }
 0x178   :  { %14672 = vst [vmem:[#allocation389_spill] sm:$0xff] %v9366_v58  ;;  %v9391_v58 = vld [vmem:[%s14128_s3 + $0xbd8] sm:$0xff] }
 0x179   :  { %14673 = vst [vmem:[#allocation390_spill] sm:$0xff] %v9371_v53  ;;  %v9396_v53 = vld [vmem:[%s14128_s3 + $0xbe0] sm:$0xff] }
 0x17a   :  { %14674 = vst [vmem:[#allocation391_spill] sm:$0xff] %v9376_v52  ;;  %v9401_v52 = vld [vmem:[%s14128_s3 + $0xbe8] sm:$0xff] }
 0x17b   :  { %14675 = vst [vmem:[#allocation392_spill] sm:$0xff] %v9381_v56  ;;  %v9406_v56 = vld [vmem:[%s14128_s3 + $0xbf0] sm:$0xff] }
 0x17c   :  { %14676 = vst [vmem:[#allocation393_spill] sm:$0xff] %v9386_v49  ;;  %v9411_v49 = vld [vmem:[%s14128_s3 + $0xbf8] sm:$0xff] }
 0x17d   :  { %14677 = vst [vmem:[#allocation394_spill] sm:$0xff] %v9391_v58  ;;  %v9416_v58 = vld [vmem:[%s14128_s3 + $0xc00] sm:$0xff] }
 0x17e   :  { %14678 = vst [vmem:[#allocation395_spill] sm:$0xff] %v9396_v53  ;;  %v9421_v53 = vld [vmem:[%s14128_s3 + $0xc08] sm:$0xff] }
 0x17f   :  { %14679 = vst [vmem:[#allocation396_spill] sm:$0xff] %v9401_v52  ;;  %v9426_v52 = vld [vmem:[%s14128_s3 + $0xc10] sm:$0xff] }
 0x180   :  { %14680 = vst [vmem:[#allocation397_spill] sm:$0xff] %v9406_v56  ;;  %v9431_v56 = vld [vmem:[%s14128_s3 + $0xc18] sm:$0xff] }
 0x181   :  { %14681 = vst [vmem:[#allocation398_spill] sm:$0xff] %v9411_v49  ;;  %v9436_v49 = vld [vmem:[%s14128_s3 + $0xc20] sm:$0xff] }
 0x182   :  { %14682 = vst [vmem:[#allocation399_spill] sm:$0xff] %v9416_v58  ;;  %v9441_v58 = vld [vmem:[%s14128_s3 + $0xc28] sm:$0xff] }
 0x183   :  { %14683 = vst [vmem:[#allocation400_spill] sm:$0xff] %v9421_v53  ;;  %v9446_v53 = vld [vmem:[%s14128_s3 + $0xc30] sm:$0xff] }
 0x184   :  { %14684 = vst [vmem:[#allocation401_spill] sm:$0xff] %v9426_v52  ;;  %v9451_v52 = vld [vmem:[%s14128_s3 + $0xc38] sm:$0xff] }
 0x185   :  { %14685 = vst [vmem:[#allocation402_spill] sm:$0xff] %v9431_v56  ;;  %v9456_v56 = vld [vmem:[%s14128_s3 + $0xc40] sm:$0xff] }
 0x186   :  { %14686 = vst [vmem:[#allocation403_spill] sm:$0xff] %v9436_v49  ;;  %v9461_v49 = vld [vmem:[%s14128_s3 + $0xc48] sm:$0xff] }
 0x187   :  { %14687 = vst [vmem:[#allocation404_spill] sm:$0xff] %v9441_v58  ;;  %v9466_v58 = vld [vmem:[%s14128_s3 + $0xc50] sm:$0xff] }
 0x188   :  { %14688 = vst [vmem:[#allocation405_spill] sm:$0xff] %v9446_v53  ;;  %v9471_v53 = vld [vmem:[%s14128_s3 + $0xc58] sm:$0xff] }
 0x189   :  { %14689 = vst [vmem:[#allocation406_spill] sm:$0xff] %v9451_v52  ;;  %v9476_v52 = vld [vmem:[%s14128_s3 + $0xc60] sm:$0xff] }
 0x18a   :  { %14690 = vst [vmem:[#allocation407_spill] sm:$0xff] %v9456_v56  ;;  %v9481_v56 = vld [vmem:[%s14128_s3 + $0xc68] sm:$0xff] }
 0x18b   :  { %14691 = vst [vmem:[#allocation408_spill] sm:$0xff] %v9461_v49  ;;  %v9486_v49 = vld [vmem:[%s14128_s3 + $0xc70] sm:$0xff] }
 0x18c   :  { %14692 = vst [vmem:[#allocation409_spill] sm:$0xff] %v9466_v58  ;;  %v9491_v58 = vld [vmem:[%s14128_s3 + $0xc78] sm:$0xff] }
 0x18d   :  { %14693 = vst [vmem:[#allocation410_spill] sm:$0xff] %v9471_v53 }
 0x18e   :  { %14694 = vst [vmem:[#allocation411_spill] sm:$0xff] %v9476_v52 }
 0x18f   :  { %14695 = vst [vmem:[#allocation412_spill] sm:$0xff] %v9481_v56 }
 0x190   :  { %14696 = vst [vmem:[#allocation413_spill] sm:$0xff] %v9486_v49 }
 0x191   :  { %14697 = vst [vmem:[#allocation414_spill] sm:$0xff] %v9491_v58 }
 0x192   :  { %850 = vsyncadd [#allocation7], 51200  ;;  %v9496_v53 = vld [vmem:[%s14130_s5] sm:$0xff]  ;;  %v9501_v52 = vld [vmem:[%s14130_s5 + $0x8] sm:$0xff] }
 0x193   :  { %14698 = vst [vmem:[#allocation415_spill] sm:$0xff] %v9496_v53  ;;  %v9506_v56 = vld [vmem:[%s14130_s5 + $0x10] sm:$0xff]  ;;  %v9511_v49 = vld [vmem:[%s14130_s5 + $0x18] sm:$0xff]  ;;  %v9516_v58 = vld [vmem:[%s14130_s5 + $0x20] sm:$0xff] }
 0x194   :  { %14699 = vst [vmem:[#allocation416_spill] sm:$0xff] %v9501_v52  ;;  %v9521_v53 = vld [vmem:[%s14130_s5 + $0x28] sm:$0xff]  ;;  %v9526_v52 = vld [vmem:[%s14130_s5 + $0x30] sm:$0xff] }
 0x195   :  { %14700 = vst [vmem:[#allocation417_spill] sm:$0xff] %v9506_v56  ;;  %v9531_v56 = vld [vmem:[%s14130_s5 + $0x38] sm:$0xff] }
 0x196   :  { %14701 = vst [vmem:[#allocation418_spill] sm:$0xff] %v9511_v49  ;;  %v9536_v49 = vld [vmem:[%s14130_s5 + $0x40] sm:$0xff] }
 0x197   :  { %14702 = vst [vmem:[#allocation419_spill] sm:$0xff] %v9516_v58  ;;  %v9541_v58 = vld [vmem:[%s14130_s5 + $0x48] sm:$0xff] }
 0x198   :  { %14703 = vst [vmem:[#allocation420_spill] sm:$0xff] %v9521_v53  ;;  %v9546_v53 = vld [vmem:[%s14130_s5 + $0x50] sm:$0xff] }
 0x199   :  { %14704 = vst [vmem:[#allocation421_spill] sm:$0xff] %v9526_v52  ;;  %v9551_v52 = vld [vmem:[%s14130_s5 + $0x58] sm:$0xff] }
 0x19a   :  { %14705 = vst [vmem:[#allocation422_spill] sm:$0xff] %v9531_v56  ;;  %v9556_v56 = vld [vmem:[%s14130_s5 + $0x60] sm:$0xff] }
 0x19b   :  { %14706 = vst [vmem:[#allocation423_spill] sm:$0xff] %v9536_v49  ;;  %v9561_v49 = vld [vmem:[%s14130_s5 + $0x68] sm:$0xff] }
 0x19c   :  { %14707 = vst [vmem:[#allocation424_spill] sm:$0xff] %v9541_v58  ;;  %v9566_v58 = vld [vmem:[%s14130_s5 + $0x70] sm:$0xff] }
 0x19d   :  { %14708 = vst [vmem:[#allocation425_spill] sm:$0xff] %v9546_v53  ;;  %v9571_v53 = vld [vmem:[%s14130_s5 + $0x78] sm:$0xff] }
 0x19e   :  { %14709 = vst [vmem:[#allocation426_spill] sm:$0xff] %v9551_v52  ;;  %v9576_v52 = vld [vmem:[%s14130_s5 + $0x80] sm:$0xff] }
 0x19f   :  { %14710 = vst [vmem:[#allocation427_spill] sm:$0xff] %v9556_v56  ;;  %v9581_v56 = vld [vmem:[%s14130_s5 + $0x88] sm:$0xff] }
 0x1a0   :  { %14711 = vst [vmem:[#allocation428_spill] sm:$0xff] %v9561_v49  ;;  %v9586_v49 = vld [vmem:[%s14130_s5 + $0x90] sm:$0xff] }
 0x1a1   :  { %14712 = vst [vmem:[#allocation429_spill] sm:$0xff] %v9566_v58  ;;  %v9591_v58 = vld [vmem:[%s14130_s5 + $0x98] sm:$0xff] }
 0x1a2   :  { %14713 = vst [vmem:[#allocation430_spill] sm:$0xff] %v9571_v53  ;;  %v9596_v53 = vld [vmem:[%s14130_s5 + $0xa0] sm:$0xff] }
 0x1a3   :  { %14714 = vst [vmem:[#allocation431_spill] sm:$0xff] %v9576_v52  ;;  %v9601_v52 = vld [vmem:[%s14130_s5 + $0xa8] sm:$0xff] }
 0x1a4   :  { %14715 = vst [vmem:[#allocation432_spill] sm:$0xff] %v9581_v56  ;;  %v9606_v56 = vld [vmem:[%s14130_s5 + $0xb0] sm:$0xff] }
 0x1a5   :  { %14716 = vst [vmem:[#allocation433_spill] sm:$0xff] %v9586_v49  ;;  %v9611_v49 = vld [vmem:[%s14130_s5 + $0xb8] sm:$0xff] }
 0x1a6   :  { %14717 = vst [vmem:[#allocation434_spill] sm:$0xff] %v9591_v58  ;;  %v9616_v58 = vld [vmem:[%s14130_s5 + $0xc0] sm:$0xff] }
 0x1a7   :  { %14718 = vst [vmem:[#allocation435_spill] sm:$0xff] %v9596_v53  ;;  %v9621_v53 = vld [vmem:[%s14130_s5 + $0xc8] sm:$0xff] }
 0x1a8   :  { %14719 = vst [vmem:[#allocation436_spill] sm:$0xff] %v9601_v52  ;;  %v9626_v52 = vld [vmem:[%s14130_s5 + $0xd0] sm:$0xff] }
 0x1a9   :  { %14720 = vst [vmem:[#allocation437_spill] sm:$0xff] %v9606_v56  ;;  %v9631_v56 = vld [vmem:[%s14130_s5 + $0xd8] sm:$0xff] }
 0x1aa   :  { %14721 = vst [vmem:[#allocation438_spill] sm:$0xff] %v9611_v49  ;;  %v9636_v49 = vld [vmem:[%s14130_s5 + $0xe0] sm:$0xff] }
 0x1ab   :  { %14722 = vst [vmem:[#allocation439_spill] sm:$0xff] %v9616_v58  ;;  %v9641_v58 = vld [vmem:[%s14130_s5 + $0xe8] sm:$0xff] }
 0x1ac   :  { %14723 = vst [vmem:[#allocation440_spill] sm:$0xff] %v9621_v53  ;;  %v9646_v53 = vld [vmem:[%s14130_s5 + $0xf0] sm:$0xff] }
 0x1ad   :  { %14724 = vst [vmem:[#allocation441_spill] sm:$0xff] %v9626_v52  ;;  %v9651_v52 = vld [vmem:[%s14130_s5 + $0xf8] sm:$0xff] }
 0x1ae   :  { %14725 = vst [vmem:[#allocation442_spill] sm:$0xff] %v9631_v56  ;;  %v9656_v56 = vld [vmem:[%s14130_s5 + $0x100] sm:$0xff] }
 0x1af   :  { %14726 = vst [vmem:[#allocation443_spill] sm:$0xff] %v9636_v49  ;;  %v9661_v49 = vld [vmem:[%s14130_s5 + $0x108] sm:$0xff] }
 0x1b0   :  { %14727 = vst [vmem:[#allocation444_spill] sm:$0xff] %v9641_v58  ;;  %v9666_v58 = vld [vmem:[%s14130_s5 + $0x110] sm:$0xff] }
 0x1b1   :  { %14728 = vst [vmem:[#allocation445_spill] sm:$0xff] %v9646_v53  ;;  %v9671_v53 = vld [vmem:[%s14130_s5 + $0x118] sm:$0xff] }
 0x1b2   :  { %14729 = vst [vmem:[#allocation446_spill] sm:$0xff] %v9651_v52  ;;  %v9676_v52 = vld [vmem:[%s14130_s5 + $0x120] sm:$0xff] }
 0x1b3   :  { %14730 = vst [vmem:[#allocation447_spill] sm:$0xff] %v9656_v56  ;;  %v9681_v56 = vld [vmem:[%s14130_s5 + $0x128] sm:$0xff] }
 0x1b4   :  { %14731 = vst [vmem:[#allocation448_spill] sm:$0xff] %v9661_v49  ;;  %v9686_v49 = vld [vmem:[%s14130_s5 + $0x130] sm:$0xff] }
 0x1b5   :  { %14732 = vst [vmem:[#allocation449_spill] sm:$0xff] %v9666_v58  ;;  %v9691_v58 = vld [vmem:[%s14130_s5 + $0x138] sm:$0xff] }
 0x1b6   :  { %14733 = vst [vmem:[#allocation450_spill] sm:$0xff] %v9671_v53  ;;  %v9696_v53 = vld [vmem:[%s14130_s5 + $0x140] sm:$0xff] }
 0x1b7   :  { %14734 = vst [vmem:[#allocation451_spill] sm:$0xff] %v9676_v52  ;;  %v9701_v52 = vld [vmem:[%s14130_s5 + $0x148] sm:$0xff] }
 0x1b8   :  { %14735 = vst [vmem:[#allocation452_spill] sm:$0xff] %v9681_v56  ;;  %v9706_v56 = vld [vmem:[%s14130_s5 + $0x150] sm:$0xff] }
 0x1b9   :  { %14736 = vst [vmem:[#allocation453_spill] sm:$0xff] %v9686_v49  ;;  %v9711_v49 = vld [vmem:[%s14130_s5 + $0x158] sm:$0xff] }
 0x1ba   :  { %14737 = vst [vmem:[#allocation454_spill] sm:$0xff] %v9691_v58  ;;  %v9716_v58 = vld [vmem:[%s14130_s5 + $0x160] sm:$0xff] }
 0x1bb   :  { %14738 = vst [vmem:[#allocation455_spill] sm:$0xff] %v9696_v53  ;;  %v9721_v53 = vld [vmem:[%s14130_s5 + $0x168] sm:$0xff] }
 0x1bc   :  { %14739 = vst [vmem:[#allocation456_spill] sm:$0xff] %v9701_v52  ;;  %v9726_v52 = vld [vmem:[%s14130_s5 + $0x170] sm:$0xff] }
 0x1bd   :  { %14740 = vst [vmem:[#allocation457_spill] sm:$0xff] %v9706_v56  ;;  %v9731_v56 = vld [vmem:[%s14130_s5 + $0x178] sm:$0xff] }
 0x1be   :  { %14741 = vst [vmem:[#allocation458_spill] sm:$0xff] %v9711_v49  ;;  %v9736_v49 = vld [vmem:[%s14130_s5 + $0x180] sm:$0xff] }
 0x1bf   :  { %14742 = vst [vmem:[#allocation459_spill] sm:$0xff] %v9716_v58  ;;  %v9741_v58 = vld [vmem:[%s14130_s5 + $0x188] sm:$0xff] }
 0x1c0   :  { %14743 = vst [vmem:[#allocation460_spill] sm:$0xff] %v9721_v53  ;;  %v9746_v53 = vld [vmem:[%s14130_s5 + $0x190] sm:$0xff] }
 0x1c1   :  { %14744 = vst [vmem:[#allocation461_spill] sm:$0xff] %v9726_v52  ;;  %v9751_v52 = vld [vmem:[%s14130_s5 + $0x198] sm:$0xff] }
 0x1c2   :  { %14745 = vst [vmem:[#allocation462_spill] sm:$0xff] %v9731_v56  ;;  %v9756_v56 = vld [vmem:[%s14130_s5 + $0x1a0] sm:$0xff] }
 0x1c3   :  { %14746 = vst [vmem:[#allocation463_spill] sm:$0xff] %v9736_v49  ;;  %v9761_v49 = vld [vmem:[%s14130_s5 + $0x1a8] sm:$0xff] }
 0x1c4   :  { %14747 = vst [vmem:[#allocation464_spill] sm:$0xff] %v9741_v58  ;;  %v9766_v58 = vld [vmem:[%s14130_s5 + $0x1b0] sm:$0xff] }
 0x1c5   :  { %14748 = vst [vmem:[#allocation465_spill] sm:$0xff] %v9746_v53  ;;  %v9771_v53 = vld [vmem:[%s14130_s5 + $0x1b8] sm:$0xff] }
 0x1c6   :  { %14749 = vst [vmem:[#allocation466_spill] sm:$0xff] %v9751_v52  ;;  %v9776_v52 = vld [vmem:[%s14130_s5 + $0x1c0] sm:$0xff] }
 0x1c7   :  { %14750 = vst [vmem:[#allocation467_spill] sm:$0xff] %v9756_v56  ;;  %v9781_v56 = vld [vmem:[%s14130_s5 + $0x1c8] sm:$0xff] }
 0x1c8   :  { %14751 = vst [vmem:[#allocation468_spill] sm:$0xff] %v9761_v49  ;;  %v9786_v49 = vld [vmem:[%s14130_s5 + $0x1d0] sm:$0xff] }
 0x1c9   :  { %14752 = vst [vmem:[#allocation469_spill] sm:$0xff] %v9766_v58  ;;  %v9791_v58 = vld [vmem:[%s14130_s5 + $0x1d8] sm:$0xff] }
 0x1ca   :  { %14753 = vst [vmem:[#allocation470_spill] sm:$0xff] %v9771_v53  ;;  %v9796_v53 = vld [vmem:[%s14130_s5 + $0x1e0] sm:$0xff] }
 0x1cb   :  { %14754 = vst [vmem:[#allocation471_spill] sm:$0xff] %v9776_v52  ;;  %v9801_v52 = vld [vmem:[%s14130_s5 + $0x1e8] sm:$0xff] }
 0x1cc   :  { %14755 = vst [vmem:[#allocation472_spill] sm:$0xff] %v9781_v56  ;;  %v9806_v56 = vld [vmem:[%s14130_s5 + $0x1f0] sm:$0xff] }
 0x1cd   :  { %14756 = vst [vmem:[#allocation473_spill] sm:$0xff] %v9786_v49  ;;  %v9811_v49 = vld [vmem:[%s14130_s5 + $0x1f8] sm:$0xff] }
 0x1ce   :  { %14757 = vst [vmem:[#allocation474_spill] sm:$0xff] %v9791_v58  ;;  %v9816_v58 = vld [vmem:[%s14130_s5 + $0x200] sm:$0xff] }
 0x1cf   :  { %14758 = vst [vmem:[#allocation475_spill] sm:$0xff] %v9796_v53  ;;  %v9821_v53 = vld [vmem:[%s14130_s5 + $0x208] sm:$0xff] }
 0x1d0   :  { %14759 = vst [vmem:[#allocation476_spill] sm:$0xff] %v9801_v52  ;;  %v9826_v52 = vld [vmem:[%s14130_s5 + $0x210] sm:$0xff] }
 0x1d1   :  { %14760 = vst [vmem:[#allocation477_spill] sm:$0xff] %v9806_v56  ;;  %v9831_v56 = vld [vmem:[%s14130_s5 + $0x218] sm:$0xff] }
 0x1d2   :  { %14761 = vst [vmem:[#allocation478_spill] sm:$0xff] %v9811_v49  ;;  %v9836_v49 = vld [vmem:[%s14130_s5 + $0x220] sm:$0xff] }
 0x1d3   :  { %14762 = vst [vmem:[#allocation479_spill] sm:$0xff] %v9816_v58  ;;  %v9841_v58 = vld [vmem:[%s14130_s5 + $0x228] sm:$0xff] }
 0x1d4   :  { %14763 = vst [vmem:[#allocation480_spill] sm:$0xff] %v9821_v53  ;;  %v9846_v53 = vld [vmem:[%s14130_s5 + $0x230] sm:$0xff] }
 0x1d5   :  { %14764 = vst [vmem:[#allocation481_spill] sm:$0xff] %v9826_v52  ;;  %v9851_v52 = vld [vmem:[%s14130_s5 + $0x238] sm:$0xff] }
 0x1d6   :  { %14765 = vst [vmem:[#allocation482_spill] sm:$0xff] %v9831_v56  ;;  %v9856_v56 = vld [vmem:[%s14130_s5 + $0x240] sm:$0xff] }
 0x1d7   :  { %14766 = vst [vmem:[#allocation483_spill] sm:$0xff] %v9836_v49  ;;  %v9861_v49 = vld [vmem:[%s14130_s5 + $0x248] sm:$0xff] }
 0x1d8   :  { %14767 = vst [vmem:[#allocation484_spill] sm:$0xff] %v9841_v58  ;;  %v9866_v58 = vld [vmem:[%s14130_s5 + $0x250] sm:$0xff] }
 0x1d9   :  { %14768 = vst [vmem:[#allocation485_spill] sm:$0xff] %v9846_v53  ;;  %v9871_v53 = vld [vmem:[%s14130_s5 + $0x258] sm:$0xff] }
 0x1da   :  { %14769 = vst [vmem:[#allocation486_spill] sm:$0xff] %v9851_v52  ;;  %v9876_v52 = vld [vmem:[%s14130_s5 + $0x260] sm:$0xff] }
 0x1db   :  { %14770 = vst [vmem:[#allocation487_spill] sm:$0xff] %v9856_v56  ;;  %v9881_v56 = vld [vmem:[%s14130_s5 + $0x268] sm:$0xff] }
 0x1dc   :  { %14771 = vst [vmem:[#allocation488_spill] sm:$0xff] %v9861_v49  ;;  %v9886_v49 = vld [vmem:[%s14130_s5 + $0x270] sm:$0xff] }
 0x1dd   :  { %14772 = vst [vmem:[#allocation489_spill] sm:$0xff] %v9866_v58  ;;  %v9891_v58 = vld [vmem:[%s14130_s5 + $0x278] sm:$0xff] }
 0x1de   :  { %14773 = vst [vmem:[#allocation490_spill] sm:$0xff] %v9871_v53  ;;  %v9896_v53 = vld [vmem:[%s14130_s5 + $0x280] sm:$0xff] }
 0x1df   :  { %14774 = vst [vmem:[#allocation491_spill] sm:$0xff] %v9876_v52  ;;  %v9901_v52 = vld [vmem:[%s14130_s5 + $0x288] sm:$0xff] }
 0x1e0   :  { %14775 = vst [vmem:[#allocation492_spill] sm:$0xff] %v9881_v56  ;;  %v9906_v56 = vld [vmem:[%s14130_s5 + $0x290] sm:$0xff] }
 0x1e1   :  { %14776 = vst [vmem:[#allocation493_spill] sm:$0xff] %v9886_v49  ;;  %v9911_v49 = vld [vmem:[%s14130_s5 + $0x298] sm:$0xff] }
 0x1e2   :  { %14777 = vst [vmem:[#allocation494_spill] sm:$0xff] %v9891_v58  ;;  %v9916_v58 = vld [vmem:[%s14130_s5 + $0x2a0] sm:$0xff] }
 0x1e3   :  { %14778 = vst [vmem:[#allocation495_spill] sm:$0xff] %v9896_v53  ;;  %v9921_v53 = vld [vmem:[%s14130_s5 + $0x2a8] sm:$0xff] }
 0x1e4   :  { %14779 = vst [vmem:[#allocation496_spill] sm:$0xff] %v9901_v52  ;;  %v9926_v52 = vld [vmem:[%s14130_s5 + $0x2b0] sm:$0xff] }
 0x1e5   :  { %14780 = vst [vmem:[#allocation497_spill] sm:$0xff] %v9906_v56  ;;  %v9931_v56 = vld [vmem:[%s14130_s5 + $0x2b8] sm:$0xff] }
 0x1e6   :  { %14781 = vst [vmem:[#allocation498_spill] sm:$0xff] %v9911_v49  ;;  %v9936_v49 = vld [vmem:[%s14130_s5 + $0x2c0] sm:$0xff] }
 0x1e7   :  { %14782 = vst [vmem:[#allocation499_spill] sm:$0xff] %v9916_v58  ;;  %v9941_v58 = vld [vmem:[%s14130_s5 + $0x2c8] sm:$0xff] }
 0x1e8   :  { %14783 = vst [vmem:[#allocation500_spill] sm:$0xff] %v9921_v53  ;;  %v9946_v53 = vld [vmem:[%s14130_s5 + $0x2d0] sm:$0xff] }
 0x1e9   :  { %14784 = vst [vmem:[#allocation501_spill] sm:$0xff] %v9926_v52  ;;  %v9951_v52 = vld [vmem:[%s14130_s5 + $0x2d8] sm:$0xff] }
 0x1ea   :  { %14785 = vst [vmem:[#allocation502_spill] sm:$0xff] %v9931_v56  ;;  %v9956_v56 = vld [vmem:[%s14130_s5 + $0x2e0] sm:$0xff] }
 0x1eb   :  { %14786 = vst [vmem:[#allocation503_spill] sm:$0xff] %v9936_v49  ;;  %v9961_v49 = vld [vmem:[%s14130_s5 + $0x2e8] sm:$0xff] }
 0x1ec   :  { %14787 = vst [vmem:[#allocation504_spill] sm:$0xff] %v9941_v58  ;;  %v9966_v58 = vld [vmem:[%s14130_s5 + $0x2f0] sm:$0xff] }
 0x1ed   :  { %14788 = vst [vmem:[#allocation505_spill] sm:$0xff] %v9946_v53  ;;  %v9971_v53 = vld [vmem:[%s14130_s5 + $0x2f8] sm:$0xff] }
 0x1ee   :  { %14789 = vst [vmem:[#allocation506_spill] sm:$0xff] %v9951_v52  ;;  %v9976_v52 = vld [vmem:[%s14130_s5 + $0x300] sm:$0xff] }
 0x1ef   :  { %14790 = vst [vmem:[#allocation507_spill] sm:$0xff] %v9956_v56  ;;  %v9981_v56 = vld [vmem:[%s14130_s5 + $0x308] sm:$0xff] }
 0x1f0   :  { %14791 = vst [vmem:[#allocation508_spill] sm:$0xff] %v9961_v49  ;;  %v9986_v49 = vld [vmem:[%s14130_s5 + $0x310] sm:$0xff] }
 0x1f1   :  { %14792 = vst [vmem:[#allocation509_spill] sm:$0xff] %v9966_v58  ;;  %v9991_v58 = vld [vmem:[%s14130_s5 + $0x318] sm:$0xff] }
 0x1f2   :  { %14793 = vst [vmem:[#allocation510_spill] sm:$0xff] %v9971_v53  ;;  %v9996_v53 = vld [vmem:[%s14130_s5 + $0x320] sm:$0xff] }
 0x1f3   :  { %14794 = vst [vmem:[#allocation511_spill] sm:$0xff] %v9976_v52  ;;  %v10001_v52 = vld [vmem:[%s14130_s5 + $0x328] sm:$0xff] }
 0x1f4   :  { %14795 = vst [vmem:[#allocation512_spill] sm:$0xff] %v9981_v56  ;;  %v10006_v56 = vld [vmem:[%s14130_s5 + $0x330] sm:$0xff] }
 0x1f5   :  { %14796 = vst [vmem:[#allocation513_spill] sm:$0xff] %v9986_v49  ;;  %v10011_v49 = vld [vmem:[%s14130_s5 + $0x338] sm:$0xff] }
 0x1f6   :  { %14797 = vst [vmem:[#allocation514_spill] sm:$0xff] %v9991_v58  ;;  %v10016_v58 = vld [vmem:[%s14130_s5 + $0x340] sm:$0xff] }
 0x1f7   :  { %14798 = vst [vmem:[#allocation515_spill] sm:$0xff] %v9996_v53  ;;  %v10021_v53 = vld [vmem:[%s14130_s5 + $0x348] sm:$0xff] }
 0x1f8   :  { %14799 = vst [vmem:[#allocation516_spill] sm:$0xff] %v10001_v52  ;;  %v10026_v52 = vld [vmem:[%s14130_s5 + $0x350] sm:$0xff] }
 0x1f9   :  { %14800 = vst [vmem:[#allocation517_spill] sm:$0xff] %v10006_v56  ;;  %v10031_v56 = vld [vmem:[%s14130_s5 + $0x358] sm:$0xff] }
 0x1fa   :  { %14801 = vst [vmem:[#allocation518_spill] sm:$0xff] %v10011_v49  ;;  %v10036_v49 = vld [vmem:[%s14130_s5 + $0x360] sm:$0xff] }
 0x1fb   :  { %14802 = vst [vmem:[#allocation519_spill] sm:$0xff] %v10016_v58  ;;  %v10041_v58 = vld [vmem:[%s14130_s5 + $0x368] sm:$0xff] }
 0x1fc   :  { %14803 = vst [vmem:[#allocation520_spill] sm:$0xff] %v10021_v53  ;;  %v10046_v53 = vld [vmem:[%s14130_s5 + $0x370] sm:$0xff] }
 0x1fd   :  { %14804 = vst [vmem:[#allocation521_spill] sm:$0xff] %v10026_v52  ;;  %v10051_v52 = vld [vmem:[%s14130_s5 + $0x378] sm:$0xff] }
 0x1fe   :  { %14805 = vst [vmem:[#allocation522_spill] sm:$0xff] %v10031_v56  ;;  %v10056_v56 = vld [vmem:[%s14130_s5 + $0x380] sm:$0xff] }
 0x1ff   :  { %14806 = vst [vmem:[#allocation523_spill] sm:$0xff] %v10036_v49  ;;  %v10061_v49 = vld [vmem:[%s14130_s5 + $0x388] sm:$0xff] }
 0x200   :  { %14807 = vst [vmem:[#allocation524_spill] sm:$0xff] %v10041_v58  ;;  %v10066_v58 = vld [vmem:[%s14130_s5 + $0x390] sm:$0xff] }
 0x201   :  { %14808 = vst [vmem:[#allocation525_spill] sm:$0xff] %v10046_v53  ;;  %v10071_v53 = vld [vmem:[%s14130_s5 + $0x398] sm:$0xff] }
 0x202   :  { %14809 = vst [vmem:[#allocation526_spill] sm:$0xff] %v10051_v52  ;;  %v10076_v52 = vld [vmem:[%s14130_s5 + $0x3a0] sm:$0xff] }
 0x203   :  { %14810 = vst [vmem:[#allocation527_spill] sm:$0xff] %v10056_v56  ;;  %v10081_v56 = vld [vmem:[%s14130_s5 + $0x3a8] sm:$0xff] }
 0x204   :  { %14811 = vst [vmem:[#allocation528_spill] sm:$0xff] %v10061_v49  ;;  %v10086_v49 = vld [vmem:[%s14130_s5 + $0x3b0] sm:$0xff] }
 0x205   :  { %14812 = vst [vmem:[#allocation529_spill] sm:$0xff] %v10066_v58  ;;  %v10091_v58 = vld [vmem:[%s14130_s5 + $0x3b8] sm:$0xff] }
 0x206   :  { %14813 = vst [vmem:[#allocation530_spill] sm:$0xff] %v10071_v53  ;;  %v10096_v53 = vld [vmem:[%s14130_s5 + $0x3c0] sm:$0xff] }
 0x207   :  { %14814 = vst [vmem:[#allocation531_spill] sm:$0xff] %v10076_v52  ;;  %v10101_v52 = vld [vmem:[%s14130_s5 + $0x3c8] sm:$0xff] }
 0x208   :  { %14815 = vst [vmem:[#allocation532_spill] sm:$0xff] %v10081_v56  ;;  %v10106_v56 = vld [vmem:[%s14130_s5 + $0x3d0] sm:$0xff] }
 0x209   :  { %14816 = vst [vmem:[#allocation533_spill] sm:$0xff] %v10086_v49  ;;  %v10111_v49 = vld [vmem:[%s14130_s5 + $0x3d8] sm:$0xff] }
 0x20a   :  { %14817 = vst [vmem:[#allocation534_spill] sm:$0xff] %v10091_v58  ;;  %v10116_v58 = vld [vmem:[%s14130_s5 + $0x3e0] sm:$0xff] }
 0x20b   :  { %14818 = vst [vmem:[#allocation535_spill] sm:$0xff] %v10096_v53  ;;  %v10121_v53 = vld [vmem:[%s14130_s5 + $0x3e8] sm:$0xff] }
 0x20c   :  { %14819 = vst [vmem:[#allocation536_spill] sm:$0xff] %v10101_v52  ;;  %v10126_v52 = vld [vmem:[%s14130_s5 + $0x3f0] sm:$0xff] }
 0x20d   :  { %14820 = vst [vmem:[#allocation537_spill] sm:$0xff] %v10106_v56  ;;  %v10131_v56 = vld [vmem:[%s14130_s5 + $0x3f8] sm:$0xff] }
 0x20e   :  { %14821 = vst [vmem:[#allocation538_spill] sm:$0xff] %v10111_v49  ;;  %v10136_v49 = vld [vmem:[%s14130_s5 + $0x400] sm:$0xff] }
 0x20f   :  { %14822 = vst [vmem:[#allocation539_spill] sm:$0xff] %v10116_v58  ;;  %v10141_v58 = vld [vmem:[%s14130_s5 + $0x408] sm:$0xff] }
 0x210   :  { %14823 = vst [vmem:[#allocation540_spill] sm:$0xff] %v10121_v53  ;;  %v10146_v53 = vld [vmem:[%s14130_s5 + $0x410] sm:$0xff] }
 0x211   :  { %14824 = vst [vmem:[#allocation541_spill] sm:$0xff] %v10126_v52  ;;  %v10151_v52 = vld [vmem:[%s14130_s5 + $0x418] sm:$0xff] }
 0x212   :  { %14825 = vst [vmem:[#allocation542_spill] sm:$0xff] %v10131_v56  ;;  %v10156_v56 = vld [vmem:[%s14130_s5 + $0x420] sm:$0xff] }
 0x213   :  { %14826 = vst [vmem:[#allocation543_spill] sm:$0xff] %v10136_v49  ;;  %v10161_v49 = vld [vmem:[%s14130_s5 + $0x428] sm:$0xff] }
 0x214   :  { %14827 = vst [vmem:[#allocation544_spill] sm:$0xff] %v10141_v58  ;;  %v10166_v58 = vld [vmem:[%s14130_s5 + $0x430] sm:$0xff] }
 0x215   :  { %14828 = vst [vmem:[#allocation545_spill] sm:$0xff] %v10146_v53  ;;  %v10171_v53 = vld [vmem:[%s14130_s5 + $0x438] sm:$0xff] }
 0x216   :  { %14829 = vst [vmem:[#allocation546_spill] sm:$0xff] %v10151_v52  ;;  %v10176_v52 = vld [vmem:[%s14130_s5 + $0x440] sm:$0xff] }
 0x217   :  { %14830 = vst [vmem:[#allocation547_spill] sm:$0xff] %v10156_v56  ;;  %v10181_v56 = vld [vmem:[%s14130_s5 + $0x448] sm:$0xff] }
 0x218   :  { %14831 = vst [vmem:[#allocation548_spill] sm:$0xff] %v10161_v49  ;;  %v10186_v49 = vld [vmem:[%s14130_s5 + $0x450] sm:$0xff] }
 0x219   :  { %14832 = vst [vmem:[#allocation549_spill] sm:$0xff] %v10166_v58  ;;  %v10191_v58 = vld [vmem:[%s14130_s5 + $0x458] sm:$0xff] }
 0x21a   :  { %14833 = vst [vmem:[#allocation550_spill] sm:$0xff] %v10171_v53  ;;  %v10196_v53 = vld [vmem:[%s14130_s5 + $0x460] sm:$0xff] }
 0x21b   :  { %14834 = vst [vmem:[#allocation551_spill] sm:$0xff] %v10176_v52  ;;  %v10201_v52 = vld [vmem:[%s14130_s5 + $0x468] sm:$0xff] }
 0x21c   :  { %14835 = vst [vmem:[#allocation552_spill] sm:$0xff] %v10181_v56  ;;  %v10206_v56 = vld [vmem:[%s14130_s5 + $0x470] sm:$0xff] }
 0x21d   :  { %14836 = vst [vmem:[#allocation553_spill] sm:$0xff] %v10186_v49  ;;  %v10211_v49 = vld [vmem:[%s14130_s5 + $0x478] sm:$0xff] }
 0x21e   :  { %14837 = vst [vmem:[#allocation554_spill] sm:$0xff] %v10191_v58  ;;  %v10216_v58 = vld [vmem:[%s14130_s5 + $0x480] sm:$0xff] }
 0x21f   :  { %14838 = vst [vmem:[#allocation555_spill] sm:$0xff] %v10196_v53  ;;  %v10221_v53 = vld [vmem:[%s14130_s5 + $0x488] sm:$0xff] }
 0x220   :  { %14839 = vst [vmem:[#allocation556_spill] sm:$0xff] %v10201_v52  ;;  %v10226_v52 = vld [vmem:[%s14130_s5 + $0x490] sm:$0xff] }
 0x221   :  { %14840 = vst [vmem:[#allocation557_spill] sm:$0xff] %v10206_v56  ;;  %v10231_v56 = vld [vmem:[%s14130_s5 + $0x498] sm:$0xff] }
 0x222   :  { %14841 = vst [vmem:[#allocation558_spill] sm:$0xff] %v10211_v49  ;;  %v10236_v49 = vld [vmem:[%s14130_s5 + $0x4a0] sm:$0xff] }
 0x223   :  { %14842 = vst [vmem:[#allocation559_spill] sm:$0xff] %v10216_v58  ;;  %v10241_v58 = vld [vmem:[%s14130_s5 + $0x4a8] sm:$0xff] }
 0x224   :  { %14843 = vst [vmem:[#allocation560_spill] sm:$0xff] %v10221_v53  ;;  %v10246_v53 = vld [vmem:[%s14130_s5 + $0x4b0] sm:$0xff] }
 0x225   :  { %14844 = vst [vmem:[#allocation561_spill] sm:$0xff] %v10226_v52  ;;  %v10251_v52 = vld [vmem:[%s14130_s5 + $0x4b8] sm:$0xff] }
 0x226   :  { %14845 = vst [vmem:[#allocation562_spill] sm:$0xff] %v10231_v56  ;;  %v10256_v56 = vld [vmem:[%s14130_s5 + $0x4c0] sm:$0xff] }
 0x227   :  { %14846 = vst [vmem:[#allocation563_spill] sm:$0xff] %v10236_v49  ;;  %v10261_v49 = vld [vmem:[%s14130_s5 + $0x4c8] sm:$0xff] }
 0x228   :  { %14847 = vst [vmem:[#allocation564_spill] sm:$0xff] %v10241_v58  ;;  %v10266_v58 = vld [vmem:[%s14130_s5 + $0x4d0] sm:$0xff] }
 0x229   :  { %14848 = vst [vmem:[#allocation565_spill] sm:$0xff] %v10246_v53  ;;  %v10271_v53 = vld [vmem:[%s14130_s5 + $0x4d8] sm:$0xff] }
 0x22a   :  { %14849 = vst [vmem:[#allocation566_spill] sm:$0xff] %v10251_v52  ;;  %v10276_v52 = vld [vmem:[%s14130_s5 + $0x4e0] sm:$0xff] }
 0x22b   :  { %14850 = vst [vmem:[#allocation567_spill] sm:$0xff] %v10256_v56  ;;  %v10281_v56 = vld [vmem:[%s14130_s5 + $0x4e8] sm:$0xff] }
 0x22c   :  { %14851 = vst [vmem:[#allocation568_spill] sm:$0xff] %v10261_v49  ;;  %v10286_v49 = vld [vmem:[%s14130_s5 + $0x4f0] sm:$0xff] }
 0x22d   :  { %14852 = vst [vmem:[#allocation569_spill] sm:$0xff] %v10266_v58  ;;  %v10291_v58 = vld [vmem:[%s14130_s5 + $0x4f8] sm:$0xff] }
 0x22e   :  { %14853 = vst [vmem:[#allocation570_spill] sm:$0xff] %v10271_v53  ;;  %v10296_v53 = vld [vmem:[%s14130_s5 + $0x500] sm:$0xff] }
 0x22f   :  { %14854 = vst [vmem:[#allocation571_spill] sm:$0xff] %v10276_v52  ;;  %v10301_v52 = vld [vmem:[%s14130_s5 + $0x508] sm:$0xff] }
 0x230   :  { %14855 = vst [vmem:[#allocation572_spill] sm:$0xff] %v10281_v56  ;;  %v10306_v56 = vld [vmem:[%s14130_s5 + $0x510] sm:$0xff] }
 0x231   :  { %14856 = vst [vmem:[#allocation573_spill] sm:$0xff] %v10286_v49  ;;  %v10311_v49 = vld [vmem:[%s14130_s5 + $0x518] sm:$0xff] }
 0x232   :  { %14857 = vst [vmem:[#allocation574_spill] sm:$0xff] %v10291_v58  ;;  %v10316_v58 = vld [vmem:[%s14130_s5 + $0x520] sm:$0xff] }
 0x233   :  { %14858 = vst [vmem:[#allocation575_spill] sm:$0xff] %v10296_v53  ;;  %v10321_v53 = vld [vmem:[%s14130_s5 + $0x528] sm:$0xff] }
 0x234   :  { %14859 = vst [vmem:[#allocation576_spill] sm:$0xff] %v10301_v52  ;;  %v10326_v52 = vld [vmem:[%s14130_s5 + $0x530] sm:$0xff] }
 0x235   :  { %14860 = vst [vmem:[#allocation577_spill] sm:$0xff] %v10306_v56  ;;  %v10331_v56 = vld [vmem:[%s14130_s5 + $0x538] sm:$0xff] }
 0x236   :  { %14861 = vst [vmem:[#allocation578_spill] sm:$0xff] %v10311_v49  ;;  %v10336_v49 = vld [vmem:[%s14130_s5 + $0x540] sm:$0xff] }
 0x237   :  { %14862 = vst [vmem:[#allocation579_spill] sm:$0xff] %v10316_v58  ;;  %v10341_v58 = vld [vmem:[%s14130_s5 + $0x548] sm:$0xff] }
 0x238   :  { %14863 = vst [vmem:[#allocation580_spill] sm:$0xff] %v10321_v53  ;;  %v10346_v53 = vld [vmem:[%s14130_s5 + $0x550] sm:$0xff] }
 0x239   :  { %14864 = vst [vmem:[#allocation581_spill] sm:$0xff] %v10326_v52  ;;  %v10351_v52 = vld [vmem:[%s14130_s5 + $0x558] sm:$0xff] }
 0x23a   :  { %14865 = vst [vmem:[#allocation582_spill] sm:$0xff] %v10331_v56  ;;  %v10356_v56 = vld [vmem:[%s14130_s5 + $0x560] sm:$0xff] }
 0x23b   :  { %14866 = vst [vmem:[#allocation583_spill] sm:$0xff] %v10336_v49  ;;  %v10361_v49 = vld [vmem:[%s14130_s5 + $0x568] sm:$0xff] }
 0x23c   :  { %14867 = vst [vmem:[#allocation584_spill] sm:$0xff] %v10341_v58  ;;  %v10366_v58 = vld [vmem:[%s14130_s5 + $0x570] sm:$0xff] }
 0x23d   :  { %14868 = vst [vmem:[#allocation585_spill] sm:$0xff] %v10346_v53  ;;  %v10371_v53 = vld [vmem:[%s14130_s5 + $0x578] sm:$0xff] }
 0x23e   :  { %14869 = vst [vmem:[#allocation586_spill] sm:$0xff] %v10351_v52  ;;  %v10376_v52 = vld [vmem:[%s14130_s5 + $0x580] sm:$0xff] }
 0x23f   :  { %14870 = vst [vmem:[#allocation587_spill] sm:$0xff] %v10356_v56  ;;  %v10381_v56 = vld [vmem:[%s14130_s5 + $0x588] sm:$0xff] }
 0x240   :  { %14871 = vst [vmem:[#allocation588_spill] sm:$0xff] %v10361_v49  ;;  %v10386_v49 = vld [vmem:[%s14130_s5 + $0x590] sm:$0xff] }
 0x241   :  { %14872 = vst [vmem:[#allocation589_spill] sm:$0xff] %v10366_v58  ;;  %v10391_v58 = vld [vmem:[%s14130_s5 + $0x598] sm:$0xff] }
 0x242   :  { %14873 = vst [vmem:[#allocation590_spill] sm:$0xff] %v10371_v53  ;;  %v10396_v53 = vld [vmem:[%s14130_s5 + $0x5a0] sm:$0xff] }
 0x243   :  { %14874 = vst [vmem:[#allocation591_spill] sm:$0xff] %v10376_v52  ;;  %v10401_v52 = vld [vmem:[%s14130_s5 + $0x5a8] sm:$0xff] }
 0x244   :  { %14875 = vst [vmem:[#allocation592_spill] sm:$0xff] %v10381_v56  ;;  %v10406_v56 = vld [vmem:[%s14130_s5 + $0x5b0] sm:$0xff] }
 0x245   :  { %14876 = vst [vmem:[#allocation593_spill] sm:$0xff] %v10386_v49  ;;  %v10411_v49 = vld [vmem:[%s14130_s5 + $0x5b8] sm:$0xff] }
 0x246   :  { %14877 = vst [vmem:[#allocation594_spill] sm:$0xff] %v10391_v58  ;;  %v10416_v58 = vld [vmem:[%s14130_s5 + $0x5c0] sm:$0xff] }
 0x247   :  { %14878 = vst [vmem:[#allocation595_spill] sm:$0xff] %v10396_v53  ;;  %v10421_v53 = vld [vmem:[%s14130_s5 + $0x5c8] sm:$0xff] }
 0x248   :  { %14879 = vst [vmem:[#allocation596_spill] sm:$0xff] %v10401_v52  ;;  %v10426_v52 = vld [vmem:[%s14130_s5 + $0x5d0] sm:$0xff] }
 0x249   :  { %14880 = vst [vmem:[#allocation597_spill] sm:$0xff] %v10406_v56  ;;  %v10431_v56 = vld [vmem:[%s14130_s5 + $0x5d8] sm:$0xff] }
 0x24a   :  { %14881 = vst [vmem:[#allocation598_spill] sm:$0xff] %v10411_v49  ;;  %v10436_v49 = vld [vmem:[%s14130_s5 + $0x5e0] sm:$0xff] }
 0x24b   :  { %14882 = vst [vmem:[#allocation599_spill] sm:$0xff] %v10416_v58  ;;  %v10441_v58 = vld [vmem:[%s14130_s5 + $0x5e8] sm:$0xff] }
 0x24c   :  { %14883 = vst [vmem:[#allocation600_spill] sm:$0xff] %v10421_v53  ;;  %v10446_v53 = vld [vmem:[%s14130_s5 + $0x5f0] sm:$0xff] }
 0x24d   :  { %14884 = vst [vmem:[#allocation601_spill] sm:$0xff] %v10426_v52  ;;  %v10451_v52 = vld [vmem:[%s14130_s5 + $0x5f8] sm:$0xff] }
 0x24e   :  { %14885 = vst [vmem:[#allocation602_spill] sm:$0xff] %v10431_v56  ;;  %v10456_v56 = vld [vmem:[%s14130_s5 + $0x600] sm:$0xff] }
 0x24f   :  { %14886 = vst [vmem:[#allocation603_spill] sm:$0xff] %v10436_v49  ;;  %v10461_v49 = vld [vmem:[%s14130_s5 + $0x608] sm:$0xff] }
 0x250   :  { %14887 = vst [vmem:[#allocation604_spill] sm:$0xff] %v10441_v58  ;;  %v10466_v58 = vld [vmem:[%s14130_s5 + $0x610] sm:$0xff] }
 0x251   :  { %14888 = vst [vmem:[#allocation605_spill] sm:$0xff] %v10446_v53  ;;  %v10471_v53 = vld [vmem:[%s14130_s5 + $0x618] sm:$0xff] }
 0x252   :  { %14889 = vst [vmem:[#allocation606_spill] sm:$0xff] %v10451_v52  ;;  %v10476_v52 = vld [vmem:[%s14130_s5 + $0x620] sm:$0xff] }
 0x253   :  { %14890 = vst [vmem:[#allocation607_spill] sm:$0xff] %v10456_v56  ;;  %v10481_v56 = vld [vmem:[%s14130_s5 + $0x628] sm:$0xff] }
 0x254   :  { %14891 = vst [vmem:[#allocation608_spill] sm:$0xff] %v10461_v49  ;;  %v10486_v49 = vld [vmem:[%s14130_s5 + $0x630] sm:$0xff] }
 0x255   :  { %14892 = vst [vmem:[#allocation609_spill] sm:$0xff] %v10466_v58  ;;  %v10491_v58 = vld [vmem:[%s14130_s5 + $0x638] sm:$0xff] }
 0x256   :  { %14893 = vst [vmem:[#allocation610_spill] sm:$0xff] %v10471_v53  ;;  %v10496_v53 = vld [vmem:[%s14130_s5 + $0x640] sm:$0xff] }
 0x257   :  { %14894 = vst [vmem:[#allocation611_spill] sm:$0xff] %v10476_v52  ;;  %v10501_v52 = vld [vmem:[%s14130_s5 + $0x648] sm:$0xff] }
 0x258   :  { %14895 = vst [vmem:[#allocation612_spill] sm:$0xff] %v10481_v56  ;;  %v10506_v56 = vld [vmem:[%s14130_s5 + $0x650] sm:$0xff] }
 0x259   :  { %14896 = vst [vmem:[#allocation613_spill] sm:$0xff] %v10486_v49  ;;  %v10511_v49 = vld [vmem:[%s14130_s5 + $0x658] sm:$0xff] }
 0x25a   :  { %14897 = vst [vmem:[#allocation614_spill] sm:$0xff] %v10491_v58  ;;  %v10516_v58 = vld [vmem:[%s14130_s5 + $0x660] sm:$0xff] }
 0x25b   :  { %14898 = vst [vmem:[#allocation615_spill] sm:$0xff] %v10496_v53  ;;  %v10521_v53 = vld [vmem:[%s14130_s5 + $0x668] sm:$0xff] }
 0x25c   :  { %14899 = vst [vmem:[#allocation616_spill] sm:$0xff] %v10501_v52  ;;  %v10526_v52 = vld [vmem:[%s14130_s5 + $0x670] sm:$0xff] }
 0x25d   :  { %14900 = vst [vmem:[#allocation617_spill] sm:$0xff] %v10506_v56  ;;  %v10531_v56 = vld [vmem:[%s14130_s5 + $0x678] sm:$0xff] }
 0x25e   :  { %14901 = vst [vmem:[#allocation618_spill] sm:$0xff] %v10511_v49  ;;  %v10536_v49 = vld [vmem:[%s14130_s5 + $0x680] sm:$0xff] }
 0x25f   :  { %14902 = vst [vmem:[#allocation619_spill] sm:$0xff] %v10516_v58  ;;  %v10541_v58 = vld [vmem:[%s14130_s5 + $0x688] sm:$0xff] }
 0x260   :  { %14903 = vst [vmem:[#allocation620_spill] sm:$0xff] %v10521_v53  ;;  %v10546_v53 = vld [vmem:[%s14130_s5 + $0x690] sm:$0xff] }
 0x261   :  { %14904 = vst [vmem:[#allocation621_spill] sm:$0xff] %v10526_v52  ;;  %v10551_v52 = vld [vmem:[%s14130_s5 + $0x698] sm:$0xff] }
 0x262   :  { %14905 = vst [vmem:[#allocation622_spill] sm:$0xff] %v10531_v56  ;;  %v10556_v56 = vld [vmem:[%s14130_s5 + $0x6a0] sm:$0xff] }
 0x263   :  { %14906 = vst [vmem:[#allocation623_spill] sm:$0xff] %v10536_v49  ;;  %v10561_v49 = vld [vmem:[%s14130_s5 + $0x6a8] sm:$0xff] }
 0x264   :  { %14907 = vst [vmem:[#allocation624_spill] sm:$0xff] %v10541_v58  ;;  %v10566_v58 = vld [vmem:[%s14130_s5 + $0x6b0] sm:$0xff] }
 0x265   :  { %14908 = vst [vmem:[#allocation625_spill] sm:$0xff] %v10546_v53  ;;  %v10571_v53 = vld [vmem:[%s14130_s5 + $0x6b8] sm:$0xff] }
 0x266   :  { %14909 = vst [vmem:[#allocation626_spill] sm:$0xff] %v10551_v52  ;;  %v10576_v52 = vld [vmem:[%s14130_s5 + $0x6c0] sm:$0xff] }
 0x267   :  { %14910 = vst [vmem:[#allocation627_spill] sm:$0xff] %v10556_v56  ;;  %v10581_v56 = vld [vmem:[%s14130_s5 + $0x6c8] sm:$0xff] }
 0x268   :  { %14911 = vst [vmem:[#allocation628_spill] sm:$0xff] %v10561_v49  ;;  %v10586_v49 = vld [vmem:[%s14130_s5 + $0x6d0] sm:$0xff] }
 0x269   :  { %14912 = vst [vmem:[#allocation629_spill] sm:$0xff] %v10566_v58  ;;  %v10591_v58 = vld [vmem:[%s14130_s5 + $0x6d8] sm:$0xff] }
 0x26a   :  { %14913 = vst [vmem:[#allocation630_spill] sm:$0xff] %v10571_v53  ;;  %v10596_v53 = vld [vmem:[%s14130_s5 + $0x6e0] sm:$0xff] }
 0x26b   :  { %14914 = vst [vmem:[#allocation631_spill] sm:$0xff] %v10576_v52  ;;  %v10601_v52 = vld [vmem:[%s14130_s5 + $0x6e8] sm:$0xff] }
 0x26c   :  { %14915 = vst [vmem:[#allocation632_spill] sm:$0xff] %v10581_v56  ;;  %v10606_v56 = vld [vmem:[%s14130_s5 + $0x6f0] sm:$0xff] }
 0x26d   :  { %14916 = vst [vmem:[#allocation633_spill] sm:$0xff] %v10586_v49  ;;  %v10611_v49 = vld [vmem:[%s14130_s5 + $0x6f8] sm:$0xff] }
 0x26e   :  { %14917 = vst [vmem:[#allocation634_spill] sm:$0xff] %v10591_v58  ;;  %v10616_v58 = vld [vmem:[%s14130_s5 + $0x700] sm:$0xff] }
 0x26f   :  { %14918 = vst [vmem:[#allocation635_spill] sm:$0xff] %v10596_v53  ;;  %v10621_v53 = vld [vmem:[%s14130_s5 + $0x708] sm:$0xff] }
 0x270   :  { %14919 = vst [vmem:[#allocation636_spill] sm:$0xff] %v10601_v52  ;;  %v10626_v52 = vld [vmem:[%s14130_s5 + $0x710] sm:$0xff] }
 0x271   :  { %14920 = vst [vmem:[#allocation637_spill] sm:$0xff] %v10606_v56  ;;  %v10631_v56 = vld [vmem:[%s14130_s5 + $0x718] sm:$0xff] }
 0x272   :  { %14921 = vst [vmem:[#allocation638_spill] sm:$0xff] %v10611_v49  ;;  %v10636_v49 = vld [vmem:[%s14130_s5 + $0x720] sm:$0xff] }
 0x273   :  { %14922 = vst [vmem:[#allocation639_spill] sm:$0xff] %v10616_v58  ;;  %v10641_v58 = vld [vmem:[%s14130_s5 + $0x728] sm:$0xff] }
 0x274   :  { %14923 = vst [vmem:[#allocation640_spill] sm:$0xff] %v10621_v53  ;;  %v10646_v53 = vld [vmem:[%s14130_s5 + $0x730] sm:$0xff] }
 0x275   :  { %14924 = vst [vmem:[#allocation641_spill] sm:$0xff] %v10626_v52  ;;  %v10651_v52 = vld [vmem:[%s14130_s5 + $0x738] sm:$0xff] }
 0x276   :  { %14925 = vst [vmem:[#allocation642_spill] sm:$0xff] %v10631_v56  ;;  %v10656_v56 = vld [vmem:[%s14130_s5 + $0x740] sm:$0xff] }
 0x277   :  { %14926 = vst [vmem:[#allocation643_spill] sm:$0xff] %v10636_v49  ;;  %v10661_v49 = vld [vmem:[%s14130_s5 + $0x748] sm:$0xff] }
 0x278   :  { %14927 = vst [vmem:[#allocation644_spill] sm:$0xff] %v10641_v58  ;;  %v10666_v58 = vld [vmem:[%s14130_s5 + $0x750] sm:$0xff] }
 0x279   :  { %14928 = vst [vmem:[#allocation645_spill] sm:$0xff] %v10646_v53  ;;  %v10671_v53 = vld [vmem:[%s14130_s5 + $0x758] sm:$0xff] }
 0x27a   :  { %14929 = vst [vmem:[#allocation646_spill] sm:$0xff] %v10651_v52  ;;  %v10676_v52 = vld [vmem:[%s14130_s5 + $0x760] sm:$0xff] }
 0x27b   :  { %14930 = vst [vmem:[#allocation647_spill] sm:$0xff] %v10656_v56  ;;  %v10681_v56 = vld [vmem:[%s14130_s5 + $0x768] sm:$0xff] }
 0x27c   :  { %14931 = vst [vmem:[#allocation648_spill] sm:$0xff] %v10661_v49  ;;  %v10686_v49 = vld [vmem:[%s14130_s5 + $0x770] sm:$0xff] }
 0x27d   :  { %14932 = vst [vmem:[#allocation649_spill] sm:$0xff] %v10666_v58  ;;  %v10691_v58 = vld [vmem:[%s14130_s5 + $0x778] sm:$0xff] }
 0x27e   :  { %14933 = vst [vmem:[#allocation650_spill] sm:$0xff] %v10671_v53  ;;  %v10696_v53 = vld [vmem:[%s14130_s5 + $0x780] sm:$0xff] }
 0x27f   :  { %14934 = vst [vmem:[#allocation651_spill] sm:$0xff] %v10676_v52  ;;  %v10701_v52 = vld [vmem:[%s14130_s5 + $0x788] sm:$0xff] }
 0x280   :  { %14935 = vst [vmem:[#allocation652_spill] sm:$0xff] %v10681_v56  ;;  %v10706_v56 = vld [vmem:[%s14130_s5 + $0x790] sm:$0xff] }
 0x281   :  { %14936 = vst [vmem:[#allocation653_spill] sm:$0xff] %v10686_v49  ;;  %v10711_v49 = vld [vmem:[%s14130_s5 + $0x798] sm:$0xff] }
 0x282   :  { %14937 = vst [vmem:[#allocation654_spill] sm:$0xff] %v10691_v58  ;;  %v10716_v58 = vld [vmem:[%s14130_s5 + $0x7a0] sm:$0xff] }
 0x283   :  { %14938 = vst [vmem:[#allocation655_spill] sm:$0xff] %v10696_v53  ;;  %v10721_v53 = vld [vmem:[%s14130_s5 + $0x7a8] sm:$0xff] }
 0x284   :  { %14939 = vst [vmem:[#allocation656_spill] sm:$0xff] %v10701_v52  ;;  %v10726_v52 = vld [vmem:[%s14130_s5 + $0x7b0] sm:$0xff] }
 0x285   :  { %14940 = vst [vmem:[#allocation657_spill] sm:$0xff] %v10706_v56  ;;  %v10731_v56 = vld [vmem:[%s14130_s5 + $0x7b8] sm:$0xff] }
 0x286   :  { %14941 = vst [vmem:[#allocation658_spill] sm:$0xff] %v10711_v49  ;;  %v10736_v49 = vld [vmem:[%s14130_s5 + $0x7c0] sm:$0xff] }
 0x287   :  { %14942 = vst [vmem:[#allocation659_spill] sm:$0xff] %v10716_v58  ;;  %v10741_v58 = vld [vmem:[%s14130_s5 + $0x7c8] sm:$0xff] }
 0x288   :  { %14943 = vst [vmem:[#allocation660_spill] sm:$0xff] %v10721_v53  ;;  %v10746_v53 = vld [vmem:[%s14130_s5 + $0x7d0] sm:$0xff] }
 0x289   :  { %14944 = vst [vmem:[#allocation661_spill] sm:$0xff] %v10726_v52  ;;  %v10751_v52 = vld [vmem:[%s14130_s5 + $0x7d8] sm:$0xff] }
 0x28a   :  { %14945 = vst [vmem:[#allocation662_spill] sm:$0xff] %v10731_v56  ;;  %v10756_v56 = vld [vmem:[%s14130_s5 + $0x7e0] sm:$0xff] }
 0x28b   :  { %14946 = vst [vmem:[#allocation663_spill] sm:$0xff] %v10736_v49  ;;  %v10761_v49 = vld [vmem:[%s14130_s5 + $0x7e8] sm:$0xff] }
 0x28c   :  { %14947 = vst [vmem:[#allocation664_spill] sm:$0xff] %v10741_v58  ;;  %v10766_v58 = vld [vmem:[%s14130_s5 + $0x7f0] sm:$0xff] }
 0x28d   :  { %14948 = vst [vmem:[#allocation665_spill] sm:$0xff] %v10746_v53  ;;  %v10771_v53 = vld [vmem:[%s14130_s5 + $0x7f8] sm:$0xff] }
 0x28e   :  { %14949 = vst [vmem:[#allocation666_spill] sm:$0xff] %v10751_v52 }
 0x28f   :  { %14950 = vst [vmem:[#allocation667_spill] sm:$0xff] %v10756_v56 }
 0x290   :  { %14951 = vst [vmem:[#allocation668_spill] sm:$0xff] %v10761_v49 }
 0x291   :  { %14952 = vst [vmem:[#allocation669_spill] sm:$0xff] %v10766_v58 }
 0x292   :  { %14953 = vst [vmem:[#allocation670_spill] sm:$0xff] %v10771_v53 }
 0x293   :  { %1379 = vsyncadd [#allocation7 + $0x1], 32768  ;;  %v1575_v52 = vld [vmem:[%s14126_s1 + $0x18] sm:$0x1]  ;;  %vm2153_vm0 = vcmask 1040384   ;;  %v1574_v56 = vld [vmem:[%s14126_s1 + $0x10] sm:$0xff] }
 0x294   :  { %7110 = vmatpush.msk.msra.mxu0 %vm2153_vm0, %v1575_v52  ;;  %7307 = vmatpush.msk.msra.mxu2 %vm2153_vm0, %v1575_v52  ;;  %v1573_v49 = vld [vmem:[%s14126_s1 + $0x8] sm:$0xff]  ;;  %v1572_v58 = vld [vmem:[%s14126_s1] sm:$0xff]  ;;  %vm1576_vm1 = vcmask 203776  }
 0x295   :  { %7308 = vmatpush.msk.msra.mxu3 %vm2153_vm0, %v1575_v52  ;;  %v1380_v53 = vld [vmem:[%s14125_s0] sm:$0xff]  ;;  %v1381_v52 = vld [vmem:[%s14125_s0 + $0x8] sm:$0xff] }
 0x296   :  { %2170 = vmatpush.msra.mxu0 %v1574_v56  ;;  %7309 = vmatpush.msra.mxu2 %v1574_v56 }
 0x297   :  { %7310 = vmatpush.msra.mxu3 %v1574_v56  ;;  %v1382_v56 = vld [vmem:[%s14125_s0 + $0x10] sm:$0xff] }
 0x298   :  { %2171 = vmatpush.msra.mxu0 %v1573_v49  ;;  %7311 = vmatpush.msra.mxu2 %v1573_v49 }
 0x299   :  { %7312 = vmatpush.msra.mxu3 %v1573_v49  ;;  %v1383_v49 = vld [vmem:[%s14125_s0 + $0x18] sm:$0xff] }
 0x29a   :  { %2172 = vmatpush.msra.mxu0 %v1572_v58  ;;  %7313 = vmatpush.msra.mxu2 %v1572_v58 }
 0x29b   :  { %7111 = vmatmul.msk.f32.vlgmr.msra.gmra.mxu0 %vm1576_vm1, %v1380_v53  ;;  %7314 = vmatpush.msra.mxu3 %v1572_v58  ;;  %v1384_v53 = vld [vmem:[%s14125_s0 + $0x20] sm:$0xff]  ;;  %v1385_v58 = vld [vmem:[%s14125_s0 + $0x28] sm:$0xff] }
 0x2a3   :  { %7112 = vmatmul.msk.f32.gmra.mxu0 %vm1576_vm1, %v1381_v52  ;;  %v1386_v52 = vld [vmem:[%s14125_s0 + $0x30] sm:$0xff] }
 0x2ab   :  { %7113 = vmatmul.msk.f32.gmra.mxu0 %vm1576_vm1, %v1382_v56  ;;  %v1387_v56 = vld [vmem:[%s14125_s0 + $0x38] sm:$0xff] }
 0x2b3   :  { %7114 = vmatmul.msk.f32.gmra.mxu0 %vm1576_vm1, %v1383_v49  ;;  %v1388_v49 = vld [vmem:[%s14125_s0 + $0x40] sm:$0xff] }
 0x2bb   :  { %7115 = vmatmul.msk.f32.gmra.mxu0 %vm1576_vm1, %v1384_v53  ;;  %v1389_v53 = vld [vmem:[%s14125_s0 + $0x48] sm:$0xff] }
 0x2c3   :  { %7116 = vmatmul.msk.f32.gmra.mxu0 %vm1576_vm1, %v1385_v58  ;;  %v1390_v58 = vld [vmem:[%s14125_s0 + $0x50] sm:$0xff] }
 0x2cb   :  { %7117 = vmatmul.msk.f32.gmra.mxu0 %vm1576_vm1, %v1386_v52  ;;  %v1391_v52 = vld [vmem:[%s14125_s0 + $0x58] sm:$0xff] }
 0x2d3   :  { %7118 = vmatmul.msk.f32.gmra.mxu0 %vm1576_vm1, %v1387_v56  ;;  %v1392_v56 = vld [vmem:[%s14125_s0 + $0x60] sm:$0xff] }
 0x2db   :  { %7119 = vmatmul.msk.f32.gmra.mxu0 %vm1576_vm1, %v1388_v49  ;;  %v1393_v49 = vld [vmem:[%s14125_s0 + $0x68] sm:$0xff] }
 0x2e3   :  { %7120 = vmatmul.msk.f32.gmra.mxu0 %vm1576_vm1, %v1389_v53  ;;  %v1394_v53 = vld [vmem:[%s14125_s0 + $0x70] sm:$0xff] }
 0x2eb   :  { %7121 = vmatmul.msk.f32.gmra.mxu0 %vm1576_vm1, %v1390_v58  ;;  %v1395_v58 = vld [vmem:[%s14125_s0 + $0x78] sm:$0xff] }
 0x2f3   :  { %7122 = vmatmul.msk.f32.gmra.mxu0 %vm1576_vm1, %v1391_v52 }
 0x2fb   :  { %7123 = vmatmul.msk.f32.gmra.mxu0 %vm1576_vm1, %v1392_v56  ;;  %v1396_v56 = vld [vmem:[%s14125_s0 + $0x80] sm:$0xff] }
 0x303   :  { %7124 = vmatmul.msk.f32.gmra.mxu0 %vm1576_vm1, %v1393_v49 }
 0x30b   :  { %7125 = vmatmul.msk.f32.gmra.mxu0 %vm1576_vm1, %v1394_v53  ;;  %v1397_v53 = vld [vmem:[%s14125_s0 + $0x88] sm:$0xff] }
 0x313   :  { %7126 = vmatmul.msk.f32.gmra.mxu0 %vm1576_vm1, %v1395_v58  ;;  %v1398_v58 = vld [vmem:[%s14125_s0 + $0x90] sm:$0xff] }
 0x318   :  { %v10849_v52 = vpop.f32.mrf.mxu0 }
 0x319   :  { %14954 = vst [vmem:[#allocation671_spill] sm:$0xff] %v10849_v52 }
 0x31b   :  { %7127 = vmatmul.msk.f32.gmra.mxu0 %vm1576_vm1, %v1396_v56  ;;  %v1399_v56 = vld [vmem:[%s14125_s0 + $0x98] sm:$0xff] }
 0x320   :  { %v10855_v49 = vpop.f32.mrf.mxu0 }
 0x321   :  { %14955 = vst [vmem:[#allocation672_spill] sm:$0xff] %v10855_v49  ;;  %v1566_v49 = vld [vmem:[%s14125_s0 + $0x5d0] sm:$0xff] }
 0x323   :  { %7128 = vmatmul.msk.f32.gmra.mxu0 %vm1576_vm1, %v1397_v53  ;;  %v1400_v53 = vld [vmem:[%s14125_s0 + $0xa0] sm:$0xff] }
 0x328   :  { %v10861_v59 = vpop.f32.mrf.mxu0 }
 0x329   :  { %14956 = vst [vmem:[#allocation673_spill] sm:$0xff] %v10861_v59  ;;  %v1547_v59 = vld [vmem:[%s14125_s0 + $0x538] sm:$0xff] }
 0x32b   :  { %7129 = vmatmul.msk.f32.gmra.mxu0 %vm1576_vm1, %v1398_v58  ;;  %v1401_v58 = vld [vmem:[%s14125_s0 + $0xa8] sm:$0xff] }
 0x330   :  { %v10867_v48 = vpop.f32.mrf.mxu0 }
 0x331   :  { %14957 = vst [vmem:[#allocation674_spill] sm:$0xff] %v10867_v48 }
 0x333   :  { %7130 = vmatmul.msk.f32.gmra.mxu0 %vm1576_vm1, %v1399_v56  ;;  %v1402_v56 = vld [vmem:[%s14125_s0 + $0xb0] sm:$0xff] }
 0x338   :  { %v10873_v60 = vpop.f32.mrf.mxu0 }
 0x339   :  { %14958 = vst [vmem:[#allocation675_spill] sm:$0xff] %v10873_v60 }
 0x33b   :  { %7131 = vmatmul.msk.f32.gmra.mxu0 %vm1576_vm1, %v1400_v53  ;;  %v1403_v53 = vld [vmem:[%s14125_s0 + $0xb8] sm:$0xff] }
 0x340   :  { %v10879_v50 = vpop.f32.mrf.mxu0 }
 0x341   :  { %14959 = vst [vmem:[#allocation676_spill] sm:$0xff] %v10879_v50 }
 0x343   :  { %7132 = vmatmul.msk.f32.gmra.mxu0 %vm1576_vm1, %v1401_v58  ;;  %v1404_v58 = vld [vmem:[%s14125_s0 + $0xc0] sm:$0xff] }
 0x348   :  { %v10885_v57 = vpop.f32.mrf.mxu0 }
 0x349   :  { %14960 = vst [vmem:[#allocation677_spill] sm:$0xff] %v10885_v57 }
 0x34b   :  { %7133 = vmatmul.msk.f32.gmra.mxu0 %vm1576_vm1, %v1402_v56  ;;  %v1405_v56 = vld [vmem:[%s14125_s0 + $0xc8] sm:$0xff] }
 0x350   :  { %v10891_v61 = vpop.f32.mrf.mxu0 }
 0x351   :  { %14961 = vst [vmem:[#allocation678_spill] sm:$0xff] %v10891_v61 }
 0x353   :  { %7134 = vmatmul.msk.f32.gmra.mxu0 %vm1576_vm1, %v1403_v53  ;;  %v1406_v53 = vld [vmem:[%s14125_s0 + $0xd0] sm:$0xff] }
 0x358   :  { %v10897_v54 = vpop.f32.mrf.mxu0 }
 0x359   :  { %14962 = vst [vmem:[#allocation679_spill] sm:$0xff] %v10897_v54 }
 0x35b   :  { %7135 = vmatmul.msk.f32.gmra.mxu0 %vm1576_vm1, %v1404_v58  ;;  %v1407_v58 = vld [vmem:[%s14125_s0 + $0xd8] sm:$0xff] }
 0x360   :  { %v10903_v55 = vpop.f32.mrf.mxu0 }
 0x361   :  { %14963 = vst [vmem:[#allocation680_spill] sm:$0xff] %v10903_v55 }
 0x363   :  { %7136 = vmatmul.msk.f32.gmra.mxu0 %vm1576_vm1, %v1405_v56  ;;  %v1408_v56 = vld [vmem:[%s14125_s0 + $0xe0] sm:$0xff] }
 0x368   :  { %v10909_v62 = vpop.f32.mrf.mxu0 }
 0x369   :  { %14964 = vst [vmem:[#allocation681_spill] sm:$0xff] %v10909_v62 }
 0x36b   :  { %7137 = vmatmul.msk.f32.gmra.mxu0 %vm1576_vm1, %v1406_v53  ;;  %v1409_v53 = vld [vmem:[%s14125_s0 + $0xe8] sm:$0xff] }
 0x370   :  { %v10915_v51 = vpop.f32.mrf.mxu0 }
 0x371   :  { %14965 = vst [vmem:[#allocation682_spill] sm:$0xff] %v10915_v51 }
 0x373   :  { %7138 = vmatmul.msk.f32.gmra.mxu0 %vm1576_vm1, %v1407_v58  ;;  %v1410_v58 = vld [vmem:[%s14125_s0 + $0xf0] sm:$0xff] }
 0x378   :  { %v10921_v32 = vpop.f32.mrf.mxu0 }
 0x379   :  { %14966 = vst [vmem:[#allocation683_spill] sm:$0xff] %v10921_v32 }
 0x37b   :  { %7139 = vmatmul.msk.f32.gmra.mxu0 %vm1576_vm1, %v1408_v56  ;;  %v1411_v56 = vld [vmem:[%s14125_s0 + $0xf8] sm:$0xff] }
 0x380   :  { %v10927_v63 = vpop.f32.mrf.mxu0 }
 0x381   :  { %14967 = vst [vmem:[#allocation684_spill] sm:$0xff] %v10927_v63 }
 0x383   :  { %7140 = vmatmul.msk.f32.gmra.mxu0 %vm1576_vm1, %v1409_v53  ;;  %v1412_v53 = vld [vmem:[%s14125_s0 + $0x100] sm:$0xff] }
 0x388   :  { %v10933_v16 = vpop.f32.mrf.mxu0 }
 0x389   :  { %14968 = vst [vmem:[#allocation685_spill] sm:$0xff] %v10933_v16 }
 0x38b   :  { %7141 = vmatmul.msk.f32.gmra.mxu0 %vm1576_vm1, %v1410_v58  ;;  %v1413_v58 = vld [vmem:[%s14125_s0 + $0x108] sm:$0xff] }
 0x390   :  { %v10939_v0 = vpop.f32.mrf.mxu0 }
 0x391   :  { %14969 = vst [vmem:[#allocation686_spill] sm:$0xff] %v10939_v0 }
 0x393   :  { %7142 = vmatmul.msk.f32.gmra.mxu0 %vm1576_vm1, %v1411_v56  ;;  %v1414_v56 = vld [vmem:[%s14125_s0 + $0x110] sm:$0xff] }
 0x398   :  { %v10945_v33 = vpop.f32.mrf.mxu0 }
 0x399   :  { %14970 = vst [vmem:[#allocation687_spill] sm:$0xff] %v10945_v33 }
 0x39b   :  { %7143 = vmatmul.msk.f32.gmra.mxu0 %vm1576_vm1, %v1412_v53  ;;  %v1415_v53 = vld [vmem:[%s14125_s0 + $0x118] sm:$0xff] }
 0x3a0   :  { %v10951_v17 = vpop.f32.mrf.mxu0 }
 0x3a1   :  { %14971 = vst [vmem:[#allocation688_spill] sm:$0xff] %v10951_v17 }
 0x3a3   :  { %7144 = vmatmul.msk.f32.gmra.mxu0 %vm1576_vm1, %v1413_v58  ;;  %v1416_v58 = vld [vmem:[%s14125_s0 + $0x120] sm:$0xff] }
 0x3a8   :  { %v10957_v1 = vpop.f32.mrf.mxu0 }
 0x3a9   :  { %14972 = vst [vmem:[#allocation689_spill] sm:$0xff] %v10957_v1 }
 0x3ab   :  { %7145 = vmatmul.msk.f32.gmra.mxu0 %vm1576_vm1, %v1414_v56  ;;  %v1417_v56 = vld [vmem:[%s14125_s0 + $0x128] sm:$0xff] }
 0x3b0   :  { %v10963_v34 = vpop.f32.mrf.mxu0 }
 0x3b1   :  { %14973 = vst [vmem:[#allocation690_spill] sm:$0xff] %v10963_v34 }
 0x3b3   :  { %7146 = vmatmul.msk.f32.gmra.mxu0 %vm1576_vm1, %v1415_v53  ;;  %v1418_v53 = vld [vmem:[%s14125_s0 + $0x130] sm:$0xff] }
 0x3b8   :  { %v10969_v18 = vpop.f32.mrf.mxu0 }
 0x3b9   :  { %14974 = vst [vmem:[#allocation691_spill] sm:$0xff] %v10969_v18 }
 0x3bb   :  { %7147 = vmatmul.msk.f32.gmra.mxu0 %vm1576_vm1, %v1416_v58  ;;  %v1419_v58 = vld [vmem:[%s14125_s0 + $0x138] sm:$0xff] }
 0x3c0   :  { %v10975_v2 = vpop.f32.mrf.mxu0 }
 0x3c1   :  { %14975 = vst [vmem:[#allocation692_spill] sm:$0xff] %v10975_v2 }
 0x3c3   :  { %7148 = vmatmul.msk.f32.gmra.mxu0 %vm1576_vm1, %v1417_v56  ;;  %v1420_v56 = vld [vmem:[%s14125_s0 + $0x140] sm:$0xff] }
 0x3c8   :  { %v10981_v35 = vpop.f32.mrf.mxu0 }
 0x3cb   :  { %7149 = vmatmul.msk.f32.gmra.mxu0 %vm1576_vm1, %v1418_v53  ;;  %v1421_v53 = vld [vmem:[%s14125_s0 + $0x148] sm:$0xff] }
 0x3d0   :  { %v10987_v19 = vpop.f32.mrf.mxu0 }
 0x3d3   :  { %7150 = vmatmul.msk.f32.gmra.mxu0 %vm1576_vm1, %v1419_v58  ;;  %v1422_v58 = vld [vmem:[%s14125_s0 + $0x150] sm:$0xff] }
 0x3d8   :  { %v10993_v3 = vpop.f32.mrf.mxu0 }
 0x3db   :  { %7151 = vmatmul.msk.f32.gmra.mxu0 %vm1576_vm1, %v1420_v56  ;;  %v1423_v56 = vld [vmem:[%s14125_s0 + $0x158] sm:$0xff] }
 0x3e0   :  { %v10999_v36 = vpop.f32.mrf.mxu0 }
 0x3e3   :  { %7152 = vmatmul.msk.f32.gmra.mxu0 %vm1576_vm1, %v1421_v53  ;;  %v1424_v53 = vld [vmem:[%s14125_s0 + $0x160] sm:$0xff] }
 0x3e8   :  { %v11005_v20 = vpop.f32.mrf.mxu0 }
 0x3eb   :  { %7153 = vmatmul.msk.f32.gmra.mxu0 %vm1576_vm1, %v1422_v58  ;;  %v1425_v58 = vld [vmem:[%s14125_s0 + $0x168] sm:$0xff] }
 0x3f0   :  { %v11011_v4 = vpop.f32.mrf.mxu0 }
 0x3f3   :  { %7154 = vmatmul.msk.f32.gmra.mxu0 %vm1576_vm1, %v1423_v56  ;;  %v1426_v56 = vld [vmem:[%s14125_s0 + $0x170] sm:$0xff] }
 0x3f8   :  { %v11017_v37 = vpop.f32.mrf.mxu0 }
 0x3fb   :  { %7155 = vmatmul.msk.f32.gmra.mxu0 %vm1576_vm1, %v1424_v53  ;;  %v1427_v53 = vld [vmem:[%s14125_s0 + $0x178] sm:$0xff] }
 0x400   :  { %v11023_v21 = vpop.f32.mrf.mxu0 }
 0x403   :  { %7156 = vmatmul.msk.f32.gmra.mxu0 %vm1576_vm1, %v1425_v58  ;;  %v1428_v58 = vld [vmem:[%s14125_s0 + $0x180] sm:$0xff] }
 0x408   :  { %v11029_v5 = vpop.f32.mrf.mxu0 }
 0x40b   :  { %7157 = vmatmul.msk.f32.gmra.mxu0 %vm1576_vm1, %v1426_v56  ;;  %v1429_v56 = vld [vmem:[%s14125_s0 + $0x188] sm:$0xff] }
 0x410   :  { %v11035_v38 = vpop.f32.mrf.mxu0 }
 0x413   :  { %7158 = vmatmul.msk.f32.gmra.mxu0 %vm1576_vm1, %v1427_v53  ;;  %v1430_v53 = vld [vmem:[%s14125_s0 + $0x190] sm:$0xff] }
 0x418   :  { %v11041_v22 = vpop.f32.mrf.mxu0 }
 0x41b   :  { %7159 = vmatmul.msk.f32.gmra.mxu0 %vm1576_vm1, %v1428_v58  ;;  %v1431_v58 = vld [vmem:[%s14125_s0 + $0x198] sm:$0xff] }
 0x420   :  { %v11047_v6 = vpop.f32.mrf.mxu0 }
 0x423   :  { %7160 = vmatmul.msk.f32.gmra.mxu0 %vm1576_vm1, %v1429_v56  ;;  %v1432_v56 = vld [vmem:[%s14125_s0 + $0x1a0] sm:$0xff] }
 0x428   :  { %v11053_v39 = vpop.f32.mrf.mxu0 }
 0x42b   :  { %7161 = vmatmul.msk.f32.gmra.mxu0 %vm1576_vm1, %v1430_v53  ;;  %v1433_v53 = vld [vmem:[%s14125_s0 + $0x1a8] sm:$0xff] }
 0x430   :  { %v11059_v23 = vpop.f32.mrf.mxu0 }
 0x433   :  { %7162 = vmatmul.msk.f32.gmra.mxu0 %vm1576_vm1, %v1431_v58  ;;  %v1434_v58 = vld [vmem:[%s14125_s0 + $0x1b0] sm:$0xff] }
 0x438   :  { %v11065_v7 = vpop.f32.mrf.mxu0 }
 0x43b   :  { %7163 = vmatmul.msk.f32.gmra.mxu0 %vm1576_vm1, %v1432_v56  ;;  %v1435_v56 = vld [vmem:[%s14125_s0 + $0x1b8] sm:$0xff] }
 0x440   :  { %v11071_v40 = vpop.f32.mrf.mxu0 }
 0x443   :  { %7164 = vmatmul.msk.f32.gmra.mxu0 %vm1576_vm1, %v1433_v53  ;;  %v1436_v53 = vld [vmem:[%s14125_s0 + $0x1c0] sm:$0xff] }
 0x448   :  { %v11077_v24 = vpop.f32.mrf.mxu0 }
 0x44b   :  { %7165 = vmatmul.msk.f32.gmra.mxu0 %vm1576_vm1, %v1434_v58  ;;  %v1437_v58 = vld [vmem:[%s14125_s0 + $0x1c8] sm:$0xff] }
 0x450   :  { %v11083_v8 = vpop.f32.mrf.mxu0 }
 0x453   :  { %7166 = vmatmul.msk.f32.gmra.mxu0 %vm1576_vm1, %v1435_v56  ;;  %v1438_v56 = vld [vmem:[%s14125_s0 + $0x1d0] sm:$0xff] }
 0x458   :  { %v11089_v41 = vpop.f32.mrf.mxu0 }
 0x45b   :  { %7167 = vmatmul.msk.f32.gmra.mxu0 %vm1576_vm1, %v1436_v53  ;;  %v1439_v53 = vld [vmem:[%s14125_s0 + $0x1d8] sm:$0xff] }
 0x460   :  { %v11095_v25 = vpop.f32.mrf.mxu0 }
 0x463   :  { %7168 = vmatmul.msk.f32.gmra.mxu0 %vm1576_vm1, %v1437_v58  ;;  %v1440_v58 = vld [vmem:[%s14125_s0 + $0x1e0] sm:$0xff] }
 0x468   :  { %v11101_v9 = vpop.f32.mrf.mxu0 }
 0x46b   :  { %7169 = vmatmul.msk.f32.gmra.mxu0 %vm1576_vm1, %v1438_v56  ;;  %v1441_v56 = vld [vmem:[%s14125_s0 + $0x1e8] sm:$0xff] }
 0x470   :  { %v11107_v42 = vpop.f32.mrf.mxu0 }
 0x473   :  { %7170 = vmatmul.msk.f32.gmra.mxu0 %vm1576_vm1, %v1439_v53  ;;  %v1442_v53 = vld [vmem:[%s14125_s0 + $0x1f0] sm:$0xff] }
 0x478   :  { %v11113_v26 = vpop.f32.mrf.mxu0 }
 0x47b   :  { %7171 = vmatmul.msk.f32.gmra.mxu0 %vm1576_vm1, %v1440_v58  ;;  %v1443_v58 = vld [vmem:[%s14125_s0 + $0x1f8] sm:$0xff] }
 0x480   :  { %v11119_v10 = vpop.f32.mrf.mxu0 }
 0x483   :  { %7172 = vmatmul.msk.f32.gmra.mxu0 %vm1576_vm1, %v1441_v56  ;;  %v1444_v56 = vld [vmem:[%s14125_s0 + $0x200] sm:$0xff] }
 0x488   :  { %v11125_v43 = vpop.f32.mrf.mxu0 }
 0x48b   :  { %7173 = vmatmul.msk.f32.gmra.mxu0 %vm1576_vm1, %v1442_v53  ;;  %v1445_v53 = vld [vmem:[%s14125_s0 + $0x208] sm:$0xff] }
 0x490   :  { %v11131_v27 = vpop.f32.mrf.mxu0 }
 0x493   :  { %7174 = vmatmul.msk.f32.gmra.mxu0 %vm1576_vm1, %v1443_v58  ;;  %v1446_v58 = vld [vmem:[%s14125_s0 + $0x210] sm:$0xff] }
 0x498   :  { %v11137_v11 = vpop.f32.mrf.mxu0 }
 0x499   :  { %14976 = vst [vmem:[#allocation693_spill] sm:$0xff] %v11137_v11 }
 0x49b   :  { %7175 = vmatmul.msk.f32.gmra.mxu0 %vm1576_vm1, %v1444_v56  ;;  %v1447_v56 = vld [vmem:[%s14125_s0 + $0x218] sm:$0xff] }
 0x4a0   :  { %v11143_v44 = vpop.f32.mrf.mxu0 }
 0x4a1   :  { %14977 = vst [vmem:[#allocation694_spill] sm:$0xff] %v11143_v44 }
 0x4a3   :  { %7176 = vmatmul.msk.f32.gmra.mxu0 %vm1576_vm1, %v1445_v53  ;;  %v1448_v53 = vld [vmem:[%s14125_s0 + $0x220] sm:$0xff] }
 0x4a8   :  { %v11149_v28 = vpop.f32.mrf.mxu0 }
 0x4a9   :  { %14978 = vst [vmem:[#allocation695_spill] sm:$0xff] %v11149_v28 }
 0x4ab   :  { %7177 = vmatmul.msk.f32.gmra.mxu0 %vm1576_vm1, %v1446_v58  ;;  %v1449_v58 = vld [vmem:[%s14125_s0 + $0x228] sm:$0xff] }
 0x4b0   :  { %v11155_v12 = vpop.f32.mrf.mxu0 }
 0x4b1   :  { %14979 = vst [vmem:[#allocation696_spill] sm:$0xff] %v11155_v12 }
 0x4b3   :  { %7178 = vmatmul.msk.f32.gmra.mxu0 %vm1576_vm1, %v1447_v56  ;;  %v1450_v56 = vld [vmem:[%s14125_s0 + $0x230] sm:$0xff] }
 0x4b8   :  { %v11161_v45 = vpop.f32.mrf.mxu0 }
 0x4b9   :  { %14980 = vst [vmem:[#allocation697_spill] sm:$0xff] %v11161_v45 }
 0x4bb   :  { %7179 = vmatmul.msk.f32.gmra.mxu0 %vm1576_vm1, %v1448_v53  ;;  %v1451_v53 = vld [vmem:[%s14125_s0 + $0x238] sm:$0xff] }
 0x4c0   :  { %v11167_v29 = vpop.f32.mrf.mxu0 }
 0x4c1   :  { %14981 = vst [vmem:[#allocation698_spill] sm:$0xff] %v11167_v29 }
 0x4c3   :  { %7180 = vmatmul.msk.f32.gmra.mxu0 %vm1576_vm1, %v1449_v58  ;;  %v1452_v58 = vld [vmem:[%s14125_s0 + $0x240] sm:$0xff] }
 0x4c8   :  { %v11173_v13 = vpop.f32.mrf.mxu0 }
 0x4c9   :  { %14982 = vst [vmem:[#allocation699_spill] sm:$0xff] %v11173_v13 }
 0x4cb   :  { %7181 = vmatmul.msk.f32.gmra.mxu0 %vm1576_vm1, %v1450_v56  ;;  %v1453_v56 = vld [vmem:[%s14125_s0 + $0x248] sm:$0xff] }
 0x4d0   :  { %v11179_v46 = vpop.f32.mrf.mxu0 }
 0x4d1   :  { %14983 = vst [vmem:[#allocation700_spill] sm:$0xff] %v11179_v46 }
 0x4d3   :  { %7182 = vmatmul.msk.f32.gmra.mxu0 %vm1576_vm1, %v1451_v53  ;;  %v1454_v53 = vld [vmem:[%s14125_s0 + $0x250] sm:$0xff] }
 0x4d8   :  { %v11185_v30 = vpop.f32.mrf.mxu0 }
 0x4d9   :  { %14984 = vst [vmem:[#allocation701_spill] sm:$0xff] %v11185_v30 }
 0x4db   :  { %7183 = vmatmul.msk.f32.gmra.mxu0 %vm1576_vm1, %v1452_v58  ;;  %v1455_v58 = vld [vmem:[%s14125_s0 + $0x258] sm:$0xff] }
 0x4e0   :  { %v11191_v14 = vpop.f32.mrf.mxu0 }
 0x4e1   :  { %14985 = vst [vmem:[#allocation702_spill] sm:$0xff] %v11191_v14 }
 0x4e3   :  { %7184 = vmatmul.msk.f32.gmra.mxu0 %vm1576_vm1, %v1453_v56  ;;  %v1456_v56 = vld [vmem:[%s14125_s0 + $0x260] sm:$0xff] }
 0x4e8   :  { %v11197_v47 = vpop.f32.mrf.mxu0 }
 0x4e9   :  { %14986 = vst [vmem:[#allocation703_spill] sm:$0xff] %v11197_v47 }
 0x4eb   :  { %7185 = vmatmul.msk.f32.gmra.mxu0 %vm1576_vm1, %v1454_v53  ;;  %v1457_v53 = vld [vmem:[%s14125_s0 + $0x268] sm:$0xff] }
 0x4f0   :  { %v11203_v31 = vpop.f32.mrf.mxu0 }
 0x4f1   :  { %14987 = vst [vmem:[#allocation704_spill] sm:$0xff] %v11203_v31 }
 0x4f3   :  { %7186 = vmatmul.msk.f32.gmra.mxu0 %vm1576_vm1, %v1455_v58  ;;  %v1458_v58 = vld [vmem:[%s14125_s0 + $0x270] sm:$0xff] }
 0x4f8   :  { %v11209_v15 = vpop.f32.mrf.mxu0 }
 0x4f9   :  { %14988 = vst [vmem:[#allocation705_spill] sm:$0xff] %v11209_v15 }
 0x4fb   :  { %7187 = vmatmul.msk.f32.gmra.mxu0 %vm1576_vm1, %v1456_v56  ;;  %v1459_v56 = vld [vmem:[%s14125_s0 + $0x278] sm:$0xff] }
 0x500   :  { %v11215_v2 = vpop.f32.mrf.mxu0 }
 0x501   :  { %14989 = vst [vmem:[#allocation706_spill] sm:$0xff] %v11215_v2 }
 0x503   :  { %7188 = vmatmul.msk.f32.gmra.mxu0 %vm1576_vm1, %v1457_v53  ;;  %v1460_v53 = vld [vmem:[%s14125_s0 + $0x280] sm:$0xff] }
 0x508   :  { %v11221_v18 = vpop.f32.mrf.mxu0 }
 0x509   :  { %14990 = vst [vmem:[#allocation707_spill] sm:$0xff] %v11221_v18 }
 0x50b   :  { %7189 = vmatmul.msk.f32.gmra.mxu0 %vm1576_vm1, %v1458_v58  ;;  %v1461_v58 = vld [vmem:[%s14125_s0 + $0x288] sm:$0xff] }
 0x510   :  { %v11227_v34 = vpop.f32.mrf.mxu0 }
 0x511   :  { %14991 = vst [vmem:[#allocation708_spill] sm:$0xff] %v11227_v34 }
 0x513   :  { %7190 = vmatmul.msk.f32.gmra.mxu0 %vm1576_vm1, %v1459_v56  ;;  %v1462_v56 = vld [vmem:[%s14125_s0 + $0x290] sm:$0xff] }
 0x518   :  { %v11233_v1 = vpop.f32.mrf.mxu0 }
 0x519   :  { %14992 = vst [vmem:[#allocation709_spill] sm:$0xff] %v11233_v1 }
 0x51b   :  { %7191 = vmatmul.msk.f32.gmra.mxu0 %vm1576_vm1, %v1460_v53  ;;  %v1463_v53 = vld [vmem:[%s14125_s0 + $0x298] sm:$0xff] }
 0x520   :  { %v11239_v17 = vpop.f32.mrf.mxu0 }
 0x521   :  { %14993 = vst [vmem:[#allocation710_spill] sm:$0xff] %v11239_v17 }
 0x523   :  { %7192 = vmatmul.msk.f32.gmra.mxu0 %vm1576_vm1, %v1461_v58  ;;  %v1464_v58 = vld [vmem:[%s14125_s0 + $0x2a0] sm:$0xff] }
 0x528   :  { %v11245_v33 = vpop.f32.mrf.mxu0 }
 0x529   :  { %14994 = vst [vmem:[#allocation711_spill] sm:$0xff] %v11245_v33 }
 0x52b   :  { %7193 = vmatmul.msk.f32.gmra.mxu0 %vm1576_vm1, %v1462_v56  ;;  %v1465_v56 = vld [vmem:[%s14125_s0 + $0x2a8] sm:$0xff] }
 0x530   :  { %v11251_v1 = vpop.f32.mrf.mxu0 }
 0x531   :  { %14995 = vst [vmem:[#allocation712_spill] sm:$0xff] %v11251_v1 }
 0x533   :  { %7194 = vmatmul.msk.f32.gmra.mxu0 %vm1576_vm1, %v1463_v53  ;;  %v1466_v53 = vld [vmem:[%s14125_s0 + $0x2b0] sm:$0xff] }
 0x538   :  { %v11257_v17 = vpop.f32.mrf.mxu0 }
 0x539   :  { %14996 = vst [vmem:[#allocation713_spill] sm:$0xff] %v11257_v17 }
 0x53b   :  { %7195 = vmatmul.msk.f32.gmra.mxu0 %vm1576_vm1, %v1464_v58  ;;  %v1467_v58 = vld [vmem:[%s14125_s0 + $0x2b8] sm:$0xff] }
 0x540   :  { %v11263_v33 = vpop.f32.mrf.mxu0 }
 0x541   :  { %14997 = vst [vmem:[#allocation714_spill] sm:$0xff] %v11263_v33 }
 0x543   :  { %7196 = vmatmul.msk.f32.gmra.mxu0 %vm1576_vm1, %v1465_v56  ;;  %v1468_v56 = vld [vmem:[%s14125_s0 + $0x2c0] sm:$0xff] }
 0x548   :  { %v11269_v1 = vpop.f32.mrf.mxu0 }
 0x54b   :  { %7197 = vmatmul.msk.f32.gmra.mxu0 %vm1576_vm1, %v1466_v53  ;;  %v1469_v53 = vld [vmem:[%s14125_s0 + $0x2c8] sm:$0xff] }
 0x550   :  { %v11275_v17 = vpop.f32.mrf.mxu0 }
 0x553   :  { %7198 = vmatmul.msk.f32.gmra.mxu0 %vm1576_vm1, %v1467_v58  ;;  %v1470_v58 = vld [vmem:[%s14125_s0 + $0x2d0] sm:$0xff] }
 0x558   :  { %v11281_v33 = vpop.f32.mrf.mxu0 }
 0x55b   :  { %7199 = vmatmul.msk.f32.gmra.mxu0 %vm1576_vm1, %v1468_v56  ;;  %v1471_v56 = vld [vmem:[%s14125_s0 + $0x2d8] sm:$0xff] }
 0x560   :  { %v11287_v0 = vpop.f32.mrf.mxu0 }
 0x563   :  { %7200 = vmatmul.msk.f32.gmra.mxu0 %vm1576_vm1, %v1469_v53  ;;  %v1472_v53 = vld [vmem:[%s14125_s0 + $0x2e0] sm:$0xff] }
 0x568   :  { %v11293_v34 = vpop.f32.mrf.mxu0 }
 0x56b   :  { %7201 = vmatmul.msk.f32.gmra.mxu0 %vm1576_vm1, %v1470_v58  ;;  %v1473_v58 = vld [vmem:[%s14125_s0 + $0x2e8] sm:$0xff] }
 0x570   :  { %v11299_v16 = vpop.f32.mrf.mxu0 }
 0x573   :  { %7202 = vmatmul.msk.f32.gmra.mxu0 %vm1576_vm1, %v1471_v56  ;;  %v1474_v56 = vld [vmem:[%s14125_s0 + $0x2f0] sm:$0xff] }
 0x578   :  { %v11305_v18 = vpop.f32.mrf.mxu0 }
 0x57b   :  { %7203 = vmatmul.msk.f32.gmra.mxu0 %vm1576_vm1, %v1472_v53  ;;  %v1475_v53 = vld [vmem:[%s14125_s0 + $0x2f8] sm:$0xff] }
 0x580   :  { %v11311_v63 = vpop.f32.mrf.mxu0 }
 0x583   :  { %7204 = vmatmul.msk.f32.gmra.mxu0 %vm1576_vm1, %v1473_v58  ;;  %v1476_v58 = vld [vmem:[%s14125_s0 + $0x300] sm:$0xff] }
 0x588   :  { %v11317_v2 = vpop.f32.mrf.mxu0 }
 0x58b   :  { %7205 = vmatmul.msk.f32.gmra.mxu0 %vm1576_vm1, %v1474_v56  ;;  %v1477_v56 = vld [vmem:[%s14125_s0 + $0x308] sm:$0xff] }
 0x590   :  { %v11323_v32 = vpop.f32.mrf.mxu0 }
 0x593   :  { %7206 = vmatmul.msk.f32.gmra.mxu0 %vm1576_vm1, %v1475_v53  ;;  %v1478_v53 = vld [vmem:[%s14125_s0 + $0x310] sm:$0xff] }
 0x598   :  { %v11329_v15 = vpop.f32.mrf.mxu0 }
 0x59b   :  { %7207 = vmatmul.msk.f32.gmra.mxu0 %vm1576_vm1, %v1476_v58  ;;  %v1479_v58 = vld [vmem:[%s14125_s0 + $0x318] sm:$0xff] }
 0x5a0   :  { %v11335_v51 = vpop.f32.mrf.mxu0 }
 0x5a3   :  { %7208 = vmatmul.msk.f32.gmra.mxu0 %vm1576_vm1, %v1477_v56  ;;  %v1480_v56 = vld [vmem:[%s14125_s0 + $0x320] sm:$0xff] }
 0x5a8   :  { %v11341_v31 = vpop.f32.mrf.mxu0 }
 0x5ab   :  { %7209 = vmatmul.msk.f32.gmra.mxu0 %vm1576_vm1, %v1478_v53  ;;  %v1481_v53 = vld [vmem:[%s14125_s0 + $0x328] sm:$0xff] }
 0x5b0   :  { %v11347_v62 = vpop.f32.mrf.mxu0 }
 0x5b3   :  { %7210 = vmatmul.msk.f32.gmra.mxu0 %vm1576_vm1, %v1479_v58  ;;  %v1482_v58 = vld [vmem:[%s14125_s0 + $0x330] sm:$0xff] }
 0x5b8   :  { %v11353_v47 = vpop.f32.mrf.mxu0 }
 0x5bb   :  { %7211 = vmatmul.msk.f32.gmra.mxu0 %vm1576_vm1, %v1480_v56  ;;  %v1483_v56 = vld [vmem:[%s14125_s0 + $0x338] sm:$0xff] }
 0x5c0   :  { %v11359_v55 = vpop.f32.mrf.mxu0 }
 0x5c3   :  { %7212 = vmatmul.msk.f32.gmra.mxu0 %vm1576_vm1, %v1481_v53  ;;  %v1484_v53 = vld [vmem:[%s14125_s0 + $0x340] sm:$0xff] }
 0x5c8   :  { %v11365_v14 = vpop.f32.mrf.mxu0 }
 0x5cb   :  { %7213 = vmatmul.msk.f32.gmra.mxu0 %vm1576_vm1, %v1482_v58  ;;  %v1485_v58 = vld [vmem:[%s14125_s0 + $0x348] sm:$0xff] }
 0x5d0   :  { %v11371_v54 = vpop.f32.mrf.mxu0 }
 0x5d3   :  { %7214 = vmatmul.msk.f32.gmra.mxu0 %vm1576_vm1, %v1483_v56  ;;  %v1486_v56 = vld [vmem:[%s14125_s0 + $0x350] sm:$0xff] }
 0x5d8   :  { %v11377_v30 = vpop.f32.mrf.mxu0 }
 0x5db   :  { %7215 = vmatmul.msk.f32.gmra.mxu0 %vm1576_vm1, %v1484_v53  ;;  %v1487_v53 = vld [vmem:[%s14125_s0 + $0x358] sm:$0xff] }
 0x5e0   :  { %v11383_v61 = vpop.f32.mrf.mxu0 }
 0x5e3   :  { %7216 = vmatmul.msk.f32.gmra.mxu0 %vm1576_vm1, %v1485_v58  ;;  %v1488_v58 = vld [vmem:[%s14125_s0 + $0x360] sm:$0xff] }
 0x5e8   :  { %v11389_v46 = vpop.f32.mrf.mxu0 }
 0x5eb   :  { %7217 = vmatmul.msk.f32.gmra.mxu0 %vm1576_vm1, %v1486_v56  ;;  %v1489_v56 = vld [vmem:[%s14125_s0 + $0x368] sm:$0xff] }
 0x5f0   :  { %v11395_v57 = vpop.f32.mrf.mxu0 }
 0x5f3   :  { %7218 = vmatmul.msk.f32.gmra.mxu0 %vm1576_vm1, %v1487_v53  ;;  %v1490_v53 = vld [vmem:[%s14125_s0 + $0x370] sm:$0xff] }
 0x5f8   :  { %v11401_v13 = vpop.f32.mrf.mxu0 }
 0x5fb   :  { %7219 = vmatmul.msk.f32.gmra.mxu0 %vm1576_vm1, %v1488_v58  ;;  %v1491_v58 = vld [vmem:[%s14125_s0 + $0x378] sm:$0xff] }
 0x600   :  { %v11407_v50 = vpop.f32.mrf.mxu0 }
 0x603   :  { %7220 = vmatmul.msk.f32.gmra.mxu0 %vm1576_vm1, %v1489_v56  ;;  %v1492_v56 = vld [vmem:[%s14125_s0 + $0x380] sm:$0xff] }
 0x608   :  { %v11413_v29 = vpop.f32.mrf.mxu0 }
 0x60b   :  { %7221 = vmatmul.msk.f32.gmra.mxu0 %vm1576_vm1, %v1490_v53  ;;  %v1493_v53 = vld [vmem:[%s14125_s0 + $0x388] sm:$0xff] }
 0x610   :  { %v11419_v60 = vpop.f32.mrf.mxu0 }
 0x613   :  { %7222 = vmatmul.msk.f32.gmra.mxu0 %vm1576_vm1, %v1491_v58  ;;  %v1546_v58 = vld [vmem:[%s14125_s0 + $0x530] sm:$0xff] }
 0x614   :  { %7277 = vmatmul.msk.f32.vlgmr.msra.gmra.mxu2 %vm1576_vm1, %v1546_v58  ;;  %v1495_v58 = vld [vmem:[%s14125_s0 + $0x398] sm:$0xff] }
 0x618   :  { %v11425_v45 = vpop.f32.mrf.mxu0 }
 0x619   :  { %14998 = vst [vmem:[#allocation715_spill] sm:$0xff] %v11425_v45 }
 0x61b   :  { %7223 = vmatmul.msk.f32.gmra.mxu0 %vm1576_vm1, %v1492_v56  ;;  %v1494_v56 = vld [vmem:[%s14125_s0 + $0x390] sm:$0xff] }
 0x61c   :  { %7278 = vmatmul.msk.f32.gmra.mxu2 %vm1576_vm1, %v1547_v59  ;;  %v1496_v59 = vld [vmem:[%s14125_s0 + $0x3a0] sm:$0xff] }
 0x620   :  { %v11431_v48 = vpop.f32.mrf.mxu0 }
 0x621   :  { %14999 = vst [vmem:[#allocation716_spill] sm:$0xff] %v11431_v48  ;;  %v1565_v48 = vld [vmem:[%s14125_s0 + $0x5c8] sm:$0xff] }
 0x623   :  { %7224 = vmatmul.msk.f32.gmra.mxu0 %vm1576_vm1, %v1493_v53 }
 0x628   :  { %v11441_v12 = vpop.f32.mrf.mxu0 }
 0x629   :  { %15000 = vst [vmem:[#allocation717_spill] sm:$0xff] %v11441_v12  ;;  %v1548_v12 = vld [vmem:[%s14125_s0 + $0x540] sm:$0xff] }
 0x62a   :  { %7279 = vmatmul.msk.f32.gmra.mxu2 %vm1576_vm1, %v1548_v12  ;;  %v1497_v12 = vld [vmem:[%s14125_s0 + $0x3a8] sm:$0xff] }
 0x62b   :  { %7225 = vmatmul.msk.f32.gmra.mxu0 %vm1576_vm1, %v1494_v56 }
 0x630   :  { %v11451_v53 = vpop.f32.mrf.mxu0 }
 0x631   :  { %15001 = vst [vmem:[#allocation718_spill] sm:$0xff] %v11451_v53  ;;  %v1549_v53 = vld [vmem:[%s14125_s0 + $0x548] sm:$0xff] }
 0x632   :  { %7280 = vmatmul.msk.f32.gmra.mxu2 %vm1576_vm1, %v1549_v53  ;;  %v1498_v53 = vld [vmem:[%s14125_s0 + $0x3b0] sm:$0xff] }
 0x633   :  { %7226 = vmatmul.msk.f32.gmra.mxu0 %vm1576_vm1, %v1495_v58 }
 0x638   :  { %v11461_v56 = vpop.f32.mrf.mxu0 }
 0x639   :  { %15002 = vst [vmem:[#allocation719_spill] sm:$0xff] %v11461_v56  ;;  %v1550_v56 = vld [vmem:[%s14125_s0 + $0x550] sm:$0xff] }
 0x63a   :  { %7281 = vmatmul.msk.f32.gmra.mxu2 %vm1576_vm1, %v1550_v56  ;;  %v1499_v56 = vld [vmem:[%s14125_s0 + $0x3b8] sm:$0xff] }
 0x63b   :  { %7227 = vmatmul.msk.f32.gmra.mxu0 %vm1576_vm1, %v1496_v59 }
 0x640   :  { %v11471_v58 = vpop.f32.mrf.mxu0 }
 0x641   :  { %15003 = vst [vmem:[#allocation720_spill] sm:$0xff] %v11471_v58  ;;  %v1551_v58 = vld [vmem:[%s14125_s0 + $0x558] sm:$0xff] }
 0x642   :  { %7282 = vmatmul.msk.f32.gmra.mxu2 %vm1576_vm1, %v1551_v58  ;;  %v1500_v58 = vld [vmem:[%s14125_s0 + $0x3c0] sm:$0xff] }
 0x643   :  { %7228 = vmatmul.msk.f32.gmra.mxu0 %vm1576_vm1, %v1497_v12 }
 0x648   :  { %v11481_v59 = vpop.f32.mrf.mxu0 }
 0x649   :  { %15004 = vst [vmem:[#allocation721_spill] sm:$0xff] %v11481_v59  ;;  %v1552_v59 = vld [vmem:[%s14125_s0 + $0x560] sm:$0xff] }
 0x64a   :  { %7283 = vmatmul.msk.f32.gmra.mxu2 %vm1576_vm1, %v1552_v59  ;;  %v1501_v59 = vld [vmem:[%s14125_s0 + $0x3c8] sm:$0xff] }
 0x64b   :  { %7229 = vmatmul.msk.f32.gmra.mxu0 %vm1576_vm1, %v1498_v53 }
 0x650   :  { %v11491_v12 = vpop.f32.mrf.mxu0 }
 0x651   :  { %15005 = vst [vmem:[#allocation722_spill] sm:$0xff] %v11491_v12  ;;  %v1553_v12 = vld [vmem:[%s14125_s0 + $0x568] sm:$0xff] }
 0x652   :  { %7284 = vmatmul.msk.f32.gmra.mxu2 %vm1576_vm1, %v1553_v12  ;;  %v1502_v12 = vld [vmem:[%s14125_s0 + $0x3d0] sm:$0xff] }
 0x653   :  { %7230 = vmatmul.msk.f32.gmra.mxu0 %vm1576_vm1, %v1499_v56 }
 0x658   :  { %v11501_v53 = vpop.f32.mrf.mxu0 }
 0x659   :  { %15006 = vst [vmem:[#allocation723_spill] sm:$0xff] %v11501_v53  ;;  %v1554_v53 = vld [vmem:[%s14125_s0 + $0x570] sm:$0xff] }
 0x65a   :  { %7285 = vmatmul.msk.f32.gmra.mxu2 %vm1576_vm1, %v1554_v53  ;;  %v1503_v53 = vld [vmem:[%s14125_s0 + $0x3d8] sm:$0xff] }
 0x65b   :  { %7231 = vmatmul.msk.f32.gmra.mxu0 %vm1576_vm1, %v1500_v58 }
 0x660   :  { %v11511_v56 = vpop.f32.mrf.mxu0 }
 0x661   :  { %15007 = vst [vmem:[#allocation724_spill] sm:$0xff] %v11511_v56  ;;  %v1555_v56 = vld [vmem:[%s14125_s0 + $0x578] sm:$0xff] }
 0x662   :  { %7286 = vmatmul.msk.f32.gmra.mxu2 %vm1576_vm1, %v1555_v56  ;;  %v1504_v56 = vld [vmem:[%s14125_s0 + $0x3e0] sm:$0xff] }
 0x663   :  { %7232 = vmatmul.msk.f32.gmra.mxu0 %vm1576_vm1, %v1501_v59 }
 0x668   :  { %v11521_v58 = vpop.f32.mrf.mxu0 }
 0x669   :  { %15008 = vst [vmem:[#allocation725_spill] sm:$0xff] %v11521_v58  ;;  %v1556_v58 = vld [vmem:[%s14125_s0 + $0x580] sm:$0xff] }
 0x66a   :  { %7287 = vmatmul.msk.f32.gmra.mxu2 %vm1576_vm1, %v1556_v58  ;;  %v1505_v58 = vld [vmem:[%s14125_s0 + $0x3e8] sm:$0xff] }
 0x66b   :  { %7233 = vmatmul.msk.f32.gmra.mxu0 %vm1576_vm1, %v1502_v12 }
 0x670   :  { %v11531_v59 = vpop.f32.mrf.mxu0 }
 0x671   :  { %15009 = vst [vmem:[#allocation726_spill] sm:$0xff] %v11531_v59  ;;  %v1557_v59 = vld [vmem:[%s14125_s0 + $0x588] sm:$0xff] }
 0x672   :  { %7288 = vmatmul.msk.f32.gmra.mxu2 %vm1576_vm1, %v1557_v59  ;;  %v1506_v59 = vld [vmem:[%s14125_s0 + $0x3f0] sm:$0xff] }
 0x673   :  { %7234 = vmatmul.msk.f32.gmra.mxu0 %vm1576_vm1, %v1503_v53 }
 0x678   :  { %v11541_v12 = vpop.f32.mrf.mxu0 }
 0x679   :  { %15010 = vst [vmem:[#allocation727_spill] sm:$0xff] %v11541_v12  ;;  %v1558_v12 = vld [vmem:[%s14125_s0 + $0x590] sm:$0xff] }
 0x67a   :  { %7289 = vmatmul.msk.f32.vlgmr.msra.gmra.mxu3 %vm1576_vm1, %v1558_v12  ;;  %v1507_v12 = vld [vmem:[%s14125_s0 + $0x3f8] sm:$0xff] }
 0x67b   :  { %7235 = vmatmul.msk.f32.gmra.mxu0 %vm1576_vm1, %v1504_v56 }
 0x680   :  { %v11551_v53 = vpop.f32.mrf.mxu0 }
 0x681   :  { %15011 = vst [vmem:[#allocation728_spill] sm:$0xff] %v11551_v53  ;;  %v1559_v53 = vld [vmem:[%s14125_s0 + $0x598] sm:$0xff] }
 0x682   :  { %7290 = vmatmul.msk.f32.gmra.mxu3 %vm1576_vm1, %v1559_v53  ;;  %v1508_v53 = vld [vmem:[%s14125_s0 + $0x400] sm:$0xff] }
 0x683   :  { %7236 = vmatmul.msk.f32.gmra.mxu0 %vm1576_vm1, %v1505_v58 }
 0x688   :  { %v11561_v56 = vpop.f32.mrf.mxu0 }
 0x689   :  { %15012 = vst [vmem:[#allocation729_spill] sm:$0xff] %v11561_v56  ;;  %v1560_v56 = vld [vmem:[%s14125_s0 + $0x5a0] sm:$0xff] }
 0x68a   :  { %7291 = vmatmul.msk.f32.gmra.mxu3 %vm1576_vm1, %v1560_v56  ;;  %v1509_v56 = vld [vmem:[%s14125_s0 + $0x408] sm:$0xff] }
 0x68b   :  { %7237 = vmatmul.msk.f32.gmra.mxu0 %vm1576_vm1, %v1506_v59 }
 0x690   :  { %v11571_v58 = vpop.f32.mrf.mxu0 }
 0x691   :  { %15013 = vst [vmem:[#allocation730_spill] sm:$0xff] %v11571_v58  ;;  %v1561_v58 = vld [vmem:[%s14125_s0 + $0x5a8] sm:$0xff] }
 0x692   :  { %7292 = vmatmul.msk.f32.gmra.mxu3 %vm1576_vm1, %v1561_v58  ;;  %v1510_v58 = vld [vmem:[%s14125_s0 + $0x410] sm:$0xff] }
 0x693   :  { %7238 = vmatmul.msk.f32.gmra.mxu0 %vm1576_vm1, %v1507_v12 }
 0x697   :  { %v2672_v28 = vpop.f32.mrf.mxu2 }
 0x698   :  { %v11581_v59 = vpop.f32.mrf.mxu0 }
 0x699   :  { %15014 = vst [vmem:[#allocation731_spill] sm:$0xff] %v11581_v59  ;;  %v1562_v59 = vld [vmem:[%s14125_s0 + $0x5b0] sm:$0xff] }
 0x69a   :  { %7293 = vmatmul.msk.f32.gmra.mxu3 %vm1576_vm1, %v1562_v59  ;;  %v1511_v59 = vld [vmem:[%s14125_s0 + $0x418] sm:$0xff] }
 0x69b   :  { %7239 = vmatmul.msk.f32.gmra.mxu0 %vm1576_vm1, %v1508_v53 }
 0x6a0   :  { %v11591_v12 = vpop.f32.mrf.mxu0 }
 0x6a1   :  { %15015 = vst [vmem:[#allocation732_spill] sm:$0xff] %v11591_v12  ;;  %v1563_v12 = vld [vmem:[%s14125_s0 + $0x5b8] sm:$0xff] }
 0x6a2   :  { %7294 = vmatmul.msk.f32.gmra.mxu3 %vm1576_vm1, %v1563_v12  ;;  %v1512_v12 = vld [vmem:[%s14125_s0 + $0x420] sm:$0xff] }
 0x6a3   :  { %7240 = vmatmul.msk.f32.gmra.mxu0 %vm1576_vm1, %v1509_v56 }
 0x6a8   :  { %v11601_v53 = vpop.f32.mrf.mxu0 }
 0x6a9   :  { %15016 = vst [vmem:[#allocation733_spill] sm:$0xff] %v11601_v53  ;;  %v1564_v53 = vld [vmem:[%s14125_s0 + $0x5c0] sm:$0xff] }
 0x6aa   :  { %7295 = vmatmul.msk.f32.gmra.mxu3 %vm1576_vm1, %v1564_v53  ;;  %v1513_v53 = vld [vmem:[%s14125_s0 + $0x428] sm:$0xff] }
 0x6ab   :  { %7241 = vmatmul.msk.f32.gmra.mxu0 %vm1576_vm1, %v1510_v58 }
 0x6b0   :  { %v11611_v56 = vpop.f32.mrf.mxu0 }
 0x6b1   :  { %15017 = vst [vmem:[#allocation734_spill] sm:$0xff] %v11611_v56  ;;  %v2675_v56 = vpop.f32.mrf.mxu2 }
 0x6b2   :  { %7296 = vmatmul.msk.f32.gmra.mxu3 %vm1576_vm1, %v1565_v48  ;;  %v1514_v48 = vld [vmem:[%s14125_s0 + $0x430] sm:$0xff] }
 0x6b3   :  { %7242 = vmatmul.msk.f32.gmra.mxu0 %vm1576_vm1, %v1511_v59 }
 0x6b8   :  { %v11621_v58 = vpop.f32.mrf.mxu0 }
 0x6b9   :  { %15018 = vst [vmem:[#allocation735_spill] sm:$0xff] %v11621_v58  ;;  %v2678_v58 = vpop.f32.mrf.mxu2 }
 0x6ba   :  { %7297 = vmatmul.msk.f32.gmra.mxu3 %vm1576_vm1, %v1566_v49  ;;  %v1567_v49 = vld [vmem:[%s14125_s0 + $0x5d8] sm:$0xff] }
 0x6bb   :  { %7243 = vmatmul.msk.f32.gmra.mxu0 %vm1576_vm1, %v1512_v12 }
 0x6c0   :  { %v11631_v59 = vpop.f32.mrf.mxu0 }
 0x6c1   :  { %15019 = vst [vmem:[#allocation736_spill] sm:$0xff] %v11631_v59  ;;  %v2772_v59 = vmax.f32 %v10981_v35, %v11269_v1  ;;  %v2681_v11 = vpop.f32.mrf.mxu2  ;;  %v1515_v35 = vld [vmem:[%s14125_s0 + $0x438] sm:$0xff] }
 0x6c2   :  { %7298 = vmatmul.msk.f32.gmra.mxu3 %vm1576_vm1, %v1567_v49 }
 0x6c3   :  { %7244 = vmatmul.msk.f32.gmra.mxu0 %vm1576_vm1, %v1513_v53  ;;  %v11649_v53 = vld [vmem:[%s14127_s2] ss:$0 sm:$0xff] }
 0x6c8   :  { %v2528_v12 = vpop.f32.mrf.mxu0 }
 0x6c9   :  { %v2820_v44 = vmax.f32 %v2528_v12, %v2672_v28 }
 0x6cb   :  { %v2868_v45 = vmax.f32 %v2772_v59, %v2820_v44  ;;  %7245 = vmatmul.msk.f32.gmra.mxu0 %vm1576_vm1, %v1514_v48  ;;  %v2773_v44 = vmax.f32 %v10987_v19, %v11275_v17  ;;  %v1568_v48 = vld [vmem:[%s14125_s0 + $0x5e0] sm:$0xff]  ;;  %v2684_v19 = vpop.f32.mrf.mxu2 }
 0x6cc   :  { %7299 = vmatmul.msk.f32.gmra.mxu3 %vm1576_vm1, %v1568_v48  ;;  %v1516_v17 = vld [vmem:[%s14125_s0 + $0x440] sm:$0xff] }
 0x6cd   :  { %v11653_v52 = vadd.f32 %v11649_v53, %v2868_v45 }
 0x6cf   :  { %15020 = vst [vmem:[#allocation737_spill] sm:$0xff] %v11653_v52  ;;  %vm14159_vm2 = vcmp.gt.f32.partialorder %v11653_v52, 0.0 }
 0x6d0   :  { %v3016_v1 = vsel %vm14159_vm2, %v11653_v52, 0.0  ;;  %v2531_v28 = vpop.f32.mrf.mxu0 }
 0x6d1   :  { %3064 = vst [vmem:[#allocation2 + $0xb0] sm:$0xff] %v3016_v1  ;;  %v2821_v45 = vmax.f32 %v2531_v28, %v2675_v56  ;;  %v2774_v56 = vmax.f32 %v10993_v3, %v11281_v33  ;;  %v1517_v3 = vld [vmem:[%s14125_s0 + $0x448] sm:$0xff] }
 0x6d3   :  { %v2869_v59 = vmax.f32 %v2773_v44, %v2821_v45  ;;  %7246 = vmatmul.msk.f32.gmra.mxu0 %vm1576_vm1, %v1515_v35  ;;  %v1569_v44 = vld [vmem:[%s14125_s0 + $0x5e8] sm:$0xff] }
 0x6d4   :  { %7300 = vmatmul.msk.f32.gmra.mxu3 %vm1576_vm1, %v1569_v44 }
 0x6d5   :  { %v2921_v12 = vadd.f32 %v11649_v53, %v2869_v59 }
 0x6d7   :  { %vm2969_vm3 = vcmp.gt.f32.partialorder %v2921_v12, 0.0 }
 0x6d8   :  { %v3017_v49 = vsel %vm2969_vm3, %v2921_v12, 0.0  ;;  %v2534_v52 = vpop.f32.mrf.mxu0  ;;  %v2775_v12 = vmax.f32 %v10999_v36, %v11287_v0  ;;  %v1518_v0 = vld [vmem:[%s14125_s0 + $0x450] sm:$0xff] }
 0x6d9   :  { %3065 = vst [vmem:[#allocation2 + $0xb8] sm:$0xff] %v3017_v49  ;;  %v2822_v1 = vmax.f32 %v2534_v52, %v2678_v58 }
 0x6db   :  { %v2870_v28 = vmax.f32 %v2774_v56, %v2822_v1  ;;  %7247 = vmatmul.msk.f32.gmra.mxu0 %vm1576_vm1, %v1516_v17  ;;  %v2687_v17 = vpop.f32.mrf.mxu2 }
 0x6dd   :  { %v11681_v35 = vadd.f32 %v11649_v53, %v2870_v28  ;;  %v1570_v28 = vld [vmem:[%s14125_s0 + $0x5f0] sm:$0xff] }
 0x6de   :  { %7301 = vmatmul.msk.f32.gmra.mxu3 %vm1576_vm1, %v1570_v28 }
 0x6df   :  { %vm2970_vm4 = vcmp.gt.f32.partialorder %v11681_v35, 0.0 }
 0x6e0   :  { %v11691_v33 = vld [vmem:[#allocation2 + $0xb1] sm:$0xff]  ;;  %v3018_v45 = vsel %vm2970_vm4, %v11681_v35, 0.0  ;;  %v2537_v59 = vpop.f32.mrf.mxu0 }
 0x6e1   :  { %15021 = vst [vmem:[#allocation738_spill] sm:$0xff] %v11691_v33  ;;  %v11693_v52 = vld [vmem:[#allocation2 + $0xb2] sm:$0xff]  ;;  %v2823_v49 = vmax.f32 %v2537_v59, %v2681_v11  ;;  %v2776_v11 = vmax.f32 %v11005_v20, %v11293_v34 }
 0x6e2   :  { %15022 = vst [vmem:[#allocation739_spill] sm:$0xff] %v11693_v52  ;;  %v11695_v58 = vld [vmem:[#allocation2 + $0xb3] sm:$0xff]  ;;  %v2780_v52 = vmax.f32 %v11029_v5, %v11317_v2 }
 0x6e3   :  { %15023 = vst [vmem:[#allocation740_spill] sm:$0xff] %v11695_v58  ;;  %v11702_v48 = vld [vmem:[#allocation2 + $0xb4] sm:$0xff]  ;;  %v2871_v56 = vmax.f32 %v2775_v12, %v2823_v49  ;;  %7248 = vmatmul.msk.f32.gmra.mxu0 %vm1576_vm1, %v1517_v3 }
 0x6e4   :  { %15024 = vst [vmem:[#allocation741_spill] sm:$0xff] %v11702_v48  ;;  %v1571_v12 = vld [vmem:[%s14125_s0 + $0x5f8] sm:$0xff]  ;;  %v1520_v48 = vld [vmem:[%s14125_s0 + $0x460] sm:$0xff] }
 0x6e5   :  { %3066 = vst [vmem:[#allocation2 + $0xc0] sm:$0xff] %v3018_v45  ;;  %v2923_v1 = vadd.f32 %v11649_v53, %v2871_v56  ;;  %v2690_v45 = vpop.f32.mrf.mxu2  ;;  %v1519_v20 = vld [vmem:[%s14125_s0 + $0x458] sm:$0xff] }
 0x6e6   :  { %7302 = vmatmul.msk.f32.gmra.mxu3 %vm1576_vm1, %v1571_v12 }
 0x6e7   :  { %vm2971_vm5 = vcmp.gt.f32.partialorder %v2923_v1, 0.0 }
 0x6e8   :  { %v3019_v44 = vsel %vm2971_vm5, %v2923_v1, 0.0  ;;  %v2540_v58 = vpop.f32.mrf.mxu0  ;;  %v2777_v1 = vmax.f32 %v11011_v4, %v11299_v16  ;;  %v2778_v4 = vmax.f32 %v11017_v37, %v11305_v18 }
 0x6e9   :  { %3067 = vst [vmem:[#allocation2 + $0xc8] sm:$0xff] %v3019_v44  ;;  %v2824_v36 = vmax.f32 %v2540_v58, %v2684_v19 }
 0x6eb   :  { %v2872_v3 = vmax.f32 %v2776_v11, %v2824_v36  ;;  %7249 = vmatmul.msk.f32.gmra.mxu0 %vm1576_vm1, %v1518_v0 }
 0x6ed   :  { %v11717_v59 = vadd.f32 %v11649_v53, %v2872_v3  ;;  %v2693_v36 = vpop.f32.mrf.mxu2 }
 0x6ef   :  { %vm2972_vm6 = vcmp.gt.f32.partialorder %v11717_v59, 0.0 }
 0x6f0   :  { %v11727_v34 = vld [vmem:[#allocation2 + $0xc1] sm:$0xff]  ;;  %v3020_v49 = vsel %vm2972_vm6, %v11717_v59, 0.0  ;;  %v2543_v56 = vpop.f32.mrf.mxu0 }
 0x6f1   :  { %v11729_v19 = vld [vmem:[#allocation2 + $0xc2] sm:$0xff]  ;;  %3068 = vst [vmem:[#allocation2 + $0xd0] sm:$0xff] %v3020_v49  ;;  %v2825_v44 = vmax.f32 %v2543_v56, %v2687_v17 }
 0x6f2   :  { %v11731_v58 = vld [vmem:[#allocation2 + $0xc3] sm:$0xff] }
 0x6f3   :  { %15025 = vst [vmem:[#allocation742_spill] sm:$0xff] %v11731_v58  ;;  %v11738_v28 = vld [vmem:[#allocation2 + $0xc4] sm:$0xff]  ;;  %v2873_v0 = vmax.f32 %v2777_v1, %v2825_v44  ;;  %7250 = vmatmul.msk.f32.gmra.mxu0 %vm1576_vm1, %v1519_v20 }
 0x6f4   :  { %15026 = vst [vmem:[#allocation743_spill] sm:$0xff] %v11738_v28  ;;  %v1521_v20 = vld [vmem:[%s14125_s0 + $0x468] sm:$0xff] }
 0x6f5   :  { %v2925_v11 = vadd.f32 %v11649_v53, %v2873_v0  ;;  %v15130_v58 = vld [vmem:[#allocation683_spill] sm:$0xff] }
 0x6f7   :  { %vm2973_vm7 = vcmp.gt.f32.partialorder %v2925_v11, 0.0 }
 0x6f8   :  { %v3021_v3 = vsel %vm2973_vm7, %v2925_v11, 0.0  ;;  %v2546_v12 = vpop.f32.mrf.mxu0 }
 0x6f9   :  { %3069 = vst [vmem:[#allocation2 + $0xd8] sm:$0xff] %v3021_v3  ;;  %v2826_v16 = vmax.f32 %v2546_v12, %v2690_v45  ;;  %v2779_v45 = vmax.f32 %v11023_v21, %v11311_v63 }
 0x6fb   :  { %v2874_v49 = vmax.f32 %v2778_v4, %v2826_v16  ;;  %7251 = vmatmul.msk.f32.gmra.mxu0 %vm1576_vm1, %v1520_v48  ;;  %v2696_v48 = vpop.f32.mrf.mxu2 }
 0x6fd   :  { %v11749_v17 = vadd.f32 %v11649_v53, %v2874_v49  ;;  %v1522_v49 = vld [vmem:[%s14125_s0 + $0x470] sm:$0xff] }
 0x6ff   :  { %15027 = vst [vmem:[#allocation744_spill] sm:$0xff] %v11749_v17  ;;  %vm2974_vm8 = vcmp.gt.f32.partialorder %v11749_v17, 0.0 }
 0x700   :  { %v11755_v56 = vld [vmem:[#allocation2 + $0xd1] sm:$0xff]  ;;  %v3022_v18 = vsel %vm2974_vm8, %v11749_v17, 0.0  ;;  %v2549_v37 = vpop.f32.mrf.mxu0 }
 0x701   :  { %v11757_v1 = vld [vmem:[#allocation2 + $0xd2] sm:$0xff]  ;;  %3070 = vst [vmem:[#allocation2 + $0xe0] sm:$0xff] %v3022_v18  ;;  %v2827_v11 = vmax.f32 %v2549_v37, %v2693_v36  ;;  %v2708_v36 = vpop.f32.mrf.mxu3 }
 0x702   :  { %v11759_v44 = vld [vmem:[#allocation2 + $0xd3] sm:$0xff] }
 0x703   :  { %15028 = vst [vmem:[#allocation745_spill] sm:$0xff] %v11759_v44  ;;  %v11766_v0 = vld [vmem:[#allocation2 + $0xd4] sm:$0xff]  ;;  %v2875_v3 = vmax.f32 %v2779_v45, %v2827_v11  ;;  %7252 = vmatmul.msk.f32.gmra.mxu0 %vm1576_vm1, %v1521_v20  ;;  %v2699_v63 = vpop.f32.mrf.mxu2 }
 0x704   :  { %15029 = vst [vmem:[#allocation746_spill] sm:$0xff] %v11766_v0  ;;  %v1523_v37 = vld [vmem:[%s14125_s0 + $0x478] sm:$0xff] }
 0x705   :  { %v2927_v12 = vadd.f32 %v11649_v53, %v2875_v3  ;;  %v15120_v0 = vld [vmem:[#allocation725_spill] sm:$0xff] }
 0x707   :  { %vm2975_vm9 = vcmp.gt.f32.partialorder %v2927_v12, 0.0 }
 0x708   :  { %v3023_v4 = vsel %vm2975_vm9, %v2927_v12, 0.0  ;;  %v2552_v16 = vpop.f32.mrf.mxu0 }
 0x709   :  { %3071 = vst [vmem:[#allocation2 + $0xe8] sm:$0xff] %v3023_v4  ;;  %v2828_v21 = vmax.f32 %v2552_v16, %v2696_v48  ;;  %v2781_v48 = vmax.f32 %v11035_v38, %v11323_v32  ;;  %v2782_v32 = vmax.f32 %v11041_v22, %v11329_v15 }
 0x70b   :  { %v2876_v18 = vmax.f32 %v2780_v52, %v2828_v21  ;;  %7253 = vmatmul.msk.f32.gmra.mxu0 %vm1576_vm1, %v1522_v49  ;;  %v2702_v16 = vpop.f32.mrf.mxu2  ;;  %v2711_v21 = vpop.f32.mrf.mxu3 }
 0x70d   :  { %v11777_v20 = vadd.f32 %v11649_v53, %v2876_v18 }
 0x70f   :  { %15030 = vst [vmem:[#allocation747_spill] sm:$0xff] %v11777_v20  ;;  %vm2976_vm10 = vcmp.gt.f32.partialorder %v11777_v20, 0.0 }
 0x710   :  { %v11783_v45 = vld [vmem:[#allocation2 + $0xe1] sm:$0xff]  ;;  %v3024_v5 = vsel %vm2976_vm10, %v11777_v20, 0.0  ;;  %v2555_v52 = vpop.f32.mrf.mxu0 }
 0x711   :  { %v11785_v11 = vld [vmem:[#allocation2 + $0xe2] sm:$0xff]  ;;  %3072 = vst [vmem:[#allocation2 + $0xf0] sm:$0xff] %v3024_v5  ;;  %v2829_v12 = vmax.f32 %v2555_v52, %v2699_v63 }
 0x712   :  { %v11787_v2 = vld [vmem:[#allocation2 + $0xe3] sm:$0xff] }
 0x713   :  { %15031 = vst [vmem:[#allocation748_spill] sm:$0xff] %v11787_v2  ;;  %v11794_v3 = vld [vmem:[#allocation2 + $0xe4] sm:$0xff]  ;;  %v2877_v4 = vmax.f32 %v2781_v48, %v2829_v12  ;;  %7254 = vmatmul.msk.f32.gmra.mxu0 %vm1576_vm1, %v1523_v37  ;;  %v1524_v2 = vld [vmem:[%s14125_s0 + $0x480] sm:$0xff]  ;;  %v2705_v5 = vpop.f32.mrf.mxu2 }
 0x714   :  { %15032 = vst [vmem:[#allocation749_spill] sm:$0xff] %v11794_v3  ;;  %v1525_v52 = vld [vmem:[%s14125_s0 + $0x488] sm:$0xff]  ;;  %v2784_v3 = vmax.f32 %v11053_v39, %v11341_v31 }
 0x715   :  { %v2929_v49 = vadd.f32 %v11649_v53, %v2877_v4  ;;  %v2783_v4 = vmax.f32 %v11047_v6, %v11335_v51 }
 0x717   :  { %vm2977_vm11 = vcmp.gt.f32.partialorder %v2929_v49, 0.0 }
 0x718   :  { %v3025_v18 = vsel %vm2977_vm11, %v2929_v49, 0.0  ;;  %v2558_v33 = vpop.f32.mrf.mxu0 }
 0x719   :  { %3073 = vst [vmem:[#allocation2 + $0xf8] sm:$0xff] %v3025_v18  ;;  %v2830_v38 = vmax.f32 %v2558_v33, %v2702_v16 }
 0x71b   :  { %v2878_v63 = vmax.f32 %v2782_v32, %v2830_v38  ;;  %7255 = vmatmul.msk.f32.gmra.mxu0 %vm1576_vm1, %v1524_v2  ;;  %v2714_v2 = vpop.f32.mrf.mxu3 }
 0x71d   :  { %v11805_v37 = vadd.f32 %v11649_v53, %v2878_v63 }
 0x71f   :  { %15033 = vst [vmem:[#allocation750_spill] sm:$0xff] %v11805_v37  ;;  %vm2978_vm12 = vcmp.gt.f32.partialorder %v11805_v37, 0.0 }
 0x720   :  { %v11811_v48 = vld [vmem:[#allocation2 + $0xf1] sm:$0xff]  ;;  %v3026_v22 = vsel %vm2978_vm12, %v11805_v37, 0.0  ;;  %v2561_v33 = vpop.f32.mrf.mxu0 }
 0x721   :  { %15034 = vst [vmem:[#allocation751_spill] sm:$0xff] %v11811_v48  ;;  %v11813_v12 = vld [vmem:[#allocation2 + $0xf2] sm:$0xff]  ;;  %v2831_v49 = vmax.f32 %v2561_v33, %v2705_v5 }
 0x722   :  { %v11815_v15 = vld [vmem:[#allocation2 + $0xf3] sm:$0xff]  ;;  %3074 = vst [vmem:[#allocation2 + $0x100] sm:$0xff] %v3026_v22 }
 0x723   :  { %15035 = vst [vmem:[#allocation752_spill] sm:$0xff] %v11815_v15  ;;  %v11822_v16 = vld [vmem:[#allocation2 + $0xf4] sm:$0xff]  ;;  %v2879_v18 = vmax.f32 %v2783_v4, %v2831_v49  ;;  %7256 = vmatmul.msk.f32.gmra.mxu0 %vm1576_vm1, %v1525_v52  ;;  %v1526_v15 = vld [vmem:[%s14125_s0 + $0x490] sm:$0xff]  ;;  %v2717_v51 = vpop.f32.mrf.mxu3 }
 0x724   :  { %15036 = vst [vmem:[#allocation753_spill] sm:$0xff] %v11822_v16  ;;  %v1527_v52 = vld [vmem:[%s14125_s0 + $0x498] sm:$0xff] }
 0x725   :  { %v2931_v32 = vadd.f32 %v11649_v53, %v2879_v18 }
 0x727   :  { %vm2979_vm13 = vcmp.gt.f32.partialorder %v2931_v32, 0.0 }
 0x728   :  { %v3027_v38 = vsel %vm2979_vm13, %v2931_v32, 0.0  ;;  %v2564_v63 = vpop.f32.mrf.mxu0 }
 0x729   :  { %3075 = vst [vmem:[#allocation2 + $0x108] sm:$0xff] %v3027_v38  ;;  %v2832_v6 = vmax.f32 %v2564_v63, %v2708_v36 }
 0x72b   :  { %v2880_v22 = vmax.f32 %v2784_v3, %v2832_v6  ;;  %7257 = vmatmul.msk.f32.gmra.mxu0 %vm1576_vm1, %v1526_v15  ;;  %v2785_v3 = vmax.f32 %v11059_v23, %v11347_v62  ;;  %v2720_v32 = vpop.f32.mrf.mxu3  ;;  %v2786_v23 = vmax.f32 %v11065_v7, %v11353_v47 }
 0x72d   :  { %v11833_v5 = vadd.f32 %v11649_v53, %v2880_v22  ;;  %v1528_v22 = vld [vmem:[%s14125_s0 + $0x4a0] sm:$0xff] }
 0x72f   :  { %15037 = vst [vmem:[#allocation754_spill] sm:$0xff] %v11833_v5  ;;  %vm2980_vm14 = vcmp.gt.f32.partialorder %v11833_v5, 0.0 }
 0x730   :  { %v11839_v33 = vld [vmem:[#allocation2 + $0x101] sm:$0xff]  ;;  %v3028_v39 = vsel %vm2980_vm14, %v11833_v5, 0.0  ;;  %v2567_v36 = vpop.f32.mrf.mxu0 }
 0x731   :  { %15038 = vst [vmem:[#allocation755_spill] sm:$0xff] %v11839_v33  ;;  %v11841_v4 = vld [vmem:[#allocation2 + $0x102] sm:$0xff]  ;;  %v2833_v49 = vmax.f32 %v2567_v36, %v2711_v21 }
 0x732   :  { %15039 = vst [vmem:[#allocation756_spill] sm:$0xff] %v11841_v4  ;;  %v11843_v31 = vld [vmem:[#allocation2 + $0x103] sm:$0xff] }
 0x733   :  { %15040 = vst [vmem:[#allocation757_spill] sm:$0xff] %v11843_v31  ;;  %v11850_v15 = vld [vmem:[#allocation2 + $0x104] sm:$0xff]  ;;  %v2881_v18 = vmax.f32 %v2785_v3, %v2833_v49  ;;  %7258 = vmatmul.msk.f32.gmra.mxu0 %vm1576_vm1, %v1527_v52  ;;  %v2723_v52 = vpop.f32.mrf.mxu3  ;;  %v15119_v31 = vld [vmem:[#allocation681_spill] sm:$0xff] }
 0x734   :  { %15041 = vst [vmem:[#allocation758_spill] sm:$0xff] %v11850_v15  ;;  %v1529_v36 = vld [vmem:[%s14125_s0 + $0x4a8] sm:$0xff] }
 0x735   :  { %3076 = vst [vmem:[#allocation2 + $0x110] sm:$0xff] %v3028_v39  ;;  %v2933_v38 = vadd.f32 %v11649_v53, %v2881_v18  ;;  %v2787_v18 = vmax.f32 %v11071_v40, %v11359_v55  ;;  %v2788_v40 = vmax.f32 %v11077_v24, %v11365_v14 }
 0x737   :  { %vm2981_vm15 = vcmp.gt.f32.partialorder %v2933_v38, 0.0 }
 0x738   :  { %v3029_v63 = vsel %vm2981_vm15, %v2933_v38, 0.0  ;;  %v2570_v6 = vpop.f32.mrf.mxu0 }
 0x739   :  { %3077 = vst [vmem:[#allocation2 + $0x118] sm:$0xff] %v3029_v63  ;;  %v2834_v62 = vmax.f32 %v2570_v6, %v2714_v2 }
 0x73b   :  { %v2882_v39 = vmax.f32 %v2786_v23, %v2834_v62  ;;  %7259 = vmatmul.msk.f32.gmra.mxu0 %vm1576_vm1, %v1528_v22 }
 0x73d   :  { %v11861_v21 = vadd.f32 %v11649_v53, %v2882_v39  ;;  %v1530_v39 = vld [vmem:[%s14125_s0 + $0x4b0] sm:$0xff] }
 0x73f   :  { %15042 = vst [vmem:[#allocation759_spill] sm:$0xff] %v11861_v21  ;;  %vm14191_vm0 = vcmp.gt.f32.partialorder %v11861_v21, 0.0 }
 0x740   :  { %v11867_v3 = vld [vmem:[#allocation2 + $0x111] sm:$0xff]  ;;  %v3030_v47 = vsel %vm14191_vm0, %v11861_v21, 0.0  ;;  %v2573_v2 = vpop.f32.mrf.mxu0 }
 0x741   :  { %15043 = vst [vmem:[#allocation760_spill] sm:$0xff] %v11867_v3  ;;  %v11869_v49 = vld [vmem:[#allocation2 + $0x112] sm:$0xff]  ;;  %v2835_v63 = vmax.f32 %v2573_v2, %v2717_v51 }
 0x742   :  { %15044 = vst [vmem:[#allocation761_spill] sm:$0xff] %v11869_v49  ;;  %v11871_v7 = vld [vmem:[#allocation2 + $0x113] sm:$0xff] }
 0x743   :  { %15045 = vst [vmem:[#allocation762_spill] sm:$0xff] %v11871_v7  ;;  %v11878_v38 = vld [vmem:[#allocation2 + $0x114] sm:$0xff]  ;;  %v2883_v6 = vmax.f32 %v2787_v18, %v2835_v63  ;;  %7260 = vmatmul.msk.f32.gmra.mxu0 %vm1576_vm1, %v1529_v36  ;;  %v2726_v7 = vpop.f32.mrf.mxu3 }
 0x744   :  { %15046 = vst [vmem:[#allocation763_spill] sm:$0xff] %v11878_v38  ;;  %v1531_v36 = vld [vmem:[%s14125_s0 + $0x4b8] sm:$0xff] }
 0x745   :  { %3078 = vst [vmem:[#allocation2 + $0x120] sm:$0xff] %v3030_v47  ;;  %v2935_v22 = vadd.f32 %v11649_v53, %v2883_v6 }
 0x747   :  { %vm2983_vm3 = vcmp.gt.f32.partialorder %v2935_v22, 0.0 }
 0x748   :  { %v3031_v23 = vsel %vm2983_vm3, %v2935_v22, 0.0  ;;  %v2576_v62 = vpop.f32.mrf.mxu0 }
 0x749   :  { %3079 = vst [vmem:[#allocation2 + $0x128] sm:$0xff] %v3031_v23  ;;  %v2836_v55 = vmax.f32 %v2576_v62, %v2720_v32  ;;  %v2789_v32 = vmax.f32 %v11083_v8, %v11371_v54  ;;  %v2790_v8 = vmax.f32 %v11089_v41, %v11377_v30 }
 0x74b   :  { %v2884_v47 = vmax.f32 %v2788_v40, %v2836_v55  ;;  %7261 = vmatmul.msk.f32.gmra.mxu0 %vm1576_vm1, %v1530_v39  ;;  %v2729_v23 = vpop.f32.mrf.mxu3 }
 0x74d   :  { %v11889_v51 = vadd.f32 %v11649_v53, %v2884_v47  ;;  %v1532_v47 = vld [vmem:[%s14125_s0 + $0x4c0] sm:$0xff] }
 0x74f   :  { %15047 = vst [vmem:[#allocation764_spill] sm:$0xff] %v11889_v51  ;;  %vm14187_vm5 = vcmp.gt.f32.partialorder %v11889_v51, 0.0 }
 0x750   :  { %v11895_v2 = vld [vmem:[#allocation2 + $0x121] sm:$0xff]  ;;  %v3032_v14 = vsel %vm14187_vm5, %v11889_v51, 0.0  ;;  %v2579_v24 = vpop.f32.mrf.mxu0 }
 0x751   :  { %15048 = vst [vmem:[#allocation765_spill] sm:$0xff] %v11895_v2  ;;  %v11897_v18 = vld [vmem:[#allocation2 + $0x122] sm:$0xff]  ;;  %v2837_v22 = vmax.f32 %v2579_v24, %v2723_v52 }
 0x752   :  { %15049 = vst [vmem:[#allocation766_spill] sm:$0xff] %v11897_v18  ;;  %v11899_v63 = vld [vmem:[#allocation2 + $0x123] sm:$0xff] }
 0x753   :  { %15050 = vst [vmem:[#allocation767_spill] sm:$0xff] %v11899_v63  ;;  %v11906_v6 = vld [vmem:[#allocation2 + $0x124] sm:$0xff]  ;;  %v2885_v62 = vmax.f32 %v2789_v32, %v2837_v22  ;;  %7262 = vmatmul.msk.f32.gmra.mxu0 %vm1576_vm1, %v1531_v36  ;;  %v2732_v52 = vpop.f32.mrf.mxu3 }
 0x754   :  { %15051 = vst [vmem:[#allocation768_spill] sm:$0xff] %v11906_v6  ;;  %v1533_v24 = vld [vmem:[%s14125_s0 + $0x4c8] sm:$0xff] }
 0x755   :  { %3080 = vst [vmem:[#allocation2 + $0x130] sm:$0xff] %v3032_v14  ;;  %v2937_v39 = vadd.f32 %v11649_v53, %v2885_v62  ;;  %v2791_v62 = vmax.f32 %v11095_v25, %v11383_v61  ;;  %v2792_v25 = vmax.f32 %v11101_v9, %v11389_v46  ;;  %v15110_v63 = vld [vmem:[#allocation723_spill] sm:$0xff] }
 0x757   :  { %vm2985_vm7 = vcmp.gt.f32.partialorder %v2937_v39, 0.0 }
 0x758   :  { %v3033_v40 = vsel %vm2985_vm7, %v2937_v39, 0.0  ;;  %v2582_v55 = vpop.f32.mrf.mxu0 }
 0x759   :  { %3081 = vst [vmem:[#allocation2 + $0x138] sm:$0xff] %v3033_v40  ;;  %v2838_v54 = vmax.f32 %v2582_v55, %v2726_v7 }
 0x75b   :  { %v2886_v14 = vmax.f32 %v2790_v8, %v2838_v54  ;;  %7263 = vmatmul.msk.f32.gmra.mxu0 %vm1576_vm1, %v1532_v47  ;;  %v2735_v8 = vpop.f32.mrf.mxu3 }
 0x75d   :  { %v11917_v36 = vadd.f32 %v11649_v53, %v2886_v14 }
 0x75f   :  { %15052 = vst [vmem:[#allocation769_spill] sm:$0xff] %v11917_v36  ;;  %vm14181_vm9 = vcmp.gt.f32.partialorder %v11917_v36, 0.0 }
 0x760   :  { %v11923_v32 = vld [vmem:[#allocation2 + $0x131] sm:$0xff]  ;;  %v3034_v41 = vsel %vm14181_vm9, %v11917_v36, 0.0  ;;  %v2585_v7 = vpop.f32.mrf.mxu0  ;;  %v1534_v36 = vld [vmem:[%s14125_s0 + $0x4d0] sm:$0xff] }
 0x761   :  { %15053 = vst [vmem:[#allocation770_spill] sm:$0xff] %v11923_v32  ;;  %v11925_v22 = vld [vmem:[#allocation2 + $0x132] sm:$0xff]  ;;  %v2839_v40 = vmax.f32 %v2585_v7, %v2729_v23 }
 0x762   :  { %15054 = vst [vmem:[#allocation771_spill] sm:$0xff] %v11925_v22  ;;  %v11927_v30 = vld [vmem:[#allocation2 + $0x133] sm:$0xff] }
 0x763   :  { %15055 = vst [vmem:[#allocation772_spill] sm:$0xff] %v11927_v30  ;;  %v11934_v39 = vld [vmem:[#allocation2 + $0x134] sm:$0xff]  ;;  %v2887_v55 = vmax.f32 %v2791_v62, %v2839_v40  ;;  %7264 = vmatmul.msk.f32.gmra.mxu0 %vm1576_vm1, %v1533_v24  ;;  %v15109_v30 = vld [vmem:[#allocation679_spill] sm:$0xff] }
 0x764   :  { %15056 = vst [vmem:[#allocation773_spill] sm:$0xff] %v11934_v39  ;;  %v1535_v24 = vld [vmem:[%s14125_s0 + $0x4d8] sm:$0xff] }
 0x765   :  { %3082 = vst [vmem:[#allocation2 + $0x140] sm:$0xff] %v3034_v41  ;;  %v2939_v47 = vadd.f32 %v11649_v53, %v2887_v55  ;;  %v15164_v32 = vld [vmem:[#allocation733_spill] sm:$0xff] }
 0x767   :  { %vm2987_vm11 = vcmp.gt.f32.partialorder %v2939_v47, 0.0 }
 0x768   :  { %v3035_v54 = vsel %vm2987_vm11, %v2939_v47, 0.0  ;;  %v2588_v14 = vpop.f32.mrf.mxu0 }
 0x769   :  { %3083 = vst [vmem:[#allocation2 + $0x148] sm:$0xff] %v3035_v54  ;;  %v2840_v61 = vmax.f32 %v2588_v14, %v2732_v52  ;;  %v2738_v52 = vpop.f32.mrf.mxu3 }
 0x76b   :  { %v2888_v41 = vmax.f32 %v2792_v25, %v2840_v61  ;;  %7265 = vmatmul.msk.f32.gmra.mxu0 %vm1576_vm1, %v1534_v36  ;;  %v2793_v36 = vmax.f32 %v11107_v42, %v11395_v57 }
 0x76d   :  { %v11945_v23 = vadd.f32 %v11649_v53, %v2888_v41  ;;  %v1536_v41 = vld [vmem:[%s14125_s0 + $0x4e0] sm:$0xff] }
 0x76f   :  { %15057 = vst [vmem:[#allocation774_spill] sm:$0xff] %v11945_v23  ;;  %vm14176_vm13 = vcmp.gt.f32.partialorder %v11945_v23, 0.0 }
 0x770   :  { %v11951_v7 = vld [vmem:[#allocation2 + $0x141] sm:$0xff]  ;;  %v3036_v9 = vsel %vm14176_vm13, %v11945_v23, 0.0  ;;  %v2591_v46 = vpop.f32.mrf.mxu0  ;;  %v2794_v23 = vmax.f32 %v11113_v26, %v11401_v13 }
 0x771   :  { %15058 = vst [vmem:[#allocation775_spill] sm:$0xff] %v11951_v7  ;;  %v11953_v62 = vld [vmem:[#allocation2 + $0x142] sm:$0xff]  ;;  %v2841_v47 = vmax.f32 %v2591_v46, %v2735_v8  ;;  %v2741_v57 = vpop.f32.mrf.mxu3  ;;  %v15101_v7 = vld [vmem:[#allocation721_spill] sm:$0xff] }
 0x772   :  { %15059 = vst [vmem:[#allocation776_spill] sm:$0xff] %v11953_v62  ;;  %v11955_v40 = vld [vmem:[#allocation2 + $0x143] sm:$0xff] }
 0x773   :  { %15060 = vst [vmem:[#allocation777_spill] sm:$0xff] %v11955_v40  ;;  %v11962_v55 = vld [vmem:[#allocation2 + $0x144] sm:$0xff]  ;;  %v2889_v54 = vmax.f32 %v2793_v36, %v2841_v47  ;;  %7266 = vmatmul.msk.f32.gmra.mxu0 %vm1576_vm1, %v1535_v24  ;;  %v15100_v40 = vld [vmem:[#allocation677_spill] sm:$0xff] }
 0x774   :  { %15061 = vst [vmem:[#allocation778_spill] sm:$0xff] %v11962_v55  ;;  %v1537_v24 = vld [vmem:[%s14125_s0 + $0x4e8] sm:$0xff] }
 0x775   :  { %3084 = vst [vmem:[#allocation2 + $0x150] sm:$0xff] %v3036_v9  ;;  %v2941_v14 = vadd.f32 %v11649_v53, %v2889_v54  ;;  %v15099_v55 = vld [vmem:[#allocation699_spill] sm:$0xff] }
 0x776   :  { %v2756_v62 = vmax.f32 %v15100_v40, %v15099_v55  ;;  %v15104_v55 = vld [vmem:[#allocation700_spill] sm:$0xff] }
 0x777   :  { %vm2989_vm15 = vcmp.gt.f32.partialorder %v2941_v14, 0.0 }
 0x778   :  { %v3037_v25 = vsel %vm2989_vm15, %v2941_v14, 0.0  ;;  %v2594_v61 = vpop.f32.mrf.mxu0 }
 0x779   :  { %3085 = vst [vmem:[#allocation2 + $0x158] sm:$0xff] %v3037_v25  ;;  %v2842_v42 = vmax.f32 %v2594_v61, %v2738_v52  ;;  %v2795_v52 = vmax.f32 %v11119_v10, %v11407_v50  ;;  %v2744_v25 = vpop.f32.mrf.mxu3  ;;  %v2796_v10 = vmax.f32 %v11125_v43, %v11413_v29 }
 0x77b   :  { %v2890_v9 = vmax.f32 %v2794_v23, %v2842_v42  ;;  %7267 = vmatmul.msk.f32.gmra.mxu0 %vm1576_vm1, %v1536_v41 }
 0x77d   :  { %v11973_v8 = vadd.f32 %v11649_v53, %v2890_v9  ;;  %v1538_v9 = vld [vmem:[%s14125_s0 + $0x4f0] sm:$0xff] }
 0x77f   :  { %15062 = vst [vmem:[#allocation779_spill] sm:$0xff] %v11973_v8  ;;  %vm14166_vm3 = vcmp.gt.f32.partialorder %v11973_v8, 0.0 }
 0x780   :  { %v11979_v46 = vld [vmem:[#allocation2 + $0x151] sm:$0xff]  ;;  %v3038_v26 = vsel %vm14166_vm3, %v11973_v8, 0.0  ;;  %v2597_v23 = vpop.f32.mrf.mxu0 }
 0x781   :  { %15063 = vst [vmem:[#allocation780_spill] sm:$0xff] %v11979_v46  ;;  %v11981_v36 = vld [vmem:[#allocation2 + $0x152] sm:$0xff]  ;;  %v2843_v54 = vmax.f32 %v2597_v23, %v2741_v57 }
 0x782   :  { %15064 = vst [vmem:[#allocation781_spill] sm:$0xff] %v11981_v36  ;;  %v11983_v13 = vld [vmem:[#allocation2 + $0x153] sm:$0xff] }
 0x783   :  { %15065 = vst [vmem:[#allocation782_spill] sm:$0xff] %v11983_v13  ;;  %v11990_v47 = vld [vmem:[#allocation2 + $0x154] sm:$0xff]  ;;  %v2891_v14 = vmax.f32 %v2795_v52, %v2843_v54  ;;  %7268 = vmatmul.msk.f32.gmra.mxu0 %vm1576_vm1, %v1537_v24  ;;  %v2747_v24 = vpop.f32.mrf.mxu3  ;;  %v15091_v13 = vld [vmem:[#allocation675_spill] sm:$0xff] }
 0x784   :  { %15066 = vst [vmem:[#allocation783_spill] sm:$0xff] %v11990_v47  ;;  %v1539_v23 = vld [vmem:[%s14125_s0 + $0x4f8] sm:$0xff]  ;;  %v1544_v8 = vld [vmem:[%s14125_s0 + $0x520] sm:$0xff] }
 0x785   :  { %3086 = vst [vmem:[#allocation2 + $0x160] sm:$0xff] %v3038_v26  ;;  %v2943_v61 = vadd.f32 %v11649_v53, %v2891_v14  ;;  %v15090_v47 = vld [vmem:[#allocation697_spill] sm:$0xff] }
 0x787   :  { %vm2991_vm7 = vcmp.gt.f32.partialorder %v2943_v61, 0.0 }
 0x788   :  { %v3039_v41 = vsel %vm2991_vm7, %v2943_v61, 0.0  ;;  %v2600_v42 = vpop.f32.mrf.mxu0 }
 0x789   :  { %3087 = vst [vmem:[#allocation2 + $0x168] sm:$0xff] %v3039_v41  ;;  %v2844_v50 = vmax.f32 %v2600_v42, %v2744_v25  ;;  %v2797_v25 = vmax.f32 %v11131_v27, %v11419_v60  ;;  %v15074_v27 = vld [vmem:[#allocation715_spill] sm:$0xff] }
 0x78b   :  { %v2892_v26 = vmax.f32 %v2796_v10, %v2844_v50  ;;  %7269 = vmatmul.msk.f32.gmra.mxu0 %vm1576_vm1, %v1538_v9 }
 0x78d   :  { %v12001_v57 = vadd.f32 %v11649_v53, %v2892_v26  ;;  %v1540_v26 = vld [vmem:[%s14125_s0 + $0x500] sm:$0xff] }
 0x78f   :  { %15067 = vst [vmem:[#allocation784_spill] sm:$0xff] %v12001_v57  ;;  %vm14152_vm11 = vcmp.gt.f32.partialorder %v12001_v57, 0.0 }
 0x790   :  { %v12007_v52 = vld [vmem:[#allocation2 + $0x161] sm:$0xff]  ;;  %v3040_v43 = vsel %vm14152_vm11, %v12001_v57, 0.0  ;;  %v2603_v14 = vpop.f32.mrf.mxu0  ;;  %v15072_v57 = vld [vmem:[#allocation693_spill] sm:$0xff] }
 0x791   :  { %15068 = vst [vmem:[#allocation785_spill] sm:$0xff] %v12007_v52  ;;  %v12009_v54 = vld [vmem:[#allocation2 + $0x162] sm:$0xff]  ;;  %v2845_v41 = vmax.f32 %v2603_v14, %v2747_v24 }
 0x792   :  { %15069 = vst [vmem:[#allocation786_spill] sm:$0xff] %v12009_v54  ;;  %v12011_v29 = vld [vmem:[#allocation2 + $0x163] sm:$0xff] }
 0x793   :  { %15070 = vst [vmem:[#allocation787_spill] sm:$0xff] %v12011_v29  ;;  %v12018_v61 = vld [vmem:[#allocation2 + $0x164] sm:$0xff]  ;;  %v2893_v42 = vmax.f32 %v2797_v25, %v2845_v41  ;;  %7270 = vmatmul.msk.f32.gmra.mxu0 %vm1576_vm1, %v1539_v23  ;;  %v15078_v41 = vld [vmem:[#allocation694_spill] sm:$0xff] }
 0x794   :  { %15071 = vst [vmem:[#allocation788_spill] sm:$0xff] %v12018_v61  ;;  %v15073_v29 = vld [vmem:[#allocation671_spill] sm:$0xff]  ;;  %v15083_v61 = vld [vmem:[#allocation673_spill] sm:$0xff] }
 0x795   :  { %3088 = vst [vmem:[#allocation2 + $0x170] sm:$0xff] %v3040_v43  ;;  %v2945_v9 = vadd.f32 %v11649_v53, %v2893_v42  ;;  %v2750_v54 = vmax.f32 %v15073_v29, %v15072_v57  ;;  %v1541_v23 = vld [vmem:[%s14125_s0 + $0x508] sm:$0xff]  ;;  %v15079_v42 = vld [vmem:[#allocation672_spill] sm:$0xff] }
 0x797   :  { %vm2993_vm15 = vcmp.gt.f32.partialorder %v2945_v9, 0.0 }
 0x798   :  { %v3041_v10 = vsel %vm2993_vm15, %v2945_v9, 0.0  ;;  %v2606_v50 = vpop.f32.mrf.mxu0  ;;  %v2751_v9 = vmax.f32 %v15079_v42, %v15078_v41  ;;  %v15084_v42 = vld [vmem:[#allocation717_spill] sm:$0xff] }
 0x799   :  { %3089 = vst [vmem:[#allocation2 + $0x178] sm:$0xff] %v3041_v10  ;;  %v2798_v60 = vmax.f32 %v15074_v27, %v2606_v50  ;;  %v15081_v50 = vld [vmem:[#allocation716_spill] sm:$0xff] }
 0x79b   :  { %v2846_v43 = vmax.f32 %v2750_v54, %v2798_v60  ;;  %7271 = vmatmul.msk.f32.gmra.mxu0 %vm1576_vm1, %v1540_v26 }
 0x79d   :  { %v12030_v24 = vadd.f32 %v11649_v53, %v2846_v43 }
 0x79f   :  { %vm2946_vm7 = vcmp.gt.f32.partialorder %v12030_v24, 0.0 }
 0x7a0   :  { %v12036_v14 = vld [vmem:[#allocation2 + $0x171] sm:$0xff]  ;;  %v2994_v54 = vsel %vm2946_vm7, %v12030_v24, 0.0  ;;  %v2609_v29 = vpop.f32.mrf.mxu0 }
 0x7a1   :  { %15075 = vst [vmem:[#allocation693_spill] sm:$0xff] %v12036_v14  ;;  %v12038_v25 = vld [vmem:[#allocation2 + $0x172] sm:$0xff]  ;;  %v2799_v26 = vmax.f32 %v15081_v50, %v2609_v29  ;;  %v15082_v14 = vld [vmem:[#allocation695_spill] sm:$0xff] }
 0x7a2   :  { %15076 = vst [vmem:[#allocation671_spill] sm:$0xff] %v12038_v25  ;;  %v12040_v57 = vld [vmem:[#allocation2 + $0x173] sm:$0xff]  ;;  %v1542_v25 = vld [vmem:[%s14125_s0 + $0x510] sm:$0xff]  ;;  %v2752_v41 = vmax.f32 %v15083_v61, %v15082_v14 }
 0x7a3   :  { %15077 = vst [vmem:[#allocation715_spill] sm:$0xff] %v12040_v57  ;;  %v12047_v10 = vld [vmem:[#allocation2 + $0x174] sm:$0xff]  ;;  %v2847_v27 = vmax.f32 %v2751_v9, %v2799_v26  ;;  %7272 = vmatmul.msk.f32.gmra.mxu0 %vm1576_vm1, %v1541_v23 }
 0x7a4   :  { %15080 = vst [vmem:[#allocation694_spill] sm:$0xff] %v12047_v10  ;;  %v1543_v29 = vld [vmem:[%s14125_s0 + $0x518] sm:$0xff] }
 0x7a5   :  { %3042 = vst [vmem:[#allocation2] sm:$0xff] %v2994_v54  ;;  %v2899_v60 = vadd.f32 %v11649_v53, %v2847_v27 }
 0x7a7   :  { %vm2947_vm15 = vcmp.gt.f32.partialorder %v2899_v60, 0.0 }
 0x7a8   :  { %v2995_v43 = vsel %vm2947_vm15, %v2899_v60, 0.0  ;;  %v2612_v57 = vpop.f32.mrf.mxu0  ;;  %v15089_v60 = vld [vmem:[#allocation718_spill] sm:$0xff] }
 0x7a9   :  { %3043 = vst [vmem:[#allocation2 + $0x8] sm:$0xff] %v2995_v43  ;;  %v2800_v54 = vmax.f32 %v15084_v42, %v2612_v57  ;;  %v15086_v57 = vld [vmem:[#allocation696_spill] sm:$0xff] }
 0x7ab   :  { %v2848_v10 = vmax.f32 %v2752_v41, %v2800_v54  ;;  %7273 = vmatmul.msk.f32.gmra.mxu0 %vm1576_vm1, %v1542_v25 }
 0x7ad   :  { %v12060_v23 = vadd.f32 %v11649_v53, %v2848_v10  ;;  %v15087_v10 = vld [vmem:[#allocation674_spill] sm:$0xff] }
 0x7ae   :  { %v2753_v26 = vmax.f32 %v15087_v10, %v15086_v57  ;;  %v2754_v57 = vmax.f32 %v15091_v13, %v15090_v47  ;;  %v15092_v10 = vld [vmem:[#allocation719_spill] sm:$0xff] }
 0x7af   :  { %vm2948_vm11 = vcmp.gt.f32.partialorder %v12060_v23, 0.0 }
 0x7b0   :  { %v12066_v9 = vld [vmem:[#allocation2 + $0x1] sm:$0xff]  ;;  %v2996_v14 = vsel %vm2948_vm11, %v12060_v23, 0.0  ;;  %v2615_v25 = vpop.f32.mrf.mxu0 }
 0x7b1   :  { %v12068_v50 = vld [vmem:[#allocation2 + $0x2] sm:$0xff]  ;;  %3044 = vst [vmem:[#allocation2 + $0x10] sm:$0xff] %v2996_v14  ;;  %v2801_v43 = vmax.f32 %v15089_v60, %v2615_v25 }
 0x7b2   :  { %v12070_v61 = vld [vmem:[#allocation2 + $0x3] sm:$0xff] }
 0x7b3   :  { %15085 = vst [vmem:[#allocation672_spill] sm:$0xff] %v12070_v61  ;;  %v12077_v27 = vld [vmem:[#allocation2 + $0x4] sm:$0xff]  ;;  %v2849_v41 = vmax.f32 %v2753_v26, %v2801_v43  ;;  %7274 = vmatmul.msk.f32.gmra.mxu0 %vm1576_vm1, %v1543_v29 }
 0x7b4   :  { %15088 = vst [vmem:[#allocation716_spill] sm:$0xff] %v12077_v27  ;;  %v1545_v25 = vld [vmem:[%s14125_s0 + $0x528] sm:$0xff] }
 0x7b5   :  { %v2901_v42 = vadd.f32 %v11649_v53, %v2849_v41  ;;  %v15153_v27 = vld [vmem:[#allocation731_spill] sm:$0xff] }
 0x7b7   :  { %vm2949_vm15 = vcmp.gt.f32.partialorder %v2901_v42, 0.0 }
 0x7b8   :  { %v2997_v54 = vsel %vm2949_vm15, %v2901_v42, 0.0  ;;  %v2618_v52 = vpop.f32.mrf.mxu0  ;;  %v15098_v42 = vld [vmem:[#allocation720_spill] sm:$0xff] }
 0x7b9   :  { %3045 = vst [vmem:[#allocation2 + $0x18] sm:$0xff] %v2997_v54  ;;  %v2802_v14 = vmax.f32 %v15092_v10, %v2618_v52  ;;  %v15095_v52 = vld [vmem:[#allocation698_spill] sm:$0xff] }
 0x7bb   :  { %v2850_v36 = vmax.f32 %v2754_v57, %v2802_v14  ;;  %7275 = vmatmul.msk.f32.gmra.mxu0 %vm1576_vm1, %v1544_v8 }
 0x7bd   :  { %v12090_v29 = vadd.f32 %v11649_v53, %v2850_v36  ;;  %v15096_v36 = vld [vmem:[#allocation676_spill] sm:$0xff] }
 0x7be   :  { %v2755_v43 = vmax.f32 %v15096_v36, %v15095_v52 }
 0x7bf   :  { %15093 = vst [vmem:[#allocation695_spill] sm:$0xff] %v12090_v29  ;;  %vm2950_vm2 = vcmp.gt.f32.partialorder %v12090_v29, 0.0 }
 0x7c0   :  { %v12096_v26 = vld [vmem:[#allocation2 + $0x11] sm:$0xff]  ;;  %v2998_v47 = vsel %vm2950_vm2, %v12090_v29, 0.0  ;;  %v2621_v8 = vpop.f32.mrf.mxu0 }
 0x7c1   :  { %v12098_v60 = vld [vmem:[#allocation2 + $0x12] sm:$0xff]  ;;  %3046 = vst [vmem:[#allocation2 + $0x20] sm:$0xff] %v2998_v47  ;;  %v2803_v54 = vmax.f32 %v15098_v42, %v2621_v8  ;;  %v15105_v42 = vld [vmem:[#allocation678_spill] sm:$0xff] }
 0x7c2   :  { %v12100_v13 = vld [vmem:[#allocation2 + $0x13] sm:$0xff] }
 0x7c3   :  { %15094 = vst [vmem:[#allocation673_spill] sm:$0xff] %v12100_v13  ;;  %v12107_v41 = vld [vmem:[#allocation2 + $0x14] sm:$0xff]  ;;  %v2851_v57 = vmax.f32 %v2755_v43, %v2803_v54  ;;  %7276 = vmatmul.msk.f32.gmra.mxu0 %vm1576_vm1, %v1545_v25 }
 0x7c4   :  { %15097 = vst [vmem:[#allocation717_spill] sm:$0xff] %v12107_v41 }
 0x7c5   :  { %v2903_v10 = vadd.f32 %v11649_v53, %v2851_v57 }
 0x7c7   :  { %vm2951_vm15 = vcmp.gt.f32.partialorder %v2903_v10, 0.0 }
 0x7c8   :  { %v2999_v14 = vsel %vm2951_vm15, %v2903_v10, 0.0  ;;  %v2624_v46 = vpop.f32.mrf.mxu0 }
 0x7c9   :  { %3047 = vst [vmem:[#allocation2 + $0x28] sm:$0xff] %v2999_v14  ;;  %v2804_v39 = vmax.f32 %v15101_v7, %v2624_v46  ;;  %v2757_v7 = vmax.f32 %v15105_v42, %v15104_v55 }
 0x7cb   :  { %v2852_v52 = vmax.f32 %v2756_v62, %v2804_v39  ;;  %v15107_v62 = vld [vmem:[#allocation722_spill] sm:$0xff] }
 0x7cd   :  { %v12116_v36 = vadd.f32 %v11649_v53, %v2852_v52  ;;  %v15108_v52 = vld [vmem:[#allocation701_spill] sm:$0xff] }
 0x7ce   :  { %v2758_v6 = vmax.f32 %v15109_v30, %v15108_v52  ;;  %v15118_v52 = vld [vmem:[#allocation703_spill] sm:$0xff] }
 0x7cf   :  { %15102 = vst [vmem:[#allocation696_spill] sm:$0xff] %v12116_v36  ;;  %vm2952_vm3 = vcmp.gt.f32.partialorder %v12116_v36, 0.0  ;;  %v2760_v16 = vmax.f32 %v15119_v31, %v15118_v52  ;;  %v15129_v52 = vld [vmem:[#allocation705_spill] sm:$0xff] }
 0x7d0   :  { %v12119_v47 = vld [vmem:[#allocation2 + $0x21] sm:$0xff]  ;;  %v3000_v43 = vsel %vm2952_vm3, %v12116_v36, 0.0  ;;  %v2627_v40 = vpop.f32.mrf.mxu0 }
 0x7d1   :  { %v12121_v25 = vld [vmem:[#allocation2 + $0x22] sm:$0xff]  ;;  %3048 = vst [vmem:[#allocation2 + $0x30] sm:$0xff] %v3000_v43  ;;  %v2805_v46 = vmax.f32 %v15107_v62, %v2627_v40  ;;  %v15114_v62 = vld [vmem:[#allocation702_spill] sm:$0xff] }
 0x7d2   :  { %v12123_v8 = vld [vmem:[#allocation2 + $0x23] sm:$0xff] }
 0x7d3   :  { %15103 = vst [vmem:[#allocation674_spill] sm:$0xff] %v12123_v8  ;;  %v12130_v39 = vld [vmem:[#allocation2 + $0x24] sm:$0xff]  ;;  %v2853_v54 = vmax.f32 %v2757_v7, %v2805_v46  ;;  %v15142_v8 = vld [vmem:[#allocation729_spill] sm:$0xff] }
 0x7d4   :  { %15106 = vst [vmem:[#allocation718_spill] sm:$0xff] %v12130_v39  ;;  %v15115_v46 = vld [vmem:[#allocation680_spill] sm:$0xff] }
 0x7d5   :  { %v2905_v57 = vadd.f32 %v11649_v53, %v2853_v54 }
 0x7d7   :  { %vm2953_vm1 = vcmp.gt.f32.partialorder %v2905_v57, 0.0 }
 0x7d8   :  { %v3001_v10 = vsel %vm2953_vm1, %v2905_v57, 0.0  ;;  %v2630_v14 = vpop.f32.mrf.mxu0 }
 0x7d9   :  { %3049 = vst [vmem:[#allocation2 + $0x38] sm:$0xff] %v3001_v10  ;;  %v2806_v38 = vmax.f32 %v15110_v63, %v2630_v14  ;;  %v2759_v63 = vmax.f32 %v15115_v46, %v15114_v62 }
 0x7db   :  { %v2854_v15 = vmax.f32 %v2758_v6, %v2806_v38 }
 0x7dd   :  { %v12138_v55 = vadd.f32 %v11649_v53, %v2854_v15  ;;  %v15117_v15 = vld [vmem:[#allocation724_spill] sm:$0xff] }
 0x7df   :  { %15111 = vst [vmem:[#allocation697_spill] sm:$0xff] %v12138_v55  ;;  %vm2954_vm15 = vcmp.gt.f32.partialorder %v12138_v55, 0.0 }
 0x7e0   :  { %v12141_v43 = vld [vmem:[#allocation2 + $0x31] sm:$0xff]  ;;  %v3002_v7 = vsel %vm2954_vm15, %v12138_v55, 0.0  ;;  %v2633_v30 = vpop.f32.mrf.mxu0 }
 0x7e1   :  { %15112 = vst [vmem:[#allocation675_spill] sm:$0xff] %v12141_v43  ;;  %v12143_v40 = vld [vmem:[#allocation2 + $0x32] sm:$0xff]  ;;  %v2807_v6 = vmax.f32 %v15117_v15, %v2633_v30  ;;  %v15125_v15 = vld [vmem:[#allocation704_spill] sm:$0xff] }
 0x7e2   :  { %v12145_v42 = vld [vmem:[#allocation2 + $0x33] sm:$0xff]  ;;  %3050 = vst [vmem:[#allocation2 + $0x40] sm:$0xff] %v3002_v7 }
 0x7e3   :  { %15113 = vst [vmem:[#allocation719_spill] sm:$0xff] %v12145_v42  ;;  %v12152_v38 = vld [vmem:[#allocation2 + $0x34] sm:$0xff]  ;;  %v2855_v54 = vmax.f32 %v2759_v63, %v2807_v6 }
 0x7e4   :  { %15116 = vst [vmem:[#allocation698_spill] sm:$0xff] %v12152_v38  ;;  %v15126_v6 = vld [vmem:[#allocation682_spill] sm:$0xff]  ;;  %v15131_v38 = vld [vmem:[#allocation727_spill] sm:$0xff] }
 0x7e5   :  { %v2907_v57 = vadd.f32 %v11649_v53, %v2855_v54 }
 0x7e7   :  { %vm2955_vm1 = vcmp.gt.f32.partialorder %v2907_v57, 0.0 }
 0x7e8   :  { %v3003_v10 = vsel %vm2955_vm1, %v2907_v57, 0.0  ;;  %v2636_v14 = vpop.f32.mrf.mxu0 }
 0x7e9   :  { %3051 = vst [vmem:[#allocation2 + $0x48] sm:$0xff] %v3003_v10  ;;  %v2808_v44 = vmax.f32 %v15120_v0, %v2636_v14  ;;  %v2761_v0 = vmax.f32 %v15126_v6, %v15125_v15 }
 0x7eb   :  { %v2856_v28 = vmax.f32 %v2760_v16, %v2808_v44 }
 0x7ed   :  { %v12160_v62 = vadd.f32 %v11649_v53, %v2856_v28  ;;  %v15128_v28 = vld [vmem:[#allocation726_spill] sm:$0xff] }
 0x7ef   :  { %15121 = vst [vmem:[#allocation676_spill] sm:$0xff] %v12160_v62  ;;  %vm2956_vm13 = vcmp.gt.f32.partialorder %v12160_v62, 0.0 }
 0x7f0   :  { %v12163_v7 = vld [vmem:[#allocation2 + $0x41] sm:$0xff]  ;;  %v3004_v63 = vsel %vm2956_vm13, %v12160_v62, 0.0  ;;  %v2639_v31 = vpop.f32.mrf.mxu0 }
 0x7f1   :  { %15122 = vst [vmem:[#allocation720_spill] sm:$0xff] %v12163_v7  ;;  %v12165_v30 = vld [vmem:[#allocation2 + $0x42] sm:$0xff]  ;;  %v2809_v16 = vmax.f32 %v15128_v28, %v2639_v31  ;;  %v15136_v28 = vld [vmem:[#allocation706_spill] sm:$0xff] }
 0x7f2   :  { %15123 = vst [vmem:[#allocation699_spill] sm:$0xff] %v12165_v30  ;;  %v12167_v46 = vld [vmem:[#allocation2 + $0x43] sm:$0xff] }
 0x7f3   :  { %15124 = vst [vmem:[#allocation677_spill] sm:$0xff] %v12167_v46  ;;  %v12174_v44 = vld [vmem:[#allocation2 + $0x44] sm:$0xff]  ;;  %v2857_v54 = vmax.f32 %v2761_v0, %v2809_v16  ;;  %v2762_v46 = vmax.f32 %v15130_v58, %v15129_v52 }
 0x7f4   :  { %15127 = vst [vmem:[#allocation721_spill] sm:$0xff] %v12174_v44  ;;  %v15137_v16 = vld [vmem:[#allocation684_spill] sm:$0xff]  ;;  %v15140_v52 = vld [vmem:[#allocation707_spill] sm:$0xff] }
 0x7f5   :  { %3052 = vst [vmem:[#allocation2 + $0x50] sm:$0xff] %v3004_v63  ;;  %v2909_v57 = vadd.f32 %v11649_v53, %v2857_v54 }
 0x7f7   :  { %vm2957_vm1 = vcmp.gt.f32.partialorder %v2909_v57, 0.0 }
 0x7f8   :  { %v3005_v10 = vsel %vm2957_vm1, %v2909_v57, 0.0  ;;  %v2642_v14 = vpop.f32.mrf.mxu0 }
 0x7f9   :  { %3053 = vst [vmem:[#allocation2 + $0x58] sm:$0xff] %v3005_v10  ;;  %v2810_v42 = vmax.f32 %v15131_v38, %v2642_v14  ;;  %v2763_v38 = vmax.f32 %v15137_v16, %v15136_v28 }
 0x7fb   :  { %v2858_v39 = vmax.f32 %v2762_v46, %v2810_v42 }
 0x7fd   :  { %v12182_v15 = vadd.f32 %v11649_v53, %v2858_v39  ;;  %v15139_v39 = vld [vmem:[#allocation728_spill] sm:$0xff] }
 0x7ff   :  { %15132 = vst [vmem:[#allocation700_spill] sm:$0xff] %v12182_v15  ;;  %vm2958_vm9 = vcmp.gt.f32.partialorder %v12182_v15, 0.0 }
 0x800   :  { %v12185_v63 = vld [vmem:[#allocation2 + $0x51] sm:$0xff]  ;;  %v3006_v0 = vsel %vm2958_vm9, %v12182_v15, 0.0  ;;  %v2645_v58 = vpop.f32.mrf.mxu0 }
 0x801   :  { %15133 = vst [vmem:[#allocation678_spill] sm:$0xff] %v12185_v63  ;;  %v12187_v31 = vld [vmem:[#allocation2 + $0x52] sm:$0xff]  ;;  %v2811_v46 = vmax.f32 %v15139_v39, %v2645_v58  ;;  %v15147_v39 = vld [vmem:[#allocation708_spill] sm:$0xff] }
 0x802   :  { %15134 = vst [vmem:[#allocation722_spill] sm:$0xff] %v12187_v31  ;;  %v12189_v6 = vld [vmem:[#allocation2 + $0x53] sm:$0xff] }
 0x803   :  { %15135 = vst [vmem:[#allocation701_spill] sm:$0xff] %v12189_v6  ;;  %v12196_v42 = vld [vmem:[#allocation2 + $0x54] sm:$0xff]  ;;  %v2859_v54 = vmax.f32 %v2763_v38, %v2811_v46 }
 0x804   :  { %15138 = vst [vmem:[#allocation679_spill] sm:$0xff] %v12196_v42  ;;  %v15141_v6 = vld [vmem:[#allocation685_spill] sm:$0xff]  ;;  %v15148_v46 = vld [vmem:[#allocation686_spill] sm:$0xff] }
 0x805   :  { %3054 = vst [vmem:[#allocation2 + $0x60] sm:$0xff] %v3006_v0  ;;  %v2911_v57 = vadd.f32 %v11649_v53, %v2859_v54  ;;  %v2764_v44 = vmax.f32 %v15141_v6, %v15140_v52  ;;  %v15151_v52 = vld [vmem:[#allocation709_spill] sm:$0xff] }
 0x807   :  { %vm2959_vm1 = vcmp.gt.f32.partialorder %v2911_v57, 0.0 }
 0x808   :  { %v3007_v10 = vsel %vm2959_vm1, %v2911_v57, 0.0  ;;  %v2648_v14 = vpop.f32.mrf.mxu0 }
 0x809   :  { %3055 = vst [vmem:[#allocation2 + $0x68] sm:$0xff] %v3007_v10  ;;  %v2812_v41 = vmax.f32 %v15142_v8, %v2648_v14  ;;  %v2765_v8 = vmax.f32 %v15148_v46, %v15147_v39  ;;  %v7317_v39 = vld [vmem:[%s14127_s2] ss:$0 sm:$0xff] }
 0x80b   :  { %v2860_v13 = vmax.f32 %v2764_v44, %v2812_v41 }
 0x80d   :  { %v12204_v28 = vadd.f32 %v11649_v53, %v2860_v13  ;;  %v15150_v13 = vld [vmem:[#allocation730_spill] sm:$0xff] }
 0x80f   :  { %15143 = vst [vmem:[#allocation723_spill] sm:$0xff] %v12204_v28  ;;  %vm2960_vm5 = vcmp.gt.f32.partialorder %v12204_v28, 0.0 }
 0x810   :  { %v12207_v0 = vld [vmem:[#allocation2 + $0x61] sm:$0xff]  ;;  %v3008_v38 = vsel %vm2960_vm5, %v12204_v28, 0.0  ;;  %v2651_v6 = vpop.f32.mrf.mxu0 }
 0x811   :  { %15144 = vst [vmem:[#allocation702_spill] sm:$0xff] %v12207_v0  ;;  %v12209_v58 = vld [vmem:[#allocation2 + $0x62] sm:$0xff]  ;;  %v2813_v44 = vmax.f32 %v15150_v13, %v2651_v6 }
 0x812   :  { %15145 = vst [vmem:[#allocation680_spill] sm:$0xff] %v12209_v58  ;;  %v12211_v16 = vld [vmem:[#allocation2 + $0x63] sm:$0xff] }
 0x813   :  { %15146 = vst [vmem:[#allocation724_spill] sm:$0xff] %v12211_v16  ;;  %v12218_v41 = vld [vmem:[#allocation2 + $0x64] sm:$0xff]  ;;  %v2861_v54 = vmax.f32 %v2765_v8, %v2813_v44 }
 0x814   :  { %15149 = vst [vmem:[#allocation703_spill] sm:$0xff] %v12218_v41  ;;  %v15152_v16 = vld [vmem:[#allocation687_spill] sm:$0xff] }
 0x815   :  { %3056 = vst [vmem:[#allocation2 + $0x70] sm:$0xff] %v3008_v38  ;;  %v2913_v57 = vadd.f32 %v11649_v53, %v2861_v54  ;;  %v2766_v42 = vmax.f32 %v15152_v16, %v15151_v52  ;;  %v15162_v52 = vld [vmem:[#allocation711_spill] sm:$0xff] }
 0x817   :  { %vm2961_vm1 = vcmp.gt.f32.partialorder %v2913_v57, 0.0 }
 0x818   :  { %v3009_v10 = vsel %vm2961_vm1, %v2913_v57, 0.0  ;;  %v2654_v14 = vpop.f32.mrf.mxu0 }
 0x819   :  { %3057 = vst [vmem:[#allocation2 + $0x78] sm:$0xff] %v3009_v10  ;;  %v2814_v61 = vmax.f32 %v15153_v27, %v2654_v14 }
 0x81b   :  { %v2862_v22 = vmax.f32 %v2766_v42, %v2814_v61  ;;  %v15158_v61 = vld [vmem:[#allocation710_spill] sm:$0xff]  ;;  %v15159_v42 = vld [vmem:[#allocation688_spill] sm:$0xff] }
 0x81c   :  { %v2767_v8 = vmax.f32 %v15159_v42, %v15158_v61 }
 0x81d   :  { %v12228_v38 = vadd.f32 %v7317_v39, %v2862_v22  ;;  %v15161_v22 = vld [vmem:[#allocation732_spill] sm:$0xff] }
 0x81f   :  { %15154 = vst [vmem:[#allocation681_spill] sm:$0xff] %v12228_v38  ;;  %vm14200_vm0 = vcmp.gt.f32.partialorder %v12228_v38, 0.0 }
 0x820   :  { %v12231_v6 = vld [vmem:[#allocation2 + $0x71] sm:$0xff]  ;;  %v3010_v16 = vsel %vm14200_vm0, %v12228_v38, 0.0  ;;  %v2657_v27 = vpop.f32.mrf.mxu0 }
 0x821   :  { %15155 = vst [vmem:[#allocation725_spill] sm:$0xff] %v12231_v6  ;;  %v12233_v53 = vld [vmem:[#allocation2 + $0x72] sm:$0xff]  ;;  %v2815_v44 = vmax.f32 %v15161_v22, %v2657_v27  ;;  %v15170_v22 = vld [vmem:[#allocation690_spill] sm:$0xff] }
 0x822   :  { %15156 = vst [vmem:[#allocation704_spill] sm:$0xff] %v12233_v53  ;;  %v12235_v46 = vld [vmem:[#allocation2 + $0x73] sm:$0xff] }
 0x823   :  { %15157 = vst [vmem:[#allocation682_spill] sm:$0xff] %v12235_v46  ;;  %v12242_v13 = vld [vmem:[#allocation2 + $0x74] sm:$0xff]  ;;  %v2863_v54 = vmax.f32 %v2767_v8, %v2815_v44 }
 0x824   :  { %15160 = vst [vmem:[#allocation726_spill] sm:$0xff] %v12242_v13  ;;  %v15163_v46 = vld [vmem:[#allocation689_spill] sm:$0xff] }
 0x825   :  { %3058 = vst [vmem:[#allocation2 + $0x80] sm:$0xff] %v3010_v16  ;;  %v2915_v57 = vadd.f32 %v7317_v39, %v2863_v54  ;;  %v2768_v41 = vmax.f32 %v15163_v46, %v15162_v52  ;;  %v15169_v46 = vld [vmem:[#allocation712_spill] sm:$0xff]  ;;  %v15174_v52 = vld [vmem:[#allocation691_spill] sm:$0xff] }
 0x826   :  { %v2769_v44 = vmax.f32 %v15170_v22, %v15169_v46 }
 0x827   :  { %vm2963_vm1 = vcmp.gt.f32.partialorder %v2915_v57, 0.0 }
 0x828   :  { %v3011_v10 = vsel %vm2963_vm1, %v2915_v57, 0.0  ;;  %v2660_v14 = vpop.f32.mrf.mxu0 }
 0x829   :  { %3059 = vst [vmem:[#allocation2 + $0x88] sm:$0xff] %v3011_v10  ;;  %v2816_v38 = vmax.f32 %v15164_v32, %v2660_v14  ;;  %v15173_v14 = vld [vmem:[#allocation713_spill] sm:$0xff] }
 0x82b   :  { %v2864_v51 = vmax.f32 %v2768_v41, %v2816_v38 }
 0x82d   :  { %v12248_v18 = vadd.f32 %v7317_v39, %v2864_v51  ;;  %v15172_v51 = vld [vmem:[#allocation734_spill] sm:$0xff] }
 0x82f   :  { %15165 = vst [vmem:[#allocation705_spill] sm:$0xff] %v12248_v18  ;;  %vm14207_vm0 = vcmp.gt.f32.partialorder %v12248_v18, 0.0 }
 0x830   :  { %v12251_v61 = vld [vmem:[#allocation2 + $0x81] sm:$0xff]  ;;  %v3012_v42 = vsel %vm14207_vm0, %v12248_v18, 0.0  ;;  %v2663_v8 = vpop.f32.mrf.mxu0 }
 0x831   :  { %15166 = vst [vmem:[#allocation683_spill] sm:$0xff] %v12251_v61  ;;  %v12253_v16 = vld [vmem:[#allocation2 + $0x82] sm:$0xff]  ;;  %v2817_v41 = vmax.f32 %v15172_v51, %v2663_v8  ;;  %v15180_v51 = vld [vmem:[#allocation714_spill] sm:$0xff] }
 0x832   :  { %15167 = vst [vmem:[#allocation727_spill] sm:$0xff] %v12253_v16  ;;  %v12255_v27 = vld [vmem:[#allocation2 + $0x83] sm:$0xff] }
 0x833   :  { %15168 = vst [vmem:[#allocation706_spill] sm:$0xff] %v12255_v27  ;;  %v12262_v32 = vld [vmem:[#allocation2 + $0x84] sm:$0xff]  ;;  %v2865_v38 = vmax.f32 %v2769_v44, %v2817_v41  ;;  %v2770_v27 = vmax.f32 %v15174_v52, %v15173_v14 }
 0x834   :  { %15171 = vst [vmem:[#allocation684_spill] sm:$0xff] %v12262_v32  ;;  %v15175_v16 = vld [vmem:[#allocation735_spill] sm:$0xff]  ;;  %v15181_v41 = vld [vmem:[#allocation692_spill] sm:$0xff] }
 0x835   :  { %3060 = vst [vmem:[#allocation2 + $0x90] sm:$0xff] %v3012_v42  ;;  %v2917_v54 = vadd.f32 %v7317_v39, %v2865_v38  ;;  %v2771_v38 = vmax.f32 %v15181_v41, %v15180_v51  ;;  %v15189_v51 = vld [vmem:[#allocation46_spill] sm:$0xff] }
 0x836   :  { %4482 = vmatpush.msrb.mxu2 %v15189_v51 }
 0x837   :  { %vm2965_vm1 = vcmp.gt.f32.partialorder %v2917_v54, 0.0 }
 0x838   :  { %v3013_v57 = vsel %vm2965_vm1, %v2917_v54, 0.0  ;;  %v2666_v10 = vpop.f32.mrf.mxu0 }
 0x839   :  { %3061 = vst [vmem:[#allocation2 + $0x98] sm:$0xff] %v3013_v57  ;;  %v2818_v18 = vmax.f32 %v15175_v16, %v2666_v10 }
 0x83b   :  { %v2866_v61 = vmax.f32 %v2770_v27, %v2818_v18  ;;  %v15183_v18 = vld [vmem:[#allocation736_spill] sm:$0xff] }
 0x83d   :  { %v12268_v13 = vadd.f32 %v7317_v39, %v2866_v61 }
 0x83f   :  { %15176 = vst [vmem:[#allocation728_spill] sm:$0xff] %v12268_v13  ;;  %vm2966_vm0 = vcmp.gt.f32.partialorder %v12268_v13, 0.0 }
 0x840   :  { %v12271_v46 = vld [vmem:[#allocation2 + $0x91] sm:$0xff]  ;;  %v3014_v22 = vsel %vm2966_vm0, %v12268_v13, 0.0  ;;  %v2669_v44 = vpop.f32.mrf.mxu0 }
 0x841   :  { %15177 = vst [vmem:[#allocation707_spill] sm:$0xff] %v12271_v46  ;;  %v12273_v42 = vld [vmem:[#allocation2 + $0x92] sm:$0xff]  ;;  %v2819_v61 = vmax.f32 %v15183_v18, %v2669_v44 }
 0x842   :  { %15178 = vst [vmem:[#allocation685_spill] sm:$0xff] %v12273_v42  ;;  %v12275_v8 = vld [vmem:[#allocation2 + $0x93] sm:$0xff] }
 0x843   :  { %15179 = vst [vmem:[#allocation729_spill] sm:$0xff] %v12275_v8  ;;  %v12282_v16 = vld [vmem:[#allocation2 + $0x94] sm:$0xff]  ;;  %v2867_v27 = vmax.f32 %v2771_v38, %v2819_v61 }
 0x844   :  { %15182 = vst [vmem:[#allocation708_spill] sm:$0xff] %v12282_v16  ;;  %v15188_v8 = vld [vmem:[#allocation30_spill] sm:$0xff] }
 0x845   :  { %3062 = vst [vmem:[#allocation2 + $0xa0] sm:$0xff] %v3014_v22  ;;  %v2919_v54 = vadd.f32 %v7317_v39, %v2867_v27  ;;  %4417 = vmatpush.msra.mxu1 %v15188_v8 }
 0x847   :  { %vm2967_vm1 = vcmp.gt.f32.partialorder %v2919_v54, 0.0 }
 0x848   :  { %v3015_v57 = vsel %vm2967_vm1, %v2919_v54, 0.0 }
 0x849   :  { %3063 = vst [vmem:[#allocation2 + $0xa8] sm:$0xff] %v3015_v57 }
 0x850   :  { %v12285_v10 = vld [vmem:[#allocation2 + $0xa1] sm:$0xff] }
 0x851   :  { %15184 = vst [vmem:[#allocation686_spill] sm:$0xff] %v12285_v10  ;;  %v12287_v14 = vld [vmem:[#allocation2 + $0xa2] sm:$0xff] }
 0x852   :  { %15185 = vst [vmem:[#allocation730_spill] sm:$0xff] %v12287_v14  ;;  %v12289_v52 = vld [vmem:[#allocation2 + $0xa3] sm:$0xff] }
 0x853   :  { %15186 = vst [vmem:[#allocation709_spill] sm:$0xff] %v12289_v52  ;;  %v12291_v13 = vld [vmem:[#allocation2 + $0xa4] sm:$0xff] }
 0x854   :  { %15187 = vst [vmem:[#allocation687_spill] sm:$0xff] %v12291_v13 }
 0x855   :  { %7426 = dma.done.wait [#allocation7], 51200 }
 0x856   :  { %7427 = vsyncadd [#allocation7], 4294916096  ;;  %v15190_v22 = vld [vmem:[#allocation62_spill] sm:$0xff]  ;;  %v15191_v39 = vld [vmem:[#allocation29_spill] sm:$0xff] }
 0x857   :  { %4547 = vmatpush.msrb.mxu3 %v15190_v22  ;;  %4418 = vmatpush.msra.mxu1 %v15191_v39  ;;  %v15192_v44 = vld [vmem:[#allocation45_spill] sm:$0xff]  ;;  %v15194_v38 = vld [vmem:[#allocation28_spill] sm:$0xff]  ;;  %v15197_v27 = vld [vmem:[#allocation27_spill] sm:$0xff] }
 0x858   :  { %4483 = vmatpush.msrb.mxu2 %v15192_v44  ;;  %v15193_v41 = vld [vmem:[#allocation61_spill] sm:$0xff]  ;;  %v15195_v18 = vld [vmem:[#allocation44_spill] sm:$0xff]  ;;  %v15198_v8 = vld [vmem:[#allocation43_spill] sm:$0xff] }
 0x859   :  { %4548 = vmatpush.msrb.mxu3 %v15193_v41  ;;  %4419 = vmatpush.msra.mxu1 %v15194_v38  ;;  %v15196_v61 = vld [vmem:[#allocation60_spill] sm:$0xff]  ;;  %v15199_v54 = vld [vmem:[#allocation59_spill] sm:$0xff]  ;;  %v15200_v57 = vld [vmem:[#allocation26_spill] sm:$0xff] }
 0x85a   :  { %4484 = vmatpush.msrb.mxu2 %v15195_v18  ;;  %v15201_v51 = vld [vmem:[#allocation42_spill] sm:$0xff]  ;;  %v15203_v39 = vld [vmem:[#allocation25_spill] sm:$0xff]  ;;  %v15206_v38 = vld [vmem:[#allocation24_spill] sm:$0xff] }
 0x85b   :  { %4549 = vmatpush.msrb.mxu3 %v15196_v61  ;;  %4420 = vmatpush.msra.mxu1 %v15197_v27  ;;  %v15202_v22 = vld [vmem:[#allocation58_spill] sm:$0xff]  ;;  %v15204_v44 = vld [vmem:[#allocation41_spill] sm:$0xff]  ;;  %v15207_v18 = vld [vmem:[#allocation40_spill] sm:$0xff] }
 0x85c   :  { %4485 = vmatpush.msrb.mxu2 %v15198_v8  ;;  %v15205_v41 = vld [vmem:[#allocation57_spill] sm:$0xff]  ;;  %v15208_v61 = vld [vmem:[#allocation56_spill] sm:$0xff]  ;;  %v15209_v27 = vld [vmem:[#allocation23_spill] sm:$0xff] }
 0x85d   :  { %4550 = vmatpush.msrb.mxu3 %v15199_v54  ;;  %4421 = vmatpush.msra.mxu1 %v15200_v57  ;;  %v15210_v8 = vld [vmem:[#allocation39_spill] sm:$0xff]  ;;  %v15212_v57 = vld [vmem:[#allocation22_spill] sm:$0xff]  ;;  %v15358_v13 = vld [vmem:[#allocation168_spill] sm:$0xff] }
 0x85e   :  { %4486 = vmatpush.msrb.mxu2 %v15201_v51  ;;  %v15211_v54 = vld [vmem:[#allocation55_spill] sm:$0xff]  ;;  %v15213_v51 = vld [vmem:[#allocation38_spill] sm:$0xff]  ;;  %v15360_v52 = vld [vmem:[#allocation184_spill] sm:$0xff] }
 0x85f   :  { %4551 = vmatpush.msrb.mxu3 %v15202_v22  ;;  %4422 = vmatpush.msra.mxu1 %v15203_v39  ;;  %v15214_v22 = vld [vmem:[#allocation54_spill] sm:$0xff]  ;;  %v15215_v39 = vld [vmem:[#allocation21_spill] sm:$0xff]  ;;  %v15361_v14 = vld [vmem:[#allocation167_spill] sm:$0xff] }
 0x860   :  { %4487 = vmatpush.msrb.mxu2 %v15204_v44  ;;  %v15216_v44 = vld [vmem:[#allocation37_spill] sm:$0xff]  ;;  %v15370_v10 = vld [vmem:[#allocation164_spill] sm:$0xff]  ;;  %v15373_v16 = vld [vmem:[#allocation163_spill] sm:$0xff] }
 0x861   :  { %4552 = vmatpush.msrb.mxu3 %v15205_v41  ;;  %4423 = vmatpush.msra.mxu1 %v15206_v38  ;;  %v15217_v41 = vld [vmem:[#allocation53_spill] sm:$0xff]  ;;  %v15218_v38 = vld [vmem:[#allocation20_spill] sm:$0xff]  ;;  %v15374_v42 = vld [vmem:[#allocation198_spill] sm:$0xff] }
 0x862   :  { %4488 = vmatpush.msrb.mxu2 %v15207_v18  ;;  %v15219_v18 = vld [vmem:[#allocation36_spill] sm:$0xff]  ;;  %v15385_v32 = vld [vmem:[#allocation159_spill] sm:$0xff] }
 0x863   :  { %4553 = vmatpush.msrb.mxu3 %v15208_v61  ;;  %4424 = vmatpush.msra.mxu1 %v15209_v27  ;;  %v15220_v61 = vld [vmem:[#allocation52_spill] sm:$0xff]  ;;  %v15221_v27 = vld [vmem:[#allocation19_spill] sm:$0xff] }
 0x864   :  { %4489 = vmatpush.msrb.mxu2 %v15210_v8  ;;  %v15222_v8 = vld [vmem:[#allocation35_spill] sm:$0xff]  ;;  %v15382_v46 = vld [vmem:[#allocation160_spill] sm:$0xff] }
 0x865   :  { %4554 = vmatpush.msrb.mxu3 %v15211_v54  ;;  %4425 = vmatpush.msra.mxu1 %v15212_v57  ;;  %v15223_v54 = vld [vmem:[#allocation51_spill] sm:$0xff]  ;;  %v15224_v57 = vld [vmem:[#allocation18_spill] sm:$0xff] }
 0x866   :  { %4490 = vmatpush.msrb.mxu2 %v15213_v51  ;;  %v15225_v51 = vld [vmem:[#allocation34_spill] sm:$0xff] }
 0x867   :  { %4555 = vmatpush.msrb.mxu3 %v15214_v22  ;;  %4426 = vmatpush.msra.mxu1 %v15215_v39  ;;  %v15226_v22 = vld [vmem:[#allocation50_spill] sm:$0xff]  ;;  %v15227_v39 = vld [vmem:[#allocation17_spill] sm:$0xff] }
 0x868   :  { %4491 = vmatpush.msrb.mxu2 %v15216_v44  ;;  %v15228_v44 = vld [vmem:[#allocation33_spill] sm:$0xff] }
 0x869   :  { %4556 = vmatpush.msrb.mxu3 %v15217_v41  ;;  %4427 = vmatpush.msra.mxu1 %v15218_v38  ;;  %v15229_v41 = vld [vmem:[#allocation49_spill] sm:$0xff]  ;;  %v15230_v38 = vld [vmem:[#allocation16_spill] sm:$0xff] }
 0x86a   :  { %4492 = vmatpush.msrb.mxu2 %v15219_v18  ;;  %v15231_v18 = vld [vmem:[#allocation32_spill] sm:$0xff] }
 0x86b   :  { %4557 = vmatpush.msrb.mxu3 %v15220_v61  ;;  %4428 = vmatpush.msra.mxu1 %v15221_v27  ;;  %v15232_v61 = vld [vmem:[#allocation48_spill] sm:$0xff]  ;;  %v15233_v27 = vld [vmem:[#allocation15_spill] sm:$0xff] }
 0x86c   :  { %4493 = vmatpush.msrb.mxu2 %v15222_v8  ;;  %v15234_v8 = vld [vmem:[#allocation31_spill] sm:$0xff] }
 0x86d   :  { %4558 = vmatpush.msrb.mxu3 %v15223_v54  ;;  %4429 = vmatpush.msra.mxu1 %v15224_v57  ;;  %v15235_v54 = vld [vmem:[#allocation78_spill] sm:$0xff]  ;;  %v15236_v57 = vld [vmem:[#allocation47_spill] sm:$0xff] }
 0x86e   :  { %4494 = vmatpush.msrb.mxu2 %v15225_v51  ;;  %v15237_v51 = vld [vmem:[#allocation94_spill] sm:$0xff] }
 0x86f   :  { %4559 = vmatpush.msrb.mxu3 %v15226_v22  ;;  %4430 = vmatpush.msra.mxu1 %v15227_v39  ;;  %v15238_v22 = vld [vmem:[#allocation77_spill] sm:$0xff]  ;;  %v15239_v39 = vld [vmem:[#allocation110_spill] sm:$0xff] }
 0x870   :  { %4495 = vmatpush.msrb.mxu2 %v15228_v44  ;;  %v15240_v44 = vld [vmem:[#allocation93_spill] sm:$0xff] }
 0x871   :  { %4560 = vmatpush.msrb.mxu3 %v15229_v41  ;;  %4431 = vmatpush.msra.mxu1 %v15230_v38  ;;  %v15241_v41 = vld [vmem:[#allocation76_spill] sm:$0xff]  ;;  %v15242_v38 = vld [vmem:[#allocation109_spill] sm:$0xff] }
 0x872   :  { %4496 = vmatpush.msrb.mxu2 %v15231_v18  ;;  %v15245_v18 = vld [vmem:[#allocation108_spill] sm:$0xff] }
 0x873   :  { %4561 = vmatpush.msrb.mxu3 %v15232_v61  ;;  %4432 = vmatpush.msra.mxu1 %v15233_v27  ;;  %v15247_v61 = vld [vmem:[#allocation91_spill] sm:$0xff]  ;;  %v15248_v27 = vld [vmem:[#allocation73_spill] sm:$0xff] }
 0x874   :  { %4497 = vmatpush.msrb.mxu2 %v15234_v8  ;;  %7322 = vmatmul.msk.f32.vlgmr.msra.gmra.mxu1 %vm2946_vm7, %v12030_v24  ;;  %v15243_v24 = vld [vmem:[#allocation92_spill] sm:$0xff]  ;;  %v15249_v8 = vld [vmem:[#allocation90_spill] sm:$0xff] }
 0x875   :  { %4498 = vmatmul.f32.vlgmr.msrb.gmra.mxu2 %v12066_v9  ;;  %4612 = vmatpush.msrb.mxu1 %v15235_v54  ;;  %v15244_v9 = vld [vmem:[#allocation75_spill] sm:$0xff] }
 0x876   :  { %4562 = vmatpush.msrb.mxu3 %v15236_v57  ;;  %4677 = vmatpush.msra.mxu2 %v15237_v51  ;;  %v15250_v54 = vld [vmem:[#allocation107_spill] sm:$0xff]  ;;  %v15251_v57 = vld [vmem:[#allocation72_spill] sm:$0xff]  ;;  %v15252_v51 = vld [vmem:[#allocation89_spill] sm:$0xff] }
 0x877   :  { %4563 = vmatmul.f32.vlgmr.msrb.gmra.mxu3 %v12068_v50  ;;  %4613 = vmatpush.msrb.mxu1 %v15238_v22  ;;  %v15246_v50 = vld [vmem:[#allocation74_spill] sm:$0xff] }
 0x878   :  { %4742 = vmatpush.msra.mxu3 %v15239_v39  ;;  %4678 = vmatpush.msra.mxu2 %v15240_v44  ;;  %v15253_v22 = vld [vmem:[#allocation106_spill] sm:$0xff]  ;;  %v15254_v39 = vld [vmem:[#allocation71_spill] sm:$0xff]  ;;  %v15255_v44 = vld [vmem:[#allocation88_spill] sm:$0xff] }
 0x879   :  { %4614 = vmatpush.msrb.mxu1 %v15241_v41  ;;  %v15256_v41 = vld [vmem:[#allocation70_spill] sm:$0xff] }
 0x87a   :  { %4743 = vmatpush.msra.mxu3 %v15242_v38  ;;  %4679 = vmatpush.msra.mxu2 %v15243_v24  ;;  %v15257_v38 = vld [vmem:[#allocation105_spill] sm:$0xff]  ;;  %v15258_v24 = vld [vmem:[#allocation87_spill] sm:$0xff] }
 0x87b   :  { %4615 = vmatpush.msrb.mxu1 %v15244_v9  ;;  %v15259_v9 = vld [vmem:[#allocation69_spill] sm:$0xff] }
 0x87c   :  { %4744 = vmatpush.msra.mxu3 %v15245_v18  ;;  %7323 = vmatmul.msk.f32.gmra.mxu1 %vm2948_vm11, %v12060_v23  ;;  %v15260_v18 = vld [vmem:[#allocation104_spill] sm:$0xff] }
 0x87d   :  { %4501 = vmatmul.f32.gmra.mxu2 %v12096_v26  ;;  %4616 = vmatpush.msrb.mxu1 %v15246_v50  ;;  %v15261_v50 = vld [vmem:[#allocation86_spill] sm:$0xff] }
 0x87e   :  { %4680 = vmatpush.msra.mxu2 %v15247_v61  ;;  %4745 = vmatpush.msra.mxu3 %v15250_v54  ;;  %v15262_v61 = vld [vmem:[#allocation68_spill] sm:$0xff]  ;;  %v15265_v54 = vld [vmem:[#allocation67_spill] sm:$0xff] }
 0x87f   :  { %4566 = vmatmul.f32.gmra.mxu3 %v12098_v60  ;;  %4617 = vmatpush.msrb.mxu1 %v15248_v27  ;;  %v15263_v27 = vld [vmem:[#allocation103_spill] sm:$0xff] }
 0x880   :  { %4681 = vmatpush.msra.mxu2 %v15249_v8  ;;  %4746 = vmatpush.msra.mxu3 %v15253_v22  ;;  %v15264_v8 = vld [vmem:[#allocation85_spill] sm:$0xff]  ;;  %v15268_v22 = vld [vmem:[#allocation84_spill] sm:$0xff] }
 0x881   :  { %4618 = vmatpush.msrb.mxu1 %v15251_v57  ;;  %v15266_v57 = vld [vmem:[#allocation102_spill] sm:$0xff] }
 0x882   :  { %4682 = vmatpush.msra.mxu2 %v15252_v51  ;;  %4747 = vmatpush.msra.mxu3 %v15257_v38  ;;  %v15267_v51 = vld [vmem:[#allocation66_spill] sm:$0xff]  ;;  %v15272_v38 = vld [vmem:[#allocation64_spill] sm:$0xff] }
 0x883   :  { %4619 = vmatpush.msrb.mxu1 %v15254_v39  ;;  %v15269_v39 = vld [vmem:[#allocation65_spill] sm:$0xff] }
 0x884   :  { %4683 = vmatpush.msra.mxu2 %v15255_v44  ;;  %7324 = vmatmul.msk.f32.gmra.mxu1 %vm2950_vm2, %v12090_v29  ;;  %v15270_v44 = vld [vmem:[#allocation101_spill] sm:$0xff] }
 0x885   :  { %4504 = vmatmul.f32.gmra.mxu2 %v12119_v47  ;;  %4620 = vmatpush.msrb.mxu1 %v15256_v41  ;;  %v15271_v41 = vld [vmem:[#allocation83_spill] sm:$0xff] }
 0x886   :  { %4684 = vmatpush.msra.mxu2 %v15258_v24  ;;  %4748 = vmatpush.msra.mxu3 %v15260_v18  ;;  %v15273_v24 = vld [vmem:[#allocation100_spill] sm:$0xff]  ;;  %v15275_v18 = vld [vmem:[#allocation63_spill] sm:$0xff] }
 0x887   :  { %4569 = vmatmul.f32.gmra.mxu3 %v12121_v25  ;;  %4621 = vmatpush.msrb.mxu1 %v15259_v9  ;;  %v15274_v9 = vld [vmem:[#allocation82_spill] sm:$0xff] }
 0x888   :  { %4685 = vmatpush.msra.mxu2 %v15261_v50  ;;  %4749 = vmatpush.msra.mxu3 %v15263_v27  ;;  %v15276_v50 = vld [vmem:[#allocation99_spill] sm:$0xff]  ;;  %v15278_v27 = vld [vmem:[#allocation98_spill] sm:$0xff] }
 0x889   :  { %4622 = vmatpush.msrb.mxu1 %v15262_v61  ;;  %v15277_v61 = vld [vmem:[#allocation81_spill] sm:$0xff] }
 0x88a   :  { %4686 = vmatpush.msra.mxu2 %v15264_v8  ;;  %4750 = vmatpush.msra.mxu3 %v15266_v57  ;;  %v15279_v8 = vld [vmem:[#allocation126_spill] sm:$0xff]  ;;  %v15281_v57 = vld [vmem:[#allocation97_spill] sm:$0xff] }
 0x88b   :  { %4623 = vmatpush.msrb.mxu1 %v15265_v54  ;;  %v15280_v54 = vld [vmem:[#allocation80_spill] sm:$0xff] }
 0x88c   :  { %7325 = vmatmul.msk.f32.gmra.mxu1 %vm2952_vm3, %v12116_v36  ;;  %4687 = vmatpush.msra.mxu2 %v15268_v22  ;;  %v15283_v22 = vld [vmem:[#allocation79_spill] sm:$0xff] }
 0x88d   :  { %4507 = vmatmul.f32.gmra.mxu2 %v12141_v43  ;;  %4624 = vmatpush.msrb.mxu1 %v15267_v51  ;;  %v15282_v51 = vld [vmem:[#allocation125_spill] sm:$0xff] }
 0x88e   :  { %4751 = vmatpush.msra.mxu3 %v15270_v44  ;;  %4688 = vmatpush.msra.mxu2 %v15271_v41  ;;  %v15285_v44 = vld [vmem:[#allocation124_spill] sm:$0xff]  ;;  %v15286_v41 = vld [vmem:[#allocation142_spill] sm:$0xff] }
 0x88f   :  { %4572 = vmatmul.f32.gmra.mxu3 %v12143_v40  ;;  %4625 = vmatpush.msrb.mxu1 %v15269_v39  ;;  %v15284_v39 = vld [vmem:[#allocation96_spill] sm:$0xff] }
 0x890   :  { %4752 = vmatpush.msra.mxu3 %v15273_v24  ;;  %4689 = vmatpush.msra.mxu2 %v15274_v9  ;;  %v15288_v24 = vld [vmem:[#allocation123_spill] sm:$0xff]  ;;  %v15289_v9 = vld [vmem:[#allocation141_spill] sm:$0xff] }
 0x891   :  { %4626 = vmatpush.msrb.mxu1 %v15272_v38  ;;  %v15287_v38 = vld [vmem:[#allocation95_spill] sm:$0xff] }
 0x892   :  { %4753 = vmatpush.msra.mxu3 %v15276_v50  ;;  %4690 = vmatpush.msra.mxu2 %v15277_v61  ;;  %v15291_v50 = vld [vmem:[#allocation158_spill] sm:$0xff]  ;;  %v15292_v61 = vld [vmem:[#allocation140_spill] sm:$0xff] }
 0x893   :  { %4627 = vmatpush.msrb.mxu1 %v15275_v18  ;;  %v15290_v18 = vld [vmem:[#allocation122_spill] sm:$0xff] }
 0x894   :  { %7326 = vmatmul.msk.f32.gmra.mxu1 %vm2954_vm15, %v12138_v55  ;;  %4754 = vmatpush.msra.mxu3 %v15278_v27  ;;  %v15293_v27 = vld [vmem:[#allocation121_spill] sm:$0xff] }
 0x895   :  { %4510 = vmatmul.f32.gmra.mxu2 %v12163_v7  ;;  %4807 = vmatpush.msra.mxu1 %v15279_v8  ;;  %v15294_v8 = vld [vmem:[#allocation157_spill] sm:$0xff] }
 0x896   :  { %4691 = vmatpush.msra.mxu2 %v15280_v54  ;;  %4755 = vmatpush.msra.mxu3 %v15281_v57  ;;  %v15295_v54 = vld [vmem:[#allocation139_spill] sm:$0xff]  ;;  %v15296_v57 = vld [vmem:[#allocation120_spill] sm:$0xff] }
 0x897   :  { %4575 = vmatmul.f32.gmra.mxu3 %v12165_v30  ;;  %4808 = vmatpush.msra.mxu1 %v15282_v51  ;;  %v15297_v51 = vld [vmem:[#allocation156_spill] sm:$0xff] }
 0x898   :  { %4692 = vmatpush.msra.mxu2 %v15283_v22  ;;  %4756 = vmatpush.msra.mxu3 %v15284_v39  ;;  %v15298_v22 = vld [vmem:[#allocation119_spill] sm:$0xff]  ;;  %v15299_v39 = vld [vmem:[#allocation138_spill] sm:$0xff] }
 0x899   :  { %4809 = vmatpush.msra.mxu1 %v15285_v44  ;;  %v15300_v44 = vld [vmem:[#allocation118_spill] sm:$0xff] }
 0x89a   :  { %4872 = vmatpush.msrb.mxu2 %v15286_v41  ;;  %4757 = vmatpush.msra.mxu3 %v15287_v38  ;;  %v15301_v41 = vld [vmem:[#allocation155_spill] sm:$0xff]  ;;  %v15302_v38 = vld [vmem:[#allocation137_spill] sm:$0xff] }
 0x89b   :  { %4810 = vmatpush.msra.mxu1 %v15288_v24  ;;  %v15303_v24 = vld [vmem:[#allocation117_spill] sm:$0xff] }
 0x89c   :  { %7327 = vmatmul.msk.f32.gmra.mxu1 %vm2956_vm13, %v12160_v62  ;;  %4873 = vmatpush.msrb.mxu2 %v15289_v9  ;;  %v15304_v9 = vld [vmem:[#allocation154_spill] sm:$0xff] }
 0x89d   :  { %4513 = vmatmul.f32.gmra.mxu2 %v12185_v63  ;;  %4811 = vmatpush.msra.mxu1 %v15290_v18  ;;  %v15305_v18 = vld [vmem:[#allocation136_spill] sm:$0xff] }
 0x89e   :  { %4937 = vmatpush.msrb.mxu3 %v15291_v50  ;;  %4874 = vmatpush.msrb.mxu2 %v15292_v61  ;;  %v15306_v50 = vld [vmem:[#allocation116_spill] sm:$0xff]  ;;  %v15307_v61 = vld [vmem:[#allocation153_spill] sm:$0xff] }
 0x89f   :  { %4578 = vmatmul.f32.gmra.mxu3 %v12187_v31  ;;  %4812 = vmatpush.msra.mxu1 %v15293_v27  ;;  %v15308_v27 = vld [vmem:[#allocation115_spill] sm:$0xff] }
 0x8a0   :  { %4938 = vmatpush.msrb.mxu3 %v15294_v8  ;;  %4875 = vmatpush.msrb.mxu2 %v15295_v54  ;;  %v15309_v8 = vld [vmem:[#allocation135_spill] sm:$0xff]  ;;  %v15310_v54 = vld [vmem:[#allocation114_spill] sm:$0xff] }
 0x8a1   :  { %4813 = vmatpush.msra.mxu1 %v15296_v57  ;;  %v15311_v57 = vld [vmem:[#allocation152_spill] sm:$0xff] }
 0x8a2   :  { %4939 = vmatpush.msrb.mxu3 %v15297_v51  ;;  %4876 = vmatpush.msrb.mxu2 %v15299_v39  ;;  %v15312_v51 = vld [vmem:[#allocation134_spill] sm:$0xff]  ;;  %v15314_v39 = vld [vmem:[#allocation151_spill] sm:$0xff] }
 0x8a3   :  { %4814 = vmatpush.msra.mxu1 %v15298_v22  ;;  %v15313_v22 = vld [vmem:[#allocation113_spill] sm:$0xff] }
 0x8a4   :  { %7328 = vmatmul.msk.f32.gmra.mxu1 %vm2958_vm9, %v12182_v15  ;;  %4940 = vmatpush.msrb.mxu3 %v15301_v41  ;;  %v15316_v41 = vld [vmem:[#allocation112_spill] sm:$0xff] }
 0x8a5   :  { %4516 = vmatmul.f32.gmra.mxu2 %v12207_v0  ;;  %4815 = vmatpush.msra.mxu1 %v15300_v44  ;;  %v15315_v44 = vld [vmem:[#allocation133_spill] sm:$0xff] }
 0x8a6   :  { %4877 = vmatpush.msrb.mxu2 %v15302_v38  ;;  %4941 = vmatpush.msrb.mxu3 %v15304_v9  ;;  %v15317_v38 = vld [vmem:[#allocation150_spill] sm:$0xff]  ;;  %v15319_v9 = vld [vmem:[#allocation149_spill] sm:$0xff] }
 0x8a7   :  { %4581 = vmatmul.f32.gmra.mxu3 %v12209_v58  ;;  %4816 = vmatpush.msra.mxu1 %v15303_v24  ;;  %v15318_v24 = vld [vmem:[#allocation132_spill] sm:$0xff] }
 0x8a8   :  { %4878 = vmatpush.msrb.mxu2 %v15305_v18  ;;  %4942 = vmatpush.msrb.mxu3 %v15307_v61  ;;  %v15320_v18 = vld [vmem:[#allocation111_spill] sm:$0xff]  ;;  %v15322_v61 = vld [vmem:[#allocation148_spill] sm:$0xff] }
 0x8a9   :  { %4817 = vmatpush.msra.mxu1 %v15306_v50  ;;  %v15321_v50 = vld [vmem:[#allocation131_spill] sm:$0xff] }
 0x8aa   :  { %4879 = vmatpush.msrb.mxu2 %v15309_v8  ;;  %4943 = vmatpush.msrb.mxu3 %v15311_v57  ;;  %v15324_v8 = vld [vmem:[#allocation147_spill] sm:$0xff] }
 0x8ab   :  { %4818 = vmatpush.msra.mxu1 %v15308_v27  ;;  %v15323_v27 = vld [vmem:[#allocation130_spill] sm:$0xff]  ;;  %v15329_v57 = vld [vmem:[#allocation127_spill] sm:$0xff] }
 0x8ac   :  { %7329 = vmatmul.msk.f32.gmra.mxu1 %vm2960_vm5, %v12204_v28  ;;  %4880 = vmatpush.msrb.mxu2 %v15312_v51  ;;  %v15330_v51 = vld [vmem:[#allocation144_spill] sm:$0xff] }
 0x8ad   :  { %4519 = vmatmul.f32.gmra.mxu2 %v12231_v6  ;;  %4819 = vmatpush.msra.mxu1 %v15310_v54  ;;  %v15325_v54 = vld [vmem:[#allocation129_spill] sm:$0xff] }
 0x8ae   :  { %4944 = vmatpush.msrb.mxu3 %v15314_v39  ;;  %4881 = vmatpush.msrb.mxu2 %v15315_v44  ;;  %v15333_v39 = vld [vmem:[#allocation766_spill] sm:$0xff]  ;;  %v15334_v44 = vld [vmem:[#allocation764_spill] sm:$0xff] }
 0x8af   :  { %4584 = vmatmul.f32.gmra.mxu3 %v12233_v53  ;;  %4820 = vmatpush.msra.mxu1 %v15313_v22  ;;  %v15331_v22 = vld [vmem:[#allocation143_spill] sm:$0xff]  ;;  %vm15335_vm7 = vcmp.gt.f32.partialorder %v15334_v44, 0.0 }
 0x8b0   :  { %4945 = vmatpush.msrb.mxu3 %v15317_v38  ;;  %4882 = vmatpush.msrb.mxu2 %v15318_v24  ;;  %v15337_v38 = vld [vmem:[#allocation771_spill] sm:$0xff]  ;;  %vm15420_vm1 = vmmov %vm15335_vm7 }
 0x8b1   :  { %4821 = vmatpush.msra.mxu1 %v15316_v41  ;;  %v15336_v41 = vld [vmem:[#allocation770_spill] sm:$0xff] }
 0x8b2   :  { %4946 = vmatpush.msrb.mxu3 %v15319_v9  ;;  %4883 = vmatpush.msrb.mxu2 %v15321_v50  ;;  %v12520_v9 = vld [vmem:[%s14129_s4] ss:$0 sm:$0xff]  ;;  %v15339_v50 = vld [vmem:[#allocation716_spill] sm:$0xff] }
 0x8b3   :  { %4822 = vmatpush.msra.mxu1 %v15320_v18  ;;  %v15338_v18 = vld [vmem:[#allocation672_spill] sm:$0xff] }
 0x8b4   :  { %7330 = vmatmul.msk.f32.gmra.mxu1 %vm2970_vm4, %v11681_v35  ;;  %4947 = vmatpush.msrb.mxu3 %v15322_v61  ;;  %v15326_v35 = vld [vmem:[#allocation146_spill] sm:$0xff]  ;;  %vm15332_vm4 = vcmp.gt.f32.partialorder %v11861_v21, 0.0 }
 0x8b5   :  { %4522 = vmatmul.f32.gmra.mxu2 %v11727_v34  ;;  %v15327_v34 = vld [vmem:[#allocation128_spill] sm:$0xff]  ;;  %v15340_v61 = vld [vmem:[#allocation174_spill] sm:$0xff] }
 0x8b6   :  { %4884 = vmatpush.msrb.mxu2 %v15323_v27  ;;  %4948 = vmatpush.msrb.mxu3 %v15324_v8  ;;  %v15341_v27 = vld [vmem:[#allocation190_spill] sm:$0xff] }
 0x8b7   :  { %4587 = vmatmul.f32.gmra.mxu3 %v11729_v19  ;;  %v15328_v19 = vld [vmem:[#allocation145_spill] sm:$0xff] }
 0x8b8   :  { %4885 = vmatpush.msrb.mxu2 %v15325_v54  ;;  %4949 = vmatpush.msrb.mxu3 %v15326_v35  ;;  %v15342_v35 = vld [vmem:[#allocation173_spill] sm:$0xff] }
 0x8ba   :  { %4886 = vmatpush.msrb.mxu2 %v15327_v34  ;;  %4950 = vmatpush.msrb.mxu3 %v15328_v19  ;;  %v15343_v34 = vld [vmem:[#allocation189_spill] sm:$0xff] }
 0x8bc   :  { %7331 = vmatmul.msk.f32.gmra.mxu1 %vm2972_vm6, %v11717_v59  ;;  %4887 = vmatpush.msrb.mxu2 %v15329_v57  ;;  %v15344_v57 = vld [vmem:[#allocation206_spill] sm:$0xff] }
 0x8bd   :  { %4525 = vmatmul.f32.gmra.mxu2 %v11755_v56  ;;  %4951 = vmatpush.msrb.mxu3 %v15330_v51 }
 0x8bf   :  { %4590 = vmatmul.f32.gmra.mxu3 %v11757_v1 }
 0x8c0   :  { %4952 = vmatpush.msrb.mxu3 %v15331_v22 }
 0x8c4   :  { %7332 = vmatmul.msk.f32.gmra.mxu1 %vm2974_vm8, %v11749_v17 }
 0x8c5   :  { %4528 = vmatmul.f32.gmra.mxu2 %v11783_v45 }
 0x8c7   :  { %4593 = vmatmul.f32.gmra.mxu3 %v11785_v11 }
 0x8cc   :  { %7333 = vmatmul.msk.f32.gmra.mxu1 %vm2976_vm10, %v11777_v20 }
 0x8cd   :  { %4531 = vmatmul.f32.gmra.mxu2 %v11811_v48 }
 0x8cf   :  { %4596 = vmatmul.f32.gmra.mxu3 %v11813_v12 }
 0x8d4   :  { %7334 = vmatmul.msk.f32.gmra.mxu1 %vm2978_vm12, %v11805_v37 }
 0x8d5   :  { %4534 = vmatmul.f32.gmra.mxu2 %v11839_v33 }
 0x8d7   :  { %4599 = vmatmul.f32.gmra.mxu3 %v11841_v4 }
 0x8dc   :  { %7335 = vmatmul.msk.f32.gmra.mxu1 %vm2980_vm14, %v11833_v5 }
 0x8dd   :  { %4537 = vmatmul.f32.gmra.mxu2 %v11867_v3 }
 0x8df   :  { %4602 = vmatmul.f32.gmra.mxu3 %v11869_v49 }
 0x8e4   :  { %7336 = vmatmul.msk.f32.gmra.mxu1 %vm15332_vm4, %v11861_v21 }
 0x8e5   :  { %4540 = vmatmul.f32.gmra.mxu2 %v11895_v2 }
 0x8e7   :  { %4605 = vmatmul.f32.gmra.mxu3 %v15333_v39 }
 0x8ec   :  { %7337 = vmatmul.msk.f32.gmra.mxu1 %vm15335_vm7, %v15334_v44 }
 0x8ed   :  { %4543 = vmatmul.f32.gmra.mxu2 %v15336_v41 }
 0x8ef   :  { %4608 = vmatmul.f32.gmra.mxu3 %v15337_v38 }
 0x8f1   :  { %v4434_v24 = vpop.f32.mrf.mxu1 }
 0x8f2   :  { %v4435_v8 = vadd.f32 %v12520_v9, %v4434_v24  ;;  %v15347_v24 = vld [vmem:[#allocation205_spill] sm:$0xff] }
 0x8f4   :  { %4628 = vmatmul.f32.vlgmr.msrb.gmra.mxu1 %v15338_v18  ;;  %v15345_v18 = vld [vmem:[#allocation172_spill] sm:$0xff] }
 0x8f5   :  { %4693 = vmatmul.f32.vlgmr.msra.gmra.mxu2 %v15339_v50  ;;  %5002 = vmatpush.msrb.mxu1 %v15340_v61  ;;  %v15346_v50 = vld [vmem:[#allocation188_spill] sm:$0xff] }
 0x8f6   :  { %5067 = vmatpush.msra.mxu2 %v15341_v27  ;;  %v15348_v27 = vld [vmem:[#allocation171_spill] sm:$0xff] }
 0x8f7   :  { %7338 = vmatmul.msk.f32.vlgmr.msra.gmra.mxu3 %vm2948_vm11, %v12060_v23  ;;  %5003 = vmatpush.msrb.mxu1 %v15342_v35  ;;  %v15349_v23 = vld [vmem:[#allocation187_spill] sm:$0xff]  ;;  %v15350_v35 = vld [vmem:[#allocation673_spill] sm:$0xff] }
 0x8f8   :  { %v4499_v54 = vpop.f32.mrf.mxu2  ;;  %5068 = vmatpush.msra.mxu2 %v15343_v34  ;;  %5132 = vmatpush.msra.mxu3 %v15344_v57  ;;  %v15351_v34 = vld [vmem:[#allocation717_spill] sm:$0xff] }
 0x8f9   :  { %v4500_v19 = vadd.f32 %v4499_v54, %v4435_v8  ;;  %v4437_v51 = vpop.f32.mrf.mxu1  ;;  %5004 = vmatpush.msrb.mxu1 %v15345_v18  ;;  %v15352_v8 = vld [vmem:[#allocation170_spill] sm:$0xff]  ;;  %v15353_v54 = vld [vmem:[#allocation204_spill] sm:$0xff]  ;;  %v15355_v18 = vld [vmem:[#allocation169_spill] sm:$0xff] }
 0x8fa   :  { %v4564_v22 = vpop.f32.mrf.mxu3  ;;  %5069 = vmatpush.msra.mxu2 %v15346_v50  ;;  %5133 = vmatpush.msra.mxu3 %v15347_v24  ;;  %v4438_v57 = vadd.f32 %v12520_v9, %v4437_v51  ;;  %v15356_v50 = vld [vmem:[#allocation203_spill] sm:$0xff] }
 0x8fb   :  { %v12535_v61 = vadd.f32 %v4564_v22, %v4500_v19  ;;  %5005 = vmatpush.msrb.mxu1 %v15348_v27  ;;  %v15354_v19 = vld [vmem:[#allocation186_spill] sm:$0xff]  ;;  %v15357_v27 = vld [vmem:[#allocation185_spill] sm:$0xff] }
 0x8fc   :  { %5070 = vmatpush.msra.mxu2 %v15349_v23  ;;  %4631 = vmatmul.f32.gmra.mxu1 %v15350_v35 }
 0x8fd   :  { %4696 = vmatmul.f32.gmra.mxu2 %v15351_v34  ;;  %5006 = vmatpush.msrb.mxu1 %v15352_v8 }
 0x8fe   :  { %5134 = vmatpush.msra.mxu3 %v15353_v54  ;;  %5071 = vmatpush.msra.mxu2 %v15354_v19  ;;  %v15359_v54 = vld [vmem:[#allocation202_spill] sm:$0xff]  ;;  %v15362_v19 = vld [vmem:[#allocation201_spill] sm:$0xff] }
 0x8ff   :  { %7339 = vmatmul.msk.f32.gmra.mxu3 %vm2950_vm2, %v12090_v29  ;;  %5007 = vmatpush.msrb.mxu1 %v15355_v18  ;;  %v15363_v18 = vld [vmem:[#allocation674_spill] sm:$0xff] }
 0x900   :  { %v4502_v22 = vpop.f32.mrf.mxu2  ;;  %5135 = vmatpush.msra.mxu3 %v15356_v50  ;;  %5072 = vmatpush.msra.mxu2 %v15357_v27  ;;  %v15364_v50 = vld [vmem:[#allocation718_spill] sm:$0xff] }
 0x901   :  { %v4503_v24 = vadd.f32 %v4502_v22, %v4438_v57  ;;  %v4440_v23 = vpop.f32.mrf.mxu1  ;;  %5008 = vmatpush.msrb.mxu1 %v15358_v13  ;;  %v15365_v57 = vld [vmem:[#allocation166_spill] sm:$0xff]  ;;  %v15366_v22 = vld [vmem:[#allocation183_spill] sm:$0xff] }
 0x902   :  { %v4567_v8 = vpop.f32.mrf.mxu3  ;;  %5136 = vmatpush.msra.mxu3 %v15359_v54  ;;  %5073 = vmatpush.msra.mxu2 %v15360_v52  ;;  %v4441_v13 = vadd.f32 %v12520_v9, %v4440_v23  ;;  %v15367_v52 = vld [vmem:[#allocation165_spill] sm:$0xff] }
 0x903   :  { %v12554_v51 = vadd.f32 %v4567_v8, %v4503_v24  ;;  %5009 = vmatpush.msrb.mxu1 %v15361_v14  ;;  %v15368_v14 = vld [vmem:[#allocation200_spill] sm:$0xff]  ;;  %v15369_v8 = vld [vmem:[#allocation182_spill] sm:$0xff]  ;;  %v15372_v23 = vld [vmem:[#allocation181_spill] sm:$0xff] }
 0x904   :  { %5137 = vmatpush.msra.mxu3 %v15362_v19  ;;  %4634 = vmatmul.f32.gmra.mxu1 %v15363_v18 }
 0x905   :  { %4699 = vmatmul.f32.gmra.mxu2 %v15364_v50  ;;  %5010 = vmatpush.msrb.mxu1 %v15365_v57  ;;  %v15371_v57 = vld [vmem:[#allocation199_spill] sm:$0xff] }
 0x906   :  { %5074 = vmatpush.msra.mxu2 %v15366_v22  ;;  %5138 = vmatpush.msra.mxu3 %v15368_v14  ;;  %v15376_v14 = vld [vmem:[#allocation698_spill] sm:$0xff] }
 0x907   :  { %7340 = vmatmul.msk.f32.gmra.mxu3 %vm2952_vm3, %v12116_v36  ;;  %5011 = vmatpush.msrb.mxu1 %v15367_v52  ;;  %v15375_v52 = vld [vmem:[#allocation719_spill] sm:$0xff] }
 0x908   :  { %v4505_v24 = vpop.f32.mrf.mxu2  ;;  %5075 = vmatpush.msra.mxu2 %v15369_v8  ;;  %5139 = vmatpush.msra.mxu3 %v15371_v57  ;;  %v15379_v8 = vld [vmem:[#allocation161_spill] sm:$0xff] }
 0x909   :  { %v4506_v27 = vadd.f32 %v4505_v24, %v4441_v13  ;;  %v4443_v54 = vpop.f32.mrf.mxu1  ;;  %5012 = vmatpush.msrb.mxu1 %v15370_v10  ;;  %v15377_v13 = vld [vmem:[#allocation162_spill] sm:$0xff]  ;;  %v15378_v24 = vld [vmem:[#allocation180_spill] sm:$0xff] }
 0x90a   :  { %v4570_v19 = vpop.f32.mrf.mxu3  ;;  %5076 = vmatpush.msra.mxu2 %v15372_v23  ;;  %5140 = vmatpush.msra.mxu3 %v15374_v42  ;;  %v4444_v10 = vadd.f32 %v12520_v9, %v4443_v54  ;;  %v15384_v54 = vld [vmem:[#allocation178_spill] sm:$0xff] }
 0x90b   :  { %v12572_v22 = vadd.f32 %v4570_v19, %v4506_v27  ;;  %5013 = vmatpush.msrb.mxu1 %v15373_v16  ;;  %v15380_v16 = vld [vmem:[#allocation197_spill] sm:$0xff]  ;;  %v15381_v19 = vld [vmem:[#allocation179_spill] sm:$0xff] }
 0x90c   :  { %4637 = vmatmul.f32.gmra.mxu1 %v15375_v52  ;;  %5077 = vmatpush.msra.mxu2 %v15378_v24 }
 0x90d   :  { %4702 = vmatmul.f32.gmra.mxu2 %v15376_v14  ;;  %5014 = vmatpush.msrb.mxu1 %v15377_v13  ;;  %v15383_v13 = vld [vmem:[#allocation196_spill] sm:$0xff]  ;;  %v15397_v14 = vld [vmem:[#allocation679_spill] sm:$0xff] }
 0x90e   :  { %5141 = vmatpush.msra.mxu3 %v15380_v16  ;;  %5078 = vmatpush.msra.mxu2 %v15381_v19  ;;  %v15388_v16 = vld [vmem:[#allocation721_spill] sm:$0xff]  ;;  %v15391_v19 = vld [vmem:[#allocation176_spill] sm:$0xff] }
 0x90f   :  { %7341 = vmatmul.msk.f32.gmra.mxu3 %vm2954_vm15, %v12138_v55  ;;  %5015 = vmatpush.msrb.mxu1 %v15379_v8  ;;  %v15386_v55 = vld [vmem:[#allocation195_spill] sm:$0xff]  ;;  %v15387_v8 = vld [vmem:[#allocation677_spill] sm:$0xff] }
 0x910   :  { %v4508_v27 = vpop.f32.mrf.mxu2  ;;  %5142 = vmatpush.msra.mxu3 %v15383_v13  ;;  %5079 = vmatpush.msra.mxu2 %v15384_v54  ;;  %v15393_v54 = vld [vmem:[#allocation175_spill] sm:$0xff] }
 0x911   :  { %v4509_v42 = vadd.f32 %v4508_v27, %v4444_v10  ;;  %v4446_v57 = vpop.f32.mrf.mxu1  ;;  %5016 = vmatpush.msrb.mxu1 %v15382_v46  ;;  %v15389_v10 = vld [vmem:[#allocation177_spill] sm:$0xff]  ;;  %v15390_v27 = vld [vmem:[#allocation194_spill] sm:$0xff] }
 0x912   :  { %v4573_v23 = vpop.f32.mrf.mxu3  ;;  %5143 = vmatpush.msra.mxu3 %v15386_v55  ;;  %5080 = vmatpush.msra.mxu2 %v15389_v10  ;;  %v4447_v46 = vadd.f32 %v12520_v9, %v4446_v57  ;;  %v15396_v57 = vld [vmem:[#allocation701_spill] sm:$0xff] }
 0x913   :  { %v12590_v24 = vadd.f32 %v4573_v23, %v4509_v42  ;;  %5017 = vmatpush.msrb.mxu1 %v15385_v32  ;;  %v15392_v32 = vld [vmem:[#allocation193_spill] sm:$0xff] }
 0x914   :  { %4640 = vmatmul.f32.gmra.mxu1 %v15387_v8  ;;  %5144 = vmatpush.msra.mxu3 %v15390_v27  ;;  %v15395_v27 = vld [vmem:[#allocation191_spill] sm:$0xff] }
 0x915   :  { %4705 = vmatmul.f32.gmra.mxu2 %v15388_v16  ;;  %v15394_v16 = vld [vmem:[#allocation192_spill] sm:$0xff] }
 0x916   :  { %5081 = vmatpush.msra.mxu2 %v15391_v19  ;;  %5145 = vmatpush.msra.mxu3 %v15392_v32 }
 0x917   :  { %7342 = vmatmul.msk.f32.gmra.mxu3 %vm2956_vm13, %v12160_v62 }
 0x918   :  { %v4511_v42 = vpop.f32.mrf.mxu2  ;;  %5082 = vmatpush.msra.mxu2 %v15393_v54  ;;  %5146 = vmatpush.msra.mxu3 %v15394_v16  ;;  %v15398_v16 = vld [vmem:[#allocation724_spill] sm:$0xff] }
 0x919   :  { %v4512_v55 = vadd.f32 %v4511_v42, %v4447_v46  ;;  %v4449_v23 = vpop.f32.mrf.mxu1 }
 0x91a   :  { %v4576_v13 = vpop.f32.mrf.mxu3  ;;  %5147 = vmatpush.msra.mxu3 %v15395_v27  ;;  %v4450_v62 = vadd.f32 %v12520_v9, %v4449_v23 }
 0x91b   :  { %v12607_v10 = vadd.f32 %v4576_v13, %v4512_v55  ;;  %v15399_v55 = vld [vmem:[#allocation703_spill] sm:$0xff] }
 0x91c   :  { %4643 = vmatmul.f32.gmra.mxu1 %v15396_v57 }
 0x91d   :  { %4708 = vmatmul.f32.gmra.mxu2 %v15397_v14 }
 0x91f   :  { %7343 = vmatmul.msk.f32.gmra.mxu3 %vm2958_vm9, %v12182_v15 }
 0x920   :  { %v4514_v46 = vpop.f32.mrf.mxu2 }
 0x921   :  { %v4515_v42 = vadd.f32 %v4514_v46, %v4450_v62  ;;  %v4452_v19 = vpop.f32.mrf.mxu1  ;;  %v15400_v62 = vld [vmem:[#allocation682_spill] sm:$0xff] }
 0x922   :  { %v4579_v32 = vpop.f32.mrf.mxu3  ;;  %v4453_v13 = vadd.f32 %v12520_v9, %v4452_v19  ;;  %v15401_v46 = vld [vmem:[#allocation726_spill] sm:$0xff] }
 0x923   :  { %v12616_v54 = vadd.f32 %v4579_v32, %v4515_v42  ;;  %v15402_v32 = vld [vmem:[#allocation681_spill] sm:$0xff] }
 0x924   :  { %4646 = vmatmul.f32.gmra.mxu1 %v15398_v16  ;;  %vm15403_vm11 = vcmp.gt.f32.partialorder %v15402_v32, 0.0 }
 0x925   :  { %4711 = vmatmul.f32.gmra.mxu2 %v15399_v55 }
 0x927   :  { %7344 = vmatmul.msk.f32.gmra.mxu3 %vm2960_vm5, %v12204_v28 }
 0x928   :  { %v4517_v23 = vpop.f32.mrf.mxu2 }
 0x929   :  { %v4518_v27 = vadd.f32 %v4517_v23, %v4453_v13  ;;  %v4455_v14 = vpop.f32.mrf.mxu1  ;;  %v15404_v13 = vld [vmem:[#allocation742_spill] sm:$0xff] }
 0x92a   :  { %v4582_v15 = vpop.f32.mrf.mxu3  ;;  %v4456_v42 = vadd.f32 %v12520_v9, %v4455_v14 }
 0x92b   :  { %v12624_v36 = vadd.f32 %v4582_v15, %v4518_v27  ;;  %v15405_v15 = vld [vmem:[#allocation743_spill] sm:$0xff] }
 0x92c   :  { %4649 = vmatmul.f32.gmra.mxu1 %v15400_v62 }
 0x92d   :  { %4714 = vmatmul.f32.gmra.mxu2 %v15401_v46 }
 0x92f   :  { %7345 = vmatmul.msk.f32.gmra.mxu3 %vm15403_vm11, %v15402_v32 }
 0x930   :  { %v4520_v19 = vpop.f32.mrf.mxu2 }
 0x931   :  { %v4521_v55 = vadd.f32 %v4520_v19, %v4456_v42  ;;  %v4458_v50 = vpop.f32.mrf.mxu1  ;;  %v15406_v42 = vld [vmem:[#allocation745_spill] sm:$0xff] }
 0x932   :  { %v4585_v28 = vpop.f32.mrf.mxu3  ;;  %v4459_v23 = vadd.f32 %v12520_v9, %v4458_v50 }
 0x933   :  { %v12632_v29 = vadd.f32 %v4585_v28, %v4521_v55  ;;  %v15407_v28 = vld [vmem:[#allocation746_spill] sm:$0xff] }
 0x934   :  { %4652 = vmatmul.f32.gmra.mxu1 %v15404_v13 }
 0x935   :  { %4717 = vmatmul.f32.gmra.mxu2 %v15405_v15 }
 0x937   :  { %7346 = vmatmul.msk.f32.gmra.mxu3 %vm2972_vm6, %v11717_v59  ;;  %vm15416_vm6 = vmmov %vm15332_vm4 }
 0x938   :  { %v4523_v14 = vpop.f32.mrf.mxu2 }
 0x939   :  { %v4524_v27 = vadd.f32 %v4523_v14, %v4459_v23  ;;  %v4461_v46 = vpop.f32.mrf.mxu1  ;;  %v15408_v23 = vld [vmem:[#allocation748_spill] sm:$0xff] }
 0x93a   :  { %v4588_v32 = vpop.f32.mrf.mxu3  ;;  %v4462_v55 = vadd.f32 %v12520_v9, %v4461_v46 }
 0x93b   :  { %v12640_v34 = vadd.f32 %v4588_v32, %v4524_v27  ;;  %v15409_v32 = vld [vmem:[#allocation749_spill] sm:$0xff] }
 0x93c   :  { %4655 = vmatmul.f32.gmra.mxu1 %v15406_v42 }
 0x93d   :  { %4720 = vmatmul.f32.gmra.mxu2 %v15407_v28 }
 0x93f   :  { %7347 = vmatmul.msk.f32.gmra.mxu3 %vm2974_vm8, %v11749_v17 }
 0x940   :  { %v4526_v50 = vpop.f32.mrf.mxu2 }
 0x941   :  { %v4527_v19 = vadd.f32 %v4526_v50, %v4462_v55  ;;  %v4464_v13 = vpop.f32.mrf.mxu1  ;;  %v15410_v55 = vld [vmem:[#allocation752_spill] sm:$0xff]  ;;  %v15411_v50 = vld [vmem:[#allocation753_spill] sm:$0xff] }
 0x942   :  { %v4591_v59 = vpop.f32.mrf.mxu3  ;;  %v4465_v14 = vadd.f32 %v12520_v9, %v4464_v13 }
 0x943   :  { %v12648_v15 = vadd.f32 %v4591_v59, %v4527_v19 }
 0x944   :  { %4658 = vmatmul.f32.gmra.mxu1 %v15408_v23 }
 0x945   :  { %4723 = vmatmul.f32.gmra.mxu2 %v15409_v32 }
 0x947   :  { %7348 = vmatmul.msk.f32.gmra.mxu3 %vm2976_vm10, %v11777_v20 }
 0x948   :  { %v4529_v46 = vpop.f32.mrf.mxu2 }
 0x949   :  { %v4530_v27 = vadd.f32 %v4529_v46, %v4465_v14  ;;  %v4467_v28 = vpop.f32.mrf.mxu1  ;;  %v15412_v14 = vld [vmem:[#allocation757_spill] sm:$0xff] }
 0x94a   :  { %v4594_v17 = vpop.f32.mrf.mxu3  ;;  %v4468_v19 = vadd.f32 %v12520_v9, %v4467_v28 }
 0x94b   :  { %v12656_v38 = vadd.f32 %v4594_v17, %v4530_v27  ;;  %v15413_v17 = vld [vmem:[#allocation758_spill] sm:$0xff] }
 0x94c   :  { %4661 = vmatmul.f32.gmra.mxu1 %v15410_v55 }
 0x94d   :  { %4726 = vmatmul.f32.gmra.mxu2 %v15411_v50 }
 0x94f   :  { %7349 = vmatmul.msk.f32.gmra.mxu3 %vm2978_vm12, %v11805_v37 }
 0x950   :  { %v4532_v13 = vpop.f32.mrf.mxu2 }
 0x951   :  { %v4533_v59 = vadd.f32 %v4532_v13, %v4468_v19  ;;  %v4470_v32 = vpop.f32.mrf.mxu1  ;;  %v15414_v19 = vld [vmem:[#allocation762_spill] sm:$0xff] }
 0x952   :  { %v4597_v20 = vpop.f32.mrf.mxu3  ;;  %v4471_v46 = vadd.f32 %v12520_v9, %v4470_v32 }
 0x953   :  { %v12664_v41 = vadd.f32 %v4597_v20, %v4533_v59  ;;  %v15415_v20 = vld [vmem:[#allocation763_spill] sm:$0xff] }
 0x954   :  { %4664 = vmatmul.f32.gmra.mxu1 %v15412_v14 }
 0x955   :  { %4729 = vmatmul.f32.gmra.mxu2 %v15413_v17 }
 0x957   :  { %7350 = vmatmul.msk.f32.gmra.mxu3 %vm2980_vm14, %v11833_v5 }
 0x958   :  { %v4535_v28 = vpop.f32.mrf.mxu2 }
 0x959   :  { %v4536_v27 = vadd.f32 %v4535_v28, %v4471_v46  ;;  %v4473_v50 = vpop.f32.mrf.mxu1  ;;  %v15418_v46 = vld [vmem:[#allocation767_spill] sm:$0xff] }
 0x95a   :  { %v4600_v37 = vpop.f32.mrf.mxu3  ;;  %v4474_v13 = vadd.f32 %v12520_v9, %v4473_v50 }
 0x95b   :  { %v12672_v39 = vadd.f32 %v4600_v37, %v4536_v27  ;;  %v15419_v37 = vld [vmem:[#allocation768_spill] sm:$0xff] }
 0x95c   :  { %4667 = vmatmul.f32.gmra.mxu1 %v15414_v19 }
 0x95d   :  { %4732 = vmatmul.f32.gmra.mxu2 %v15415_v20 }
 0x95f   :  { %7351 = vmatmul.msk.f32.gmra.mxu3 %vm15416_vm6, %v11861_v21 }
 0x960   :  { %v4538_v32 = vpop.f32.mrf.mxu2 }
 0x961   :  { %v4539_v59 = vadd.f32 %v4538_v32, %v4474_v13  ;;  %v4476_v17 = vpop.f32.mrf.mxu1  ;;  %v15421_v13 = vld [vmem:[#allocation772_spill] sm:$0xff] }
 0x962   :  { %v4603_v5 = vpop.f32.mrf.mxu3  ;;  %v4477_v28 = vadd.f32 %v12520_v9, %v4476_v17 }
 0x963   :  { %v12680_v2 = vadd.f32 %v4603_v5, %v4539_v59  ;;  %v15422_v5 = vld [vmem:[#allocation773_spill] sm:$0xff] }
 0x964   :  { %4670 = vmatmul.f32.gmra.mxu1 %v15418_v46  ;;  %v15423_v59 = vld [vmem:[#allocation769_spill] sm:$0xff] }
 0x965   :  { %15417 = vst [vmem:[#allocation731_spill] sm:$0xff] %v12680_v2  ;;  %4735 = vmatmul.f32.gmra.mxu2 %v15419_v37  ;;  %vm15424_vm4 = vcmp.gt.f32.partialorder %v15423_v59, 0.0 }
 0x967   :  { %7352 = vmatmul.msk.f32.gmra.mxu3 %vm15420_vm1, %v15334_v44 }
 0x968   :  { %v4541_v50 = vpop.f32.mrf.mxu2 }
 0x969   :  { %v4542_v27 = vadd.f32 %v4541_v50, %v4477_v28  ;;  %v4479_v20 = vpop.f32.mrf.mxu1  ;;  %v15426_v28 = vld [vmem:[#allocation238_spill] sm:$0xff]  ;;  %v15427_v50 = vld [vmem:[#allocation221_spill] sm:$0xff] }
 0x96a   :  { %v4606_v21 = vpop.f32.mrf.mxu3  ;;  %v4480_v32 = vadd.f32 %v12520_v9, %v4479_v20 }
 0x96b   :  { %v12688_v19 = vadd.f32 %v4606_v21, %v4542_v27  ;;  %v15425_v21 = vld [vmem:[#allocation222_spill] sm:$0xff]  ;;  %v15428_v27 = vld [vmem:[#allocation237_spill] sm:$0xff] }
 0x96c   :  { %4673 = vmatmul.f32.gmra.mxu1 %v15421_v13 }
 0x96d   :  { %4738 = vmatmul.f32.gmra.mxu2 %v15422_v5 }
 0x96f   :  { %7353 = vmatmul.msk.f32.gmra.mxu3 %vm15424_vm4, %v15423_v59 }
 0x970   :  { %v4544_v17 = vpop.f32.mrf.mxu2 }
 0x971   :  { %v4545_v37 = vadd.f32 %v4544_v17, %v4480_v32  ;;  %v4629_v44 = vpop.f32.mrf.mxu1  ;;  %v15430_v17 = vld [vmem:[#allocation220_spill] sm:$0xff] }
 0x972   :  { %v4609_v46 = vpop.f32.mrf.mxu3  ;;  %v4630_v9 = vadd.f32 %v4629_v44, %v12535_v61  ;;  %v15433_v44 = vld [vmem:[#allocation219_spill] sm:$0xff] }
 0x973   :  { %v12696_v2 = vadd.f32 %v4609_v46, %v4545_v37  ;;  %v15429_v46 = vld [vmem:[#allocation254_spill] sm:$0xff]  ;;  %v15434_v61 = vld [vmem:[#allocation235_spill] sm:$0xff] }
 0x974   :  { %4823 = vmatmul.f32.vlgmr.msra.gmra.mxu1 %v12096_v26 }
 0x975   :  { %4888 = vmatmul.f32.vlgmr.msrb.gmra.mxu2 %v12098_v60  ;;  %5197 = vmatpush.msra.mxu1 %v15425_v21  ;;  %v15431_v60 = vld [vmem:[#allocation236_spill] sm:$0xff] }
 0x976   :  { %5262 = vmatpush.msrb.mxu2 %v15426_v28  ;;  %v15432_v28 = vld [vmem:[#allocation253_spill] sm:$0xff] }
 0x977   :  { %4953 = vmatmul.f32.vlgmr.msrb.gmra.mxu3 %v15350_v35  ;;  %5198 = vmatpush.msra.mxu1 %v15427_v50  ;;  %v15435_v35 = vld [vmem:[#allocation218_spill] sm:$0xff] }
 0x978   :  { %v4694_v20 = vpop.f32.mrf.mxu2  ;;  %5263 = vmatpush.msrb.mxu2 %v15428_v27  ;;  %5327 = vmatpush.msrb.mxu3 %v15429_v46  ;;  %v15437_v50 = vld [vmem:[#allocation234_spill] sm:$0xff]  ;;  %v15439_v46 = vld [vmem:[#allocation251_spill] sm:$0xff] }
 0x979   :  { %v4695_v32 = vadd.f32 %v4694_v20, %v4630_v9  ;;  %v4632_v37 = vpop.f32.mrf.mxu1  ;;  %5199 = vmatpush.msra.mxu1 %v15430_v17  ;;  %v15436_v9 = vld [vmem:[#allocation252_spill] sm:$0xff]  ;;  %v15440_v17 = vld [vmem:[#allocation233_spill] sm:$0xff] }
 0x97a   :  { %v4759_v26 = vpop.f32.mrf.mxu3  ;;  %5264 = vmatpush.msrb.mxu2 %v15431_v60  ;;  %5328 = vmatpush.msrb.mxu3 %v15432_v28  ;;  %v4633_v20 = vadd.f32 %v4632_v37, %v12554_v51  ;;  %v15443_v51 = vld [vmem:[#allocation232_spill] sm:$0xff]  ;;  %v15444_v37 = vld [vmem:[#allocation215_spill] sm:$0xff] }
 0x97b   :  { %v12709_v21 = vadd.f32 %v4759_v26, %v4695_v32  ;;  %5200 = vmatpush.msra.mxu1 %v15433_v44  ;;  %v15438_v32 = vld [vmem:[#allocation217_spill] sm:$0xff]  ;;  %v15441_v44 = vld [vmem:[#allocation216_spill] sm:$0xff] }
 0x97c   :  { %5265 = vmatpush.msrb.mxu2 %v15434_v61  ;;  %4826 = vmatmul.f32.gmra.mxu1 %v12119_v47  ;;  %v15442_v61 = vld [vmem:[#allocation250_spill] sm:$0xff] }
 0x97d   :  { %4891 = vmatmul.f32.gmra.mxu2 %v12121_v25  ;;  %5201 = vmatpush.msra.mxu1 %v15435_v35 }
 0x97e   :  { %5329 = vmatpush.msrb.mxu3 %v15436_v9  ;;  %5266 = vmatpush.msrb.mxu2 %v15437_v50  ;;  %v15445_v9 = vld [vmem:[#allocation249_spill] sm:$0xff]  ;;  %v15447_v50 = vld [vmem:[#allocation231_spill] sm:$0xff] }
 0x97f   :  { %4956 = vmatmul.f32.gmra.mxu3 %v15363_v18  ;;  %5202 = vmatpush.msra.mxu1 %v15438_v32 }
 0x980   :  { %v4697_v27 = vpop.f32.mrf.mxu2  ;;  %5330 = vmatpush.msrb.mxu3 %v15439_v46  ;;  %5267 = vmatpush.msrb.mxu2 %v15440_v17  ;;  %v15448_v46 = vld [vmem:[#allocation213_spill] sm:$0xff] }
 0x981   :  { %v4698_v26 = vadd.f32 %v4697_v27, %v4633_v20  ;;  %v4635_v60 = vpop.f32.mrf.mxu1  ;;  %5203 = vmatpush.msra.mxu1 %v15441_v44  ;;  %v15446_v20 = vld [vmem:[#allocation214_spill] sm:$0xff] }
 0x982   :  { %v4762_v28 = vpop.f32.mrf.mxu3  ;;  %5331 = vmatpush.msrb.mxu3 %v15442_v61  ;;  %5268 = vmatpush.msrb.mxu2 %v15443_v51  ;;  %v4636_v27 = vadd.f32 %v4635_v60, %v12572_v22  ;;  %v15451_v51 = vld [vmem:[#allocation212_spill] sm:$0xff]  ;;  %v15454_v22 = vld [vmem:[#allocation211_spill] sm:$0xff]  ;;  %v15455_v60 = vld [vmem:[#allocation246_spill] sm:$0xff] }
 0x983   :  { %v12726_v35 = vadd.f32 %v4762_v28, %v4698_v26  ;;  %5204 = vmatpush.msra.mxu1 %v15444_v37  ;;  %v15449_v26 = vld [vmem:[#allocation248_spill] sm:$0xff]  ;;  %v15450_v28 = vld [vmem:[#allocation230_spill] sm:$0xff]  ;;  %v15452_v37 = vld [vmem:[#allocation247_spill] sm:$0xff] }
 0x984   :  { %5332 = vmatpush.msrb.mxu3 %v15445_v9  ;;  %4829 = vmatmul.f32.gmra.mxu1 %v12141_v43 }
 0x985   :  { %4894 = vmatmul.f32.gmra.mxu2 %v12143_v40  ;;  %5205 = vmatpush.msra.mxu1 %v15446_v20  ;;  %v15453_v20 = vld [vmem:[#allocation229_spill] sm:$0xff] }
 0x986   :  { %5269 = vmatpush.msrb.mxu2 %v15447_v50  ;;  %5333 = vmatpush.msrb.mxu3 %v15449_v26  ;;  %v15456_v50 = vld [vmem:[#allocation210_spill] sm:$0xff]  ;;  %v15458_v26 = vld [vmem:[#allocation209_spill] sm:$0xff] }
 0x987   :  { %4959 = vmatmul.f32.gmra.mxu3 %v15375_v52  ;;  %5206 = vmatpush.msra.mxu1 %v15448_v46 }
 0x988   :  { %v4700_v32 = vpop.f32.mrf.mxu2  ;;  %5270 = vmatpush.msrb.mxu2 %v15450_v28  ;;  %5334 = vmatpush.msrb.mxu3 %v15452_v37 }
 0x989   :  { %v4701_v17 = vadd.f32 %v4700_v32, %v4636_v27  ;;  %v4638_v44 = vpop.f32.mrf.mxu1  ;;  %5207 = vmatpush.msra.mxu1 %v15451_v51  ;;  %v15457_v27 = vld [vmem:[#allocation228_spill] sm:$0xff] }
 0x98a   :  { %v4765_v61 = vpop.f32.mrf.mxu3  ;;  %5271 = vmatpush.msrb.mxu2 %v15453_v20  ;;  %5335 = vmatpush.msrb.mxu3 %v15455_v60  ;;  %v4639_v32 = vadd.f32 %v4638_v44, %v12590_v24  ;;  %v15461_v20 = vld [vmem:[#allocation208_spill] sm:$0xff]  ;;  %v15464_v24 = vld [vmem:[#allocation207_spill] sm:$0xff] }
 0x98b   :  { %v12742_v9 = vadd.f32 %v4765_v61, %v4701_v17  ;;  %5208 = vmatpush.msra.mxu1 %v15454_v22  ;;  %v15459_v17 = vld [vmem:[#allocation245_spill] sm:$0xff]  ;;  %v15460_v61 = vld [vmem:[#allocation227_spill] sm:$0xff]  ;;  %v15462_v22 = vld [vmem:[#allocation244_spill] sm:$0xff] }
 0x98c   :  { %4832 = vmatmul.f32.gmra.mxu1 %v12163_v7  ;;  %5272 = vmatpush.msrb.mxu2 %v15457_v27  ;;  %v15465_v44 = vld [vmem:[#allocation243_spill] sm:$0xff]  ;;  %v15466_v27 = vld [vmem:[#allocation225_spill] sm:$0xff] }
 0x98d   :  { %4897 = vmatmul.f32.gmra.mxu2 %v12165_v30  ;;  %5209 = vmatpush.msra.mxu1 %v15456_v50  ;;  %v15463_v50 = vld [vmem:[#allocation226_spill] sm:$0xff] }
 0x98e   :  { %5336 = vmatpush.msrb.mxu3 %v15459_v17  ;;  %5273 = vmatpush.msrb.mxu2 %v15460_v61  ;;  %v15468_v17 = vld [vmem:[#allocation224_spill] sm:$0xff] }
 0x98f   :  { %4962 = vmatmul.f32.gmra.mxu3 %v15387_v8  ;;  %5210 = vmatpush.msra.mxu1 %v15458_v26 }
 0x990   :  { %v4703_v46 = vpop.f32.mrf.mxu2  ;;  %5337 = vmatpush.msrb.mxu3 %v15462_v22  ;;  %5274 = vmatpush.msrb.mxu2 %v15463_v50  ;;  %v15470_v22 = vld [vmem:[#allocation223_spill] sm:$0xff]  ;;  %v15471_v50 = vld [vmem:[#allocation240_spill] sm:$0xff] }
 0x991   :  { %v4704_v28 = vadd.f32 %v4703_v46, %v4639_v32  ;;  %v4641_v51 = vpop.f32.mrf.mxu1  ;;  %5211 = vmatpush.msra.mxu1 %v15461_v20  ;;  %v15467_v32 = vld [vmem:[#allocation242_spill] sm:$0xff] }
 0x992   :  { %v4768_v37 = vpop.f32.mrf.mxu3  ;;  %5338 = vmatpush.msrb.mxu3 %v15465_v44  ;;  %5275 = vmatpush.msrb.mxu2 %v15466_v27  ;;  %v4642_v46 = vadd.f32 %v4641_v51, %v12607_v10  ;;  %v15472_v44 = vld [vmem:[#allocation239_spill] sm:$0xff] }
 0x993   :  { %v12758_v60 = vadd.f32 %v4768_v37, %v4704_v28  ;;  %5212 = vmatpush.msra.mxu1 %v15464_v24  ;;  %v15469_v28 = vld [vmem:[#allocation241_spill] sm:$0xff] }
 0x994   :  { %4835 = vmatmul.f32.gmra.mxu1 %v12185_v63  ;;  %5339 = vmatpush.msrb.mxu3 %v15467_v32 }
 0x995   :  { %4900 = vmatmul.f32.gmra.mxu2 %v12187_v31 }
 0x996   :  { %5276 = vmatpush.msrb.mxu2 %v15468_v17  ;;  %5340 = vmatpush.msrb.mxu3 %v15469_v28 }
 0x997   :  { %4965 = vmatmul.f32.gmra.mxu3 %v15396_v57 }
 0x998   :  { %v4706_v26 = vpop.f32.mrf.mxu2  ;;  %5277 = vmatpush.msrb.mxu2 %v15470_v22  ;;  %5341 = vmatpush.msrb.mxu3 %v15471_v50  ;;  %v15473_v22 = vld [vmem:[#allocation683_spill] sm:$0xff] }
 0x999   :  { %v4707_v61 = vadd.f32 %v4706_v26, %v4642_v46  ;;  %v4644_v37 = vpop.f32.mrf.mxu1  ;;  %v15474_v50 = vld [vmem:[#allocation727_spill] sm:$0xff] }
 0x99a   :  { %v4771_v20 = vpop.f32.mrf.mxu3  ;;  %5342 = vmatpush.msrb.mxu3 %v15472_v44  ;;  %v4645_v10 = vadd.f32 %v4644_v37, %v12616_v54 }
 0x99b   :  { %v12773_v24 = vadd.f32 %v4771_v20, %v4707_v61 }
 0x99c   :  { %4838 = vmatmul.f32.gmra.mxu1 %v12207_v0 }
 0x99d   :  { %4903 = vmatmul.f32.gmra.mxu2 %v12209_v58 }
 0x99f   :  { %4968 = vmatmul.f32.gmra.mxu3 %v15398_v16 }
 0x9a0   :  { %v4709_v51 = vpop.f32.mrf.mxu2 }
 0x9a1   :  { %v4710_v27 = vadd.f32 %v4709_v51, %v4645_v10  ;;  %v4647_v32 = vpop.f32.mrf.mxu1  ;;  %v15475_v10 = vld [vmem:[#allocation706_spill] sm:$0xff] }
 0x9a2   :  { %v4774_v46 = vpop.f32.mrf.mxu3  ;;  %v4648_v17 = vadd.f32 %v4647_v32, %v12624_v36 }
 0x9a3   :  { %v12780_v26 = vadd.f32 %v4774_v46, %v4710_v27 }
 0x9a4   :  { %4841 = vmatmul.f32.gmra.mxu1 %v12231_v6 }
 0x9a5   :  { %4906 = vmatmul.f32.gmra.mxu2 %v12233_v53 }
 0x9a7   :  { %4971 = vmatmul.f32.gmra.mxu3 %v15400_v62 }
 0x9a8   :  { %v4712_v28 = vpop.f32.mrf.mxu2 }
 0x9a9   :  { %v4713_v61 = vadd.f32 %v4712_v28, %v4648_v17  ;;  %v4650_v20 = vpop.f32.mrf.mxu1 }
 0x9aa   :  { %v4777_v54 = vpop.f32.mrf.mxu3  ;;  %v4651_v44 = vadd.f32 %v4650_v20, %v12632_v29 }
 0x9ab   :  { %v12786_v37 = vadd.f32 %v4777_v54, %v4713_v61 }
 0x9ac   :  { %4844 = vmatmul.f32.gmra.mxu1 %v15473_v22 }
 0x9ad   :  { %4909 = vmatmul.f32.gmra.mxu2 %v15474_v50 }
 0x9af   :  { %4974 = vmatmul.f32.gmra.mxu3 %v15475_v10 }
 0x9b0   :  { %v4715_v51 = vpop.f32.mrf.mxu2 }
 0x9b1   :  { %v4716_v27 = vadd.f32 %v4715_v51, %v4651_v44  ;;  %v4653_v46 = vpop.f32.mrf.mxu1 }
 0x9b2   :  { %v4780_v36 = vpop.f32.mrf.mxu3  ;;  %v4654_v17 = vadd.f32 %v4653_v46, %v12640_v34 }
 0x9b3   :  { %v12792_v32 = vadd.f32 %v4780_v36, %v4716_v27 }
 0x9b4   :  { %4847 = vmatmul.f32.gmra.mxu1 %v11755_v56 }
 0x9b5   :  { %4912 = vmatmul.f32.gmra.mxu2 %v11757_v1 }
 0x9b7   :  { %4977 = vmatmul.f32.gmra.mxu3 %v15406_v42 }
 0x9b8   :  { %v4718_v28 = vpop.f32.mrf.mxu2 }
 0x9b9   :  { %v4719_v61 = vadd.f32 %v4718_v28, %v4654_v17  ;;  %v4656_v54 = vpop.f32.mrf.mxu1 }
 0x9ba   :  { %v4783_v29 = vpop.f32.mrf.mxu3  ;;  %v4657_v44 = vadd.f32 %v4656_v54, %v12648_v15 }
 0x9bb   :  { %v12798_v20 = vadd.f32 %v4783_v29, %v4719_v61 }
 0x9bc   :  { %4850 = vmatmul.f32.gmra.mxu1 %v11783_v45 }
 0x9bd   :  { %4915 = vmatmul.f32.gmra.mxu2 %v11785_v11 }
 0x9bf   :  { %4980 = vmatmul.f32.gmra.mxu3 %v15408_v23 }
 0x9c0   :  { %v4721_v56 = vpop.f32.mrf.mxu2 }
 0x9c1   :  { %v4722_v1 = vadd.f32 %v4721_v56, %v4657_v44  ;;  %v4659_v51 = vpop.f32.mrf.mxu1 }
 0x9c2   :  { %v4786_v34 = vpop.f32.mrf.mxu3  ;;  %v4660_v42 = vadd.f32 %v4659_v51, %v12656_v38  ;;  %v15476_v51 = vld [vmem:[#allocation762_spill] sm:$0xff] }
 0x9c3   :  { %v12804_v27 = vadd.f32 %v4786_v34, %v4722_v1 }
 0x9c4   :  { %4853 = vmatmul.f32.gmra.mxu1 %v11811_v48 }
 0x9c5   :  { %4918 = vmatmul.f32.gmra.mxu2 %v11813_v12 }
 0x9c7   :  { %4983 = vmatmul.f32.gmra.mxu3 %v15410_v55 }
 0x9c8   :  { %v4724_v46 = vpop.f32.mrf.mxu2 }
 0x9c9   :  { %v4725_v36 = vadd.f32 %v4724_v46, %v4660_v42  ;;  %v4662_v17 = vpop.f32.mrf.mxu1 }
 0x9ca   :  { %v4789_v15 = vpop.f32.mrf.mxu3  ;;  %v4663_v61 = vadd.f32 %v4662_v17, %v12664_v41  ;;  %v15477_v17 = vld [vmem:[#allocation765_spill] sm:$0xff] }
 0x9cb   :  { %v12810_v28 = vadd.f32 %v4789_v15, %v4725_v36  ;;  %v15478_v15 = vld [vmem:[#allocation766_spill] sm:$0xff] }
 0x9cc   :  { %4856 = vmatmul.f32.gmra.mxu1 %v11839_v33 }
 0x9cd   :  { %4921 = vmatmul.f32.gmra.mxu2 %v11841_v4 }
 0x9cf   :  { %4986 = vmatmul.f32.gmra.mxu3 %v15412_v14 }
 0x9d0   :  { %v4727_v54 = vpop.f32.mrf.mxu2 }
 0x9d1   :  { %v4728_v29 = vadd.f32 %v4727_v54, %v4663_v61  ;;  %v4665_v44 = vpop.f32.mrf.mxu1  ;;  %v15479_v61 = vld [vmem:[#allocation731_spill] sm:$0xff] }
 0x9d2   :  { %v4792_v38 = vpop.f32.mrf.mxu3  ;;  %v4666_v1 = vadd.f32 %v4665_v44, %v12672_v39 }
 0x9d3   :  { %v12816_v56 = vadd.f32 %v4792_v38, %v4728_v29  ;;  %v15480_v29 = vld [vmem:[#allocation767_spill] sm:$0xff] }
 0x9d4   :  { %4859 = vmatmul.f32.gmra.mxu1 %v11867_v3 }
 0x9d5   :  { %4924 = vmatmul.f32.gmra.mxu2 %v11869_v49 }
 0x9d7   :  { %4989 = vmatmul.f32.gmra.mxu3 %v15476_v51  ;;  %v15481_v51 = vld [vmem:[#allocation770_spill] sm:$0xff] }
 0x9d8   :  { %v4730_v34 = vpop.f32.mrf.mxu2 }
 0x9d9   :  { %v4731_v42 = vadd.f32 %v4730_v34, %v4666_v1  ;;  %v4668_v46 = vpop.f32.mrf.mxu1  ;;  %v15482_v1 = vld [vmem:[#allocation771_spill] sm:$0xff] }
 0x9da   :  { %v4795_v41 = vpop.f32.mrf.mxu3  ;;  %v4669_v54 = vadd.f32 %v4668_v46, %v15479_v61 }
 0x9db   :  { %v12822_v36 = vadd.f32 %v4795_v41, %v4731_v42 }
 0x9dc   :  { %4862 = vmatmul.f32.gmra.mxu1 %v15477_v17 }
 0x9dd   :  { %4927 = vmatmul.f32.gmra.mxu2 %v15478_v15 }
 0x9df   :  { %4992 = vmatmul.f32.gmra.mxu3 %v15480_v29  ;;  %v15483_v29 = vld [vmem:[#allocation775_spill] sm:$0xff] }
 0x9e0   :  { %v4733_v38 = vpop.f32.mrf.mxu2 }
 0x9e1   :  { %v4734_v49 = vadd.f32 %v4733_v38, %v4669_v54  ;;  %v4671_v14 = vpop.f32.mrf.mxu1  ;;  %v15484_v54 = vld [vmem:[#allocation776_spill] sm:$0xff]  ;;  %v15485_v38 = vld [vmem:[#allocation777_spill] sm:$0xff] }
 0x9e2   :  { %v4798_v39 = vpop.f32.mrf.mxu3  ;;  %v4672_v34 = vadd.f32 %v4671_v14, %v12688_v19 }
 0x9e3   :  { %v12828_v44 = vadd.f32 %v4798_v39, %v4734_v49 }
 0x9e4   :  { %4865 = vmatmul.f32.gmra.mxu1 %v15481_v51 }
 0x9e5   :  { %4930 = vmatmul.f32.gmra.mxu2 %v15482_v1 }
 0x9e7   :  { %4995 = vmatmul.f32.gmra.mxu3 %v15421_v13  ;;  %v15486_v13 = vld [vmem:[#allocation717_spill] sm:$0xff] }
 0x9e8   :  { %v4736_v42 = vpop.f32.mrf.mxu2 }
 0x9e9   :  { %v4737_v41 = vadd.f32 %v4736_v42, %v4672_v34  ;;  %v4674_v15 = vpop.f32.mrf.mxu1  ;;  %v15487_v34 = vld [vmem:[#allocation695_spill] sm:$0xff]  ;;  %v15488_v42 = vld [vmem:[#allocation270_spill] sm:$0xff] }
 0x9ea   :  { %v4801_v46 = vpop.f32.mrf.mxu3  ;;  %v4675_v49 = vadd.f32 %v4674_v15, %v12696_v2 }
 0x9eb   :  { %v12834_v61 = vadd.f32 %v4801_v46, %v4737_v41  ;;  %v15489_v41 = vld [vmem:[#allocation286_spill] sm:$0xff]  ;;  %v15490_v46 = vld [vmem:[#allocation269_spill] sm:$0xff] }
 0x9ec   :  { %4868 = vmatmul.f32.gmra.mxu1 %v15483_v29 }
 0x9ed   :  { %4933 = vmatmul.f32.gmra.mxu2 %v15484_v54 }
 0x9ef   :  { %4998 = vmatmul.f32.gmra.mxu3 %v15485_v38  ;;  %v15493_v38 = vld [vmem:[#allocation268_spill] sm:$0xff] }
 0x9f0   :  { %v4739_v39 = vpop.f32.mrf.mxu2 }
 0x9f1   :  { %v4740_v1 = vadd.f32 %v4739_v39, %v4675_v49  ;;  %v4824_v14 = vpop.f32.mrf.mxu1  ;;  %v15491_v49 = vld [vmem:[#allocation285_spill] sm:$0xff] }
 0x9f2   :  { %v4804_v4 = vpop.f32.mrf.mxu3  ;;  %v4825_v2 = vadd.f32 %v4824_v14, %v12709_v21  ;;  %v15496_v21 = vld [vmem:[#allocation267_spill] sm:$0xff]  ;;  %v15498_v14 = vld [vmem:[#allocation718_spill] sm:$0xff] }
 0x9f3   :  { %v12840_v19 = vadd.f32 %v4804_v4, %v4740_v1  ;;  %v15492_v1 = vld [vmem:[#allocation302_spill] sm:$0xff] }
 0x9f4   :  { %5018 = vmatmul.f32.vlgmr.msrb.gmra.mxu1 %v15486_v13 }
 0x9f5   :  { %7354 = vmatmul.msk.f32.vlgmr.msra.gmra.mxu2 %vm2950_vm2, %v15487_v34  ;;  %5392 = vmatpush.msrb.mxu1 %v15488_v42  ;;  %v15494_v34 = vld [vmem:[#allocation284_spill] sm:$0xff]  ;;  %vm15548_vm2 = vmmov %vm15403_vm11 }
 0x9f6   :  { %5457 = vmatpush.msra.mxu2 %v15489_v41  ;;  %v15495_v41 = vld [vmem:[#allocation301_spill] sm:$0xff]  ;;  %vm15566_vm11 = vmmov %vm15420_vm1 }
 0x9f7   :  { %5148 = vmatmul.f32.vlgmr.msra.gmra.mxu3 %v12119_v47  ;;  %5393 = vmatpush.msrb.mxu1 %v15490_v46  ;;  %v15497_v47 = vld [vmem:[#allocation283_spill] sm:$0xff]  ;;  %v15499_v46 = vld [vmem:[#allocation696_spill] sm:$0xff] }
 0x9f8   :  { %v4889_v15 = vpop.f32.mrf.mxu2  ;;  %5458 = vmatpush.msra.mxu2 %v15491_v49  ;;  %5522 = vmatpush.msra.mxu3 %v15492_v1  ;;  %v15502_v49 = vld [vmem:[#allocation282_spill] sm:$0xff]  ;;  %v15503_v1 = vld [vmem:[#allocation265_spill] sm:$0xff] }
 0x9f9   :  { %v4890_v4 = vadd.f32 %v4889_v15, %v4825_v2  ;;  %v4827_v13 = vpop.f32.mrf.mxu1  ;;  %5394 = vmatpush.msrb.mxu1 %v15493_v38  ;;  %v15500_v2 = vld [vmem:[#allocation266_spill] sm:$0xff]  ;;  %v15501_v15 = vld [vmem:[#allocation300_spill] sm:$0xff] }
 0x9fa   :  { %v4954_v39 = vpop.f32.mrf.mxu3  ;;  %5459 = vmatpush.msra.mxu2 %v15494_v34  ;;  %5523 = vmatpush.msra.mxu3 %v15495_v41  ;;  %v4828_v38 = vadd.f32 %v4827_v13, %v12726_v35  ;;  %v15505_v41 = vld [vmem:[#allocation281_spill] sm:$0xff]  ;;  %v15508_v35 = vld [vmem:[#allocation280_spill] sm:$0xff]  ;;  %v15509_v13 = vld [vmem:[#allocation263_spill] sm:$0xff] }
 0x9fb   :  { %v12855_v42 = vadd.f32 %v4954_v39, %v4890_v4  ;;  %5395 = vmatpush.msrb.mxu1 %v15496_v21  ;;  %v15504_v39 = vld [vmem:[#allocation299_spill] sm:$0xff] }
 0x9fc   :  { %5460 = vmatpush.msra.mxu2 %v15497_v47  ;;  %5021 = vmatmul.f32.gmra.mxu1 %v15498_v14 }
 0x9fd   :  { %7355 = vmatmul.msk.f32.gmra.mxu2 %vm2952_vm3, %v15499_v46  ;;  %5396 = vmatpush.msrb.mxu1 %v15500_v2  ;;  %v15506_v46 = vld [vmem:[#allocation264_spill] sm:$0xff]  ;;  %v15507_v2 = vld [vmem:[#allocation298_spill] sm:$0xff] }
 0x9fe   :  { %5524 = vmatpush.msra.mxu3 %v15501_v15  ;;  %5461 = vmatpush.msra.mxu2 %v15502_v49  ;;  %v15510_v49 = vld [vmem:[#allocation297_spill] sm:$0xff] }
 0x9ff   :  { %5151 = vmatmul.f32.gmra.mxu3 %v12141_v43  ;;  %5397 = vmatpush.msrb.mxu1 %v15503_v1  ;;  %v15511_v1 = vld [vmem:[#allocation698_spill] sm:$0xff]  ;;  %v15518_v43 = vld [vmem:[#allocation260_spill] sm:$0xff] }
 0xa00   :  { %v4892_v4 = vpop.f32.mrf.mxu2  ;;  %5525 = vmatpush.msra.mxu3 %v15504_v39  ;;  %5462 = vmatpush.msra.mxu2 %v15505_v41  ;;  %v15512_v39 = vld [vmem:[#allocation697_spill] sm:$0xff] }
 0xa01   :  { %v4893_v34 = vadd.f32 %v4892_v4, %v4828_v38  ;;  %v4830_v21 = vpop.f32.mrf.mxu1  ;;  %5398 = vmatpush.msrb.mxu1 %v15506_v46  ;;  %v15513_v38 = vld [vmem:[#allocation262_spill] sm:$0xff]  ;;  %v15514_v4 = vld [vmem:[#allocation279_spill] sm:$0xff]  ;;  %v15515_v41 = vld [vmem:[#allocation261_spill] sm:$0xff] }
 0xa02   :  { %v4957_v47 = vpop.f32.mrf.mxu3  ;;  %5526 = vmatpush.msra.mxu3 %v15507_v2  ;;  %5463 = vmatpush.msra.mxu2 %v15508_v35  ;;  %v4831_v46 = vadd.f32 %v4830_v21, %v12742_v9  ;;  %v15517_v35 = vld [vmem:[#allocation278_spill] sm:$0xff]  ;;  %v15521_v9 = vld [vmem:[#allocation259_spill] sm:$0xff] }
 0xa03   :  { %v12874_v15 = vadd.f32 %v4957_v47, %v4893_v34  ;;  %5399 = vmatpush.msrb.mxu1 %v15509_v13  ;;  %v15516_v47 = vld [vmem:[#allocation296_spill] sm:$0xff]  ;;  %v15522_v21 = vld [vmem:[#allocation294_spill] sm:$0xff] }
 0xa04   :  { %5527 = vmatpush.msra.mxu3 %v15510_v49  ;;  %5024 = vmatmul.f32.gmra.mxu1 %v15511_v1 }
 0xa05   :  { %7356 = vmatmul.msk.f32.gmra.mxu2 %vm2954_vm15, %v15512_v39  ;;  %5400 = vmatpush.msrb.mxu1 %v15513_v38  ;;  %v15519_v39 = vld [vmem:[#allocation295_spill] sm:$0xff] }
 0xa06   :  { %5464 = vmatpush.msra.mxu2 %v15514_v4  ;;  %5528 = vmatpush.msra.mxu3 %v15516_v47  ;;  %v15520_v4 = vld [vmem:[#allocation277_spill] sm:$0xff]  ;;  %v15524_v47 = vld [vmem:[#allocation676_spill] sm:$0xff] }
 0xa07   :  { %5154 = vmatmul.f32.gmra.mxu3 %v12163_v7  ;;  %5401 = vmatpush.msrb.mxu1 %v15515_v41  ;;  %v15523_v41 = vld [vmem:[#allocation721_spill] sm:$0xff]  ;;  %v15530_v7 = vld [vmem:[#allocation256_spill] sm:$0xff] }
 0xa08   :  { %v4895_v34 = vpop.f32.mrf.mxu2  ;;  %5465 = vmatpush.msra.mxu2 %v15517_v35  ;;  %5529 = vmatpush.msra.mxu3 %v15519_v39  ;;  %v15528_v35 = vld [vmem:[#allocation293_spill] sm:$0xff] }
 0xa09   :  { %v4896_v2 = vadd.f32 %v4895_v34, %v4831_v46  ;;  %v4833_v13 = vpop.f32.mrf.mxu1  ;;  %5402 = vmatpush.msrb.mxu1 %v15518_v43  ;;  %v15525_v46 = vld [vmem:[#allocation258_spill] sm:$0xff]  ;;  %v15526_v34 = vld [vmem:[#allocation276_spill] sm:$0xff] }
 0xa0a   :  { %v4960_v49 = vpop.f32.mrf.mxu3  ;;  %5466 = vmatpush.msra.mxu2 %v15520_v4  ;;  %5530 = vmatpush.msra.mxu3 %v15522_v21  ;;  %v4834_v43 = vadd.f32 %v4833_v13, %v12758_v60  ;;  %v15529_v4 = vld [vmem:[#allocation275_spill] sm:$0xff] }
 0xa0b   :  { %v12892_v38 = vadd.f32 %v4960_v49, %v4896_v2  ;;  %5403 = vmatpush.msrb.mxu1 %v15521_v9  ;;  %v15527_v2 = vld [vmem:[#allocation257_spill] sm:$0xff]  ;;  %v15533_v60 = vld [vmem:[#allocation255_spill] sm:$0xff] }
 0xa0c   :  { %5027 = vmatmul.f32.gmra.mxu1 %v15523_v41  ;;  %5467 = vmatpush.msra.mxu2 %v15526_v34  ;;  %v15532_v34 = vld [vmem:[#allocation274_spill] sm:$0xff]  ;;  %v15534_v13 = vld [vmem:[#allocation291_spill] sm:$0xff] }
 0xa0d   :  { %7357 = vmatmul.msk.f32.gmra.mxu2 %vm2956_vm13, %v15524_v47  ;;  %5404 = vmatpush.msrb.mxu1 %v15525_v46  ;;  %v15531_v47 = vld [vmem:[#allocation292_spill] sm:$0xff] }
 0xa0e   :  { %5531 = vmatpush.msra.mxu3 %v15528_v35  ;;  %5468 = vmatpush.msra.mxu2 %v15529_v4  ;;  %v15536_v35 = vld [vmem:[#allocation700_spill] sm:$0xff]  ;;  %v15540_v4 = vld [vmem:[#allocation289_spill] sm:$0xff] }
 0xa0f   :  { %5157 = vmatmul.f32.gmra.mxu3 %v12185_v63  ;;  %5405 = vmatpush.msrb.mxu1 %v15527_v2  ;;  %v15535_v2 = vld [vmem:[#allocation679_spill] sm:$0xff]  ;;  %v15542_v63 = vld [vmem:[#allocation288_spill] sm:$0xff] }
 0xa10   :  { %v4898_v39 = vpop.f32.mrf.mxu2  ;;  %5532 = vmatpush.msra.mxu3 %v15531_v47  ;;  %5469 = vmatpush.msra.mxu2 %v15532_v34 }
 0xa11   :  { %v4899_v49 = vadd.f32 %v4898_v39, %v4834_v43  ;;  %v4836_v9 = vpop.f32.mrf.mxu1  ;;  %5406 = vmatpush.msrb.mxu1 %v15530_v7  ;;  %v15537_v43 = vld [vmem:[#allocation273_spill] sm:$0xff]  ;;  %v15538_v39 = vld [vmem:[#allocation290_spill] sm:$0xff] }
 0xa12   :  { %v4963_v21 = vpop.f32.mrf.mxu3  ;;  %5533 = vmatpush.msra.mxu3 %v15534_v13  ;;  %5470 = vmatpush.msra.mxu2 %v15537_v43  ;;  %v4837_v7 = vadd.f32 %v4836_v9, %v12773_v24  ;;  %v15541_v13 = vld [vmem:[#allocation271_spill] sm:$0xff] }
 0xa13   :  { %v12910_v46 = vadd.f32 %v4963_v21, %v4899_v49  ;;  %5407 = vmatpush.msrb.mxu1 %v15533_v60  ;;  %v15539_v49 = vld [vmem:[#allocation272_spill] sm:$0xff]  ;;  %v15543_v43 = vld [vmem:[#allocation287_spill] sm:$0xff] }
 0xa14   :  { %5030 = vmatmul.f32.gmra.mxu1 %v15535_v2  ;;  %5534 = vmatpush.msra.mxu3 %v15538_v39  ;;  %v15544_v39 = vld [vmem:[#allocation703_spill] sm:$0xff] }
 0xa15   :  { %7358 = vmatmul.msk.f32.gmra.mxu2 %vm2958_vm9, %v15536_v35  ;;  %v15545_v24 = vld [vmem:[#allocation723_spill] sm:$0xff] }
 0xa16   :  { %5471 = vmatpush.msra.mxu2 %v15539_v49  ;;  %5535 = vmatpush.msra.mxu3 %v15540_v4 }
 0xa17   :  { %5160 = vmatmul.f32.gmra.mxu3 %v12207_v0 }
 0xa18   :  { %v4901_v47 = vpop.f32.mrf.mxu2  ;;  %5472 = vmatpush.msra.mxu2 %v15541_v13  ;;  %5536 = vmatpush.msra.mxu3 %v15542_v63  ;;  %v15546_v63 = vld [vmem:[#allocation726_spill] sm:$0xff] }
 0xa19   :  { %v4902_v21 = vadd.f32 %v4901_v47, %v4837_v7  ;;  %v4839_v34 = vpop.f32.mrf.mxu1 }
 0xa1a   :  { %v4966_v60 = vpop.f32.mrf.mxu3  ;;  %5537 = vmatpush.msra.mxu3 %v15543_v43  ;;  %v4840_v9 = vadd.f32 %v4839_v34, %v12780_v26 }
 0xa1b   :  { %v12927_v35 = vadd.f32 %v4966_v60, %v4902_v21  ;;  %v15547_v21 = vld [vmem:[#allocation681_spill] sm:$0xff] }
 0xa1c   :  { %5033 = vmatmul.f32.gmra.mxu1 %v15544_v39 }
 0xa1d   :  { %7359 = vmatmul.msk.f32.gmra.mxu2 %vm2960_vm5, %v15545_v24 }
 0xa1f   :  { %5163 = vmatmul.f32.gmra.mxu3 %v12231_v6 }
 0xa20   :  { %v4904_v7 = vpop.f32.mrf.mxu2 }
 0xa21   :  { %v4905_v47 = vadd.f32 %v4904_v7, %v4840_v9  ;;  %v4842_v49 = vpop.f32.mrf.mxu1  ;;  %v15549_v9 = vld [vmem:[#allocation684_spill] sm:$0xff]  ;;  %v15550_v7 = vld [vmem:[#allocation705_spill] sm:$0xff] }
 0xa22   :  { %v4969_v4 = vpop.f32.mrf.mxu3  ;;  %v4843_v60 = vadd.f32 %v4842_v49, %v12786_v37  ;;  %vm15551_vm7 = vcmp.gt.f32.partialorder %v15550_v7, 0.0 }
 0xa23   :  { %v12936_v13 = vadd.f32 %v4969_v4, %v4905_v47  ;;  %v15552_v4 = vld [vmem:[#allocation707_spill] sm:$0xff] }
 0xa24   :  { %5036 = vmatmul.f32.gmra.mxu1 %v15546_v63 }
 0xa25   :  { %7360 = vmatmul.msk.f32.gmra.mxu2 %vm15548_vm2, %v15547_v21 }
 0xa27   :  { %5166 = vmatmul.f32.gmra.mxu3 %v15473_v22 }
 0xa28   :  { %v4907_v43 = vpop.f32.mrf.mxu2 }
 0xa29   :  { %v4908_v26 = vadd.f32 %v4907_v43, %v4843_v60  ;;  %v4845_v34 = vpop.f32.mrf.mxu1  ;;  %v15553_v60 = vld [vmem:[#allocation746_spill] sm:$0xff] }
 0xa2a   :  { %v4972_v6 = vpop.f32.mrf.mxu3  ;;  %v4846_v47 = vadd.f32 %v4845_v34, %v12792_v32 }
 0xa2b   :  { %v12944_v24 = vadd.f32 %v4972_v6, %v4908_v26  ;;  %v15554_v6 = vld [vmem:[#allocation744_spill] sm:$0xff] }
 0xa2c   :  { %5039 = vmatmul.f32.gmra.mxu1 %v15549_v9 }
 0xa2d   :  { %7361 = vmatmul.msk.f32.gmra.mxu2 %vm15551_vm7, %v15550_v7 }
 0xa2f   :  { %5169 = vmatmul.f32.gmra.mxu3 %v15552_v4 }
 0xa30   :  { %v4910_v21 = vpop.f32.mrf.mxu2 }
 0xa31   :  { %v4911_v37 = vadd.f32 %v4910_v21, %v4846_v47  ;;  %v4848_v49 = vpop.f32.mrf.mxu1  ;;  %v15555_v21 = vld [vmem:[#allocation749_spill] sm:$0xff] }
 0xa32   :  { %v4975_v22 = vpop.f32.mrf.mxu3  ;;  %v4849_v43 = vadd.f32 %v4848_v49, %v12798_v20 }
 0xa33   :  { %v12952_v0 = vadd.f32 %v4975_v22, %v4911_v37  ;;  %v15556_v22 = vld [vmem:[#allocation747_spill] sm:$0xff] }
 0xa34   :  { %5042 = vmatmul.f32.gmra.mxu1 %v15553_v60 }
 0xa35   :  { %7362 = vmatmul.msk.f32.gmra.mxu2 %vm2974_vm8, %v15554_v6  ;;  %v15557_v6 = vld [vmem:[#allocation753_spill] sm:$0xff]  ;;  %vm15563_vm8 = vmmov %vm15416_vm6 }
 0xa36   :  { %vm15567_vm6 = vmmov %vm15424_vm4 }
 0xa37   :  { %5172 = vmatmul.f32.gmra.mxu3 %v11783_v45  ;;  %vm15697_vm4 = vmmov %vm15551_vm7 }
 0xa38   :  { %v4913_v26 = vpop.f32.mrf.mxu2  ;;  %vm15713_vm7 = vmmov %vm15567_vm6 }
 0xa39   :  { %v4914_v32 = vadd.f32 %v4913_v26, %v4849_v43  ;;  %v4851_v34 = vpop.f32.mrf.mxu1 }
 0xa3a   :  { %v4978_v4 = vpop.f32.mrf.mxu3  ;;  %v4852_v47 = vadd.f32 %v4851_v34, %v12804_v27 }
 0xa3b   :  { %v12960_v7 = vadd.f32 %v4978_v4, %v4914_v32  ;;  %v15558_v4 = vld [vmem:[#allocation750_spill] sm:$0xff] }
 0xa3c   :  { %5045 = vmatmul.f32.gmra.mxu1 %v15555_v21 }
 0xa3d   :  { %7363 = vmatmul.msk.f32.gmra.mxu2 %vm2976_vm10, %v15556_v22 }
 0xa3f   :  { %5175 = vmatmul.f32.gmra.mxu3 %v11811_v48 }
 0xa40   :  { %v4916_v37 = vpop.f32.mrf.mxu2 }
 0xa41   :  { %v4917_v20 = vadd.f32 %v4916_v37, %v4852_v47  ;;  %v4854_v49 = vpop.f32.mrf.mxu1  ;;  %v15559_v47 = vld [vmem:[#allocation758_spill] sm:$0xff] }
 0xa42   :  { %v4981_v45 = vpop.f32.mrf.mxu3  ;;  %v4855_v43 = vadd.f32 %v4854_v49, %v12810_v28  ;;  %v15560_v37 = vld [vmem:[#allocation754_spill] sm:$0xff] }
 0xa43   :  { %v12968_v60 = vadd.f32 %v4981_v45, %v4917_v20 }
 0xa44   :  { %5048 = vmatmul.f32.gmra.mxu1 %v15557_v6 }
 0xa45   :  { %7364 = vmatmul.msk.f32.gmra.mxu2 %vm2978_vm12, %v15558_v4 }
 0xa47   :  { %5178 = vmatmul.f32.gmra.mxu3 %v11839_v33 }
 0xa48   :  { %v4919_v26 = vpop.f32.mrf.mxu2 }
 0xa49   :  { %v4920_v27 = vadd.f32 %v4919_v26, %v4855_v43  ;;  %v4857_v32 = vpop.f32.mrf.mxu1  ;;  %v15561_v43 = vld [vmem:[#allocation763_spill] sm:$0xff] }
 0xa4a   :  { %v4984_v34 = vpop.f32.mrf.mxu3  ;;  %v4858_v20 = vadd.f32 %v4857_v32, %v12816_v56  ;;  %v15562_v26 = vld [vmem:[#allocation759_spill] sm:$0xff] }
 0xa4b   :  { %v12976_v48 = vadd.f32 %v4984_v34, %v4920_v27 }
 0xa4c   :  { %5051 = vmatmul.f32.gmra.mxu1 %v15559_v47 }
 0xa4d   :  { %7365 = vmatmul.msk.f32.gmra.mxu2 %vm2980_vm14, %v15560_v37 }
 0xa4f   :  { %5181 = vmatmul.f32.gmra.mxu3 %v11867_v3 }
 0xa50   :  { %v4922_v45 = vpop.f32.mrf.mxu2 }
 0xa51   :  { %v4923_v28 = vadd.f32 %v4922_v45, %v4858_v20  ;;  %v4860_v49 = vpop.f32.mrf.mxu1  ;;  %v15564_v20 = vld [vmem:[#allocation768_spill] sm:$0xff] }
 0xa52   :  { %v4987_v33 = vpop.f32.mrf.mxu3  ;;  %v4861_v27 = vadd.f32 %v4860_v49, %v12822_v36 }
 0xa53   :  { %v12984_v4 = vadd.f32 %v4987_v33, %v4923_v28  ;;  %v15565_v33 = vld [vmem:[#allocation764_spill] sm:$0xff] }
 0xa54   :  { %5054 = vmatmul.f32.gmra.mxu1 %v15561_v43 }
 0xa55   :  { %7366 = vmatmul.msk.f32.gmra.mxu2 %vm15563_vm8, %v15562_v26 }
 0xa57   :  { %5184 = vmatmul.f32.gmra.mxu3 %v15477_v17 }
 0xa58   :  { %v4925_v34 = vpop.f32.mrf.mxu2 }
 0xa59   :  { %v4926_v56 = vadd.f32 %v4925_v34, %v4861_v27  ;;  %v4863_v32 = vpop.f32.mrf.mxu1 }
 0xa5a   :  { %v4990_v3 = vpop.f32.mrf.mxu3  ;;  %v4864_v45 = vadd.f32 %v4863_v32, %v12828_v44 }
 0xa5b   :  { %v12992_v37 = vadd.f32 %v4990_v3, %v4926_v56 }
 0xa5c   :  { %5057 = vmatmul.f32.gmra.mxu1 %v15564_v20 }
 0xa5d   :  { %7367 = vmatmul.msk.f32.gmra.mxu2 %vm15566_vm11, %v15565_v33 }
 0xa5f   :  { %5187 = vmatmul.f32.gmra.mxu3 %v15481_v51 }
 0xa60   :  { %v4928_v28 = vpop.f32.mrf.mxu2 }
 0xa61   :  { %v4929_v36 = vadd.f32 %v4928_v28, %v4864_v45  ;;  %v4866_v49 = vpop.f32.mrf.mxu1  ;;  %v15568_v45 = vld [vmem:[#allocation778_spill] sm:$0xff] }
 0xa62   :  { %v4993_v17 = vpop.f32.mrf.mxu3  ;;  %v4867_v3 = vadd.f32 %v4866_v49, %v12834_v61 }
 0xa63   :  { %v13000_v26 = vadd.f32 %v4993_v17, %v4929_v36  ;;  %v15569_v17 = vld [vmem:[#allocation774_spill] sm:$0xff]  ;;  %v15571_v36 = vld [vmem:[#allocation780_spill] sm:$0xff] }
 0xa64   :  { %5060 = vmatmul.f32.gmra.mxu1 %v15422_v5  ;;  %vm15570_vm1 = vcmp.gt.f32.partialorder %v15569_v17, 0.0 }
 0xa65   :  { %7368 = vmatmul.msk.f32.gmra.mxu2 %vm15567_vm6, %v15423_v59 }
 0xa67   :  { %5190 = vmatmul.f32.gmra.mxu3 %v15483_v29 }
 0xa68   :  { %v4931_v27 = vpop.f32.mrf.mxu2 }
 0xa69   :  { %v4932_v44 = vadd.f32 %v4931_v27, %v4867_v3  ;;  %v4869_v34 = vpop.f32.mrf.mxu1  ;;  %v15572_v3 = vld [vmem:[#allocation318_spill] sm:$0xff] }
 0xa6a   :  { %v4996_v56 = vpop.f32.mrf.mxu3  ;;  %v4870_v28 = vadd.f32 %v4869_v34, %v12840_v19  ;;  %v15573_v27 = vld [vmem:[#allocation334_spill] sm:$0xff]  ;;  %v15574_v34 = vld [vmem:[#allocation317_spill] sm:$0xff] }
 0xa6b   :  { %v13008_v32 = vadd.f32 %v4996_v56, %v4932_v44 }
 0xa6c   :  { %5063 = vmatmul.f32.gmra.mxu1 %v15568_v45 }
 0xa6d   :  { %7369 = vmatmul.msk.f32.gmra.mxu2 %vm15570_vm1, %v15569_v17 }
 0xa6f   :  { %5193 = vmatmul.f32.gmra.mxu3 %v15571_v36 }
 0xa70   :  { %v4934_v59 = vpop.f32.mrf.mxu2 }
 0xa71   :  { %v4935_v61 = vadd.f32 %v4934_v59, %v4870_v28  ;;  %v5019_v29 = vpop.f32.mrf.mxu1  ;;  %v15575_v59 = vld [vmem:[#allocation333_spill] sm:$0xff]  ;;  %v15576_v28 = vld [vmem:[#allocation350_spill] sm:$0xff] }
 0xa72   :  { %v4999_v49 = vpop.f32.mrf.mxu3  ;;  %v5020_v44 = vadd.f32 %v5019_v29, %v12855_v42  ;;  %v15580_v29 = vld [vmem:[#allocation315_spill] sm:$0xff] }
 0xa73   :  { %v13016_v51 = vadd.f32 %v4999_v49, %v4935_v61  ;;  %v15577_v49 = vld [vmem:[#allocation316_spill] sm:$0xff]  ;;  %v15581_v42 = vld [vmem:[#allocation331_spill] sm:$0xff] }
 0xa74   :  { %5213 = vmatmul.f32.vlgmr.msra.gmra.mxu1 %v12121_v25 }
 0xa75   :  { %5278 = vmatmul.f32.vlgmr.msrb.gmra.mxu2 %v15363_v18  ;;  %5587 = vmatpush.msra.mxu1 %v15572_v3  ;;  %v15578_v18 = vld [vmem:[#allocation332_spill] sm:$0xff] }
 0xa76   :  { %5652 = vmatpush.msrb.mxu2 %v15573_v27  ;;  %v15579_v27 = vld [vmem:[#allocation349_spill] sm:$0xff] }
 0xa77   :  { %5343 = vmatmul.f32.vlgmr.msrb.gmra.mxu3 %v15498_v14  ;;  %5588 = vmatpush.msra.mxu1 %v15574_v34  ;;  %v15582_v14 = vld [vmem:[#allocation314_spill] sm:$0xff] }
 0xa78   :  { %v5084_v19 = vpop.f32.mrf.mxu2  ;;  %5653 = vmatpush.msrb.mxu2 %v15575_v59  ;;  %5717 = vmatpush.msrb.mxu3 %v15576_v28  ;;  %v15584_v34 = vld [vmem:[#allocation330_spill] sm:$0xff]  ;;  %v15586_v28 = vld [vmem:[#allocation347_spill] sm:$0xff] }
 0xa79   :  { %v5085_v56 = vadd.f32 %v5084_v19, %v5020_v44  ;;  %v5022_v61 = vpop.f32.mrf.mxu1  ;;  %5589 = vmatpush.msra.mxu1 %v15577_v49  ;;  %v15583_v44 = vld [vmem:[#allocation348_spill] sm:$0xff]  ;;  %v15587_v49 = vld [vmem:[#allocation329_spill] sm:$0xff] }
 0xa7a   :  { %v5149_v25 = vpop.f32.mrf.mxu3  ;;  %5654 = vmatpush.msrb.mxu2 %v15578_v18  ;;  %5718 = vmatpush.msrb.mxu3 %v15579_v27  ;;  %v5023_v19 = vadd.f32 %v5022_v61, %v12874_v15  ;;  %v15590_v15 = vld [vmem:[#allocation328_spill] sm:$0xff]  ;;  %v15591_v61 = vld [vmem:[#allocation311_spill] sm:$0xff] }
 0xa7b   :  { %v13029_v3 = vadd.f32 %v5149_v25, %v5085_v56  ;;  %5590 = vmatpush.msra.mxu1 %v15580_v29  ;;  %v15585_v56 = vld [vmem:[#allocation313_spill] sm:$0xff]  ;;  %v15588_v29 = vld [vmem:[#allocation312_spill] sm:$0xff] }
 0xa7c   :  { %5655 = vmatpush.msrb.mxu2 %v15581_v42  ;;  %5216 = vmatmul.f32.gmra.mxu1 %v12143_v40  ;;  %v15589_v42 = vld [vmem:[#allocation346_spill] sm:$0xff] }
 0xa7d   :  { %5281 = vmatmul.f32.gmra.mxu2 %v15375_v52  ;;  %5591 = vmatpush.msra.mxu1 %v15582_v14 }
 0xa7e   :  { %5719 = vmatpush.msrb.mxu3 %v15583_v44  ;;  %5656 = vmatpush.msrb.mxu2 %v15584_v34  ;;  %v15592_v44 = vld [vmem:[#allocation345_spill] sm:$0xff]  ;;  %v15594_v34 = vld [vmem:[#allocation327_spill] sm:$0xff] }
 0xa7f   :  { %5346 = vmatmul.f32.gmra.mxu3 %v15511_v1  ;;  %5592 = vmatpush.msra.mxu1 %v15585_v56 }
 0xa80   :  { %v5087_v59 = vpop.f32.mrf.mxu2  ;;  %5720 = vmatpush.msrb.mxu3 %v15586_v28  ;;  %5657 = vmatpush.msrb.mxu2 %v15587_v49  ;;  %v15595_v28 = vld [vmem:[#allocation309_spill] sm:$0xff] }
 0xa81   :  { %v5088_v25 = vadd.f32 %v5087_v59, %v5023_v19  ;;  %v5025_v18 = vpop.f32.mrf.mxu1  ;;  %5593 = vmatpush.msra.mxu1 %v15588_v29  ;;  %v15593_v19 = vld [vmem:[#allocation310_spill] sm:$0xff] }
 0xa82   :  { %v5152_v27 = vpop.f32.mrf.mxu3  ;;  %5721 = vmatpush.msrb.mxu3 %v15589_v42  ;;  %5658 = vmatpush.msrb.mxu2 %v15590_v15  ;;  %v5026_v59 = vadd.f32 %v5025_v18, %v12892_v38  ;;  %v15598_v15 = vld [vmem:[#allocation308_spill] sm:$0xff]  ;;  %v15601_v38 = vld [vmem:[#allocation307_spill] sm:$0xff]  ;;  %v15602_v18 = vld [vmem:[#allocation342_spill] sm:$0xff] }
 0xa83   :  { %v13046_v14 = vadd.f32 %v5152_v27, %v5088_v25  ;;  %5594 = vmatpush.msra.mxu1 %v15591_v61  ;;  %v15596_v25 = vld [vmem:[#allocation344_spill] sm:$0xff]  ;;  %v15597_v27 = vld [vmem:[#allocation326_spill] sm:$0xff]  ;;  %v15599_v61 = vld [vmem:[#allocation343_spill] sm:$0xff] }
 0xa84   :  { %5722 = vmatpush.msrb.mxu3 %v15592_v44  ;;  %5219 = vmatmul.f32.gmra.mxu1 %v12165_v30 }
 0xa85   :  { %5284 = vmatmul.f32.gmra.mxu2 %v15387_v8  ;;  %5595 = vmatpush.msra.mxu1 %v15593_v19  ;;  %v15600_v19 = vld [vmem:[#allocation325_spill] sm:$0xff] }
 0xa86   :  { %5659 = vmatpush.msrb.mxu2 %v15594_v34  ;;  %5723 = vmatpush.msrb.mxu3 %v15596_v25  ;;  %v15603_v34 = vld [vmem:[#allocation306_spill] sm:$0xff]  ;;  %v15605_v25 = vld [vmem:[#allocation305_spill] sm:$0xff] }
 0xa87   :  { %5349 = vmatmul.f32.gmra.mxu3 %v15523_v41  ;;  %5596 = vmatpush.msra.mxu1 %v15595_v28 }
 0xa88   :  { %v5090_v56 = vpop.f32.mrf.mxu2  ;;  %5660 = vmatpush.msrb.mxu2 %v15597_v27  ;;  %5724 = vmatpush.msrb.mxu3 %v15599_v61 }
 0xa89   :  { %v5091_v49 = vadd.f32 %v5090_v56, %v5026_v59  ;;  %v5028_v29 = vpop.f32.mrf.mxu1  ;;  %5597 = vmatpush.msra.mxu1 %v15598_v15  ;;  %v15604_v59 = vld [vmem:[#allocation324_spill] sm:$0xff] }
 0xa8a   :  { %v5155_v42 = vpop.f32.mrf.mxu3  ;;  %5661 = vmatpush.msrb.mxu2 %v15600_v19  ;;  %5725 = vmatpush.msrb.mxu3 %v15602_v18  ;;  %v5029_v56 = vadd.f32 %v5028_v29, %v12910_v46  ;;  %v15608_v19 = vld [vmem:[#allocation304_spill] sm:$0xff]  ;;  %v15611_v46 = vld [vmem:[#allocation303_spill] sm:$0xff] }
 0xa8b   :  { %v13062_v44 = vadd.f32 %v5155_v42, %v5091_v49  ;;  %5598 = vmatpush.msra.mxu1 %v15601_v38  ;;  %v15606_v49 = vld [vmem:[#allocation341_spill] sm:$0xff]  ;;  %v15607_v42 = vld [vmem:[#allocation323_spill] sm:$0xff]  ;;  %v15609_v38 = vld [vmem:[#allocation340_spill] sm:$0xff] }
 0xa8c   :  { %5222 = vmatmul.f32.gmra.mxu1 %v12187_v31  ;;  %5662 = vmatpush.msrb.mxu2 %v15604_v59  ;;  %v15612_v29 = vld [vmem:[#allocation339_spill] sm:$0xff]  ;;  %v15613_v59 = vld [vmem:[#allocation321_spill] sm:$0xff] }
 0xa8d   :  { %5287 = vmatmul.f32.gmra.mxu2 %v15396_v57  ;;  %5599 = vmatpush.msra.mxu1 %v15603_v34  ;;  %v15610_v34 = vld [vmem:[#allocation322_spill] sm:$0xff] }
 0xa8e   :  { %5726 = vmatpush.msrb.mxu3 %v15606_v49  ;;  %5663 = vmatpush.msrb.mxu2 %v15607_v42  ;;  %v15615_v49 = vld [vmem:[#allocation320_spill] sm:$0xff] }
 0xa8f   :  { %5352 = vmatmul.f32.gmra.mxu3 %v15535_v2  ;;  %5600 = vmatpush.msra.mxu1 %v15605_v25 }
 0xa90   :  { %v5093_v28 = vpop.f32.mrf.mxu2  ;;  %5727 = vmatpush.msrb.mxu3 %v15609_v38  ;;  %5664 = vmatpush.msrb.mxu2 %v15610_v34  ;;  %v15617_v38 = vld [vmem:[#allocation319_spill] sm:$0xff]  ;;  %v15618_v34 = vld [vmem:[#allocation336_spill] sm:$0xff] }
 0xa91   :  { %v5094_v27 = vadd.f32 %v5093_v28, %v5029_v56  ;;  %v5031_v15 = vpop.f32.mrf.mxu1  ;;  %5601 = vmatpush.msra.mxu1 %v15608_v19  ;;  %v15614_v56 = vld [vmem:[#allocation338_spill] sm:$0xff] }
 0xa92   :  { %v5158_v61 = vpop.f32.mrf.mxu3  ;;  %5728 = vmatpush.msrb.mxu3 %v15612_v29  ;;  %5665 = vmatpush.msrb.mxu2 %v15613_v59  ;;  %v5032_v28 = vadd.f32 %v5031_v15, %v12927_v35  ;;  %v15619_v29 = vld [vmem:[#allocation335_spill] sm:$0xff] }
 0xa93   :  { %v13078_v18 = vadd.f32 %v5158_v61, %v5094_v27  ;;  %5602 = vmatpush.msra.mxu1 %v15611_v46  ;;  %v15616_v27 = vld [vmem:[#allocation337_spill] sm:$0xff] }
 0xa94   :  { %5225 = vmatmul.f32.gmra.mxu1 %v12209_v58  ;;  %5729 = vmatpush.msrb.mxu3 %v15614_v56 }
 0xa95   :  { %5290 = vmatmul.f32.gmra.mxu2 %v15398_v16 }
 0xa96   :  { %5666 = vmatpush.msrb.mxu2 %v15615_v49  ;;  %5730 = vmatpush.msrb.mxu3 %v15616_v27 }
 0xa97   :  { %5355 = vmatmul.f32.gmra.mxu3 %v15544_v39 }
 0xa98   :  { %v5096_v25 = vpop.f32.mrf.mxu2  ;;  %5667 = vmatpush.msrb.mxu2 %v15617_v38  ;;  %5731 = vmatpush.msrb.mxu3 %v15618_v34  ;;  %v15620_v38 = vld [vmem:[#allocation685_spill] sm:$0xff] }
 0xa99   :  { %v5097_v42 = vadd.f32 %v5096_v25, %v5032_v28  ;;  %v5034_v61 = vpop.f32.mrf.mxu1  ;;  %v15621_v34 = vld [vmem:[#allocation729_spill] sm:$0xff] }
 0xa9a   :  { %v5161_v19 = vpop.f32.mrf.mxu3  ;;  %5732 = vmatpush.msrb.mxu3 %v15619_v29  ;;  %v5035_v35 = vadd.f32 %v5034_v61, %v12936_v13 }
 0xa9b   :  { %v13093_v46 = vadd.f32 %v5161_v19, %v5097_v42 }
 0xa9c   :  { %5228 = vmatmul.f32.gmra.mxu1 %v12233_v53 }
 0xa9d   :  { %5293 = vmatmul.f32.gmra.mxu2 %v15400_v62 }
 0xa9f   :  { %5358 = vmatmul.f32.gmra.mxu3 %v15546_v63 }
 0xaa0   :  { %v5099_v15 = vpop.f32.mrf.mxu2 }
 0xaa1   :  { %v5100_v59 = vadd.f32 %v5099_v15, %v5035_v35  ;;  %v5037_v56 = vpop.f32.mrf.mxu1  ;;  %v15622_v35 = vld [vmem:[#allocation708_spill] sm:$0xff] }
 0xaa2   :  { %v5164_v28 = vpop.f32.mrf.mxu3  ;;  %v5038_v49 = vadd.f32 %v5037_v56, %v12944_v24 }
 0xaa3   :  { %v13100_v25 = vadd.f32 %v5164_v28, %v5100_v59 }
 0xaa4   :  { %5231 = vmatmul.f32.gmra.mxu1 %v15474_v50 }
 0xaa5   :  { %5296 = vmatmul.f32.gmra.mxu2 %v15475_v10 }
 0xaa7   :  { %5361 = vmatmul.f32.gmra.mxu3 %v15549_v9 }
 0xaa8   :  { %v5102_v27 = vpop.f32.mrf.mxu2 }
 0xaa9   :  { %v5103_v42 = vadd.f32 %v5102_v27, %v5038_v49  ;;  %v5040_v19 = vpop.f32.mrf.mxu1 }
 0xaaa   :  { %v5167_v13 = vpop.f32.mrf.mxu3  ;;  %v5041_v29 = vadd.f32 %v5040_v19, %v12952_v0 }
 0xaab   :  { %v13106_v61 = vadd.f32 %v5167_v13, %v5103_v42 }
 0xaac   :  { %5234 = vmatmul.f32.gmra.mxu1 %v15620_v38 }
 0xaad   :  { %5299 = vmatmul.f32.gmra.mxu2 %v15621_v34 }
 0xaaf   :  { %5364 = vmatmul.f32.gmra.mxu3 %v15622_v35 }
 0xab0   :  { %v5105_v15 = vpop.f32.mrf.mxu2 }
 0xab1   :  { %v5106_v59 = vadd.f32 %v5105_v15, %v5041_v29  ;;  %v5043_v28 = vpop.f32.mrf.mxu1 }
 0xab2   :  { %v5170_v24 = vpop.f32.mrf.mxu3  ;;  %v5044_v49 = vadd.f32 %v5043_v28, %v12960_v7  ;;  %v15624_v28 = vld [vmem:[#allocation757_spill] sm:$0xff] }
 0xab3   :  { %v13112_v56 = vadd.f32 %v5170_v24, %v5106_v59 }
 0xab4   :  { %5237 = vmatmul.f32.gmra.mxu1 %v11785_v11 }
 0xab5   :  { %5302 = vmatmul.f32.gmra.mxu2 %v15408_v23 }
 0xab7   :  { %5367 = vmatmul.f32.gmra.mxu3 %v15555_v21  ;;  %v15623_v21 = vld [vmem:[#allocation756_spill] sm:$0xff] }
 0xab8   :  { %v5108_v27 = vpop.f32.mrf.mxu2 }
 0xab9   :  { %v5109_v42 = vadd.f32 %v5108_v27, %v5044_v49  ;;  %v5046_v13 = vpop.f32.mrf.mxu1 }
 0xaba   :  { %v5173_v0 = vpop.f32.mrf.mxu3  ;;  %v5047_v29 = vadd.f32 %v5046_v13, %v12968_v60 }
 0xabb   :  { %v13118_v19 = vadd.f32 %v5173_v0, %v5109_v42  ;;  %v15625_v0 = vld [vmem:[#allocation761_spill] sm:$0xff] }
 0xabc   :  { %5240 = vmatmul.f32.gmra.mxu1 %v11813_v12 }
 0xabd   :  { %5305 = vmatmul.f32.gmra.mxu2 %v15410_v55 }
 0xabf   :  { %5370 = vmatmul.f32.gmra.mxu3 %v15557_v6 }
 0xac0   :  { %v5111_v11 = vpop.f32.mrf.mxu2 }
 0xac1   :  { %v5112_v23 = vadd.f32 %v5111_v11, %v5047_v29  ;;  %v5049_v15 = vpop.f32.mrf.mxu1  ;;  %v15626_v29 = vld [vmem:[#allocation762_spill] sm:$0xff] }
 0xac2   :  { %v5176_v7 = vpop.f32.mrf.mxu3  ;;  %v5050_v24 = vadd.f32 %v5049_v15, %v12976_v48 }
 0xac3   :  { %v13124_v59 = vadd.f32 %v5176_v7, %v5112_v23 }
 0xac4   :  { %5243 = vmatmul.f32.gmra.mxu1 %v15623_v21 }
 0xac5   :  { %5308 = vmatmul.f32.gmra.mxu2 %v15624_v28 }
 0xac7   :  { %5373 = vmatmul.f32.gmra.mxu3 %v15559_v47  ;;  %v15627_v47 = vld [vmem:[#allocation766_spill] sm:$0xff] }
 0xac8   :  { %v5114_v49 = vpop.f32.mrf.mxu2 }
 0xac9   :  { %v5115_v27 = vadd.f32 %v5114_v49, %v5050_v24  ;;  %v5052_v42 = vpop.f32.mrf.mxu1  ;;  %v15628_v24 = vld [vmem:[#allocation767_spill] sm:$0xff] }
 0xaca   :  { %v5179_v60 = vpop.f32.mrf.mxu3  ;;  %v5053_v11 = vadd.f32 %v5052_v42, %v12984_v4 }
 0xacb   :  { %v13130_v13 = vadd.f32 %v5179_v60, %v5115_v27 }
 0xacc   :  { %5246 = vmatmul.f32.gmra.mxu1 %v15625_v0 }
 0xacd   :  { %5311 = vmatmul.f32.gmra.mxu2 %v15626_v29 }
 0xacf   :  { %5376 = vmatmul.f32.gmra.mxu3 %v15561_v43  ;;  %v15629_v43 = vld [vmem:[#allocation771_spill] sm:$0xff] }
 0xad0   :  { %v5117_v23 = vpop.f32.mrf.mxu2 }
 0xad1   :  { %v5118_v7 = vadd.f32 %v5117_v23, %v5053_v11  ;;  %v5055_v28 = vpop.f32.mrf.mxu1  ;;  %v15630_v11 = vld [vmem:[#allocation772_spill] sm:$0xff] }
 0xad2   :  { %v5182_v48 = vpop.f32.mrf.mxu3  ;;  %v5056_v49 = vadd.f32 %v5055_v28, %v12992_v37 }
 0xad3   :  { %v13136_v15 = vadd.f32 %v5182_v48, %v5118_v7 }
 0xad4   :  { %5249 = vmatmul.f32.gmra.mxu1 %v15627_v47 }
 0xad5   :  { %5314 = vmatmul.f32.gmra.mxu2 %v15628_v24 }
 0xad7   :  { %5379 = vmatmul.f32.gmra.mxu3 %v15564_v20 }
 0xad8   :  { %v5120_v27 = vpop.f32.mrf.mxu2 }
 0xad9   :  { %v5121_v60 = vadd.f32 %v5120_v27, %v5056_v49  ;;  %v5058_v29 = vpop.f32.mrf.mxu1  ;;  %v15631_v49 = vld [vmem:[#allocation777_spill] sm:$0xff] }
 0xada   :  { %v5185_v4 = vpop.f32.mrf.mxu3  ;;  %v5059_v23 = vadd.f32 %v5058_v29, %v13000_v26 }
 0xadb   :  { %v13142_v42 = vadd.f32 %v5185_v4, %v5121_v60 }
 0xadc   :  { %5252 = vmatmul.f32.gmra.mxu1 %v15629_v43 }
 0xadd   :  { %5317 = vmatmul.f32.gmra.mxu2 %v15630_v11 }
 0xadf   :  { %5382 = vmatmul.f32.gmra.mxu3 %v15422_v5  ;;  %v15632_v5 = vld [vmem:[#allocation781_spill] sm:$0xff] }
 0xae0   :  { %v5123_v7 = vpop.f32.mrf.mxu2 }
 0xae1   :  { %v5124_v48 = vadd.f32 %v5123_v7, %v5059_v23  ;;  %v5061_v24 = vpop.f32.mrf.mxu1  ;;  %v15633_v23 = vld [vmem:[#allocation782_spill] sm:$0xff] }
 0xae2   :  { %v5188_v37 = vpop.f32.mrf.mxu3  ;;  %v5062_v27 = vadd.f32 %v5061_v24, %v13008_v32 }
 0xae3   :  { %v13148_v28 = vadd.f32 %v5188_v37, %v5124_v48  ;;  %v15634_v48 = vld [vmem:[#allocation783_spill] sm:$0xff] }
 0xae4   :  { %5255 = vmatmul.f32.gmra.mxu1 %v15484_v54 }
 0xae5   :  { %5320 = vmatmul.f32.gmra.mxu2 %v15631_v49 }
 0xae7   :  { %5385 = vmatmul.f32.gmra.mxu3 %v15568_v45  ;;  %v15635_v45 = vld [vmem:[#allocation696_spill] sm:$0xff] }
 0xae8   :  { %v5126_v60 = vpop.f32.mrf.mxu2 }
 0xae9   :  { %v5127_v4 = vadd.f32 %v5126_v60, %v5062_v27  ;;  %v5064_v11 = vpop.f32.mrf.mxu1  ;;  %v15636_v27 = vld [vmem:[#allocation675_spill] sm:$0xff]  ;;  %v15637_v60 = vld [vmem:[#allocation366_spill] sm:$0xff] }
 0xaea   :  { %v5191_v26 = vpop.f32.mrf.mxu3  ;;  %v5065_v7 = vadd.f32 %v5064_v11, %v13016_v51 }
 0xaeb   :  { %v13154_v29 = vadd.f32 %v5191_v26, %v5127_v4  ;;  %v15638_v4 = vld [vmem:[#allocation382_spill] sm:$0xff]  ;;  %v15639_v26 = vld [vmem:[#allocation365_spill] sm:$0xff] }
 0xaec   :  { %5258 = vmatmul.f32.gmra.mxu1 %v15632_v5 }
 0xaed   :  { %5323 = vmatmul.f32.gmra.mxu2 %v15633_v23 }
 0xaef   :  { %5388 = vmatmul.f32.gmra.mxu3 %v15634_v48  ;;  %v15642_v48 = vld [vmem:[#allocation364_spill] sm:$0xff] }
 0xaf0   :  { %v5129_v37 = vpop.f32.mrf.mxu2 }
 0xaf1   :  { %v5130_v49 = vadd.f32 %v5129_v37, %v5065_v7  ;;  %v5214_v32 = vpop.f32.mrf.mxu1  ;;  %v15640_v7 = vld [vmem:[#allocation381_spill] sm:$0xff] }
 0xaf2   :  { %v5194_v20 = vpop.f32.mrf.mxu3  ;;  %v5215_v51 = vadd.f32 %v5214_v32, %v13029_v3  ;;  %v15645_v3 = vld [vmem:[#allocation363_spill] sm:$0xff]  ;;  %v15647_v32 = vld [vmem:[#allocation697_spill] sm:$0xff] }
 0xaf3   :  { %v13160_v24 = vadd.f32 %v5194_v20, %v5130_v49  ;;  %v15641_v49 = vld [vmem:[#allocation398_spill] sm:$0xff] }
 0xaf4   :  { %7370 = vmatmul.msk.f32.vlgmr.msrb.gmra.mxu1 %vm2952_vm3, %v15635_v45  ;;  %vm15694_vm3 = vmmov %vm15548_vm2 }
 0xaf5   :  { %5473 = vmatmul.f32.vlgmr.msra.gmra.mxu2 %v15636_v27  ;;  %5782 = vmatpush.msrb.mxu1 %v15637_v60  ;;  %v15643_v27 = vld [vmem:[#allocation380_spill] sm:$0xff]  ;;  %vm15710_vm2 = vmmov %vm15566_vm11 }
 0xaf6   :  { %5847 = vmatpush.msra.mxu2 %v15638_v4  ;;  %v15644_v4 = vld [vmem:[#allocation397_spill] sm:$0xff] }
 0xaf7   :  { %5538 = vmatmul.f32.vlgmr.msra.gmra.mxu3 %v12143_v40  ;;  %5783 = vmatpush.msrb.mxu1 %v15639_v26  ;;  %v15646_v40 = vld [vmem:[#allocation379_spill] sm:$0xff]  ;;  %v15650_v26 = vld [vmem:[#allocation396_spill] sm:$0xff] }
 0xaf8   :  { %v5279_v11 = vpop.f32.mrf.mxu2  ;;  %5848 = vmatpush.msra.mxu2 %v15640_v7  ;;  %5912 = vmatpush.msra.mxu3 %v15641_v49  ;;  %v15651_v7 = vld [vmem:[#allocation378_spill] sm:$0xff]  ;;  %v15652_v49 = vld [vmem:[#allocation361_spill] sm:$0xff] }
 0xaf9   :  { %v5280_v20 = vadd.f32 %v5279_v11, %v5215_v51  ;;  %v5217_v37 = vpop.f32.mrf.mxu1  ;;  %5784 = vmatpush.msrb.mxu1 %v15642_v48  ;;  %v15648_v51 = vld [vmem:[#allocation720_spill] sm:$0xff]  ;;  %v15649_v11 = vld [vmem:[#allocation362_spill] sm:$0xff] }
 0xafa   :  { %v5344_v45 = vpop.f32.mrf.mxu3  ;;  %5849 = vmatpush.msra.mxu2 %v15643_v27  ;;  %5913 = vmatpush.msra.mxu3 %v15644_v4  ;;  %v5218_v48 = vadd.f32 %v5217_v37, %v13046_v14  ;;  %v15654_v4 = vld [vmem:[#allocation377_spill] sm:$0xff]  ;;  %v15657_v14 = vld [vmem:[#allocation376_spill] sm:$0xff]  ;;  %v15658_v37 = vld [vmem:[#allocation359_spill] sm:$0xff] }
 0xafb   :  { %v13175_v60 = vadd.f32 %v5344_v45, %v5280_v20  ;;  %5785 = vmatpush.msrb.mxu1 %v15645_v3  ;;  %v15653_v45 = vld [vmem:[#allocation395_spill] sm:$0xff] }
 0xafc   :  { %5850 = vmatpush.msra.mxu2 %v15646_v40  ;;  %7371 = vmatmul.msk.f32.gmra.mxu1 %vm2954_vm15, %v15647_v32 }
 0xafd   :  { %5476 = vmatmul.f32.gmra.mxu2 %v15648_v51  ;;  %5786 = vmatpush.msrb.mxu1 %v15649_v11  ;;  %v15655_v51 = vld [vmem:[#allocation360_spill] sm:$0xff]  ;;  %v15656_v11 = vld [vmem:[#allocation394_spill] sm:$0xff] }
 0xafe   :  { %5914 = vmatpush.msra.mxu3 %v15650_v26  ;;  %5851 = vmatpush.msra.mxu2 %v15651_v7  ;;  %v15659_v7 = vld [vmem:[#allocation393_spill] sm:$0xff] }
 0xaff   :  { %5541 = vmatmul.f32.gmra.mxu3 %v12165_v30  ;;  %5787 = vmatpush.msrb.mxu1 %v15652_v49  ;;  %v15660_v49 = vld [vmem:[#allocation676_spill] sm:$0xff] }
 0xb00   :  { %v5282_v20 = vpop.f32.mrf.mxu2  ;;  %5915 = vmatpush.msra.mxu3 %v15653_v45  ;;  %5852 = vmatpush.msra.mxu2 %v15654_v4  ;;  %v15663_v45 = vld [vmem:[#allocation375_spill] sm:$0xff]  ;;  %v15664_v4 = vld [vmem:[#allocation357_spill] sm:$0xff]  ;;  %v15667_v30 = vld [vmem:[#allocation356_spill] sm:$0xff] }
 0xb01   :  { %v5283_v27 = vadd.f32 %v5282_v20, %v5218_v48  ;;  %v5220_v3 = vpop.f32.mrf.mxu1  ;;  %5788 = vmatpush.msrb.mxu1 %v15655_v51  ;;  %v15661_v48 = vld [vmem:[#allocation678_spill] sm:$0xff] }
 0xb02   :  { %v5347_v40 = vpop.f32.mrf.mxu3  ;;  %5916 = vmatpush.msra.mxu3 %v15656_v11  ;;  %5853 = vmatpush.msra.mxu2 %v15657_v14  ;;  %v15662_v20 = vld [vmem:[#allocation358_spill] sm:$0xff]  ;;  %v5221_v51 = vadd.f32 %v5220_v3, %v13062_v44  ;;  %v15670_v44 = vld [vmem:[#allocation355_spill] sm:$0xff] }
 0xb03   :  { %v13194_v26 = vadd.f32 %v5347_v40, %v5283_v27  ;;  %5789 = vmatpush.msrb.mxu1 %v15658_v37  ;;  %v15665_v40 = vld [vmem:[#allocation392_spill] sm:$0xff]  ;;  %v15666_v14 = vld [vmem:[#allocation374_spill] sm:$0xff] }
 0xb04   :  { %5917 = vmatpush.msra.mxu3 %v15659_v7  ;;  %7372 = vmatmul.msk.f32.gmra.mxu1 %vm2956_vm13, %v15660_v49  ;;  %v15671_v3 = vld [vmem:[#allocation390_spill] sm:$0xff] }
 0xb05   :  { %5479 = vmatmul.f32.gmra.mxu2 %v15661_v48  ;;  %5790 = vmatpush.msrb.mxu1 %v15662_v20  ;;  %v15668_v48 = vld [vmem:[#allocation391_spill] sm:$0xff] }
 0xb06   :  { %5854 = vmatpush.msra.mxu2 %v15663_v45  ;;  %5918 = vmatpush.msra.mxu3 %v15665_v40  ;;  %v15669_v45 = vld [vmem:[#allocation373_spill] sm:$0xff]  ;;  %v15675_v40 = vld [vmem:[#allocation372_spill] sm:$0xff] }
 0xb07   :  { %5544 = vmatmul.f32.gmra.mxu3 %v12187_v31  ;;  %5791 = vmatpush.msrb.mxu1 %v15664_v4  ;;  %v15672_v4 = vld [vmem:[#allocation700_spill] sm:$0xff] }
 0xb08   :  { %v5285_v27 = vpop.f32.mrf.mxu2  ;;  %5855 = vmatpush.msra.mxu2 %v15666_v14  ;;  %5919 = vmatpush.msra.mxu3 %v15668_v48  ;;  %v15677_v14 = vld [vmem:[#allocation389_spill] sm:$0xff]  ;;  %v15679_v31 = vld [vmem:[#allocation352_spill] sm:$0xff] }
 0xb09   :  { %v5286_v11 = vadd.f32 %v5285_v27, %v5221_v51  ;;  %v5223_v37 = vpop.f32.mrf.mxu1  ;;  %5792 = vmatpush.msrb.mxu1 %v15667_v30  ;;  %v15673_v51 = vld [vmem:[#allocation702_spill] sm:$0xff] }
 0xb0a   :  { %v5350_v7 = vpop.f32.mrf.mxu3  ;;  %5856 = vmatpush.msra.mxu2 %v15669_v45  ;;  %5920 = vmatpush.msra.mxu3 %v15671_v3  ;;  %v15674_v27 = vld [vmem:[#allocation354_spill] sm:$0xff]  ;;  %v5224_v30 = vadd.f32 %v5223_v37, %v13078_v18  ;;  %v15678_v45 = vld [vmem:[#allocation371_spill] sm:$0xff] }
 0xb0b   :  { %v13212_v20 = vadd.f32 %v5350_v7, %v5286_v11  ;;  %5793 = vmatpush.msrb.mxu1 %v15670_v44  ;;  %v15676_v11 = vld [vmem:[#allocation353_spill] sm:$0xff]  ;;  %v15682_v18 = vld [vmem:[#allocation351_spill] sm:$0xff] }
 0xb0c   :  { %7373 = vmatmul.msk.f32.gmra.mxu1 %vm2958_vm9, %v15672_v4  ;;  %5857 = vmatpush.msra.mxu2 %v15675_v40  ;;  %v15681_v40 = vld [vmem:[#allocation370_spill] sm:$0xff]  ;;  %v15683_v37 = vld [vmem:[#allocation387_spill] sm:$0xff] }
 0xb0d   :  { %5482 = vmatmul.f32.gmra.mxu2 %v15673_v51  ;;  %5794 = vmatpush.msrb.mxu1 %v15674_v27  ;;  %v15680_v51 = vld [vmem:[#allocation388_spill] sm:$0xff] }
 0xb0e   :  { %5921 = vmatpush.msra.mxu3 %v15677_v14  ;;  %5858 = vmatpush.msra.mxu2 %v15678_v45  ;;  %v15687_v14 = vld [vmem:[#allocation386_spill] sm:$0xff]  ;;  %v15689_v45 = vld [vmem:[#allocation385_spill] sm:$0xff] }
 0xb0f   :  { %5547 = vmatmul.f32.gmra.mxu3 %v12209_v58  ;;  %5795 = vmatpush.msrb.mxu1 %v15676_v11  ;;  %v15684_v11 = vld [vmem:[#allocation723_spill] sm:$0xff]  ;;  %v15691_v58 = vld [vmem:[#allocation384_spill] sm:$0xff] }
 0xb10   :  { %v5288_v48 = vpop.f32.mrf.mxu2  ;;  %5922 = vmatpush.msra.mxu3 %v15680_v51  ;;  %5859 = vmatpush.msra.mxu2 %v15681_v40 }
 0xb11   :  { %v5289_v7 = vadd.f32 %v5288_v48, %v5224_v30  ;;  %v5226_v44 = vpop.f32.mrf.mxu1  ;;  %5796 = vmatpush.msrb.mxu1 %v15679_v31  ;;  %v15685_v30 = vld [vmem:[#allocation725_spill] sm:$0xff] }
 0xb12   :  { %v5353_v3 = vpop.f32.mrf.mxu3  ;;  %5923 = vmatpush.msra.mxu3 %v15683_v37  ;;  %v15686_v48 = vld [vmem:[#allocation369_spill] sm:$0xff]  ;;  %v5227_v31 = vadd.f32 %v5226_v44, %v13093_v46  ;;  %v15690_v37 = vld [vmem:[#allocation367_spill] sm:$0xff] }
 0xb13   :  { %v13230_v27 = vadd.f32 %v5353_v3, %v5289_v7  ;;  %5797 = vmatpush.msrb.mxu1 %v15682_v18  ;;  %5860 = vmatpush.msra.mxu2 %v15686_v48  ;;  %v15688_v7 = vld [vmem:[#allocation368_spill] sm:$0xff]  ;;  %v15692_v48 = vld [vmem:[#allocation383_spill] sm:$0xff] }
 0xb14   :  { %7374 = vmatmul.msk.f32.gmra.mxu1 %vm2960_vm5, %v15684_v11  ;;  %5924 = vmatpush.msra.mxu3 %v15687_v14  ;;  %v15693_v14 = vld [vmem:[#allocation681_spill] sm:$0xff]  ;;  %v15695_v46 = vld [vmem:[#allocation683_spill] sm:$0xff] }
 0xb15   :  { %5485 = vmatmul.f32.gmra.mxu2 %v15685_v30 }
 0xb16   :  { %5861 = vmatpush.msra.mxu2 %v15688_v7  ;;  %5925 = vmatpush.msra.mxu3 %v15689_v45 }
 0xb17   :  { %5550 = vmatmul.f32.gmra.mxu3 %v12233_v53 }
 0xb18   :  { %v5291_v51 = vpop.f32.mrf.mxu2  ;;  %5862 = vmatpush.msra.mxu2 %v15690_v37  ;;  %5926 = vmatpush.msra.mxu3 %v15691_v58  ;;  %v15696_v58 = vld [vmem:[#allocation705_spill] sm:$0xff] }
 0xb19   :  { %v5292_v3 = vadd.f32 %v5291_v51, %v5227_v31  ;;  %v5229_v40 = vpop.f32.mrf.mxu1 }
 0xb1a   :  { %v5356_v18 = vpop.f32.mrf.mxu3  ;;  %5927 = vmatpush.msra.mxu3 %v15692_v48  ;;  %v5230_v44 = vadd.f32 %v5229_v40, %v13100_v25 }
 0xb1b   :  { %v13247_v30 = vadd.f32 %v5356_v18, %v5292_v3  ;;  %v15698_v3 = vld [vmem:[#allocation707_spill] sm:$0xff] }
 0xb1c   :  { %7375 = vmatmul.msk.f32.gmra.mxu1 %vm15694_vm3, %v15693_v14 }
 0xb1d   :  { %5488 = vmatmul.f32.gmra.mxu2 %v15695_v46 }
 0xb1f   :  { %5553 = vmatmul.f32.gmra.mxu3 %v15474_v50 }
 0xb20   :  { %v5294_v31 = vpop.f32.mrf.mxu2 }
 0xb21   :  { %v5295_v51 = vadd.f32 %v5294_v31, %v5230_v44  ;;  %v5232_v7 = vpop.f32.mrf.mxu1  ;;  %v15699_v44 = vld [vmem:[#allocation728_spill] sm:$0xff]  ;;  %v15700_v31 = vld [vmem:[#allocation686_spill] sm:$0xff] }
 0xb22   :  { %v5359_v45 = vpop.f32.mrf.mxu3  ;;  %v5233_v18 = vadd.f32 %v5232_v7, %v13106_v61 }
 0xb23   :  { %v13256_v37 = vadd.f32 %v5359_v45, %v5295_v51  ;;  %v15701_v45 = vld [vmem:[#allocation730_spill] sm:$0xff] }
 0xb24   :  { %7376 = vmatmul.msk.f32.gmra.mxu1 %vm15697_vm4, %v15696_v58 }
 0xb25   :  { %5491 = vmatmul.f32.gmra.mxu2 %v15698_v3 }
 0xb27   :  { %5556 = vmatmul.f32.gmra.mxu3 %v15620_v38 }
 0xb28   :  { %v5297_v48 = vpop.f32.mrf.mxu2 }
 0xb29   :  { %v5298_v25 = vadd.f32 %v5297_v48, %v5233_v18  ;;  %v5235_v40 = vpop.f32.mrf.mxu1 }
 0xb2a   :  { %v5362_v50 = vpop.f32.mrf.mxu3  ;;  %v5236_v51 = vadd.f32 %v5235_v40, %v13112_v56 }
 0xb2b   :  { %v13264_v46 = vadd.f32 %v5362_v50, %v5298_v25  ;;  %v15702_v50 = vld [vmem:[#allocation751_spill] sm:$0xff] }
 0xb2c   :  { %7377 = vmatmul.msk.f32.gmra.mxu1 %vm2966_vm0, %v15699_v44 }
 0xb2d   :  { %5494 = vmatmul.f32.gmra.mxu2 %v15700_v31 }
 0xb2f   :  { %5559 = vmatmul.f32.gmra.mxu3 %v15701_v45 }
 0xb30   :  { %v5300_v3 = vpop.f32.mrf.mxu2 }
 0xb31   :  { %v5301_v61 = vadd.f32 %v5300_v3, %v5236_v51  ;;  %v5238_v7 = vpop.f32.mrf.mxu1  ;;  %v15703_v3 = vld [vmem:[#allocation750_spill] sm:$0xff] }
 0xb32   :  { %v5365_v38 = vpop.f32.mrf.mxu3  ;;  %v5239_v18 = vadd.f32 %v5238_v7, %v13118_v19 }
 0xb33   :  { %v13272_v53 = vadd.f32 %v5365_v38, %v5301_v61  ;;  %v15704_v38 = vld [vmem:[#allocation755_spill] sm:$0xff] }
 0xb34   :  { %7378 = vmatmul.msk.f32.gmra.mxu1 %vm2976_vm10, %v15556_v22  ;;  %vm15708_vm10 = vmmov %vm15563_vm8 }
 0xb35   :  { %5497 = vmatmul.f32.gmra.mxu2 %v15702_v50  ;;  %v15705_v50 = vld [vmem:[#allocation754_spill] sm:$0xff]  ;;  %vm15715_vm8 = vmmov %vm15570_vm1 }
 0xb37   :  { %5562 = vmatmul.f32.gmra.mxu3 %v11813_v12 }
 0xb38   :  { %v5303_v48 = vpop.f32.mrf.mxu2 }
 0xb39   :  { %v5304_v56 = vadd.f32 %v5303_v48, %v5239_v18  ;;  %v5241_v25 = vpop.f32.mrf.mxu1  ;;  %v15706_v18 = vld [vmem:[#allocation760_spill] sm:$0xff] }
 0xb3a   :  { %v5368_v40 = vpop.f32.mrf.mxu3  ;;  %v5242_v22 = vadd.f32 %v5241_v25, %v13124_v59 }
 0xb3b   :  { %v13280_v45 = vadd.f32 %v5368_v40, %v5304_v56 }
 0xb3c   :  { %7379 = vmatmul.msk.f32.gmra.mxu1 %vm2978_vm12, %v15703_v3 }
 0xb3d   :  { %5500 = vmatmul.f32.gmra.mxu2 %v15704_v38 }
 0xb3f   :  { %5565 = vmatmul.f32.gmra.mxu3 %v15623_v21 }
 0xb40   :  { %v5306_v51 = vpop.f32.mrf.mxu2 }
 0xb41   :  { %v5307_v19 = vadd.f32 %v5306_v51, %v5242_v22  ;;  %v5244_v61 = vpop.f32.mrf.mxu1  ;;  %v15707_v22 = vld [vmem:[#allocation759_spill] sm:$0xff]  ;;  %v15709_v51 = vld [vmem:[#allocation765_spill] sm:$0xff] }
 0xb42   :  { %v5371_v12 = vpop.f32.mrf.mxu3  ;;  %v5245_v48 = vadd.f32 %v5244_v61, %v13130_v13 }
 0xb43   :  { %v13288_v7 = vadd.f32 %v5371_v12, %v5307_v19 }
 0xb44   :  { %7380 = vmatmul.msk.f32.gmra.mxu1 %vm2980_vm14, %v15705_v50 }
 0xb45   :  { %5503 = vmatmul.f32.gmra.mxu2 %v15706_v18 }
 0xb47   :  { %5568 = vmatmul.f32.gmra.mxu3 %v15625_v0 }
 0xb48   :  { %v5309_v56 = vpop.f32.mrf.mxu2 }
 0xb49   :  { %v5310_v59 = vadd.f32 %v5309_v56, %v5245_v48  ;;  %v5247_v25 = vpop.f32.mrf.mxu1  ;;  %v15711_v48 = vld [vmem:[#allocation770_spill] sm:$0xff] }
 0xb4a   :  { %v5374_v40 = vpop.f32.mrf.mxu3  ;;  %v5248_v19 = vadd.f32 %v5247_v25, %v13136_v15 }
 0xb4b   :  { %v13296_v21 = vadd.f32 %v5374_v40, %v5310_v59 }
 0xb4c   :  { %7381 = vmatmul.msk.f32.gmra.mxu1 %vm15708_vm10, %v15707_v22 }
 0xb4d   :  { %5506 = vmatmul.f32.gmra.mxu2 %v15709_v51 }
 0xb4f   :  { %5571 = vmatmul.f32.gmra.mxu3 %v15627_v47 }
 0xb50   :  { %v5312_v12 = vpop.f32.mrf.mxu2 }
 0xb51   :  { %v5313_v13 = vadd.f32 %v5312_v12, %v5248_v19  ;;  %v5250_v61 = vpop.f32.mrf.mxu1  ;;  %v15712_v19 = vld [vmem:[#allocation769_spill] sm:$0xff] }
 0xb52   :  { %v5377_v0 = vpop.f32.mrf.mxu3  ;;  %v5251_v56 = vadd.f32 %v5250_v61, %v13142_v42 }
 0xb53   :  { %v13304_v18 = vadd.f32 %v5377_v0, %v5313_v13  ;;  %v15714_v0 = vld [vmem:[#allocation775_spill] sm:$0xff] }
 0xb54   :  { %7382 = vmatmul.msk.f32.gmra.mxu1 %vm15710_vm2, %v15565_v33 }
 0xb55   :  { %5509 = vmatmul.f32.gmra.mxu2 %v15711_v48 }
 0xb57   :  { %5574 = vmatmul.f32.gmra.mxu3 %v15629_v43 }
 0xb58   :  { %v5315_v59 = vpop.f32.mrf.mxu2 }
 0xb59   :  { %v5316_v15 = vadd.f32 %v5315_v59, %v5251_v56  ;;  %v5253_v25 = vpop.f32.mrf.mxu1 }
 0xb5a   :  { %v5380_v40 = vpop.f32.mrf.mxu3  ;;  %v5254_v12 = vadd.f32 %v5253_v25, %v13148_v28 }
 0xb5b   :  { %v13312_v47 = vadd.f32 %v5380_v40, %v5316_v15 }
 0xb5c   :  { %7383 = vmatmul.msk.f32.gmra.mxu1 %vm15713_vm7, %v15712_v19  ;;  %vm6071_vm7 = vcmask 1041409  }
 0xb5d   :  { %5512 = vmatmul.f32.gmra.mxu2 %v15714_v0 }
 0xb5f   :  { %5577 = vmatmul.f32.gmra.mxu3 %v15484_v54 }
 0xb60   :  { %v5318_v13 = vpop.f32.mrf.mxu2 }
 0xb61   :  { %v5319_v42 = vadd.f32 %v5318_v13, %v5254_v12  ;;  %v5256_v61 = vpop.f32.mrf.mxu1  ;;  %v15716_v12 = vld [vmem:[#allocation779_spill] sm:$0xff] }
 0xb62   :  { %v5383_v43 = vpop.f32.mrf.mxu3  ;;  %v5257_v56 = vadd.f32 %v5256_v61, %v13154_v29  ;;  %vm15717_vm11 = vcmp.gt.f32.partialorder %v15716_v12, 0.0 }
 0xb63   :  { %v13320_v48 = vadd.f32 %v5383_v43, %v5319_v42  ;;  %v15718_v43 = vld [vmem:[#allocation785_spill] sm:$0xff]  ;;  %v15719_v42 = vld [vmem:[#allocation786_spill] sm:$0xff] }
 0xb64   :  { %7384 = vmatmul.msk.f32.gmra.mxu1 %vm15715_vm8, %v15569_v17  ;;  %vm6073_vm8 = vcmask 1043459  }
 0xb65   :  { %5515 = vmatmul.f32.gmra.mxu2 %v15571_v36 }
 0xb67   :  { %5580 = vmatmul.f32.gmra.mxu3 %v15632_v5 }
 0xb68   :  { %v5321_v59 = vpop.f32.mrf.mxu2 }
 0xb69   :  { %v5322_v28 = vadd.f32 %v5321_v59, %v5257_v56  ;;  %v5259_v15 = vpop.f32.mrf.mxu1  ;;  %v15720_v56 = vld [vmem:[#allocation414_spill] sm:$0xff] }
 0xb6a   :  { %v5386_v25 = vpop.f32.mrf.mxu3  ;;  %v5260_v13 = vadd.f32 %v5259_v15, %v13160_v24 }
 0xb6b   :  { %v13328_v40 = vadd.f32 %v5386_v25, %v5322_v28  ;;  %v15721_v28 = vld [vmem:[#allocation413_spill] sm:$0xff] }
 0xb6c   :  { %7385 = vmatmul.msk.f32.gmra.mxu1 %vm15717_vm11, %v15716_v12 }
 0xb6d   :  { %5518 = vmatmul.f32.gmra.mxu2 %v15718_v43 }
 0xb6f   :  { %5583 = vmatmul.f32.gmra.mxu3 %v15719_v42 }
 0xb70   :  { %v5324_v36 = vpop.f32.mrf.mxu2 }
 0xb71   :  { %v5325_v29 = vadd.f32 %v5324_v36, %v5260_v13  ;;  %v5409_v5 = vpop.f32.mrf.mxu1  ;;  %v15722_v13 = vld [vmem:[#allocation412_spill] sm:$0xff] }
 0xb72   :  { %v5389_v61 = vpop.f32.mrf.mxu3  ;;  %v5410_v59 = vadd.f32 %v5409_v5, %v13175_v60  ;;  %v15724_v5 = vld [vmem:[#allocation410_spill] sm:$0xff] }
 0xb73   :  { %v13336_v54 = vadd.f32 %v5389_v61, %v5325_v29 }
 0xb74   :  { %5603 = vmatmul.f32.vlgmr.msra.gmra.mxu1 %v15375_v52  ;;  %v15723_v52 = vld [vmem:[#allocation411_spill] sm:$0xff] }
 0xb75   :  { %5668 = vmatmul.f32.vlgmr.msrb.gmra.mxu2 %v15511_v1  ;;  %5977 = vmatpush.msra.mxu1 %v15720_v56 }
 0xb77   :  { %7386 = vmatmul.msk.f32.vlgmr.msrb.gmra.mxu3 %vm2954_vm15, %v15647_v32  ;;  %5978 = vmatpush.msra.mxu1 %v15721_v28  ;;  %v15725_v32 = vld [vmem:[#allocation409_spill] sm:$0xff]  ;;  %vm15755_vm15 = vmmov %vm15570_vm1 }
 0xb78   :  { %v5474_v24 = vpop.f32.mrf.mxu2 }
 0xb79   :  { %v5475_v36 = vadd.f32 %v5474_v24, %v5410_v59  ;;  %v5412_v15 = vpop.f32.mrf.mxu1  ;;  %5979 = vmatpush.msra.mxu1 %v15722_v13  ;;  %v15726_v24 = vld [vmem:[#allocation408_spill] sm:$0xff] }
 0xb7a   :  { %v5539_v25 = vpop.f32.mrf.mxu3  ;;  %v5413_v1 = vadd.f32 %v5412_v15, %v13194_v26  ;;  %v15728_v26 = vld [vmem:[#allocation406_spill] sm:$0xff] }
 0xb7b   :  { %v13347_v29 = vadd.f32 %v5539_v25, %v5475_v36  ;;  %5980 = vmatpush.msra.mxu1 %v15723_v52  ;;  %v15727_v36 = vld [vmem:[#allocation407_spill] sm:$0xff]  ;;  %v15729_v25 = vld [vmem:[#allocation405_spill] sm:$0xff] }
 0xb7c   :  { %5606 = vmatmul.f32.gmra.mxu1 %v15387_v8 }
 0xb7d   :  { %5671 = vmatmul.f32.gmra.mxu2 %v15523_v41  ;;  %5981 = vmatpush.msra.mxu1 %v15724_v5 }
 0xb7f   :  { %7387 = vmatmul.msk.f32.gmra.mxu3 %vm2956_vm13, %v15660_v49  ;;  %5982 = vmatpush.msra.mxu1 %v15725_v32  ;;  %v15731_v32 = vld [vmem:[#allocation403_spill] sm:$0xff] }
 0xb80   :  { %v5477_v60 = vpop.f32.mrf.mxu2 }
 0xb81   :  { %v5478_v61 = vadd.f32 %v5477_v60, %v5413_v1  ;;  %v5415_v56 = vpop.f32.mrf.mxu1  ;;  %5983 = vmatpush.msra.mxu1 %v15726_v24  ;;  %v15730_v1 = vld [vmem:[#allocation404_spill] sm:$0xff] }
 0xb82   :  { %v5542_v59 = vpop.f32.mrf.mxu3  ;;  %v5416_v49 = vadd.f32 %v5415_v56, %v13212_v20  ;;  %v15732_v20 = vld [vmem:[#allocation402_spill] sm:$0xff]  ;;  %v15733_v56 = vld [vmem:[#allocation401_spill] sm:$0xff] }
 0xb83   :  { %v13359_v28 = vadd.f32 %v5542_v59, %v5478_v61  ;;  %5984 = vmatpush.msra.mxu1 %v15727_v36 }
 0xb84   :  { %5609 = vmatmul.f32.gmra.mxu1 %v15396_v57 }
 0xb85   :  { %5674 = vmatmul.f32.gmra.mxu2 %v15535_v2  ;;  %5985 = vmatpush.msra.mxu1 %v15728_v26  ;;  %v15734_v26 = vld [vmem:[#allocation400_spill] sm:$0xff] }
 0xb87   :  { %7388 = vmatmul.msk.f32.gmra.mxu3 %vm2958_vm9, %v15672_v4  ;;  %5986 = vmatpush.msra.mxu1 %v15729_v25  ;;  %vm15737_vm9 = vmmov %vm15697_vm4 }
 0xb88   :  { %v5480_v15 = vpop.f32.mrf.mxu2 }
 0xb89   :  { %v5481_v13 = vadd.f32 %v5480_v15, %v5416_v49  ;;  %v5418_v52 = vpop.f32.mrf.mxu1  ;;  %5987 = vmatpush.msra.mxu1 %v15730_v1  ;;  %v15735_v15 = vld [vmem:[#allocation399_spill] sm:$0xff] }
 0xb8a   :  { %v5545_v5 = vpop.f32.mrf.mxu3  ;;  %v5419_v4 = vadd.f32 %v5418_v52, %v13230_v27 }
 0xb8b   :  { %v13371_v60 = vadd.f32 %v5545_v5, %v5481_v13  ;;  %5988 = vmatpush.msra.mxu1 %v15731_v32 }
 0xb8c   :  { %5612 = vmatmul.f32.gmra.mxu1 %v15398_v16 }
 0xb8d   :  { %5677 = vmatmul.f32.gmra.mxu2 %v15544_v39  ;;  %5989 = vmatpush.msra.mxu1 %v15732_v20 }
 0xb8f   :  { %7389 = vmatmul.msk.f32.gmra.mxu3 %vm2960_vm5, %v15684_v11  ;;  %5990 = vmatpush.msra.mxu1 %v15733_v56  ;;  %vm15736_vm5 = vmmov %vm15694_vm3 }
 0xb90   :  { %v5483_v61 = vpop.f32.mrf.mxu2 }
 0xb91   :  { %v5484_v59 = vadd.f32 %v5483_v61, %v5419_v4  ;;  %v5421_v24 = vpop.f32.mrf.mxu1  ;;  %5991 = vmatpush.msra.mxu1 %v15734_v26  ;;  %v15739_v26 = vld [vmem:[#allocation687_spill] sm:$0xff] }
 0xb92   :  { %v5548_v36 = vpop.f32.mrf.mxu3  ;;  %v5422_v27 = vadd.f32 %v5421_v24, %v13247_v30 }
 0xb93   :  { %v13383_v49 = vadd.f32 %v5548_v36, %v5484_v59  ;;  %5992 = vmatpush.msra.mxu1 %v15735_v15  ;;  %v15738_v36 = vld [vmem:[#allocation709_spill] sm:$0xff] }
 0xb94   :  { %5615 = vmatmul.f32.gmra.mxu1 %v15400_v62 }
 0xb95   :  { %5680 = vmatmul.f32.gmra.mxu2 %v15546_v63 }
 0xb97   :  { %7390 = vmatmul.msk.f32.gmra.mxu3 %vm15736_vm5, %v15693_v14  ;;  %vm6077_vm5 = vcmask 1047559  }
 0xb98   :  { %v5486_v11 = vpop.f32.mrf.mxu2 }
 0xb99   :  { %v5487_v25 = vadd.f32 %v5486_v11, %v5422_v27  ;;  %v5424_v13 = vpop.f32.mrf.mxu1  ;;  %v15740_v27 = vld [vmem:[#allocation737_spill] sm:$0xff] }
 0xb9a   :  { %v5551_v52 = vpop.f32.mrf.mxu3  ;;  %v5425_v1 = vadd.f32 %v5424_v13, %v13256_v37  ;;  %vm15741_vm13 = vcmp.gt.f32.partialorder %v15740_v27, 0.0 }
 0xb9b   :  { %v13392_v5 = vadd.f32 %v5551_v52, %v5487_v25 }
 0xb9c   :  { %5618 = vmatmul.f32.gmra.mxu1 %v15475_v10 }
 0xb9d   :  { %5683 = vmatmul.f32.gmra.mxu2 %v15549_v9 }
 0xb9f   :  { %7391 = vmatmul.msk.f32.gmra.mxu3 %vm15737_vm9, %v15696_v58 }
 0xba0   :  { %v5489_v30 = vpop.f32.mrf.mxu2 }
 0xba1   :  { %v5490_v32 = vadd.f32 %v5489_v30, %v5425_v1  ;;  %v5427_v20 = vpop.f32.mrf.mxu1 }
 0xba2   :  { %v5554_v14 = vpop.f32.mrf.mxu3  ;;  %v5428_v61 = vadd.f32 %v5427_v20, %v13264_v46 }
 0xba3   :  { %v13400_v4 = vadd.f32 %v5554_v14, %v5490_v32  ;;  %v15742_v14 = vld [vmem:[#allocation757_spill] sm:$0xff] }
 0xba4   :  { %5621 = vmatmul.f32.gmra.mxu1 %v15621_v34 }
 0xba5   :  { %5686 = vmatmul.f32.gmra.mxu2 %v15622_v35 }
 0xba7   :  { %7392 = vmatmul.msk.f32.gmra.mxu3 %vm2966_vm0, %v15699_v44  ;;  %vm15752_vm0 = vmmov %vm15567_vm6 }
 0xba8   :  { %v5492_v37 = vpop.f32.mrf.mxu2  ;;  %vm15757_vm6 = vmmov %vm15717_vm11  ;;  %vm6075_vm11 = vcmask 1045509  }
 0xba9   :  { %v5493_v56 = vadd.f32 %v5492_v37, %v5428_v61  ;;  %v5430_v59 = vpop.f32.mrf.mxu1  ;;  %v15743_v61 = vld [vmem:[#allocation758_spill] sm:$0xff] }
 0xbaa   :  { %v5557_v58 = vpop.f32.mrf.mxu3  ;;  %v5431_v15 = vadd.f32 %v5430_v59, %v13272_v53  ;;  %v15744_v59 = vld [vmem:[#allocation762_spill] sm:$0xff] }
 0xbab   :  { %v13408_v24 = vadd.f32 %v5557_v58, %v5493_v56  ;;  %v15745_v58 = vld [vmem:[#allocation763_spill] sm:$0xff] }
 0xbac   :  { %5624 = vmatmul.f32.gmra.mxu1 %v15738_v36 }
 0xbad   :  { %5689 = vmatmul.f32.gmra.mxu2 %v15739_v26 }
 0xbaf   :  { %7393 = vmatmul.msk.f32.gmra.mxu3 %vm15741_vm13, %v15740_v27 }
 0xbb0   :  { %v5495_v46 = vpop.f32.mrf.mxu2 }
 0xbb1   :  { %v5496_v11 = vadd.f32 %v5495_v46, %v5431_v15  ;;  %v5433_v25 = vpop.f32.mrf.mxu1 }
 0xbb2   :  { %v5560_v44 = vpop.f32.mrf.mxu3  ;;  %v5434_v52 = vadd.f32 %v5433_v25, %v13280_v45  ;;  %v15747_v25 = vld [vmem:[#allocation767_spill] sm:$0xff] }
 0xbb3   :  { %v13416_v13 = vadd.f32 %v5560_v44, %v5496_v11  ;;  %v15748_v44 = vld [vmem:[#allocation768_spill] sm:$0xff] }
 0xbb4   :  { %5627 = vmatmul.f32.gmra.mxu1 %v15410_v55 }
 0xbb5   :  { %5692 = vmatmul.f32.gmra.mxu2 %v15557_v6 }
 0xbb7   :  { %7394 = vmatmul.msk.f32.gmra.mxu3 %vm2978_vm12, %v15703_v3  ;;  %vm15746_vm12 = vmmov %vm15708_vm10 }
 0xbb8   :  { %v5498_v53 = vpop.f32.mrf.mxu2 }
 0xbb9   :  { %v5499_v1 = vadd.f32 %v5498_v53, %v5434_v52  ;;  %v5436_v30 = vpop.f32.mrf.mxu1 }
 0xbba   :  { %v5563_v32 = vpop.f32.mrf.mxu3  ;;  %v5437_v55 = vadd.f32 %v5436_v30, %v13288_v7 }
 0xbbb   :  { %v13424_v20 = vadd.f32 %v5563_v32, %v5499_v1  ;;  %v15750_v32 = vld [vmem:[#allocation772_spill] sm:$0xff] }
 0xbbc   :  { %5630 = vmatmul.f32.gmra.mxu1 %v15742_v14 }
 0xbbd   :  { %5695 = vmatmul.f32.gmra.mxu2 %v15743_v61 }
 0xbbf   :  { %7395 = vmatmul.msk.f32.gmra.mxu3 %vm2980_vm14, %v15705_v50  ;;  %vm15749_vm14 = vmmov %vm15710_vm2 }
 0xbc0   :  { %v5501_v6 = vpop.f32.mrf.mxu2 }
 0xbc1   :  { %v5502_v45 = vadd.f32 %v5501_v6, %v5437_v55  ;;  %v5439_v37 = vpop.f32.mrf.mxu1  ;;  %v15751_v55 = vld [vmem:[#allocation773_spill] sm:$0xff] }
 0xbc2   :  { %v5566_v3 = vpop.f32.mrf.mxu3  ;;  %v5440_v15 = vadd.f32 %v5439_v37, %v13296_v21 }
 0xbc3   :  { %v13432_v56 = vadd.f32 %v5566_v3, %v5502_v45 }
 0xbc4   :  { %5633 = vmatmul.f32.gmra.mxu1 %v15744_v59 }
 0xbc5   :  { %5698 = vmatmul.f32.gmra.mxu2 %v15745_v58 }
 0xbc7   :  { %7396 = vmatmul.msk.f32.gmra.mxu3 %vm15746_vm12, %v15707_v22 }
 0xbc8   :  { %v5504_v7 = vpop.f32.mrf.mxu2 }
 0xbc9   :  { %v5505_v27 = vadd.f32 %v5504_v7, %v5440_v15  ;;  %v5442_v46 = vpop.f32.mrf.mxu1  ;;  %v15753_v15 = vld [vmem:[#allocation777_spill] sm:$0xff]  ;;  %v15754_v7 = vld [vmem:[#allocation778_spill] sm:$0xff] }
 0xbca   :  { %v5569_v50 = vpop.f32.mrf.mxu3  ;;  %v5443_v52 = vadd.f32 %v5442_v46, %v13304_v18 }
 0xbcb   :  { %v13440_v11 = vadd.f32 %v5569_v50, %v5505_v27 }
 0xbcc   :  { %5636 = vmatmul.f32.gmra.mxu1 %v15747_v25 }
 0xbcd   :  { %5701 = vmatmul.f32.gmra.mxu2 %v15748_v44 }
 0xbcf   :  { %7397 = vmatmul.msk.f32.gmra.mxu3 %vm15749_vm14, %v15565_v33 }
 0xbd0   :  { %v5507_v21 = vpop.f32.mrf.mxu2 }
 0xbd1   :  { %v5508_v53 = vadd.f32 %v5507_v21, %v5443_v52  ;;  %v5445_v1 = vpop.f32.mrf.mxu1  ;;  %v15756_v21 = vld [vmem:[#allocation783_spill] sm:$0xff] }
 0xbd2   :  { %v5572_v22 = vpop.f32.mrf.mxu3  ;;  %v5446_v6 = vadd.f32 %v5445_v1, %v13312_v47 }
 0xbd3   :  { %v13448_v30 = vadd.f32 %v5572_v22, %v5508_v53 }
 0xbd4   :  { %5639 = vmatmul.f32.gmra.mxu1 %v15750_v32 }
 0xbd5   :  { %5704 = vmatmul.f32.gmra.mxu2 %v15751_v55 }
 0xbd7   :  { %7398 = vmatmul.msk.f32.gmra.mxu3 %vm15752_vm0, %v15712_v19 }
 0xbd8   :  { %v5510_v18 = vpop.f32.mrf.mxu2 }
 0xbd9   :  { %v5511_v45 = vadd.f32 %v5510_v18, %v5446_v6  ;;  %v5448_v37 = vpop.f32.mrf.mxu1  ;;  %v15758_v18 = vld [vmem:[#allocation787_spill] sm:$0xff] }
 0xbda   :  { %v5575_v33 = vpop.f32.mrf.mxu3  ;;  %v5449_v27 = vadd.f32 %v5448_v37, %v13320_v48 }
 0xbdb   :  { %v13456_v3 = vadd.f32 %v5575_v33, %v5511_v45  ;;  %v15759_v45 = vld [vmem:[#allocation788_spill] sm:$0xff] }
 0xbdc   :  { %5642 = vmatmul.f32.gmra.mxu1 %v15753_v15  ;;  %v15760_v33 = vld [vmem:[#allocation784_spill] sm:$0xff] }
 0xbdd   :  { %5707 = vmatmul.f32.gmra.mxu2 %v15754_v7  ;;  %vm15761_vm1 = vcmp.gt.f32.partialorder %v15760_v33, 0.0 }
 0xbdf   :  { %7399 = vmatmul.msk.f32.gmra.mxu3 %vm15755_vm15, %v15569_v17 }
 0xbe0   :  { %v5513_v47 = vpop.f32.mrf.mxu2 }
 0xbe1   :  { %v5514_v46 = vadd.f32 %v5513_v47, %v5449_v27  ;;  %v5451_v50 = vpop.f32.mrf.mxu1 }
 0xbe2   :  { %v5578_v19 = vpop.f32.mrf.mxu3  ;;  %v5452_v53 = vadd.f32 %v5451_v50, %v13328_v40  ;;  %v15762_v50 = vld [vmem:[#allocation720_spill] sm:$0xff] }
 0xbe3   :  { %v13464_v52 = vadd.f32 %v5578_v19, %v5514_v46  ;;  %v15763_v19 = vld [vmem:[#allocation699_spill] sm:$0xff] }
 0xbe4   :  { %5645 = vmatmul.f32.gmra.mxu1 %v15633_v23 }
 0xbe5   :  { %5710 = vmatmul.f32.gmra.mxu2 %v15756_v21 }
 0xbe7   :  { %7400 = vmatmul.msk.f32.gmra.mxu3 %vm15757_vm6, %v15716_v12 }
 0xbe8   :  { %v5516_v48 = vpop.f32.mrf.mxu2 }
 0xbe9   :  { %v5517_v1 = vadd.f32 %v5516_v48, %v5452_v53  ;;  %v5454_v22 = vpop.f32.mrf.mxu1 }
 0xbea   :  { %v5581_v17 = vpop.f32.mrf.mxu3  ;;  %v5455_v37 = vadd.f32 %v5454_v22, %v13336_v54 }
 0xbeb   :  { %v13472_v6 = vadd.f32 %v5581_v17, %v5517_v1 }
 0xbec   :  { %5648 = vmatmul.f32.gmra.mxu1 %v15758_v18 }
 0xbed   :  { %5713 = vmatmul.f32.gmra.mxu2 %v15759_v45 }
 0xbef   :  { %7401 = vmatmul.msk.f32.gmra.mxu3 %vm15761_vm1, %v15760_v33  ;;  %v15764_v33 = vld [vmem:[#allocation678_spill] sm:$0xff] }
 0xbf0   :  { %v5519_v40 = vpop.f32.mrf.mxu2 }
 0xbf1   :  { %v5520_v27 = vadd.f32 %v5519_v40, %v5455_v37  ;;  %v5604_v12 = vpop.f32.mrf.mxu1  ;;  %v15765_v37 = vld [vmem:[#allocation722_spill] sm:$0xff] }
 0xbf2   :  { %v5584_v47 = vpop.f32.mrf.mxu3  ;;  %v5605_v53 = vadd.f32 %v5604_v12, %v13347_v29 }
 0xbf3   :  { %v13480_v46 = vadd.f32 %v5584_v47, %v5520_v27 }
 0xbf4   :  { %5798 = vmatmul.f32.vlgmr.msrb.gmra.mxu1 %v15762_v50 }
 0xbf5   :  { %5863 = vmatmul.f32.vlgmr.msra.gmra.mxu2 %v15763_v19  ;;  %v15767_v19 = vld [vmem:[#allocation680_spill] sm:$0xff] }
 0xbf7   :  { %5928 = vmatmul.f32.vlgmr.msra.gmra.mxu3 %v15387_v8  ;;  %v15766_v8 = vld [vmem:[#allocation702_spill] sm:$0xff] }
 0xbf8   :  { %v5669_v48 = vpop.f32.mrf.mxu2 }
 0xbf9   :  { %v5670_v54 = vadd.f32 %v5669_v48, %v5605_v53  ;;  %v5607_v1 = vpop.f32.mrf.mxu1 }
 0xbfa   :  { %v5734_v22 = vpop.f32.mrf.mxu3  ;;  %v5608_v40 = vadd.f32 %v5607_v1, %v13359_v28 }
 0xbfb   :  { %v13486_v17 = vadd.f32 %v5734_v22, %v5670_v54 }
 0xbfc   :  { %5801 = vmatmul.f32.gmra.mxu1 %v15764_v33  ;;  %v15769_v33 = vld [vmem:[#allocation704_spill] sm:$0xff] }
 0xbfd   :  { %5866 = vmatmul.f32.gmra.mxu2 %v15765_v37 }
 0xbff   :  { %5931 = vmatmul.f32.gmra.mxu3 %v15396_v57  ;;  %v15768_v57 = vld [vmem:[#allocation725_spill] sm:$0xff] }
 0xc00   :  { %v5672_v27 = vpop.f32.mrf.mxu2 }
 0xc01   :  { %v5673_v47 = vadd.f32 %v5672_v27, %v5608_v40  ;;  %v5610_v50 = vpop.f32.mrf.mxu1 }
 0xc02   :  { %v5737_v29 = vpop.f32.mrf.mxu3  ;;  %v5611_v53 = vadd.f32 %v5610_v50, %v13371_v60 }
 0xc03   :  { %v13492_v12 = vadd.f32 %v5737_v29, %v5673_v47  ;;  %v15771_v29 = vld [vmem:[#allocation727_spill] sm:$0xff] }
 0xc04   :  { %5804 = vmatmul.f32.gmra.mxu1 %v15766_v8 }
 0xc05   :  { %5869 = vmatmul.f32.gmra.mxu2 %v15767_v19 }
 0xc07   :  { %5934 = vmatmul.f32.gmra.mxu3 %v15398_v16  ;;  %v15770_v16 = vld [vmem:[#allocation683_spill] sm:$0xff] }
 0xc08   :  { %v5675_v48 = vpop.f32.mrf.mxu2 }
 0xc09   :  { %v5676_v54 = vadd.f32 %v5675_v48, %v5611_v53  ;;  %v5613_v22 = vpop.f32.mrf.mxu1 }
 0xc0a   :  { %v5740_v28 = vpop.f32.mrf.mxu3  ;;  %v5614_v37 = vadd.f32 %v5613_v22, %v13383_v49  ;;  %v15773_v22 = vld [vmem:[#allocation685_spill] sm:$0xff] }
 0xc0b   :  { %v13498_v1 = vadd.f32 %v5740_v28, %v5676_v54 }
 0xc0c   :  { %5807 = vmatmul.f32.gmra.mxu1 %v15768_v57 }
 0xc0d   :  { %5872 = vmatmul.f32.gmra.mxu2 %v15769_v33 }
 0xc0f   :  { %5937 = vmatmul.f32.gmra.mxu3 %v15400_v62  ;;  %v15772_v62 = vld [vmem:[#allocation707_spill] sm:$0xff] }
 0xc10   :  { %v5678_v40 = vpop.f32.mrf.mxu2 }
 0xc11   :  { %v5679_v27 = vadd.f32 %v5678_v40, %v5614_v37  ;;  %v5616_v47 = vpop.f32.mrf.mxu1 }
 0xc12   :  { %v5743_v60 = vpop.f32.mrf.mxu3  ;;  %v5617_v8 = vadd.f32 %v5616_v47, %v13392_v5 }
 0xc13   :  { %v13504_v50 = vadd.f32 %v5743_v60, %v5679_v27 }
 0xc14   :  { %5810 = vmatmul.f32.gmra.mxu1 %v15770_v16 }
 0xc15   :  { %5875 = vmatmul.f32.gmra.mxu2 %v15771_v29 }
 0xc17   :  { %5940 = vmatmul.f32.gmra.mxu3 %v15475_v10  ;;  %v15774_v10 = vld [vmem:[#allocation730_spill] sm:$0xff] }
 0xc18   :  { %v5681_v19 = vpop.f32.mrf.mxu2 }
 0xc19   :  { %v5682_v53 = vadd.f32 %v5681_v19, %v5617_v8  ;;  %v5619_v48 = vpop.f32.mrf.mxu1  ;;  %v15776_v8 = vld [vmem:[#allocation739_spill] sm:$0xff] }
 0xc1a   :  { %v5746_v49 = vpop.f32.mrf.mxu3  ;;  %v5620_v28 = vadd.f32 %v5619_v48, %v13400_v4 }
 0xc1b   :  { %v13510_v54 = vadd.f32 %v5746_v49, %v5682_v53  ;;  %v15777_v53 = vld [vmem:[#allocation740_spill] sm:$0xff] }
 0xc1c   :  { %5813 = vmatmul.f32.gmra.mxu1 %v15772_v62 }
 0xc1d   :  { %5878 = vmatmul.f32.gmra.mxu2 %v15773_v22 }
 0xc1f   :  { %5943 = vmatmul.f32.gmra.mxu3 %v15621_v34  ;;  %v15775_v34 = vld [vmem:[#allocation738_spill] sm:$0xff] }
 0xc20   :  { %v5684_v57 = vpop.f32.mrf.mxu2 }
 0xc21   :  { %v5685_v33 = vadd.f32 %v5684_v57, %v5620_v28  ;;  %v5622_v37 = vpop.f32.mrf.mxu1 }
 0xc22   :  { %v5749_v5 = vpop.f32.mrf.mxu3  ;;  %v5623_v27 = vadd.f32 %v5622_v37, %v13408_v24 }
 0xc23   :  { %v13516_v40 = vadd.f32 %v5749_v5, %v5685_v33  ;;  %v15779_v5 = vld [vmem:[#allocation760_spill] sm:$0xff] }
 0xc24   :  { %5816 = vmatmul.f32.gmra.mxu1 %v15700_v31 }
 0xc25   :  { %5881 = vmatmul.f32.gmra.mxu2 %v15774_v10  ;;  %v15780_v10 = vld [vmem:[#allocation761_spill] sm:$0xff] }
 0xc27   :  { %5946 = vmatmul.f32.gmra.mxu3 %v15738_v36  ;;  %v15778_v36 = vld [vmem:[#allocation756_spill] sm:$0xff] }
 0xc28   :  { %v5687_v47 = vpop.f32.mrf.mxu2 }
 0xc29   :  { %v5688_v60 = vadd.f32 %v5687_v47, %v5623_v27  ;;  %v5625_v16 = vpop.f32.mrf.mxu1 }
 0xc2a   :  { %v5752_v4 = vpop.f32.mrf.mxu3  ;;  %v5626_v19 = vadd.f32 %v5625_v16, %v13416_v13 }
 0xc2b   :  { %v13522_v29 = vadd.f32 %v5752_v4, %v5688_v60 }
 0xc2c   :  { %5819 = vmatmul.f32.gmra.mxu1 %v15775_v34 }
 0xc2d   :  { %5884 = vmatmul.f32.gmra.mxu2 %v15776_v8 }
 0xc2f   :  { %5949 = vmatmul.f32.gmra.mxu3 %v15777_v53 }
 0xc30   :  { %v5690_v31 = vpop.f32.mrf.mxu2 }
 0xc31   :  { %v5691_v48 = vadd.f32 %v5690_v31, %v5626_v19  ;;  %v5628_v49 = vpop.f32.mrf.mxu1  ;;  %v15783_v31 = vld [vmem:[#allocation771_spill] sm:$0xff] }
 0xc32   :  { %v5755_v24 = vpop.f32.mrf.mxu3  ;;  %v5629_v22 = vadd.f32 %v5628_v49, %v13424_v20 }
 0xc33   :  { %v13528_v62 = vadd.f32 %v5755_v24, %v5691_v48 }
 0xc34   :  { %5822 = vmatmul.f32.gmra.mxu1 %v15704_v38 }
 0xc35   :  { %5887 = vmatmul.f32.gmra.mxu2 %v15778_v36 }
 0xc37   :  { %5952 = vmatmul.f32.gmra.mxu3 %v15742_v14  ;;  %v15781_v14 = vld [vmem:[#allocation766_spill] sm:$0xff] }
 0xc38   :  { %v5693_v28 = vpop.f32.mrf.mxu2 }
 0xc39   :  { %v5694_v57 = vadd.f32 %v5693_v28, %v5629_v22  ;;  %v5631_v33 = vpop.f32.mrf.mxu1 }
 0xc3a   :  { %v5758_v13 = vpop.f32.mrf.mxu3  ;;  %v5632_v27 = vadd.f32 %v5631_v33, %v13432_v56 }
 0xc3b   :  { %v13534_v37 = vadd.f32 %v5758_v13, %v5694_v57 }
 0xc3c   :  { %5825 = vmatmul.f32.gmra.mxu1 %v15779_v5  ;;  %v15785_v5 = vld [vmem:[#allocation780_spill] sm:$0xff] }
 0xc3d   :  { %5890 = vmatmul.f32.gmra.mxu2 %v15780_v10 }
 0xc3f   :  { %5955 = vmatmul.f32.gmra.mxu3 %v15744_v59  ;;  %v15782_v59 = vld [vmem:[#allocation770_spill] sm:$0xff] }
 0xc40   :  { %v5696_v38 = vpop.f32.mrf.mxu2 }
 0xc41   :  { %v5697_v47 = vadd.f32 %v5696_v38, %v5632_v27  ;;  %v5634_v60 = vpop.f32.mrf.mxu1 }
 0xc42   :  { %v5761_v20 = vpop.f32.mrf.mxu3  ;;  %v5635_v4 = vadd.f32 %v5634_v60, %v13440_v11 }
 0xc43   :  { %v13540_v16 = vadd.f32 %v5761_v20, %v5697_v47 }
 0xc44   :  { %5828 = vmatmul.f32.gmra.mxu1 %v15709_v51 }
 0xc45   :  { %5893 = vmatmul.f32.gmra.mxu2 %v15781_v14 }
 0xc47   :  { %5958 = vmatmul.f32.gmra.mxu3 %v15747_v25  ;;  %v15784_v25 = vld [vmem:[#allocation776_spill] sm:$0xff] }
 0xc48   :  { %v5699_v34 = vpop.f32.mrf.mxu2 }
 0xc49   :  { %v5700_v8 = vadd.f32 %v5699_v34, %v5635_v4  ;;  %v5637_v19 = vpop.f32.mrf.mxu1  ;;  %v15787_v34 = vld [vmem:[#allocation693_spill] sm:$0xff] }
 0xc4a   :  { %v5764_v56 = vpop.f32.mrf.mxu3  ;;  %v5638_v48 = vadd.f32 %v5637_v19, %v13448_v30  ;;  %v15789_v19 = vld [vmem:[#allocation715_spill] sm:$0xff] }
 0xc4b   :  { %v13546_v53 = vadd.f32 %v5764_v56, %v5700_v8 }
 0xc4c   :  { %5831 = vmatmul.f32.gmra.mxu1 %v15782_v59 }
 0xc4d   :  { %5896 = vmatmul.f32.gmra.mxu2 %v15783_v31 }
 0xc4f   :  { %5961 = vmatmul.f32.gmra.mxu3 %v15750_v32  ;;  %v15786_v32 = vld [vmem:[#allocation781_spill] sm:$0xff] }
 0xc50   :  { %v5702_v51 = vpop.f32.mrf.mxu2 }
 0xc51   :  { %v5703_v49 = vadd.f32 %v5702_v51, %v5638_v48  ;;  %v5640_v24 = vpop.f32.mrf.mxu1 }
 0xc52   :  { %v5767_v11 = vpop.f32.mrf.mxu3  ;;  %v5641_v22 = vadd.f32 %v5640_v24, %v13456_v3 }
 0xc53   :  { %v5768_v36 = vadd.f32 %v5767_v11, %v5703_v49 }
 0xc54   :  { %5834 = vmatmul.f32.gmra.mxu1 %v15714_v0 }
 0xc55   :  { %5899 = vmatmul.f32.gmra.mxu2 %v15784_v25 }
 0xc57   :  { %5964 = vmatmul.f32.gmra.mxu3 %v15753_v15 }
 0xc58   :  { %v5705_v28 = vpop.f32.mrf.mxu2 }
 0xc59   :  { %v5706_v57 = vadd.f32 %v5705_v28, %v5641_v22  ;;  %v5643_v33 = vpop.f32.mrf.mxu1 }
 0xc5a   :  { %v5770_v13 = vpop.f32.mrf.mxu3  ;;  %v5644_v10 = vadd.f32 %v5643_v33, %v13464_v52 }
 0xc5b   :  { %v5771_v30 = vadd.f32 %v5770_v13, %v5706_v57 }
 0xc5c   :  { %5837 = vmatmul.f32.gmra.mxu1 %v15785_v5 }
 0xc5d   :  { %5902 = vmatmul.f32.gmra.mxu2 %v15786_v32  ;;  %v15791_v32 = vld [vmem:[#allocation694_spill] sm:$0xff] }
 0xc5f   :  { %5967 = vmatmul.f32.gmra.mxu3 %v15633_v23  ;;  %v15788_v23 = vld [vmem:[#allocation671_spill] sm:$0xff] }
 0xc60   :  { %v5708_v0 = vpop.f32.mrf.mxu2 }
 0xc61   :  { %v5709_v27 = vadd.f32 %v5708_v0, %v5644_v10  ;;  %v5646_v38 = vpop.f32.mrf.mxu1 }
 0xc62   :  { %v5773_v47 = vpop.f32.mrf.mxu3  ;;  %v5647_v15 = vadd.f32 %v5646_v38, %v13472_v6 }
 0xc63   :  { %v5774_v3 = vadd.f32 %v5773_v47, %v5709_v27 }
 0xc64   :  { %5840 = vmatmul.f32.gmra.mxu1 %v15718_v43 }
 0xc65   :  { %5905 = vmatmul.f32.gmra.mxu2 %v15719_v42 }
 0xc67   :  { %5970 = vmatmul.f32.gmra.mxu3 %v15758_v18 }
 0xc68   :  { %v5711_v60 = vpop.f32.mrf.mxu2 }
 0xc69   :  { %v5712_v20 = vadd.f32 %v5711_v60, %v5647_v15  ;;  %v5649_v14 = vpop.f32.mrf.mxu1 }
 0xc6a   :  { %v5776_v4 = vpop.f32.mrf.mxu3  ;;  %v5650_v8 = vadd.f32 %v5649_v14, %v13480_v46 }
 0xc6b   :  { %v5777_v52 = vadd.f32 %v5776_v4, %v5712_v20 }
 0xc6c   :  { %5843 = vmatmul.f32.gmra.mxu1 %v15787_v34 }
 0xc6d   :  { %5908 = vmatmul.f32.gmra.mxu2 %v15788_v23 }
 0xc6f   :  { %5973 = vmatmul.f32.gmra.mxu3 %v15789_v19 }
 0xc70   :  { %v5714_v43 = vpop.f32.mrf.mxu2 }
 0xc71   :  { %v5715_v56 = vadd.f32 %v5714_v43, %v5650_v8  ;;  %v5799_v59 = vpop.f32.mrf.mxu1 }
 0xc72   :  { %v5779_v42 = vpop.f32.mrf.mxu3  ;;  %v5800_v10 = vadd.f32 %v5799_v59, %v13486_v17 }
 0xc73   :  { %v5780_v6 = vadd.f32 %v5779_v42, %v5715_v56 }
 0xc74   :  { %5993 = vmatmul.f32.vlgmr.msra.gmra.mxu1 %v15523_v41 }
 0xc78   :  { %v5864_v22 = vpop.f32.mrf.mxu2 }
 0xc79   :  { %v5802_v18 = vpop.f32.mrf.mxu1  ;;  %v5865_v0 = vadd.f32 %v5864_v22, %v5800_v10 }
 0xc7c   :  { %5996 = vmatmul.f32.gmra.mxu1 %v15535_v2  ;;  %v15790_v2 = vld [vmem:[#allocation741_spill] sm:$0xff] }
 0xc81   :  { %v5805_v31 = vpop.f32.mrf.mxu1 }
 0xc82   :  { %v5806_v23 = vadd.f32 %v5805_v31, %v13498_v1 }
 0xc84   :  { %5999 = vmatmul.f32.gmra.mxu1 %v15544_v39 }
 0xc89   :  { %v13571_v48 = vpop.f32.mrf.mxu1 }
 0xc8c   :  { %6002 = vmatmul.f32.gmra.mxu1 %v15546_v63 }
 0xc91   :  { %v13574_v46 = vpop.f32.mrf.mxu1 }
 0xc94   :  { %6005 = vmatmul.f32.gmra.mxu1 %v15549_v9 }
 0xc99   :  { %v13577_v51 = vpop.f32.mrf.mxu1 }
 0xc9c   :  { %6008 = vmatmul.f32.gmra.mxu1 %v15622_v35 }
 0xca1   :  { %v13580_v49 = vpop.f32.mrf.mxu1 }
 0xca4   :  { %6011 = vmatmul.f32.gmra.mxu1 %v15739_v26 }
 0xca9   :  { %v13583_v41 = vpop.f32.mrf.mxu1 }
 0xcac   :  { %6014 = vmatmul.f32.gmra.mxu1 %v15790_v2 }
 0xcb1   :  { %v5823_v39 = vpop.f32.mrf.mxu1 }
 0xcb2   :  { %v13587_v24 = vadd.f32 %v5823_v39, %v13534_v37  ;;  %v5929_v37 = vpop.f32.mrf.mxu3 }
 0xcb3   :  { %v5930_v47 = vadd.f32 %v5929_v37, %v5865_v0 }
 0xcb4   :  { %6017 = vmatmul.f32.gmra.mxu1 %v15743_v61 }
 0xcb9   :  { %v5826_v63 = vpop.f32.mrf.mxu1 }
 0xcba   :  { %v13591_v9 = vadd.f32 %v5826_v63, %v13540_v16  ;;  %v5867_v16 = vpop.f32.mrf.mxu2 }
 0xcbc   :  { %6020 = vmatmul.f32.gmra.mxu1 %v15745_v58  ;;  %v5932_v58 = vpop.f32.mrf.mxu3 }
 0xcc1   :  { %v5829_v35 = vpop.f32.mrf.mxu1 }
 0xcc2   :  { %v13595_v11 = vadd.f32 %v5829_v35, %v13546_v53 }
 0xcc4   :  { %6023 = vmatmul.f32.gmra.mxu1 %v15748_v44  ;;  %v5870_v44 = vpop.f32.mrf.mxu2  ;;  %v5935_v13 = vpop.f32.mrf.mxu3 }
 0xcc5   :  { %v5871_v17 = vadd.f32 %v5870_v44, %v5806_v23 }
 0xcc9   :  { %v5832_v26 = vpop.f32.mrf.mxu1 }
 0xcca   :  { %v13598_v25 = vadd.f32 %v5832_v26, %v5768_v36 }
 0xccc   :  { %6026 = vmatmul.f32.gmra.mxu1 %v15751_v55  ;;  %v5873_v55 = vpop.f32.mrf.mxu2 }
 0xcd1   :  { %v5835_v61 = vpop.f32.mrf.mxu1 }
 0xcd2   :  { %v13601_v28 = vadd.f32 %v5835_v61, %v5771_v30 }
 0xcd4   :  { %6029 = vmatmul.f32.gmra.mxu1 %v15754_v7  ;;  %v5938_v7 = vpop.f32.mrf.mxu3  ;;  %v5876_v38 = vpop.f32.mrf.mxu2 }
 0xcd9   :  { %v5838_v57 = vpop.f32.mrf.mxu1 }
 0xcda   :  { %v13604_v33 = vadd.f32 %v5838_v57, %v5774_v3 }
 0xcdc   :  { %6032 = vmatmul.f32.gmra.mxu1 %v15756_v21  ;;  %v5803_v21 = vadd.f32 %v5802_v18, %v13492_v12  ;;  %v5941_v60 = vpop.f32.mrf.mxu3  ;;  %v5879_v34 = vpop.f32.mrf.mxu2  ;;  %v5809_v12 = vadd.f32 %v13571_v48, %v13504_v50  ;;  %v5812_v50 = vadd.f32 %v13574_v46, %v13510_v54 }
 0xcde   :  { %v5868_v3 = vadd.f32 %v5867_v16, %v5803_v21  ;;  %v5874_v18 = vadd.f32 %v5873_v55, %v5809_v12  ;;  %v5877_v16 = vadd.f32 %v5876_v38, %v5812_v50 }
 0xce0   :  { %v5933_v20 = vadd.f32 %v5932_v58, %v5868_v3  ;;  %v5939_v63 = vadd.f32 %v5938_v7, %v5874_v18  ;;  %v5942_v55 = vadd.f32 %v5941_v60, %v5877_v16 }
 0xce1   :  { %v5841_v53 = vpop.f32.mrf.mxu1 }
 0xce2   :  { %v13607_v36 = vadd.f32 %v5841_v53, %v5777_v52  ;;  %v5815_v53 = vadd.f32 %v13577_v51, %v13516_v40  ;;  %v5818_v51 = vadd.f32 %v13580_v49, %v13522_v29 }
 0xce4   :  { %6035 = vmatmul.f32.gmra.mxu1 %v15759_v45  ;;  %v5944_v56 = vpop.f32.mrf.mxu3  ;;  %v5882_v39 = vpop.f32.mrf.mxu2 }
 0xce5   :  { %v5883_v60 = vadd.f32 %v5882_v39, %v5818_v51 }
 0xce9   :  { %v5844_v5 = vpop.f32.mrf.mxu1 }
 0xcea   :  { %v13610_v30 = vadd.f32 %v5844_v5, %v5780_v6  ;;  %v5936_v6 = vadd.f32 %v5935_v13, %v5871_v17  ;;  %v5880_v5 = vadd.f32 %v5879_v34, %v5815_v53 }
 0xcec   :  { %6038 = vmatmul.f32.gmra.mxu1 %v15791_v32  ;;  %v5947_v26 = vpop.f32.mrf.mxu3  ;;  %v5885_v57 = vpop.f32.mrf.mxu2  ;;  %v5945_v10 = vadd.f32 %v5944_v56, %v5880_v5 }
 0xcf1   :  { %v5994_v27 = vpop.f32.mrf.mxu1 }
 0xcf2   :  { %v5995_v15 = vadd.f32 %v5994_v27, %v5930_v47 }
 0xcf4   :  { %v6044_v14 = vrot.slane %v5995_v15, 1  ;;  %v5950_v32 = vpop.f32.mrf.mxu3  ;;  %v5888_v27 = vpop.f32.mrf.mxu2 }
 0xcf6   :  { %v6048_v8 = vmax.f32 %v5995_v15, %v6044_v14  ;;  %v5821_v14 = vadd.f32 %v13583_v41, %v13528_v62 }
 0xcf8   :  { %v5886_v34 = vadd.f32 %v5885_v57, %v5821_v14 }
 0xcf9   :  { %v5997_v45 = vpop.f32.mrf.mxu1 }
 0xcfa   :  { %v5998_v4 = vadd.f32 %v5997_v45, %v5933_v20 }
 0xcfc   :  { %v6052_v52 = vrot.slane %v5998_v4, 1  ;;  %v5953_v15 = vpop.f32.mrf.mxu3  ;;  %v5891_v23 = vpop.f32.mrf.mxu2 }
 0xcfe   :  { %v6056_v19 = vmax.f32 %v5998_v4, %v6052_v52  ;;  %v5948_v52 = vadd.f32 %v5947_v26, %v5883_v60 }
 0xd00   :  { %v6058_v43 = vmax.f32 %v6048_v8, %v6056_v19  ;;  %v5951_v19 = vadd.f32 %v5950_v32, %v5886_v34 }
 0xd01   :  { %v6000_v42 = vpop.f32.mrf.mxu1 }
 0xd02   :  { %vm6060_vm3 = vcmp.gt.f32.partialorder %v6058_v43, 0.0  ;;  %v6001_v2 = vadd.f32 %v6000_v42, %v5936_v6  ;;  %v5889_v6 = vadd.f32 %v5888_v27, %v13587_v24 }
 0xd03   :  { %v13618_v59 = vsel %vm6060_vm3, %v6058_v43, 0.0 }
 0xd04   :  { %6081 = vst.sshfl [vmem:[#allocation1] sm:$0xff pattern:$0x73625140] %v13618_v59  ;;  %v6128_v31 = vrot.slane %v6001_v2, 1  ;;  %v5956_v17 = vpop.f32.mrf.mxu3  ;;  %v5894_v41 = vpop.f32.mrf.mxu2 }
 0xd06   :  { %v6132_v48 = vmax.f32 %v6001_v2, %v6128_v31  ;;  %v5954_v31 = vadd.f32 %v5953_v15, %v5889_v6 }
 0xd09   :  { %v6003_v1 = vpop.f32.mrf.mxu1 }
 0xd0a   :  { %v6004_v35 = vadd.f32 %v6003_v1, %v5939_v63 }
 0xd0b   :  { %v13621_v22 = vld [vmem:[#allocation1 + $0x1] ss:$4 sm:$0xff] }
 0xd0c   :  { %6096 = vst.sshfl [vmem:[#allocation1] sm:$0xff pattern:$0x73625140] %v13618_v59  ;;  %v6136_v37 = vrot.slane %v6004_v35, 1  ;;  %v5959_v39 = vpop.f32.mrf.mxu3  ;;  %v5897_v50 = vpop.f32.mrf.mxu2 }
 0xd0e   :  { %v6140_v61 = vmax.f32 %v6004_v35, %v6136_v37  ;;  %v5892_v35 = vadd.f32 %v5891_v23, %v13591_v9 }
 0xd10   :  { %v6142_v58 = vmax.f32 %v6132_v48, %v6140_v61  ;;  %v5957_v37 = vadd.f32 %v5956_v17, %v5892_v35 }
 0xd11   :  { %v6006_v44 = vpop.f32.mrf.mxu1 }
 0xd12   :  { %v6007_v7 = vadd.f32 %v6006_v44, %v5942_v55  ;;  %vm6144_vm4 = vcmp.gt.f32.partialorder %v6142_v58, 0.0  ;;  %v5895_v55 = vadd.f32 %v5894_v41, %v13595_v11 }
 0xd13   :  { %v13628_v13 = vld [vmem:[#allocation1 + $0x2] ss:$4 sm:$0xff]  ;;  %v13633_v38 = vsel %vm6144_vm4, %v6142_v58, 0.0 }
 0xd14   :  { %6111 = vst.sshfl [vmem:[#allocation1] sm:$0xff pattern:$0x73625140] %v13618_v59  ;;  %v6206_v46 = vrot.slane %v6007_v7, 1  ;;  %v5962_v57 = vpop.f32.mrf.mxu3  ;;  %v5900_v32 = vpop.f32.mrf.mxu2 }
 0xd16   :  { %v6210_v47 = vmax.f32 %v6007_v7, %v6206_v46  ;;  %v5898_v46 = vadd.f32 %v5897_v50, %v13598_v25 }
 0xd19   :  { %v6009_v54 = vpop.f32.mrf.mxu1 }
 0xd1a   :  { %v6010_v0 = vadd.f32 %v6009_v54, %v5945_v10  ;;  %v5960_v54 = vadd.f32 %v5959_v39, %v5895_v55 }
 0xd1b   :  { %v13631_v21 = vld [vmem:[#allocation1 + $0x3] ss:$4 sm:$0xff] }
 0xd1c   :  { %6159 = vst.sshfl [vmem:[#allocation1] sm:$0xff pattern:$0x73625140] %v13633_v38  ;;  %v6214_v40 = vrot.slane %v6010_v0, 1  ;;  %v5903_v34 = vpop.f32.mrf.mxu2 }
 0xd1e   :  { %v6218_v3 = vmax.f32 %v6010_v0, %v6214_v40  ;;  %v5965_v40 = vpop.f32.mrf.mxu3 }
 0xd20   :  { %v6220_v20 = vmax.f32 %v6210_v47, %v6218_v3  ;;  %v5963_v47 = vadd.f32 %v5962_v57, %v5898_v46 }
 0xd21   :  { %v6012_v45 = vpop.f32.mrf.mxu1 }
 0xd22   :  { %v6013_v8 = vadd.f32 %v6012_v45, %v5948_v52  ;;  %vm6222_vm10 = vcmp.gt.f32.partialorder %v6220_v20, 0.0 }
 0xd23   :  { %v13640_v4 = vld [vmem:[#allocation1 + $0x1] ss:$4 sm:$0xff]  ;;  %v13649_v1 = vsel %vm6222_vm10, %v6220_v20, 0.0 }
 0xd24   :  { %6174 = vst.sshfl [vmem:[#allocation1] sm:$0xff pattern:$0x73625140] %v13633_v38  ;;  %v6284_v49 = vrot.slane %v6013_v8, 1 }
 0xd26   :  { %v6288_v12 = vmax.f32 %v6013_v8, %v6284_v49 }
 0xd29   :  { %v6015_v29 = vpop.f32.mrf.mxu1 }
 0xd2a   :  { %v6016_v43 = vadd.f32 %v6015_v29, %v5951_v19  ;;  %v5901_v29 = vadd.f32 %v5900_v32, %v13601_v28 }
 0xd2b   :  { %v13643_v56 = vld [vmem:[#allocation1 + $0x2] ss:$4 sm:$0xff] }
 0xd2c   :  { %6189 = vst.sshfl [vmem:[#allocation1] sm:$0xff pattern:$0x73625140] %v13633_v38  ;;  %v6292_v42 = vrot.slane %v6016_v43, 1 }
 0xd2e   :  { %v6296_v62 = vmax.f32 %v6016_v43, %v6292_v42  ;;  %v5968_v42 = vpop.f32.mrf.mxu3 }
 0xd30   :  { %v6298_v18 = vmax.f32 %v6288_v12, %v6296_v62 }
 0xd31   :  { %v6018_v2 = vpop.f32.mrf.mxu1 }
 0xd32   :  { %v6019_v26 = vadd.f32 %v6018_v2, %v5954_v31  ;;  %vm6300_vm9 = vcmp.gt.f32.partialorder %v6298_v18, 0.0  ;;  %v5966_v2 = vadd.f32 %v5965_v40, %v5901_v29 }
 0xd33   :  { %v13647_v63 = vld [vmem:[#allocation1 + $0x3] ss:$4 sm:$0xff]  ;;  %v13668_v14 = vsel %vm6300_vm9, %v6298_v18, 0.0 }
 0xd34   :  { %6237 = vst.sshfl [vmem:[#allocation1] sm:$0xff pattern:$0x73625140] %v13649_v1  ;;  %v6045_v61 = vrot.slane %v6019_v26, 1 }
 0xd36   :  { %v6049_v44 = vmax.f32 %v6019_v26, %v6045_v61 }
 0xd39   :  { %v6021_v48 = vpop.f32.mrf.mxu1 }
 0xd3a   :  { %v6022_v16 = vadd.f32 %v6021_v48, %v5957_v37  ;;  %v5906_v37 = vpop.f32.mrf.mxu2 }
 0xd3b   :  { %v13653_v24 = vld [vmem:[#allocation1 + $0x1] ss:$4 sm:$0xff] }
 0xd3c   :  { %6252 = vst.sshfl [vmem:[#allocation1] sm:$0xff pattern:$0x73625140] %v13649_v1  ;;  %v6053_v58 = vrot.slane %v6022_v16, 1 }
 0xd3e   :  { %v6057_v53 = vmax.f32 %v6022_v16, %v6053_v58 }
 0xd40   :  { %v6059_v5 = vmax.f32 %v6049_v44, %v6057_v53 }
 0xd41   :  { %v6024_v9 = vpop.f32.mrf.mxu1 }
 0xd42   :  { %vm6061_vm2 = vcmp.gt.f32.partialorder %v6059_v5, 0.0  ;;  %v6025_v27 = vadd.f32 %v6024_v9, %v5960_v54 }
 0xd43   :  { %v13657_v7 = vld [vmem:[#allocation1 + $0x2] ss:$4 sm:$0xff]  ;;  %v6063_v10 = vsel %vm6061_vm2, %v6059_v5, 0.0  ;;  %v5971_v5 = vpop.f32.mrf.mxu3 }
 0xd44   :  { %6267 = vst.sshfl [vmem:[#allocation1] sm:$0xff pattern:$0x73625140] %v13649_v1  ;;  %v6070_v0 = vrot.slane %v6063_v10, 7  ;;  %v6129_v60 = vrot.slane %v6025_v27, 1 }
 0xd45   :  { %6084 = vst.sshfl [vmem:[#allocation1 + $0x20] sm:$0xff pattern:$0x73625140] %v6063_v10 }
 0xd46   :  { %v6072_v11 = vsel %vm6071_vm7, %v6070_v0, %v13618_v59  ;;  %v6133_v8 = vmax.f32 %v6025_v27, %v6129_v60 }
 0xd47   :  { %v6074_v51 = vsel %vm6073_vm8, %v6070_v0, %v6072_v11  ;;  %v5907_v11 = vadd.f32 %v5906_v37, %v13607_v36 }
 0xd48   :  { %v6076_v3 = vsel %vm6075_vm11, %v6070_v0, %v6074_v51  ;;  %v5909_v51 = vpop.f32.mrf.mxu2 }
 0xd49   :  { %v6078_v25 = vsel %vm6077_vm5, %v6070_v0, %v6076_v3  ;;  %v6027_v15 = vpop.f32.mrf.mxu1  ;;  %v5972_v60 = vadd.f32 %v5971_v5, %v5907_v11 }
 0xd4a   :  { %6080 = vst [vmem:[#allocation4] sm:$0x3] %v6078_v25  ;;  %v6028_v20 = vadd.f32 %v6027_v15, %v5963_v47 }
 0xd4b   :  { %v13666_v45 = vld [vmem:[#allocation1 + $0x3] ss:$4 sm:$0xff] }
 0xd4c   :  { %6315 = vst.sshfl [vmem:[#allocation1] sm:$0xff pattern:$0x73625140] %v13668_v14  ;;  %v6086_v59 = vld [vmem:[#allocation1 + $0x21] ss:$4 sm:$0xff]  ;;  %v6137_v52 = vrot.slane %v6028_v20, 1 }
 0xd4d   :  { %v6089_v23 = vrot.slane %v6086_v59, 7  ;;  %6099 = vst.sshfl [vmem:[#allocation1 + $0x20] sm:$0xff pattern:$0x73625140] %v6063_v10 }
 0xd4e   :  { %v6141_v19 = vmax.f32 %v6028_v20, %v6137_v52  ;;  %v5910_v20 = vadd.f32 %v5909_v51, %v13610_v30 }
 0xd4f   :  { %v6090_v17 = vsel %vm6071_vm7, %v6089_v23, %v13621_v22  ;;  %v5904_v22 = vadd.f32 %v5903_v34, %v13604_v33 }
 0xd50   :  { %v6091_v49 = vsel %vm6073_vm8, %v6089_v23, %v6090_v17  ;;  %v6143_v43 = vmax.f32 %v6133_v8, %v6141_v19 }
 0xd51   :  { %v6092_v12 = vsel %vm6075_vm11, %v6089_v23, %v6091_v49  ;;  %v6030_v62 = vpop.f32.mrf.mxu1  ;;  %v5969_v61 = vadd.f32 %v5968_v42, %v5904_v22 }
 0xd52   :  { %v6093_v41 = vsel %vm6077_vm5, %v6089_v23, %v6092_v12  ;;  %vm6145_vm13 = vcmp.gt.f32.partialorder %v6143_v43, 0.0  ;;  %v6031_v26 = vadd.f32 %v6030_v62, %v5966_v2 }
 0xd53   :  { %v13677_v6 = vld [vmem:[#allocation1 + $0x1] ss:$4 sm:$0xff]  ;;  %6095 = vst [vmem:[#allocation4 + $0x2] sm:$0x3] %v6093_v41  ;;  %v13679_v18 = vsel %vm6145_vm13, %v6143_v43, 0.0 }
 0xd54   :  { %6330 = vst.sshfl [vmem:[#allocation1] sm:$0xff pattern:$0x73625140] %v13668_v14  ;;  %v6101_v28 = vld [vmem:[#allocation1 + $0x22] ss:$4 sm:$0xff]  ;;  %v6152_v39 = vrot.slane %v13679_v18, 7 }
 0xd55   :  { %v6104_v31 = vrot.slane %v6101_v28, 7  ;;  %6114 = vst.sshfl [vmem:[#allocation1 + $0x20] sm:$0xff pattern:$0x73625140] %v6063_v10 }
 0xd56   :  { %v6153_v35 = vsel %vm6071_vm7, %v6152_v39, %v13633_v38  ;;  %v6207_v38 = vrot.slane %v6031_v26, 1 }
 0xd57   :  { %v6105_v50 = vsel %vm6071_vm7, %v6104_v31, %v13628_v13  ;;  %v6154_v48 = vsel %vm6073_vm8, %v6152_v39, %v6153_v35 }
 0xd58   :  { %v6106_v33 = vsel %vm6073_vm8, %v6104_v31, %v6105_v50  ;;  %v6155_v16 = vsel %vm6075_vm11, %v6152_v39, %v6154_v48  ;;  %v6211_v54 = vmax.f32 %v6031_v26, %v6207_v38 }
 0xd59   :  { %v6107_v58 = vsel %vm6075_vm11, %v6104_v31, %v6106_v33  ;;  %v6156_v57 = vsel %vm6077_vm5, %v6152_v39, %v6155_v16  ;;  %v6033_v44 = vpop.f32.mrf.mxu1 }
 0xd5a   :  { %v6108_v53 = vsel %vm6077_vm5, %v6104_v31, %v6107_v58  ;;  %6158 = vst [vmem:[#allocation4 + $0x8] sm:$0x3] %v6156_v57  ;;  %v6034_v55 = vadd.f32 %v6033_v44, %v5969_v61 }
 0xd5b   :  { %v13694_v9 = vld [vmem:[#allocation1 + $0x2] ss:$4 sm:$0xff]  ;;  %6110 = vst [vmem:[#allocation4 + $0x4] sm:$0x3] %v6108_v53 }
 0xd5c   :  { %6345 = vst.sshfl [vmem:[#allocation1] sm:$0xff pattern:$0x73625140] %v13668_v14  ;;  %v6116_v13 = vld [vmem:[#allocation1 + $0x23] ss:$4 sm:$0xff]  ;;  %v6215_v32 = vrot.slane %v6034_v55, 1 }
 0xd5d   :  { %v6119_v10 = vrot.slane %v6116_v13, 7  ;;  %6162 = vst.sshfl [vmem:[#allocation1 + $0x20] sm:$0xff pattern:$0x73625140] %v13679_v18 }
 0xd5e   :  { %v6219_v46 = vmax.f32 %v6034_v55, %v6215_v32 }
 0xd5f   :  { %v6120_v0 = vsel %vm6071_vm7, %v6119_v10, %v13631_v21  ;;  %v5974_v21 = vpop.f32.mrf.mxu3 }
 0xd60   :  { %v6121_v27 = vsel %vm6073_vm8, %v6119_v10, %v6120_v0  ;;  %v6221_v40 = vmax.f32 %v6211_v54, %v6219_v46  ;;  %v5975_v17 = vadd.f32 %v5974_v21, %v5910_v20 }
 0xd61   :  { %v6122_v47 = vsel %vm6075_vm11, %v6119_v10, %v6121_v27  ;;  %v6036_v3 = vpop.f32.mrf.mxu1 }
 0xd62   :  { %v6123_v25 = vsel %vm6077_vm5, %v6119_v10, %v6122_v47  ;;  %vm6223_vm12 = vcmp.gt.f32.partialorder %v6221_v40, 0.0  ;;  %v6037_v23 = vadd.f32 %v6036_v3, %v5972_v60 }
 0xd63   :  { %6125 = vst [vmem:[#allocation4 + $0x6] sm:$0x3] %v6123_v25  ;;  %v6225_v15 = vsel %vm6223_vm12, %v6221_v40, 0.0 }
 0xd64   :  { %v6164_v59 = vld [vmem:[#allocation1 + $0x21] ss:$4 sm:$0xff]  ;;  %v6230_v52 = vrot.slane %v6225_v15, 7 }
 0xd65   :  { %v6167_v34 = vrot.slane %v6164_v59, 7  ;;  %6177 = vst.sshfl [vmem:[#allocation1 + $0x20] sm:$0xff pattern:$0x73625140] %v13679_v18 }
 0xd66   :  { %v6231_v36 = vsel %vm6071_vm7, %v6230_v52, %v13649_v1  ;;  %v6285_v1 = vrot.slane %v6037_v23, 1 }
 0xd67   :  { %v6168_v8 = vsel %vm6071_vm7, %v6167_v34, %v13640_v4  ;;  %v6232_v19 = vsel %vm6073_vm8, %v6230_v52, %v6231_v36 }
 0xd68   :  { %v6169_v29 = vsel %vm6073_vm8, %v6167_v34, %v6168_v8  ;;  %v6233_v30 = vsel %vm6075_vm11, %v6230_v52, %v6232_v19  ;;  %v6289_v22 = vmax.f32 %v6037_v23, %v6285_v1 }
 0xd69   :  { %v6170_v49 = vsel %vm6075_vm11, %v6167_v34, %v6169_v29  ;;  %v6234_v43 = vsel %vm6077_vm5, %v6230_v52, %v6233_v30  ;;  %v6039_v42 = vpop.f32.mrf.mxu1 }
 0xd6a   :  { %v6171_v12 = vsel %vm6077_vm5, %v6167_v34, %v6170_v49  ;;  %6236 = vst [vmem:[#allocation4 + $0x10] sm:$0x3] %v6234_v43  ;;  %v6040_v62 = vadd.f32 %v6039_v42, %v5975_v17  ;;  %v6347_v17 = vld [vmem:[#allocation1 + $0x3] ss:$4 sm:$0xff] }
 0xd6b   :  { %6173 = vst [vmem:[#allocation4 + $0xa] sm:$0x3] %v6171_v12  ;;  %v15793_v42 = vld [vmem:[#allocation478_spill] sm:$0xff] }
 0xd6c   :  { %v6179_v41 = vld [vmem:[#allocation1 + $0x22] ss:$4 sm:$0xff]  ;;  %v6293_v4 = vrot.slane %v6040_v62, 1  ;;  %6728 = vmatpush.msrb.mxu3 %v15793_v42 }
 0xd6d   :  { %v6182_v2 = vrot.slane %v6179_v41, 7  ;;  %6192 = vst.sshfl [vmem:[#allocation1 + $0x20] sm:$0xff pattern:$0x73625140] %v13679_v18 }
 0xd6e   :  { %v6297_v28 = vmax.f32 %v6040_v62, %v6293_v4 }
 0xd6f   :  { %v6183_v39 = vsel %vm6071_vm7, %v6182_v2, %v13643_v56 }
 0xd70   :  { %v6184_v31 = vsel %vm6073_vm8, %v6182_v2, %v6183_v39  ;;  %v6299_v35 = vmax.f32 %v6289_v22, %v6297_v28 }
 0xd71   :  { %v6185_v26 = vsel %vm6075_vm11, %v6182_v2, %v6184_v31 }
 0xd72   :  { %v6186_v37 = vsel %vm6077_vm5, %v6182_v2, %v6185_v26  ;;  %vm6301_vm14 = vcmp.gt.f32.partialorder %v6299_v35, 0.0 }
 0xd73   :  { %6188 = vst [vmem:[#allocation4 + $0xc] sm:$0x3] %v6186_v37  ;;  %v6303_v50 = vsel %vm6301_vm14, %v6299_v35, 0.0 }
 0xd74   :  { %v6194_v48 = vld [vmem:[#allocation1 + $0x23] ss:$4 sm:$0xff]  ;;  %v6308_v61 = vrot.slane %v6303_v50, 7 }
 0xd75   :  { %v6197_v33 = vrot.slane %v6194_v48, 7  ;;  %6240 = vst.sshfl [vmem:[#allocation1 + $0x20] sm:$0xff pattern:$0x73625140] %v6225_v15 }
 0xd76   :  { %v6309_v18 = vsel %vm6071_vm7, %v6308_v61, %v13668_v14 }
 0xd77   :  { %v6198_v56 = vsel %vm6071_vm7, %v6197_v33, %v13647_v63  ;;  %v6310_v16 = vsel %vm6073_vm8, %v6308_v61, %v6309_v18 }
 0xd78   :  { %v6199_v58 = vsel %vm6073_vm8, %v6197_v33, %v6198_v56  ;;  %v6311_v57 = vsel %vm6075_vm11, %v6308_v61, %v6310_v16 }
 0xd79   :  { %v6200_v44 = vsel %vm6075_vm11, %v6197_v33, %v6199_v58  ;;  %v6312_v53 = vsel %vm6077_vm5, %v6308_v61, %v6311_v57 }
 0xd7a   :  { %v6201_v38 = vsel %vm6077_vm5, %v6197_v33, %v6200_v44  ;;  %6314 = vst [vmem:[#allocation4 + $0x18] sm:$0x3] %v6312_v53 }
 0xd7b   :  { %6203 = vst [vmem:[#allocation4 + $0xe] sm:$0x3] %v6201_v38 }
 0xd7c   :  { %v6242_v55 = vld [vmem:[#allocation1 + $0x21] ss:$4 sm:$0xff] }
 0xd7d   :  { %v6245_v5 = vrot.slane %v6242_v55, 7  ;;  %6255 = vst.sshfl [vmem:[#allocation1 + $0x20] sm:$0xff pattern:$0x73625140] %v6225_v15 }
 0xd7f   :  { %v6246_v63 = vsel %vm6071_vm7, %v6245_v5, %v13653_v24 }
 0xd80   :  { %v6247_v14 = vsel %vm6073_vm8, %v6245_v5, %v6246_v63 }
 0xd81   :  { %v6248_v13 = vsel %vm6075_vm11, %v6245_v5, %v6247_v14 }
 0xd82   :  { %v6249_v32 = vsel %vm6077_vm5, %v6245_v5, %v6248_v13 }
 0xd83   :  { %6251 = vst [vmem:[#allocation4 + $0x12] sm:$0x3] %v6249_v32 }
 0xd84   :  { %v6257_v10 = vld [vmem:[#allocation1 + $0x22] ss:$4 sm:$0xff] }
 0xd85   :  { %v6260_v54 = vrot.slane %v6257_v10, 7  ;;  %6270 = vst.sshfl [vmem:[#allocation1 + $0x20] sm:$0xff pattern:$0x73625140] %v6225_v15 }
 0xd87   :  { %v6261_v46 = vsel %vm6071_vm7, %v6260_v54, %v13657_v7 }
 0xd88   :  { %v6262_v0 = vsel %vm6073_vm8, %v6260_v54, %v6261_v46 }
 0xd89   :  { %v6263_v11 = vsel %vm6075_vm11, %v6260_v54, %v6262_v0 }
 0xd8a   :  { %v6264_v27 = vsel %vm6077_vm5, %v6260_v54, %v6263_v11 }
 0xd8b   :  { %6266 = vst [vmem:[#allocation4 + $0x14] sm:$0x3] %v6264_v27 }
 0xd8c   :  { %v6272_v24 = vld [vmem:[#allocation1 + $0x23] ss:$4 sm:$0xff] }
 0xd8d   :  { %v6275_v40 = vrot.slane %v6272_v24, 7  ;;  %6318 = vst.sshfl [vmem:[#allocation1 + $0x20] sm:$0xff pattern:$0x73625140] %v6303_v50 }
 0xd8f   :  { %v6276_v51 = vsel %vm6071_vm7, %v6275_v40, %v13666_v45 }
 0xd90   :  { %v6277_v47 = vsel %vm6073_vm8, %v6275_v40, %v6276_v51 }
 0xd91   :  { %v6278_v3 = vsel %vm6075_vm11, %v6275_v40, %v6277_v47 }
 0xd92   :  { %v6279_v25 = vsel %vm6077_vm5, %v6275_v40, %v6278_v3 }
 0xd93   :  { %6281 = vst [vmem:[#allocation4 + $0x16] sm:$0x3] %v6279_v25 }
 0xd94   :  { %v6320_v7 = vld [vmem:[#allocation1 + $0x21] ss:$4 sm:$0xff] }
 0xd95   :  { %v6323_v15 = vrot.slane %v6320_v7, 7  ;;  %6333 = vst.sshfl [vmem:[#allocation1 + $0x20] sm:$0xff pattern:$0x73625140] %v6303_v50 }
 0xd97   :  { %v6324_v60 = vsel %vm6071_vm7, %v6323_v15, %v13677_v6 }
 0xd98   :  { %v6325_v20 = vsel %vm6073_vm8, %v6323_v15, %v6324_v60 }
 0xd99   :  { %v6326_v59 = vsel %vm6075_vm11, %v6323_v15, %v6325_v20 }
 0xd9a   :  { %v6327_v52 = vsel %vm6077_vm5, %v6323_v15, %v6326_v59 }
 0xd9b   :  { %6329 = vst [vmem:[#allocation4 + $0x1a] sm:$0x3] %v6327_v52 }
 0xd9c   :  { %v6335_v45 = vld [vmem:[#allocation1 + $0x22] ss:$4 sm:$0xff] }
 0xd9d   :  { %v6338_v21 = vrot.slane %v6335_v45, 7  ;;  %6348 = vst.sshfl [vmem:[#allocation1 + $0x20] sm:$0xff pattern:$0x73625140] %v6303_v50 }
 0xd9f   :  { %v6339_v34 = vsel %vm6071_vm7, %v6338_v21, %v13694_v9  ;;  %v15792_v9 = vld [vmem:[#allocation430_spill] sm:$0xff] }
 0xda0   :  { %v6340_v36 = vsel %vm6073_vm8, %v6338_v21, %v6339_v34  ;;  %6668 = vmatpush.msrb.mxu2 %v15792_v9 }
 0xda1   :  { %v6341_v23 = vsel %vm6075_vm11, %v6338_v21, %v6340_v36 }
 0xda2   :  { %v6342_v8 = vsel %vm6077_vm5, %v6338_v21, %v6341_v23 }
 0xda3   :  { %6344 = vst [vmem:[#allocation4 + $0x1c] sm:$0x3] %v6342_v8 }
 0xda4   :  { %v6350_v6 = vld [vmem:[#allocation1 + $0x23] ss:$4 sm:$0xff] }
 0xda5   :  { %v6353_v19 = vrot.slane %v6350_v6, 7 }
 0xda7   :  { %v6354_v29 = vsel %vm6071_vm7, %v6353_v19, %v6347_v17 }
 0xda8   :  { %v6355_v30 = vsel %vm6073_vm8, %v6353_v19, %v6354_v29 }
 0xda9   :  { %v6356_v49 = vsel %vm6075_vm11, %v6353_v19, %v6355_v30 }
 0xdaa   :  { %v6357_v43 = vsel %vm6077_vm5, %v6353_v19, %v6356_v49 }
 0xdab   :  { %6359 = vst [vmem:[#allocation4 + $0x1e] sm:$0x3] %v6357_v43 }
 0xdac   :  { %7428 = dma.done.wait [#allocation7 + $0x1], 32768 }
 0xdad   :  { %7429 = vsyncadd [#allocation7 + $0x1], 4294934528  ;;  %v15794_v12 = vld [vmem:[#allocation446_spill] sm:$0xff]  ;;  %v15795_v1 = vld [vmem:[#allocation429_spill] sm:$0xff]  ;;  %s7432_s24 = smov [#allocation8]   ;;  %s7080_s3 = sshll.u32 %s14136_s11, 4  ;;  %s7081_s3 = int_to_ptr.hbm [resolvable:$true] %s7080_s3 }
 0xdae   :  { %6688 = vmatpush.msrb.mxu1 %v15794_v12  ;;  %6669 = vmatpush.msrb.mxu2 %v15795_v1  ;;  %v15796_v62 = vld [vmem:[#allocation477_spill] sm:$0xff]  ;;  %v15798_v4 = vld [vmem:[#allocation428_spill] sm:$0xff]  ;;  %v15801_v28 = vld [vmem:[#allocation427_spill] sm:$0xff]  ;;  %s7078_s25 = sshll.u32 %s7432_s24, 4  ;;  %s7079_s25 = int_to_ptr.vmem [resolvable:$true] %s7078_s25 }
 0xdaf   :  { %6729 = vmatpush.msrb.mxu3 %v15796_v62  ;;  %v15797_v41 = vld [vmem:[#allocation445_spill] sm:$0xff]  ;;  %v15799_v2 = vld [vmem:[#allocation476_spill] sm:$0xff]  ;;  %v15802_v39 = vld [vmem:[#allocation475_spill] sm:$0xff] }
 0xdb0   :  { %6689 = vmatpush.msrb.mxu1 %v15797_v41  ;;  %6670 = vmatpush.msrb.mxu2 %v15798_v4  ;;  %v15800_v22 = vld [vmem:[#allocation444_spill] sm:$0xff]  ;;  %v15803_v31 = vld [vmem:[#allocation443_spill] sm:$0xff]  ;;  %v15804_v35 = vld [vmem:[#allocation426_spill] sm:$0xff] }
 0xdb1   :  { %6730 = vmatpush.msrb.mxu3 %v15799_v2  ;;  %v15805_v26 = vld [vmem:[#allocation474_spill] sm:$0xff]  ;;  %v15807_v50 = vld [vmem:[#allocation425_spill] sm:$0xff]  ;;  %v15810_v33 = vld [vmem:[#allocation424_spill] sm:$0xff] }
 0xdb2   :  { %6690 = vmatpush.msrb.mxu1 %v15800_v22  ;;  %6671 = vmatpush.msrb.mxu2 %v15801_v28  ;;  %v15806_v37 = vld [vmem:[#allocation442_spill] sm:$0xff]  ;;  %v15808_v48 = vld [vmem:[#allocation473_spill] sm:$0xff]  ;;  %v15811_v18 = vld [vmem:[#allocation472_spill] sm:$0xff] }
 0xdb3   :  { %6731 = vmatpush.msrb.mxu3 %v15802_v39  ;;  %v15809_v61 = vld [vmem:[#allocation441_spill] sm:$0xff]  ;;  %v15812_v56 = vld [vmem:[#allocation440_spill] sm:$0xff]  ;;  %v15813_v16 = vld [vmem:[#allocation423_spill] sm:$0xff] }
 0xdb4   :  { %6691 = vmatpush.msrb.mxu1 %v15803_v31  ;;  %6672 = vmatpush.msrb.mxu2 %v15804_v35  ;;  %v15814_v58 = vld [vmem:[#allocation471_spill] sm:$0xff]  ;;  %v15816_v44 = vld [vmem:[#allocation422_spill] sm:$0xff]  ;;  %v15819_v5 = vld [vmem:[#allocation421_spill] sm:$0xff] }
 0xdb5   :  { %6732 = vmatpush.msrb.mxu3 %v15805_v26  ;;  %v15815_v57 = vld [vmem:[#allocation439_spill] sm:$0xff]  ;;  %v15817_v53 = vld [vmem:[#allocation470_spill] sm:$0xff]  ;;  %v15820_v63 = vld [vmem:[#allocation469_spill] sm:$0xff] }
 0xdb6   :  { %6692 = vmatpush.msrb.mxu1 %v15806_v37  ;;  %6673 = vmatpush.msrb.mxu2 %v15807_v50  ;;  %v15818_v38 = vld [vmem:[#allocation438_spill] sm:$0xff]  ;;  %v15821_v14 = vld [vmem:[#allocation437_spill] sm:$0xff]  ;;  %v15822_v13 = vld [vmem:[#allocation420_spill] sm:$0xff] }
 0xdb7   :  { %6733 = vmatpush.msrb.mxu3 %v15808_v48  ;;  %v6363_v55 = vld [vmem:[#allocation4] sm:$0xff]  ;;  %v15823_v32 = vld [vmem:[#allocation468_spill] sm:$0xff]  ;;  %v15831_v40 = vld [vmem:[#allocation417_spill] sm:$0xff] }
 0xdb8   :  { %6693 = vmatpush.msrb.mxu1 %v15809_v61  ;;  %6674 = vmatpush.msrb.mxu2 %v15810_v33  ;;  %6631 = vst [vmem:[#allocation1] ss:$4 sm:$0xff] %v6363_v55  ;;  %v15824_v10 = vld [vmem:[#allocation436_spill] sm:$0xff]  ;;  %v15825_v54 = vld [vmem:[#allocation419_spill] sm:$0xff]  ;;  %v15828_v11 = vld [vmem:[#allocation418_spill] sm:$0xff] }
 0xdb9   :  { %6734 = vmatpush.msrb.mxu3 %v15811_v18  ;;  %v15826_v46 = vld [vmem:[#allocation467_spill] sm:$0xff]  ;;  %v15829_v27 = vld [vmem:[#allocation466_spill] sm:$0xff]  ;;  %v15832_v51 = vld [vmem:[#allocation465_spill] sm:$0xff] }
 0xdba   :  { %6694 = vmatpush.msrb.mxu1 %v15812_v56  ;;  %6675 = vmatpush.msrb.mxu2 %v15813_v16  ;;  %v15827_v0 = vld [vmem:[#allocation435_spill] sm:$0xff]  ;;  %v15830_v24 = vld [vmem:[#allocation434_spill] sm:$0xff]  ;;  %v15833_v47 = vld [vmem:[#allocation433_spill] sm:$0xff] }
 0xdbb   :  { %6735 = vmatpush.msrb.mxu3 %v15814_v58  ;;  %v15834_v3 = vld [vmem:[#allocation416_spill] sm:$0xff]  ;;  %v15837_v60 = vld [vmem:[#allocation415_spill] sm:$0xff]  ;;  %v15839_v59 = vld [vmem:[#allocation462_spill] sm:$0xff] }
 0xdbc   :  { %6695 = vmatpush.msrb.mxu1 %v15815_v57  ;;  %6676 = vmatpush.msrb.mxu2 %v15816_v44  ;;  %v15835_v25 = vld [vmem:[#allocation464_spill] sm:$0xff]  ;;  %v15838_v20 = vld [vmem:[#allocation463_spill] sm:$0xff]  ;;  %v15840_v52 = vld [vmem:[#allocation510_spill] sm:$0xff] }
 0xdbd   :  { %6736 = vmatpush.msrb.mxu3 %v15817_v53  ;;  %v15836_v15 = vld [vmem:[#allocation432_spill] sm:$0xff]  ;;  %v15841_v45 = vld [vmem:[#allocation431_spill] sm:$0xff]  ;;  %v15842_v21 = vld [vmem:[#allocation461_spill] sm:$0xff] }
 0xdbe   :  { %6696 = vmatpush.msrb.mxu1 %v15818_v38  ;;  %6677 = vmatpush.msrb.mxu2 %v15819_v5  ;;  %v15843_v34 = vld [vmem:[#allocation509_spill] sm:$0xff]  ;;  %v15844_v23 = vld [vmem:[#allocation558_spill] sm:$0xff]  ;;  %v15845_v8 = vld [vmem:[#allocation460_spill] sm:$0xff] }
 0xdbf   :  { %6737 = vmatpush.msrb.mxu3 %v15820_v63  ;;  %v6634_v7 = vld.sshfl [vmem:[#allocation1] sm:$0xff pattern:$0x73625140]  ;;  %v6637_v36 = vld.sshfl [vmem:[#allocation1 + $0x18] sm:$0xff pattern:$0x73625140] }
 0xdc0   :  { %6697 = vmatpush.msrb.mxu1 %v15821_v14  ;;  %6678 = vmatpush.msrb.mxu2 %v15822_v13  ;;  %v6636_v6 = vld.sshfl [vmem:[#allocation1 + $0x10] sm:$0xff pattern:$0x73625140]  ;;  %v6365_v17 = vld [vmem:[#allocation4 + $0x10] sm:$0xff]  ;;  %v15851_v42 = vld [vmem:[#allocation458_spill] sm:$0xff] }
 0xdc1   :  { %6738 = vmatpush.msrb.mxu3 %v15823_v32  ;;  %v15846_v19 = vld [vmem:[#allocation508_spill] sm:$0xff]  ;;  %v6635_v29 = vld.sshfl [vmem:[#allocation1 + $0x8] sm:$0xff pattern:$0x73625140]  ;;  %v15847_v30 = vld [vmem:[#allocation557_spill] sm:$0xff] }
 0xdc2   :  { %6698 = vmatpush.msrb.mxu1 %v15824_v10  ;;  %6679 = vmatpush.msrb.mxu2 %v15825_v54  ;;  %v15848_v49 = vld [vmem:[#allocation459_spill] sm:$0xff]  ;;  %6642 = vst [vmem:[#allocation1] ss:$4 sm:$0xff] %v6365_v17  ;;  %v15850_v9 = vld [vmem:[#allocation556_spill] sm:$0xff]  ;;  %v15852_v12 = vld [vmem:[#allocation506_spill] sm:$0xff] }
 0xdc3   :  { %6739 = vmatpush.msrb.mxu3 %v15826_v46  ;;  %v15849_v43 = vld [vmem:[#allocation507_spill] sm:$0xff]  ;;  %v15854_v62 = vld [vmem:[#allocation457_spill] sm:$0xff]  ;;  %v15856_v4 = vld [vmem:[#allocation554_spill] sm:$0xff] }
 0xdc4   :  { %6699 = vmatpush.msrb.mxu1 %v15827_v0  ;;  %6680 = vmatpush.msrb.mxu2 %v15828_v11  ;;  %v15853_v1 = vld [vmem:[#allocation555_spill] sm:$0xff]  ;;  %v15855_v41 = vld [vmem:[#allocation505_spill] sm:$0xff]  ;;  %v15857_v2 = vld [vmem:[#allocation456_spill] sm:$0xff] }
 0xdc5   :  { %6740 = vmatpush.msrb.mxu3 %v15829_v27  ;;  %v15858_v22 = vld [vmem:[#allocation504_spill] sm:$0xff]  ;;  %v15859_v28 = vld [vmem:[#allocation553_spill] sm:$0xff]  ;;  %v15860_v39 = vld [vmem:[#allocation455_spill] sm:$0xff] }
 0xdc6   :  { %6700 = vmatpush.msrb.mxu1 %v15830_v24  ;;  %6681 = vmatpush.msrb.mxu2 %v15831_v40  ;;  %v15861_v31 = vld [vmem:[#allocation503_spill] sm:$0xff]  ;;  %v15862_v35 = vld [vmem:[#allocation552_spill] sm:$0xff]  ;;  %v15863_v26 = vld [vmem:[#allocation454_spill] sm:$0xff] }
 0xdc7   :  { %6741 = vmatpush.msrb.mxu3 %v15832_v51  ;;  %v15864_v37 = vld [vmem:[#allocation502_spill] sm:$0xff]  ;;  %v15865_v50 = vld [vmem:[#allocation551_spill] sm:$0xff]  ;;  %v15866_v48 = vld [vmem:[#allocation453_spill] sm:$0xff] }
 0xdc8   :  { %6701 = vmatpush.msrb.mxu1 %v15833_v47  ;;  %6682 = vmatpush.msrb.mxu2 %v15834_v3  ;;  %v15867_v61 = vld [vmem:[#allocation501_spill] sm:$0xff]  ;;  %v15868_v33 = vld [vmem:[#allocation550_spill] sm:$0xff]  ;;  %v15869_v18 = vld [vmem:[#allocation452_spill] sm:$0xff] }
 0xdc9   :  { %6742 = vmatpush.msrb.mxu3 %v15835_v25  ;;  %v15870_v56 = vld [vmem:[#allocation500_spill] sm:$0xff]  ;;  %v15871_v58 = vld [vmem:[#allocation549_spill] sm:$0xff]  ;;  %v15872_v57 = vld [vmem:[#allocation451_spill] sm:$0xff] }
 0xdca   :  { %6702 = vmatpush.msrb.mxu1 %v15836_v15  ;;  %6683 = vmatpush.msrb.mxu2 %v15837_v60  ;;  %v6364_v16 = vld [vmem:[#allocation4 + $0x8] sm:$0xff]  ;;  %v15875_v38 = vld [vmem:[#allocation450_spill] sm:$0xff]  ;;  %v15878_v63 = vld [vmem:[#allocation449_spill] sm:$0xff] }
 0xdcb   :  { %6743 = vmatpush.msrb.mxu3 %v15838_v20  ;;  %6684 = vmatmul.f32.vlgmr.msrb.gmra.mxu2 %v6634_v7  ;;  %6633 = vst [vmem:[#allocation1 + $0x20] ss:$4 sm:$0xff] %v6364_v16  ;;  %v15873_v44 = vld [vmem:[#allocation499_spill] sm:$0xff]  ;;  %v15874_v53 = vld [vmem:[#allocation548_spill] sm:$0xff]  ;;  %v15876_v55 = vld [vmem:[#allocation498_spill] sm:$0xff] }
 0xdcc   :  { %6708 = vmatpush.msra.mxu2 %v15839_v59  ;;  %6703 = vmatpush.msrb.mxu1 %v15841_v45  ;;  %v15877_v5 = vld [vmem:[#allocation547_spill] sm:$0xff]  ;;  %v15879_v14 = vld [vmem:[#allocation497_spill] sm:$0xff]  ;;  %v15880_v13 = vld [vmem:[#allocation546_spill] sm:$0xff] }
 0xdcd   :  { %6768 = vmatpush.msra.mxu3 %v15840_v52  ;;  %6704 = vmatmul.f32.vlgmr.msrb.gmra.mxu1 %v6635_v29  ;;  %v15881_v32 = vld [vmem:[#allocation448_spill] sm:$0xff]  ;;  %v15883_v54 = vld [vmem:[#allocation545_spill] sm:$0xff]  ;;  %v15884_v46 = vld [vmem:[#allocation447_spill] sm:$0xff] }
 0xdce   :  { %6709 = vmatpush.msra.mxu2 %v15842_v21  ;;  %6828 = vmatpush.msra.mxu1 %v15844_v23  ;;  %v15882_v10 = vld [vmem:[#allocation496_spill] sm:$0xff]  ;;  %v15885_v0 = vld [vmem:[#allocation494_spill] sm:$0xff]  ;;  %v15886_v11 = vld [vmem:[#allocation495_spill] sm:$0xff] }
 0xdcf   :  { %6769 = vmatpush.msra.mxu3 %v15843_v34  ;;  %v15887_v24 = vld [vmem:[#allocation493_spill] sm:$0xff]  ;;  %v15888_v40 = vld [vmem:[#allocation542_spill] sm:$0xff]  ;;  %v15889_v51 = vld [vmem:[#allocation544_spill] sm:$0xff] }
 0xdd0   :  { %6710 = vmatpush.msra.mxu2 %v15845_v8  ;;  %6744 = vmatmul.f32.vlgmr.msrb.gmra.mxu3 %v6637_v36  ;;  %v15890_v47 = vld [vmem:[#allocation492_spill] sm:$0xff]  ;;  %v15891_v3 = vld [vmem:[#allocation541_spill] sm:$0xff]  ;;  %v15892_v25 = vld [vmem:[#allocation543_spill] sm:$0xff] }
 0xdd1   :  { %6770 = vmatpush.msra.mxu3 %v15846_v19  ;;  %6829 = vmatpush.msra.mxu1 %v15847_v30  ;;  %v15893_v7 = vld [vmem:[#allocation491_spill] sm:$0xff]  ;;  %v15894_v15 = vld [vmem:[#allocation540_spill] sm:$0xff]  ;;  %v15895_v60 = vld [vmem:[#allocation606_spill] sm:$0xff] }
 0xdd2   :  { %6711 = vmatpush.msra.mxu2 %v15848_v49  ;;  %v6639_v27 = vld.sshfl [vmem:[#allocation1 + $0x28] sm:$0xff pattern:$0x73625140]  ;;  %v15898_v52 = vld [vmem:[#allocation605_spill] sm:$0xff]  ;;  %v15901_v34 = vld [vmem:[#allocation604_spill] sm:$0xff] }
 0xdd3   :  { %6771 = vmatpush.msra.mxu3 %v15849_v43  ;;  %6830 = vmatpush.msra.mxu1 %v15850_v9  ;;  %v15896_v20 = vld [vmem:[#allocation490_spill] sm:$0xff]  ;;  %v15897_v59 = vld [vmem:[#allocation539_spill] sm:$0xff]  ;;  %v15899_v45 = vld [vmem:[#allocation489_spill] sm:$0xff] }
 0xdd4   :  { %6712 = vmatpush.msra.mxu2 %v15851_v42  ;;  %v15900_v21 = vld [vmem:[#allocation538_spill] sm:$0xff]  ;;  %v15902_v36 = vld [vmem:[#allocation488_spill] sm:$0xff]  ;;  %v15903_v23 = vld [vmem:[#allocation537_spill] sm:$0xff] }
 0xdd5   :  { %6772 = vmatpush.msra.mxu3 %v15852_v12  ;;  %6831 = vmatpush.msra.mxu1 %v15853_v1  ;;  %v15904_v8 = vld [vmem:[#allocation603_spill] sm:$0xff]  ;;  %v15906_v19 = vld [vmem:[#allocation536_spill] sm:$0xff]  ;;  %v15907_v17 = vld [vmem:[#allocation602_spill] sm:$0xff] }
 0xdd6   :  { %6713 = vmatpush.msra.mxu2 %v15854_v62  ;;  %v15908_v29 = vld [vmem:[#allocation486_spill] sm:$0xff]  ;;  %v15909_v30 = vld [vmem:[#allocation535_spill] sm:$0xff]  ;;  %v15910_v49 = vld [vmem:[#allocation601_spill] sm:$0xff] }
 0xdd7   :  { %6773 = vmatpush.msra.mxu3 %v15855_v41  ;;  %6832 = vmatpush.msra.mxu1 %v15856_v4  ;;  %v15911_v43 = vld [vmem:[#allocation485_spill] sm:$0xff]  ;;  %v15912_v9 = vld [vmem:[#allocation534_spill] sm:$0xff]  ;;  %v15913_v42 = vld [vmem:[#allocation600_spill] sm:$0xff] }
 0xdd8   :  { %6714 = vmatpush.msra.mxu2 %v15857_v2  ;;  %v15914_v12 = vld [vmem:[#allocation484_spill] sm:$0xff]  ;;  %v15915_v1 = vld [vmem:[#allocation533_spill] sm:$0xff]  ;;  %v15916_v62 = vld [vmem:[#allocation599_spill] sm:$0xff] }
 0xdd9   :  { %6774 = vmatpush.msra.mxu3 %v15858_v22  ;;  %6833 = vmatpush.msra.mxu1 %v15859_v28  ;;  %v15917_v41 = vld [vmem:[#allocation483_spill] sm:$0xff]  ;;  %v15918_v4 = vld [vmem:[#allocation532_spill] sm:$0xff]  ;;  %v15919_v2 = vld [vmem:[#allocation598_spill] sm:$0xff] }
 0xdda   :  { %6715 = vmatpush.msra.mxu2 %v15860_v39  ;;  %v15920_v22 = vld [vmem:[#allocation482_spill] sm:$0xff]  ;;  %v15921_v28 = vld [vmem:[#allocation531_spill] sm:$0xff]  ;;  %v15922_v39 = vld [vmem:[#allocation597_spill] sm:$0xff] }
 0xddb   :  { %6775 = vmatpush.msra.mxu3 %v15861_v31  ;;  %6834 = vmatpush.msra.mxu1 %v15862_v35  ;;  %v15923_v31 = vld [vmem:[#allocation481_spill] sm:$0xff]  ;;  %v15924_v35 = vld [vmem:[#allocation530_spill] sm:$0xff] }
 0xddc   :  { %6716 = vmatpush.msra.mxu2 %v15863_v26  ;;  %v15925_v26 = vld [vmem:[#allocation596_spill] sm:$0xff]  ;;  %v15931_v16 = vld [vmem:[#allocation594_spill] sm:$0xff] }
 0xddd   :  { %6776 = vmatpush.msra.mxu3 %v15864_v37  ;;  %6835 = vmatpush.msra.mxu1 %v15865_v50  ;;  %v15926_v37 = vld [vmem:[#allocation480_spill] sm:$0xff]  ;;  %v6638_v50 = vld.sshfl [vmem:[#allocation1 + $0x20] sm:$0xff pattern:$0x73625140] }
 0xdde   :  { %6717 = vmatpush.msra.mxu2 %v15866_v48  ;;  %v15927_v48 = vld [vmem:[#allocation529_spill] sm:$0xff] }
 0xddf   :  { %6777 = vmatpush.msra.mxu3 %v15867_v61  ;;  %6836 = vmatpush.msra.mxu1 %v15868_v33  ;;  %v15928_v61 = vld [vmem:[#allocation595_spill] sm:$0xff] }
 0xde0   :  { %6718 = vmatpush.msra.mxu2 %v15869_v18  ;;  %v15929_v33 = vld [vmem:[#allocation479_spill] sm:$0xff]  ;;  %v15930_v18 = vld [vmem:[#allocation528_spill] sm:$0xff] }
 0xde1   :  { %6778 = vmatpush.msra.mxu3 %v15870_v56  ;;  %6837 = vmatpush.msra.mxu1 %v15871_v58  ;;  %v6640_v56 = vld.sshfl [vmem:[#allocation1 + $0x30] sm:$0xff pattern:$0x73625140]  ;;  %v15932_v58 = vld [vmem:[#allocation526_spill] sm:$0xff] }
 0xde2   :  { %6719 = vmatpush.msra.mxu2 %v15872_v57  ;;  %v15933_v57 = vld [vmem:[#allocation527_spill] sm:$0xff] }
 0xde3   :  { %6779 = vmatpush.msra.mxu3 %v15873_v44  ;;  %6838 = vmatpush.msra.mxu1 %v15874_v53  ;;  %v6366_v44 = vld [vmem:[#allocation4 + $0x18] sm:$0xff]  ;;  %v6641_v53 = vld.sshfl [vmem:[#allocation1 + $0x38] sm:$0xff pattern:$0x73625140] }
 0xde4   :  { %6720 = vmatpush.msra.mxu2 %v15875_v38  ;;  %6643 = vst [vmem:[#allocation1 + $0x20] ss:$4 sm:$0xff] %v6366_v44  ;;  %v15934_v38 = vld [vmem:[#allocation593_spill] sm:$0xff]  ;;  %v15993_v44 = vld [vmem:[#allocation634_spill] sm:$0xff] }
 0xde5   :  { %6780 = vmatpush.msra.mxu3 %v15876_v55  ;;  %6839 = vmatpush.msra.mxu1 %v15877_v5  ;;  %v15935_v55 = vld [vmem:[#allocation525_spill] sm:$0xff]  ;;  %v15936_v5 = vld [vmem:[#allocation590_spill] sm:$0xff] }
 0xde6   :  { %6721 = vmatpush.msra.mxu2 %v15878_v63  ;;  %v15937_v63 = vld [vmem:[#allocation592_spill] sm:$0xff] }
 0xde7   :  { %6781 = vmatpush.msra.mxu3 %v15879_v14  ;;  %6840 = vmatpush.msra.mxu1 %v15880_v13  ;;  %v15938_v14 = vld [vmem:[#allocation524_spill] sm:$0xff]  ;;  %v15939_v13 = vld [vmem:[#allocation589_spill] sm:$0xff] }
 0xde8   :  { %6722 = vmatpush.msra.mxu2 %v15881_v32  ;;  %v15940_v32 = vld [vmem:[#allocation591_spill] sm:$0xff] }
 0xde9   :  { %6782 = vmatpush.msra.mxu3 %v15882_v10  ;;  %6841 = vmatpush.msra.mxu1 %v15883_v54  ;;  %v15941_v10 = vld [vmem:[#allocation523_spill] sm:$0xff]  ;;  %v15942_v54 = vld [vmem:[#allocation588_spill] sm:$0xff] }
 0xdea   :  { %6723 = vmatpush.msra.mxu2 %v15884_v46  ;;  %v15943_v46 = vld [vmem:[#allocation522_spill] sm:$0xff] }
 0xdeb   :  { %6783 = vmatpush.msra.mxu3 %v15886_v11  ;;  %6724 = vmatmul.f32.vlgmr.msra.gmra.mxu2 %v6636_v6  ;;  %v15905_v6 = vld [vmem:[#allocation487_spill] sm:$0xff]  ;;  %v6644_v11 = vld.sshfl [vmem:[#allocation1] sm:$0xff pattern:$0x73625140] }
 0xdec   :  { %6748 = vmatpush.msrb.mxu2 %v15885_v0  ;;  %6784 = vmatmul.f32.vlgmr.msra.gmra.mxu3 %v6639_v27  ;;  %v15944_v0 = vld [vmem:[#allocation587_spill] sm:$0xff]  ;;  %v15945_v27 = vld [vmem:[#allocation521_spill] sm:$0xff] }
 0xded   :  { %6808 = vmatpush.msrb.mxu3 %v15888_v40  ;;  %6842 = vmatpush.msra.mxu1 %v15889_v51  ;;  %v15947_v40 = vld [vmem:[#allocation654_spill] sm:$0xff]  ;;  %v15948_v51 = vld [vmem:[#allocation520_spill] sm:$0xff] }
 0xdee   :  { %6749 = vmatpush.msrb.mxu2 %v15887_v24  ;;  %v15946_v24 = vld [vmem:[#allocation586_spill] sm:$0xff] }
 0xdef   :  { %6809 = vmatpush.msrb.mxu3 %v15891_v3  ;;  %6843 = vmatpush.msra.mxu1 %v15892_v25  ;;  %v15950_v3 = vld [vmem:[#allocation653_spill] sm:$0xff]  ;;  %v15951_v25 = vld [vmem:[#allocation519_spill] sm:$0xff] }
 0xdf0   :  { %6750 = vmatpush.msrb.mxu2 %v15890_v47  ;;  %6844 = vmatmul.f32.vlgmr.msra.gmra.mxu1 %v6644_v11  ;;  %v15949_v47 = vld [vmem:[#allocation585_spill] sm:$0xff]  ;;  %v16006_v11 = vld [vmem:[#allocation628_spill] sm:$0xff] }
 0xdf1   :  { %6810 = vmatpush.msrb.mxu3 %v15894_v15  ;;  %6888 = vmatpush.msrb.mxu1 %v15895_v60  ;;  %v15953_v15 = vld [vmem:[#allocation652_spill] sm:$0xff]  ;;  %v15954_v60 = vld [vmem:[#allocation518_spill] sm:$0xff] }
 0xdf2   :  { %6751 = vmatpush.msrb.mxu2 %v15893_v7  ;;  %v15952_v7 = vld [vmem:[#allocation584_spill] sm:$0xff] }
 0xdf3   :  { %6811 = vmatpush.msrb.mxu3 %v15897_v59  ;;  %6889 = vmatpush.msrb.mxu1 %v15898_v52  ;;  %v15956_v59 = vld [vmem:[#allocation651_spill] sm:$0xff]  ;;  %v15957_v52 = vld [vmem:[#allocation517_spill] sm:$0xff] }
 0xdf4   :  { %6752 = vmatpush.msrb.mxu2 %v15896_v20  ;;  %v15955_v20 = vld [vmem:[#allocation583_spill] sm:$0xff] }
 0xdf5   :  { %6812 = vmatpush.msrb.mxu3 %v15900_v21  ;;  %6890 = vmatpush.msrb.mxu1 %v15901_v34  ;;  %v15959_v21 = vld [vmem:[#allocation650_spill] sm:$0xff]  ;;  %v15960_v34 = vld [vmem:[#allocation516_spill] sm:$0xff] }
 0xdf6   :  { %6753 = vmatpush.msrb.mxu2 %v15899_v45  ;;  %v15958_v45 = vld [vmem:[#allocation582_spill] sm:$0xff] }
 0xdf7   :  { %6813 = vmatpush.msrb.mxu3 %v15903_v23  ;;  %6891 = vmatpush.msrb.mxu1 %v15904_v8  ;;  %v15962_v23 = vld [vmem:[#allocation649_spill] sm:$0xff]  ;;  %v15963_v8 = vld [vmem:[#allocation515_spill] sm:$0xff] }
 0xdf8   :  { %6754 = vmatpush.msrb.mxu2 %v15902_v36  ;;  %v15961_v36 = vld [vmem:[#allocation581_spill] sm:$0xff] }
 0xdf9   :  { %6814 = vmatpush.msrb.mxu3 %v15906_v19  ;;  %6892 = vmatpush.msrb.mxu1 %v15907_v17  ;;  %v15965_v19 = vld [vmem:[#allocation648_spill] sm:$0xff]  ;;  %v15966_v17 = vld [vmem:[#allocation514_spill] sm:$0xff] }
 0xdfa   :  { %6755 = vmatpush.msrb.mxu2 %v15905_v6  ;;  %v15964_v6 = vld [vmem:[#allocation580_spill] sm:$0xff] }
 0xdfb   :  { %6815 = vmatpush.msrb.mxu3 %v15909_v30  ;;  %6893 = vmatpush.msrb.mxu1 %v15910_v49  ;;  %v15968_v30 = vld [vmem:[#allocation647_spill] sm:$0xff]  ;;  %v15969_v49 = vld [vmem:[#allocation513_spill] sm:$0xff] }
 0xdfc   :  { %6756 = vmatpush.msrb.mxu2 %v15908_v29  ;;  %v15967_v29 = vld [vmem:[#allocation579_spill] sm:$0xff] }
 0xdfd   :  { %6816 = vmatpush.msrb.mxu3 %v15912_v9  ;;  %6894 = vmatpush.msrb.mxu1 %v15913_v42  ;;  %v15971_v9 = vld [vmem:[#allocation646_spill] sm:$0xff]  ;;  %v15972_v42 = vld [vmem:[#allocation512_spill] sm:$0xff] }
 0xdfe   :  { %6757 = vmatpush.msrb.mxu2 %v15911_v43  ;;  %v15970_v43 = vld [vmem:[#allocation578_spill] sm:$0xff] }
 0xdff   :  { %6817 = vmatpush.msrb.mxu3 %v15915_v1  ;;  %6895 = vmatpush.msrb.mxu1 %v15916_v62  ;;  %v15974_v1 = vld [vmem:[#allocation645_spill] sm:$0xff]  ;;  %v15975_v62 = vld [vmem:[#allocation511_spill] sm:$0xff] }
 0xe00   :  { %6758 = vmatpush.msrb.mxu2 %v15914_v12  ;;  %v15973_v12 = vld [vmem:[#allocation577_spill] sm:$0xff] }
 0xe01   :  { %6818 = vmatpush.msrb.mxu3 %v15918_v4  ;;  %6896 = vmatpush.msrb.mxu1 %v15919_v2  ;;  %v15977_v4 = vld [vmem:[#allocation644_spill] sm:$0xff]  ;;  %v15978_v2 = vld [vmem:[#allocation574_spill] sm:$0xff] }
 0xe02   :  { %6759 = vmatpush.msrb.mxu2 %v15917_v41  ;;  %v15976_v41 = vld [vmem:[#allocation576_spill] sm:$0xff] }
 0xe03   :  { %6819 = vmatpush.msrb.mxu3 %v15921_v28  ;;  %6897 = vmatpush.msrb.mxu1 %v15922_v39  ;;  %v6646_v28 = vld.sshfl [vmem:[#allocation1 + $0x10] sm:$0xff pattern:$0x73625140] }
 0xe04   :  { %6760 = vmatpush.msrb.mxu2 %v15920_v22  ;;  %v15979_v22 = vld [vmem:[#allocation575_spill] sm:$0xff] }
 0xe05   :  { %6820 = vmatpush.msrb.mxu3 %v15924_v35  ;;  %6898 = vmatpush.msrb.mxu1 %v15925_v26  ;;  %v15980_v39 = vld [vmem:[#allocation643_spill] sm:$0xff]  ;;  %v15982_v35 = vld [vmem:[#allocation638_spill] sm:$0xff] }
 0xe06   :  { %6761 = vmatpush.msrb.mxu2 %v15923_v31  ;;  %v15981_v31 = vld [vmem:[#allocation573_spill] sm:$0xff]  ;;  %v15983_v26 = vld [vmem:[#allocation642_spill] sm:$0xff] }
 0xe07   :  { %6821 = vmatpush.msrb.mxu3 %v15927_v48  ;;  %6899 = vmatpush.msrb.mxu1 %v15928_v61  ;;  %v15986_v48 = vld [vmem:[#allocation641_spill] sm:$0xff]  ;;  %v15987_v61 = vld [vmem:[#allocation571_spill] sm:$0xff] }
 0xe08   :  { %6762 = vmatpush.msrb.mxu2 %v15926_v37  ;;  %v15984_v37 = vld [vmem:[#allocation572_spill] sm:$0xff] }
 0xe09   :  { %6822 = vmatpush.msrb.mxu3 %v15930_v18  ;;  %6900 = vmatpush.msrb.mxu1 %v15931_v16  ;;  %v15989_v18 = vld [vmem:[#allocation640_spill] sm:$0xff]  ;;  %v15991_v16 = vld [vmem:[#allocation635_spill] sm:$0xff] }
 0xe0a   :  { %6763 = vmatpush.msrb.mxu2 %v15929_v33  ;;  %v15988_v33 = vld [vmem:[#allocation636_spill] sm:$0xff] }
 0xe0b   :  { %6764 = vmatmul.f32.vlgmr.msrb.gmra.mxu2 %v6638_v50  ;;  %6823 = vmatpush.msrb.mxu3 %v15933_v57  ;;  %v15985_v50 = vld [vmem:[#allocation637_spill] sm:$0xff] }
 0xe0c   :  { %6788 = vmatpush.msra.mxu2 %v15932_v58  ;;  %6824 = vmatmul.f32.vlgmr.msrb.gmra.mxu3 %v6641_v53  ;;  %v6647_v58 = vld.sshfl [vmem:[#allocation1 + $0x18] sm:$0xff pattern:$0x73625140]  ;;  %v15994_v53 = vld [vmem:[#allocation639_spill] sm:$0xff] }
 0xe0d   :  { %6901 = vmatpush.msrb.mxu1 %v15934_v38  ;;  %6868 = vmatpush.msra.mxu3 %v15936_v5  ;;  %v15992_v57 = vld [vmem:[#allocation569_spill] sm:$0xff]  ;;  %v15995_v38 = vld [vmem:[#allocation568_spill] sm:$0xff]  ;;  %v15997_v5 = vld [vmem:[#allocation567_spill] sm:$0xff] }
 0xe0e   :  { %6789 = vmatpush.msra.mxu2 %v15935_v55  ;;  %v15996_v55 = vld [vmem:[#allocation633_spill] sm:$0xff] }
 0xe0f   :  { %6902 = vmatpush.msrb.mxu1 %v15937_v63  ;;  %6869 = vmatpush.msra.mxu3 %v15939_v13  ;;  %v15998_v63 = vld [vmem:[#allocation632_spill] sm:$0xff]  ;;  %v16000_v13 = vld [vmem:[#allocation631_spill] sm:$0xff] }
 0xe10   :  { %6790 = vmatpush.msra.mxu2 %v15938_v14  ;;  %v15999_v14 = vld [vmem:[#allocation566_spill] sm:$0xff] }
 0xe11   :  { %6903 = vmatpush.msrb.mxu1 %v15940_v32  ;;  %6870 = vmatpush.msra.mxu3 %v15942_v54  ;;  %v16001_v32 = vld [vmem:[#allocation565_spill] sm:$0xff]  ;;  %v16003_v54 = vld [vmem:[#allocation564_spill] sm:$0xff] }
 0xe12   :  { %6791 = vmatpush.msra.mxu2 %v15941_v10  ;;  %6904 = vmatmul.f32.vlgmr.msrb.gmra.mxu1 %v6647_v58  ;;  %v16002_v10 = vld [vmem:[#allocation630_spill] sm:$0xff] }
 0xe13   :  { %6871 = vmatpush.msra.mxu3 %v15944_v0  ;;  %6948 = vmatpush.msra.mxu1 %v15947_v40  ;;  %v16005_v0 = vld [vmem:[#allocation563_spill] sm:$0xff]  ;;  %v16009_v40 = vld [vmem:[#allocation561_spill] sm:$0xff] }
 0xe14   :  { %6792 = vmatpush.msra.mxu2 %v15943_v46  ;;  %v16004_v46 = vld [vmem:[#allocation629_spill] sm:$0xff] }
 0xe15   :  { %6872 = vmatpush.msra.mxu3 %v15946_v24  ;;  %6949 = vmatpush.msra.mxu1 %v15950_v3  ;;  %v16008_v24 = vld [vmem:[#allocation627_spill] sm:$0xff] }
 0xe16   :  { %6793 = vmatpush.msra.mxu2 %v15945_v27  ;;  %v16007_v27 = vld [vmem:[#allocation562_spill] sm:$0xff] }
 0xe17   :  { %6873 = vmatpush.msra.mxu3 %v15949_v47  ;;  %6950 = vmatpush.msra.mxu1 %v15953_v15  ;;  %v16011_v47 = vld [vmem:[#allocation560_spill] sm:$0xff]  ;;  %v6645_v3 = vld.sshfl [vmem:[#allocation1 + $0x8] sm:$0xff pattern:$0x73625140] }
 0xe18   :  { %6794 = vmatpush.msra.mxu2 %v15948_v51  ;;  %v16010_v51 = vld [vmem:[#allocation626_spill] sm:$0xff]  ;;  %v16014_v15 = vld [vmem:[#allocation624_spill] sm:$0xff] }
 0xe19   :  { %6874 = vmatpush.msra.mxu3 %v15952_v7  ;;  %6951 = vmatpush.msra.mxu1 %v15956_v59  ;;  %v16013_v7 = vld [vmem:[#allocation559_spill] sm:$0xff] }
 0xe1a   :  { %6795 = vmatpush.msra.mxu2 %v15951_v25  ;;  %v16012_v25 = vld [vmem:[#allocation625_spill] sm:$0xff]  ;;  %v6649_v59 = vld.sshfl [vmem:[#allocation1 + $0x28] sm:$0xff pattern:$0x73625140] }
 0xe1b   :  { %6875 = vmatpush.msra.mxu3 %v15955_v20  ;;  %6952 = vmatpush.msra.mxu1 %v15959_v21  ;;  %v16016_v20 = vld [vmem:[#allocation623_spill] sm:$0xff] }
 0xe1c   :  { %6796 = vmatpush.msra.mxu2 %v15954_v60  ;;  %v16015_v60 = vld [vmem:[#allocation622_spill] sm:$0xff]  ;;  %v16019_v21 = vld [vmem:[#allocation619_spill] sm:$0xff] }
 0xe1d   :  { %6876 = vmatpush.msra.mxu3 %v15958_v45  ;;  %6953 = vmatpush.msra.mxu1 %v15962_v23  ;;  %v16018_v45 = vld [vmem:[#allocation620_spill] sm:$0xff]  ;;  %v16021_v23 = vld [vmem:[#allocation617_spill] sm:$0xff] }
 0xe1e   :  { %6797 = vmatpush.msra.mxu2 %v15957_v52  ;;  %v16017_v52 = vld [vmem:[#allocation621_spill] sm:$0xff] }
 0xe1f   :  { %6877 = vmatpush.msra.mxu3 %v15961_v36  ;;  %6954 = vmatpush.msra.mxu1 %v15965_v19  ;;  %v6650_v36 = vld.sshfl [vmem:[#allocation1 + $0x30] sm:$0xff pattern:$0x73625140]  ;;  %v16024_v19 = vld [vmem:[#allocation614_spill] sm:$0xff] }
 0xe20   :  { %6798 = vmatpush.msra.mxu2 %v15960_v34  ;;  %v16020_v34 = vld [vmem:[#allocation618_spill] sm:$0xff] }
 0xe21   :  { %6878 = vmatpush.msra.mxu3 %v15964_v6  ;;  %6955 = vmatpush.msra.mxu1 %v15968_v30  ;;  %v16023_v6 = vld [vmem:[#allocation615_spill] sm:$0xff] }
 0xe22   :  { %6799 = vmatpush.msra.mxu2 %v15963_v8  ;;  %v16022_v8 = vld [vmem:[#allocation616_spill] sm:$0xff]  ;;  %v16027_v30 = vld [vmem:[#allocation611_spill] sm:$0xff] }
 0xe23   :  { %6879 = vmatpush.msra.mxu3 %v15967_v29  ;;  %6956 = vmatpush.msra.mxu1 %v15971_v9  ;;  %v16026_v29 = vld [vmem:[#allocation612_spill] sm:$0xff] }
 0xe24   :  { %6800 = vmatpush.msra.mxu2 %v15966_v17  ;;  %v16025_v17 = vld [vmem:[#allocation613_spill] sm:$0xff]  ;;  %v16030_v9 = vld [vmem:[#allocation608_spill] sm:$0xff] }
 0xe25   :  { %6880 = vmatpush.msra.mxu3 %v15970_v43  ;;  %6957 = vmatpush.msra.mxu1 %v15974_v1  ;;  %v16029_v43 = vld [vmem:[#allocation609_spill] sm:$0xff]  ;;  %v16032_v1 = vld [vmem:[#allocation670_spill] sm:$0xff] }
 0xe26   :  { %6801 = vmatpush.msra.mxu2 %v15969_v49  ;;  %v16028_v49 = vld [vmem:[#allocation610_spill] sm:$0xff] }
 0xe27   :  { %6881 = vmatpush.msra.mxu3 %v15973_v12  ;;  %6958 = vmatpush.msra.mxu1 %v15977_v4  ;;  %v16031_v12 = vld [vmem:[#allocation607_spill] sm:$0xff] }
 0xe28   :  { %6802 = vmatpush.msra.mxu2 %v15972_v42  ;;  %v6648_v42 = vld.sshfl [vmem:[#allocation1 + $0x20] sm:$0xff pattern:$0x73625140]  ;;  %v16035_v4 = vld [vmem:[#allocation667_spill] sm:$0xff] }
 0xe29   :  { %6882 = vmatpush.msra.mxu3 %v15976_v41  ;;  %6959 = vmatpush.msra.mxu1 %v15980_v39  ;;  %v16034_v41 = vld [vmem:[#allocation668_spill] sm:$0xff]  ;;  %v16039_v39 = vld [vmem:[#allocation663_spill] sm:$0xff] }
 0xe2a   :  { %6803 = vmatpush.msra.mxu2 %v15975_v62  ;;  %v16033_v62 = vld [vmem:[#allocation669_spill] sm:$0xff] }
 0xe2b   :  { %6804 = vmatmul.f32.vlgmr.msra.gmra.mxu2 %v6640_v56  ;;  %6883 = vmatpush.msra.mxu3 %v15979_v22  ;;  %v15990_v56 = vld [vmem:[#allocation570_spill] sm:$0xff]  ;;  %v16037_v22 = vld [vmem:[#allocation665_spill] sm:$0xff] }
 0xe2c   :  { %6848 = vmatpush.msrb.mxu2 %v15978_v2  ;;  %6884 = vmatmul.f32.vlgmr.msra.gmra.mxu3 %v6646_v28  ;;  %v16036_v2 = vld [vmem:[#allocation666_spill] sm:$0xff]  ;;  %v16038_v28 = vld [vmem:[#allocation664_spill] sm:$0xff] }
 0xe2d   :  { %6928 = vmatpush.msrb.mxu3 %v15982_v35  ;;  %6960 = vmatpush.msra.mxu1 %v15983_v26  ;;  %v16041_v35 = vld [vmem:[#allocation661_spill] sm:$0xff]  ;;  %v16042_v26 = vld [vmem:[#allocation660_spill] sm:$0xff] }
 0xe2e   :  { %6849 = vmatpush.msrb.mxu2 %v15981_v31  ;;  %v16040_v31 = vld [vmem:[#allocation662_spill] sm:$0xff] }
 0xe2f   :  { %6929 = vmatpush.msrb.mxu3 %v15985_v50  ;;  %6961 = vmatpush.msra.mxu1 %v15986_v48  ;;  %v16044_v50 = vld [vmem:[#allocation658_spill] sm:$0xff]  ;;  %v16045_v48 = vld [vmem:[#allocation657_spill] sm:$0xff] }
 0xe30   :  { %6850 = vmatpush.msrb.mxu2 %v15984_v37  ;;  %v16043_v37 = vld [vmem:[#allocation659_spill] sm:$0xff] }
 0xe31   :  { %6930 = vmatpush.msrb.mxu3 %v15988_v33  ;;  %6962 = vmatpush.msra.mxu1 %v15989_v18  ;;  %v6651_v33 = vld.sshfl [vmem:[#allocation1 + $0x38] sm:$0xff pattern:$0x73625140]  ;;  %v16047_v18 = vld [vmem:[#allocation655_spill] sm:$0xff] }
 0xe32   :  { %6851 = vmatpush.msrb.mxu2 %v15987_v61  ;;  %v16046_v61 = vld [vmem:[#allocation656_spill] sm:$0xff] }
 0xe33   :  { %6931 = vmatpush.msrb.mxu3 %v15991_v16  ;;  %6963 = vmatpush.msra.mxu1 %v15994_v53  ;;  %v7004_v16 = vld [vmem:[%s14132_s7 + $0x70] sm:$0xff]  ;;  %v7001_v53 = vld [vmem:[%s14132_s7 + $0x58] sm:$0xff] }
 0xe34   :  { %6852 = vmatpush.msrb.mxu2 %v15990_v56  ;;  %6964 = vmatmul.f32.vlgmr.msra.gmra.mxu1 %v6650_v36  ;;  %v7005_v56 = vld [vmem:[%s14132_s7 + $0x78] sm:$0xff]  ;;  %v7045_v36 = vld [vmem:[%s14134_s9 + $0x68] sm:$0xff] }
 0xe35   :  { %6932 = vmatpush.msrb.mxu3 %v15993_v44  ;;  %v7002_v44 = vld [vmem:[%s14132_s7 + $0x60] sm:$0xff] }
 0xe36   :  { %6853 = vmatpush.msrb.mxu2 %v15992_v57  ;;  %v7003_v57 = vld [vmem:[%s14132_s7 + $0x68] sm:$0xff] }
 0xe37   :  { %6933 = vmatpush.msrb.mxu3 %v15996_v55  ;;  %v7000_v55 = vld [vmem:[%s14132_s7 + $0x50] sm:$0xff] }
 0xe38   :  { %6854 = vmatpush.msrb.mxu2 %v15995_v38  ;;  %v7319_v38 = vld [vmem:[%s14131_s6] ss:$0 sm:$0xff] }
 0xe39   :  { %6934 = vmatpush.msrb.mxu3 %v15998_v63 }
 0xe3a   :  { %6855 = vmatpush.msrb.mxu2 %v15997_v5  ;;  %v6999_v5 = vld [vmem:[%s14132_s7 + $0x48] sm:$0xff] }
 0xe3b   :  { %6935 = vmatpush.msrb.mxu3 %v16000_v13 }
 0xe3c   :  { %6856 = vmatpush.msrb.mxu2 %v15999_v14 }
 0xe3d   :  { %6936 = vmatpush.msrb.mxu3 %v16002_v10  ;;  %v6997_v10 = vld [vmem:[%s14132_s7 + $0x38] sm:$0xff] }
 0xe3e   :  { %6857 = vmatpush.msrb.mxu2 %v16001_v32  ;;  %v6998_v32 = vld [vmem:[%s14132_s7 + $0x40] sm:$0xff] }
 0xe3f   :  { %6937 = vmatpush.msrb.mxu3 %v16004_v46 }
 0xe40   :  { %6858 = vmatpush.msrb.mxu2 %v16003_v54 }
 0xe41   :  { %6938 = vmatpush.msrb.mxu3 %v16006_v11  ;;  %v6995_v11 = vld [vmem:[%s14132_s7 + $0x28] sm:$0xff] }
 0xe42   :  { %6859 = vmatpush.msrb.mxu2 %v16005_v0  ;;  %v6996_v0 = vld [vmem:[%s14132_s7 + $0x30] sm:$0xff] }
 0xe43   :  { %6939 = vmatpush.msrb.mxu3 %v16008_v24 }
 0xe44   :  { %6860 = vmatpush.msrb.mxu2 %v16007_v27 }
 0xe45   :  { %6940 = vmatpush.msrb.mxu3 %v16010_v51  ;;  %v6993_v51 = vld [vmem:[%s14132_s7 + $0x18] sm:$0xff] }
 0xe46   :  { %6861 = vmatpush.msrb.mxu2 %v16009_v40  ;;  %v6994_v40 = vld [vmem:[%s14132_s7 + $0x20] sm:$0xff] }
 0xe47   :  { %6941 = vmatpush.msrb.mxu3 %v16012_v25  ;;  %v6992_v25 = vld [vmem:[%s14132_s7 + $0x10] sm:$0xff] }
 0xe48   :  { %6862 = vmatpush.msrb.mxu2 %v16011_v47 }
 0xe49   :  { %6942 = vmatpush.msrb.mxu3 %v16014_v15 }
 0xe4a   :  { %6863 = vmatpush.msrb.mxu2 %v16013_v7  ;;  %v6705_v14 = vpop.f32.mrf.mxu1 }
 0xe4b   :  { %6864 = vmatmul.f32.vlgmr.msrb.gmra.mxu2 %v6645_v3  ;;  %6943 = vmatpush.msrb.mxu3 %v16016_v20 }
 0xe4c   :  { %6908 = vmatpush.msra.mxu2 %v16015_v60  ;;  %6944 = vmatmul.f32.vlgmr.msrb.gmra.mxu3 %v6649_v59  ;;  %v6991_v60 = vld [vmem:[%s14132_s7 + $0x8] sm:$0xff]  ;;  %v6990_v59 = vld [vmem:[%s14132_s7] sm:$0xff] }
 0xe4d   :  { %7010 = vmatpush.msra.mxu3 %v7005_v56  ;;  %v7032_v56 = vld [vmem:[%s14134_s9] sm:$0xff] }
 0xe4e   :  { %6909 = vmatpush.msra.mxu2 %v16017_v52  ;;  %v6685_v58 = vpop.f32.mrf.mxu2 }
 0xe4f   :  { %7011 = vmatpush.msra.mxu3 %v7004_v16  ;;  %v6686_v63 = vadd.f32 %v7319_v38, %v6685_v58  ;;  %v7320_v16 = vld [vmem:[%s14133_s8] ss:$0 sm:$0xff] }
 0xe50   :  { %6910 = vmatpush.msra.mxu2 %v16018_v45 }
 0xe51   :  { %7012 = vmatpush.msra.mxu3 %v7003_v57  ;;  %v6706_v54 = vadd.f32 %v6705_v14, %v6686_v63 }
 0xe52   :  { %6911 = vmatpush.msra.mxu2 %v16019_v21  ;;  %v7047_v21 = vld [vmem:[%s14134_s9 + $0x78] sm:$0xff] }
 0xe53   :  { %7013 = vmatpush.msra.mxu3 %v7002_v44  ;;  %v6745_v46 = vpop.f32.mrf.mxu3  ;;  %7052 = vmatpush.msrb.mxu1 %v7047_v21  ;;  %v7321_v44 = vld [vmem:[%s14135_s10] ss:$0 sm:$0xff] }
 0xe54   :  { %6912 = vmatpush.msra.mxu2 %v16020_v34  ;;  %v7046_v34 = vld [vmem:[%s14134_s9 + $0x70] sm:$0xff] }
 0xe55   :  { %7014 = vmatpush.msra.mxu3 %v7001_v53  ;;  %7053 = vmatpush.msrb.mxu1 %v7046_v34 }
 0xe56   :  { %6913 = vmatpush.msra.mxu2 %v16021_v23 }
 0xe57   :  { %7015 = vmatpush.msra.mxu3 %v7000_v55  ;;  %7054 = vmatpush.msrb.mxu1 %v7045_v36 }
 0xe58   :  { %6914 = vmatpush.msra.mxu2 %v16022_v8 }
 0xe59   :  { %7016 = vmatpush.msra.mxu3 %v6999_v5 }
 0xe5a   :  { %6915 = vmatpush.msra.mxu2 %v16023_v6  ;;  %v7044_v6 = vld [vmem:[%s14134_s9 + $0x60] sm:$0xff] }
 0xe5b   :  { %7017 = vmatpush.msra.mxu3 %v6998_v32  ;;  %7055 = vmatpush.msrb.mxu1 %v7044_v6 }
 0xe5c   :  { %6916 = vmatpush.msra.mxu2 %v16024_v19 }
 0xe5d   :  { %7018 = vmatpush.msra.mxu3 %v6997_v10 }
 0xe5e   :  { %6917 = vmatpush.msra.mxu2 %v16025_v17  ;;  %v7043_v17 = vld [vmem:[%s14134_s9 + $0x58] sm:$0xff] }
 0xe5f   :  { %7019 = vmatpush.msra.mxu3 %v6996_v0  ;;  %7056 = vmatpush.msrb.mxu1 %v7043_v17 }
 0xe60   :  { %6918 = vmatpush.msra.mxu2 %v16026_v29 }
 0xe61   :  { %7020 = vmatpush.msra.mxu3 %v6995_v11 }
 0xe62   :  { %6919 = vmatpush.msra.mxu2 %v16027_v30  ;;  %v7042_v30 = vld [vmem:[%s14134_s9 + $0x50] sm:$0xff] }
 0xe63   :  { %7021 = vmatpush.msra.mxu3 %v6994_v40  ;;  %7057 = vmatpush.msrb.mxu1 %v7042_v30 }
 0xe64   :  { %6920 = vmatpush.msra.mxu2 %v16028_v49 }
 0xe65   :  { %7022 = vmatpush.msra.mxu3 %v6993_v51 }
 0xe66   :  { %6921 = vmatpush.msra.mxu2 %v16029_v43 }
 0xe67   :  { %7023 = vmatpush.msra.mxu3 %v6992_v25 }
 0xe68   :  { %6922 = vmatpush.msra.mxu2 %v16030_v9  ;;  %v7041_v9 = vld [vmem:[%s14134_s9 + $0x48] sm:$0xff] }
 0xe69   :  { %7024 = vmatpush.msra.mxu3 %v6991_v60  ;;  %7058 = vmatpush.msrb.mxu1 %v7041_v9 }
 0xe6a   :  { %6923 = vmatpush.msra.mxu2 %v16031_v12 }
 0xe6b   :  { %6924 = vmatmul.f32.vlgmr.msra.gmra.mxu2 %v6648_v42  ;;  %7025 = vmatpush.msra.mxu3 %v6990_v59  ;;  %v7040_v42 = vld [vmem:[%s14134_s9 + $0x40] sm:$0xff] }
 0xe6c   :  { %6968 = vmatpush.msrb.mxu2 %v16032_v1  ;;  %7059 = vmatpush.msrb.mxu1 %v7040_v42 }
 0xe6d   :  { %v6845_v8 = vpop.f32.mrf.mxu1 }
 0xe6e   :  { %6969 = vmatpush.msrb.mxu2 %v16033_v62  ;;  %v6725_v13 = vpop.f32.mrf.mxu2  ;;  %v7039_v62 = vld [vmem:[%s14134_s9 + $0x38] sm:$0xff] }
 0xe6f   :  { %v6726_v27 = vadd.f32 %v6725_v13, %v6706_v54  ;;  %v6785_v3 = vpop.f32.mrf.mxu3  ;;  %7060 = vmatpush.msrb.mxu1 %v7039_v62 }
 0xe70   :  { %6970 = vmatpush.msrb.mxu2 %v16034_v41 }
 0xe71   :  { %v6746_v47 = vadd.f32 %v6745_v46, %v6726_v27 }
 0xe72   :  { %6971 = vmatpush.msrb.mxu2 %v16035_v4  ;;  %v7038_v4 = vld [vmem:[%s14134_s9 + $0x30] sm:$0xff] }
 0xe73   :  { %7061 = vmatpush.msrb.mxu1 %v7038_v4 }
 0xe74   :  { %6972 = vmatpush.msrb.mxu2 %v16036_v2 }
 0xe76   :  { %6973 = vmatpush.msrb.mxu2 %v16037_v22  ;;  %v7037_v22 = vld [vmem:[%s14134_s9 + $0x28] sm:$0xff] }
 0xe77   :  { %7062 = vmatpush.msrb.mxu1 %v7037_v22 }
 0xe78   :  { %6974 = vmatpush.msrb.mxu2 %v16038_v28 }
 0xe7a   :  { %6975 = vmatpush.msrb.mxu2 %v16039_v39 }
 0xe7c   :  { %6976 = vmatpush.msrb.mxu2 %v16040_v31  ;;  %v7036_v31 = vld [vmem:[%s14134_s9 + $0x20] sm:$0xff] }
 0xe7d   :  { %7063 = vmatpush.msrb.mxu1 %v7036_v31 }
 0xe7e   :  { %6977 = vmatpush.msrb.mxu2 %v16041_v35  ;;  %v7035_v35 = vld [vmem:[%s14134_s9 + $0x18] sm:$0xff] }
 0xe7f   :  { %7064 = vmatpush.msrb.mxu1 %v7035_v35 }
 0xe80   :  { %6978 = vmatpush.msrb.mxu2 %v16042_v26 }
 0xe82   :  { %6979 = vmatpush.msrb.mxu2 %v16043_v37 }
 0xe84   :  { %6980 = vmatpush.msrb.mxu2 %v16044_v50  ;;  %v7034_v50 = vld [vmem:[%s14134_s9 + $0x10] sm:$0xff] }
 0xe85   :  { %7065 = vmatpush.msrb.mxu1 %v7034_v50 }
 0xe86   :  { %6981 = vmatpush.msrb.mxu2 %v16045_v48 }
 0xe88   :  { %6982 = vmatpush.msrb.mxu2 %v16046_v61 }
 0xe8a   :  { %6983 = vmatpush.msrb.mxu2 %v16047_v18  ;;  %v7033_v18 = vld [vmem:[%s14134_s9 + $0x8] sm:$0xff] }
 0xe8b   :  { %6984 = vmatmul.f32.vlgmr.msrb.gmra.mxu2 %v6651_v33  ;;  %7066 = vmatpush.msrb.mxu1 %v7033_v18 }
 0xe8d   :  { %7067 = vmatpush.msrb.mxu1 %v7032_v56 }
 0xe8e   :  { %v6765_v24 = vpop.f32.mrf.mxu2 }
 0xe8f   :  { %v6766_v7 = vadd.f32 %v6765_v24, %v6746_v47  ;;  %v6825_v45 = vpop.f32.mrf.mxu3  ;;  %v6905_v1 = vpop.f32.mrf.mxu1 }
 0xe91   :  { %v6786_v20 = vadd.f32 %v6785_v3, %v6766_v7 }
 0xeae   :  { %v6805_v15 = vpop.f32.mrf.mxu2 }
 0xeaf   :  { %v6806_v52 = vadd.f32 %v6805_v15, %v6786_v20  ;;  %v6885_v43 = vpop.f32.mrf.mxu3 }
 0xeb1   :  { %v6826_v23 = vadd.f32 %v6825_v45, %v6806_v52  ;;  %v6965_v37 = vpop.f32.mrf.mxu1 }
 0xeb3   :  { %v6846_v29 = vadd.f32 %v6845_v8, %v6826_v23 }
 0xece   :  { %v6865_v19 = vpop.f32.mrf.mxu2 }
 0xecf   :  { %v6866_v49 = vadd.f32 %v6865_v19, %v6846_v29  ;;  %v6945_v39 = vpop.f32.mrf.mxu3 }
 0xed1   :  { %v6886_v12 = vadd.f32 %v6885_v43, %v6866_v49 }
 0xed3   :  { %v6906_v2 = vadd.f32 %v6905_v1, %v6886_v12 }
 0xeee   :  { %v6925_v41 = vpop.f32.mrf.mxu2 }
 0xeef   :  { %v6926_v28 = vadd.f32 %v6925_v41, %v6906_v2 }
 0xef1   :  { %v6946_v26 = vadd.f32 %v6945_v39, %v6926_v28 }
 0xef3   :  { %v6966_v48 = vadd.f32 %v6965_v37, %v6946_v26 }
 0xf0e   :  { %v6985_v61 = vpop.f32.mrf.mxu2 }
 0xf0f   :  { %v6986_v33 = vadd.f32 %v6985_v61, %v6966_v48 }
 0xf11   :  { %vm6988_vm0 = vcmp.gt.f32.partialorder %v6986_v33, 0.0 }
 0xf12   :  { %7303 = vmatmul.msk.f32.vlgmr.msra.gmra.mxu3 %vm6988_vm0, %v6986_v33 }
 0xf95   :  { %v7027_v58 = vpop.f32.mrf.mxu3 }
 0xf96   :  { %v7028_v57 = vadd.f32 %v7320_v16, %v7027_v58 }
 0xf98   :  { %vm7030_vm15 = vcmp.gt.f32.partialorder %v7028_v57, 0.0 }
 0xf99   :  { %7304 = vmatmul.msk.f32.vlgmr.msrb.gmra.mxu1 %vm7030_vm15, %v7028_v57 }
0x1016   :  { %v7069_v53 = vpop.f32.mrf.mxu1 }
0x1017   :  { %v7070_v38 = vadd.f32 %v7321_v44, %v7069_v53 }
0x1019   :  { %7072 = vst [vmem:[#allocation8] sm:$0x3] %v7070_v38 }
0x101a   :  { %7083 = dma.vmem_to_hbm [thread:$0]  %s7079_s25, 32, %s7081_s3, [#allocation9]  }
0x101b   :  { %7430 = dma.done.wait [#allocation9], 32  }
0x101c   :  { %7431 = vsyncadd [#allocation9], 4294967264 }
0x101d   :  { %7088 = vsyncpa [#allocation9], 1 }
0x101e   :  { %7089 = vsyncmov [#allocation7] }
0x1021   :  { %s7090_s8 = vpop.sfrf %7089 }
0x1022   :  { %p7305_p0 = scmp.ne.s32.totalorder %s7090_s8, 0 }
0x1024   :  { %7094 = shalt.err (%p7305_p0)  }
0x1025   :  { %7096 = vsyncmov [#allocation7 + $0x1] }
0x1028   :  { %s7097_s9 = vpop.sfrf %7096 }
0x1029   :  { %p7306_p1 = scmp.ne.s32.totalorder %s7097_s9, 0 }
0x102b   :  { %7101 = shalt.err (%p7306_p1)  }

</bundles_post_ra>
